<compile_context>
chip_gen: v5e
topology: v5e:2x2
jax: 0.10.0
libtpu: 0.0.40
codegen_flags: <defaults>
</compile_context>

<pallas_src>
import functools

import jax
import jax.numpy as jnp
from jax.experimental import pallas as pl
from jax.experimental.pallas import tpu as pltpu


_VMEM_LIMIT_BYTES = 48 * 1024 * 1024  # < 64 MiB physical on v7x, ample elsewhere


def _round_up(x, m):
    return (x + m - 1) // m * m


# ----------------------------------------------------------------------------
# Pallas kernels
# ----------------------------------------------------------------------------
def _linear_act_kernel(x_ref, w_ref, b_ref, o_ref, *, act):
    # o = act(x @ w + b); bf16 operands, f32 accumulation on the MXU.
    y = jnp.dot(x_ref[...], w_ref[...], preferred_element_type=jnp.float32)
    y = y + b_ref[...]                      # (1, N) broadcasts over rows
    if act == "relu":
        y = jnp.maximum(y, 0.0)
    elif act == "lrelu":
        y = jnp.where(y > 0, y, 0.01 * y)   # LeakyReLU(0.01)
    o_ref[...] = y.astype(o_ref.dtype)


def _fc_dueling_kernel(x_ref, wfc_ref, bfc_ref, wqv_ref, bqv_ref, o_ref):
    # Fused: h = lrelu(x @ Wfc + bfc); qv = h @ [Wq|Wv] + [bq|bv]
    h = jnp.dot(x_ref[...], wfc_ref[...], preferred_element_type=jnp.float32)
    h = h + bfc_ref[...]
    h = jnp.where(h > 0, h, 0.01 * h)       # LeakyReLU(0.01)
    qv = jnp.dot(h.astype(wqv_ref.dtype), wqv_ref[...],
                 preferred_element_type=jnp.float32)
    o_ref[...] = (qv + bqv_ref[...]).astype(o_ref.dtype)


# ----------------------------------------------------------------------------
# Pallas wrappers (M-grid, bf16 operands, padded K)
# ----------------------------------------------------------------------------
def matmul_bias_act(x, w, b, *, act, out_dtype, tm_max=512):
    """x: (M, K), w: (Kp, N) bf16 (Kp >= K, zero-padded), b: (N,) f32."""
    M, K = x.shape
    Kp, N = w.shape
    x = x.astype(jnp.bfloat16)
    if Kp > K:
        x = jnp.pad(x, ((0, 0), (0, Kp - K)))
    tm = min(tm_max, _round_up(M, 16))
    Mp = _round_up(M, tm)
    if Mp > M:
        x = jnp.pad(x, ((0, Mp - M), (0, 0)))

    out = pl.pallas_call(
        functools.partial(_linear_act_kernel, act=act),
        out_shape=jax.ShapeDtypeStruct((Mp, N), out_dtype),
        grid_spec=pltpu.PrefetchScalarGridSpec(
            num_scalar_prefetch=0,
            grid=(Mp // tm,),
            in_specs=[
                pl.BlockSpec((tm, Kp), lambda i: (i, 0)),   # row tile of x
                pl.BlockSpec((Kp, N), lambda i: (0, 0)),    # weight (resident)
                pl.BlockSpec((1, N), lambda i: (0, 0)),     # bias
            ],
            out_specs=pl.BlockSpec((tm, N), lambda i: (i, 0)),
        ),
        compiler_params=pltpu.CompilerParams(
            dimension_semantics=("parallel",),
            vmem_limit_bytes=_VMEM_LIMIT_BYTES),
    )(x, w, b.reshape(1, N).astype(jnp.float32))
    return out[:M]


def fc_dueling_head(x, wfc, bfc, wqv, bqv, *, tm_max=512):
    """Fused fc(3136->512)+LeakyReLU and dueling head/tail in one pallas_call.

    x: (B, 3136) bf16-castable, wfc: (3200, 512) bf16, wqv: (512, A+1) bf16.
    Returns Q-values (B, A) f32 = q + v - q.mean()  (global mean, as in torch).
    """
    M, K = x.shape
    Kp, H = wfc.shape
    Nqv = wqv.shape[1]
    A = Nqv - 1

    x = x.astype(jnp.bfloat16)
    if Kp > K:
        x = jnp.pad(x, ((0, 0), (0, Kp - K)))
    tm = min(tm_max, _round_up(M, 16))
    Mp = _round_up(M, tm)
    if Mp > M:
        x = jnp.pad(x, ((0, Mp - M), (0, 0)))

    qv = pl.pallas_call(
        _fc_dueling_kernel,
        out_shape=jax.ShapeDtypeStruct((Mp, Nqv), jnp.float32),
        grid_spec=pltpu.PrefetchScalarGridSpec(
            num_scalar_prefetch=0,
            grid=(Mp // tm,),
            in_specs=[
                pl.BlockSpec((tm, Kp), lambda i: (i, 0)),   # feature row tile
                pl.BlockSpec((Kp, H), lambda i: (0, 0)),    # fc weight
                pl.BlockSpec((1, H), lambda i: (0, 0)),     # fc bias
                pl.BlockSpec((H, Nqv), lambda i: (0, 0)),   # fused head|tail W
                pl.BlockSpec((1, Nqv), lambda i: (0, 0)),   # fused head|tail b
            ],
            out_specs=pl.BlockSpec((tm, Nqv), lambda i: (i, 0)),
        ),
        compiler_params=pltpu.CompilerParams(
            dimension_semantics=("parallel",),
            vmem_limit_bytes=_VMEM_LIMIT_BYTES),
    )(x, wfc, bfc.reshape(1, H).astype(jnp.float32),
      wqv, bqv.reshape(1, Nqv).astype(jnp.float32))

    qv = qv[:M]
    q, v = qv[:, :A], qv[:, A:]
    # Reference module: return q + v - q.mean()  (global scalar mean over B*A).
    return q + v - jnp.mean(q)


# ----------------------------------------------------------------------------
# Conv via channel-last im2col + Pallas matmul kernel
# ----------------------------------------------------------------------------
def im2col_nhwc(x, kh, kw, stride):
    """x: (B, H, W, C) -> patches (B*OH*OW, kh*kw*C), column order (kh, kw, C)
    with C fastest — matches the repacked weight layout from prepare_params."""
    B, H, W, C = x.shape
    oh = (H - kh) // stride + 1
    ow = (W - kw) // stride + 1
    cols = []
    for i in range(kh):
        for j in range(kw):
            cols.append(x[:, i:i + stride * oh:stride,
                          j:j + stride * ow:stride, :])
    p = jnp.stack(cols, axis=3)                       # (B, oh, ow, kh*kw, C)
    return p.reshape(B * oh * ow, kh * kw * C), oh, ow


def conv2d_relu_nhwc(x, w, b, *, stride, kh, kw):
    """PyTorch-semantics Conv2d (valid padding) + ReLU, NHWC in / NHWC out."""
    B = x.shape[0]
    oc = w.shape[1]
    patches, oh, ow = im2col_nhwc(x, kh, kw, stride)
    y = matmul_bias_act(patches, w, b, act="relu", out_dtype=jnp.bfloat16)
    return y.reshape(B, oh, ow, oc)                   # stays channel-last


# ----------------------------------------------------------------------------
# Parameters: PyTorch-layout init + one-time kernel-friendly repack
# ----------------------------------------------------------------------------
def _uniform(key, shape, bound):
    return jax.random.uniform(key, shape, jnp.float32, -bound, bound)


def init_params(key, channels, num_actions):
    """PyTorch-default-style uniform fan_in init, PyTorch tensor layouts."""
    ks = jax.random.split(key, 12)

    def conv(kw_, kb_, oc, ic, k):
        bound = 1.0 / float(ic * k * k) ** 0.5
        return _uniform(kw_, (oc, ic, k, k), bound), _uniform(kb_, (oc,), bound)

    def lin(kw_, kb_, f_in, f_out):
        bound = 1.0 / float(f_in) ** 0.5
        return _uniform(kw_, (f_in, f_out), bound), _uniform(kb_, (f_out,), bound)

    p = {}
    p["conv1_w"], p["conv1_b"] = conv(ks[0], ks[1], 32, channels, 8)
    p["conv2_w"], p["conv2_b"] = conv(ks[2], ks[3], 64, 32, 4)
    p["conv3_w"], p["conv3_b"] = conv(ks[4], ks[5], 64, 64, 3)
    p["fc_w"], p["fc_b"] = lin(ks[6], ks[7], 3136, 512)
    p["head_w"], p["head_b"] = lin(ks[8], ks[9], 512, num_actions)
    p["tail_w"], p["tail_b"] = lin(ks[10], ks[11], 512, 1)
    return p


def _pad_rows_to(w, mult=128):
    k = w.shape[0]
    kp = _round_up(k, mult)
    if kp > k:
        w = jnp.pad(w, ((0, kp - k), (0, 0)))
    return w


def prepare_params(p):
    """One-time repack for the kernels:
      - conv weights (OC, C, kh, kw) -> (kh*kw*C, OC), K padded to x128, bf16
      - fc weight rows re-permuted from NCHW-flatten to NHWC-flatten order
      - head/tail fused into a single (512, A+1) weight / (A+1,) bias
      - all matmul weights bf16, biases f32."""
    out = {}

    def conv_w(w):
        oc, c, kh, kw = w.shape
        w2 = w.transpose(2, 3, 1, 0).reshape(kh * kw * c, oc)  # (kh,kw,C) order
        return _pad_rows_to(w2).astype(jnp.bfloat16)

    out["conv1_w"] = conv_w(p["conv1_w"]); out["conv1_b"] = p["conv1_b"]
    out["conv2_w"] = conv_w(p["conv2_w"]); out["conv2_b"] = p["conv2_b"]
    out["conv3_w"] = conv_w(p["conv3_w"]); out["conv3_b"] = p["conv3_b"]

    # fc rows are indexed c*49 + h*7 + w (torch NCHW .view(B,-1)); re-permute
    # to h*448 + w*64 + c so the NHWC conv3 output can be flattened directly.
    fcw = p["fc_w"].reshape(64, 7, 7, 512).transpose(1, 2, 0, 3).reshape(3136, 512)
    out["fc_w"] = _pad_rows_to(fcw).astype(jnp.bfloat16)   # (3200, 512)
    out["fc_b"] = p["fc_b"]

    out["qv_w"] = jnp.concatenate([p["head_w"], p["tail_w"]],
                                  axis=1).astype(jnp.bfloat16)   # (512, A+1)
    out["qv_b"] = jnp.concatenate([p["head_b"], p["tail_b"]], axis=0)
    return out


# ----------------------------------------------------------------------------
# Forward pass
# ----------------------------------------------------------------------------
@jax.jit
def dueling_dqn_forward(prep, x):
    # NCHW (B, C, 84, 84) -> NHWC once; activations stay channel-last after.
    x = jnp.transpose(x, (0, 2, 3, 1)).astype(jnp.bfloat16)
    x = conv2d_relu_nhwc(x, prep["conv1_w"], prep["conv1_b"], stride=4, kh=8, kw=8)
    x = conv2d_relu_nhwc(x, prep["conv2_w"], prep["conv2_b"], stride=2, kh=4, kw=4)
    x = conv2d_relu_nhwc(x, prep["conv3_w"], prep["conv3_b"], stride=1, kh=3, kw=3)
    B = x.shape[0]
    flat = x.reshape(B, -1)   # NHWC flatten; fc_w rows were re-permuted to match
    return fc_dueling_head(flat, prep["fc_w"], prep["fc_b"],
                           prep["qv_w"], prep["qv_b"])          # (B, A) f32


if __name__ == "__main__":
    key = jax.random.PRNGKey(0)
    k_params, k_x = jax.random.split(key)

    batch, channels, num_actions = 2, 4, 6
    # 84x84 spatial is required so the flattened conv3 output is 3136 features.
    x = jax.random.normal(k_x, (batch, channels, 84, 84), dtype=jnp.float32)

    params = init_params(k_params, channels, num_actions)
    prep = prepare_params(params)

    out = dueling_dqn_forward(prep, x)
    out = jax.block_until_ready(out)
    assert out.shape == (batch, num_actions), out.shape
    assert bool(jnp.all(jnp.isfinite(out)))
    print("KERNEL_OK")
</pallas_src>

<mosaic_0001>
module attributes {stable_mosaic.version = 11 : i64} {
  func.func @_linear_act_kernel(%arg0: i32, %arg1: memref<512x256xbf16, #tpu.memory_space<vmem>>, %arg2: memref<256x32xbf16, #tpu.memory_space<vmem>>, %arg3: memref<1x32xf32, #tpu.memory_space<vmem>>, %arg4: memref<512x32xbf16, #tpu.memory_space<vmem>>) attributes {dimension_semantics = [#tpu.dimension_semantics<parallel>], iteration_bounds = array<i64: 2>, scalar_prefetch = 0 : i64, scratch_operands = 0 : i64, tpu.core_type = #tpu.core_type<tc>, window_params = [{transform_indices = @transform_0, window_bounds = array<i64: 512, 256>}, {pipeline_mode = #tpu.pipeline_mode<synchronous>, transform_indices = @transform_1, window_bounds = array<i64: 256, 32>}, {pipeline_mode = #tpu.pipeline_mode<synchronous>, transform_indices = @transform_2, window_bounds = array<i64: 1, 32>}, {transform_indices = @transform_3, window_bounds = array<i64: 512, 32>}]} {
    %c0 = arith.constant 0 : index
    %c0_0 = arith.constant 0 : index
    %0 = vector.load %arg1[%c0, %c0_0] : memref<512x256xbf16, #tpu.memory_space<vmem>>, vector<512x256xbf16>
    %c0_1 = arith.constant 0 : index
    %c0_2 = arith.constant 0 : index
    %1 = vector.load %arg2[%c0_1, %c0_2] : memref<256x32xbf16, #tpu.memory_space<vmem>>, vector<256x32xbf16>
    %cst = arith.constant dense<0.000000e+00> : vector<512x32xf32>
    %2 = tpu.matmul %0, %1, %cst {dimension_numbers = #tpu.dot_dimension_numbers<[1], [0], [0], [1], [0, 0, 1, 1], [], []>} : vector<512x256xbf16>, vector<256x32xbf16>, vector<512x32xf32> -> vector<512x32xf32>
    %c0_3 = arith.constant 0 : index
    %c0_4 = arith.constant 0 : index
    %3 = vector.load %arg3[%c0_3, %c0_4] : memref<1x32xf32, #tpu.memory_space<vmem>>, vector<1x32xf32>
    %4 = vector.broadcast %3 : vector<1x32xf32> to vector<512x32xf32>
    %5 = arith.addf %2, %4 : vector<512x32xf32>
    %cst_5 = arith.constant 0.000000e+00 : f32
    %6 = vector.broadcast %cst_5 : f32 to vector<512x32xf32>
    %7 = arith.maximumf %5, %6 : vector<512x32xf32>
    %8 = arith.truncf %7 : vector<512x32xf32> to vector<512x32xbf16>
    %c0_6 = arith.constant 0 : index
    %c0_7 = arith.constant 0 : index
    %9 = vector.load %arg4[%c0_6, %c0_7] : memref<512x32xbf16, #tpu.memory_space<vmem>>, vector<512x32xbf16>
    tpu.vector_store %arg4[%c0_6, %c0_7], %8 {strides = array<i32>} : memref<512x32xbf16, #tpu.memory_space<vmem>>, vector<512x32xbf16>,
    return
  }
  func.func @transform_0(%arg0: i32) -> (i32, i32) {
    %c0_i32 = arith.constant 0 : i32
    %c0_i32_0 = arith.constant 0 : i32
    return %arg0, %c0_i32 : i32, i32
  }
  func.func @transform_1(%arg0: i32) -> (i32, i32) {
    %c0_i32 = arith.constant 0 : i32
    %c0_i32_0 = arith.constant 0 : i32
    %c0_i32_1 = arith.constant 0 : i32
    return %c0_i32, %c0_i32_0 : i32, i32
  }
  func.func @transform_2(%arg0: i32) -> (i32, i32) {
    %c0_i32 = arith.constant 0 : i32
    %c0_i32_0 = arith.constant 0 : i32
    %c0_i32_1 = arith.constant 0 : i32
    return %c0_i32, %c0_i32_0 : i32, i32
  }
  func.func @transform_3(%arg0: i32) -> (i32, i32) {
    %c0_i32 = arith.constant 0 : i32
    %c0_i32_0 = arith.constant 0 : i32
    return %arg0, %c0_i32 : i32, i32
  }
}

module attributes {stable_mosaic.version = 11 : i64} {
  func.func @_linear_act_kernel(%arg0: i32, %arg1: memref<176x512xbf16, #tpu.memory_space<vmem>>, %arg2: memref<512x64xbf16, #tpu.memory_space<vmem>>, %arg3: memref<1x64xf32, #tpu.memory_space<vmem>>, %arg4: memref<176x64xbf16, #tpu.memory_space<vmem>>) attributes {dimension_semantics = [#tpu.dimension_semantics<parallel>], iteration_bounds = array<i64: 1>, scalar_prefetch = 0 : i64, scratch_operands = 0 : i64, tpu.core_type = #tpu.core_type<tc>, window_params = [{transform_indices = @transform_0, window_bounds = array<i64: 176, 512>}, {pipeline_mode = #tpu.pipeline_mode<synchronous>, transform_indices = @transform_1, window_bounds = array<i64: 512, 64>}, {pipeline_mode = #tpu.pipeline_mode<synchronous>, transform_indices = @transform_2, window_bounds = array<i64: 1, 64>}, {transform_indices = @transform_3, window_bounds = array<i64: 176, 64>}]} {
    %c0 = arith.constant 0 : index
    %c0_0 = arith.constant 0 : index
    %0 = vector.load %arg1[%c0, %c0_0] : memref<176x512xbf16, #tpu.memory_space<vmem>>, vector<176x512xbf16>
    %c0_1 = arith.constant 0 : index
    %c0_2 = arith.constant 0 : index
    %1 = vector.load %arg2[%c0_1, %c0_2] : memref<512x64xbf16, #tpu.memory_space<vmem>>, vector<512x64xbf16>
    %cst = arith.constant dense<0.000000e+00> : vector<176x64xf32>
    %2 = tpu.matmul %0, %1, %cst {dimension_numbers = #tpu.dot_dimension_numbers<[1], [0], [0], [1], [0, 0, 1, 1], [], []>} : vector<176x512xbf16>, vector<512x64xbf16>, vector<176x64xf32> -> vector<176x64xf32>
    %c0_3 = arith.constant 0 : index
    %c0_4 = arith.constant 0 : index
    %3 = vector.load %arg3[%c0_3, %c0_4] : memref<1x64xf32, #tpu.memory_space<vmem>>, vector<1x64xf32>
    %4 = vector.broadcast %3 : vector<1x64xf32> to vector<176x64xf32>
    %5 = arith.addf %2, %4 : vector<176x64xf32>
    %cst_5 = arith.constant 0.000000e+00 : f32
    %6 = vector.broadcast %cst_5 : f32 to vector<176x64xf32>
    %7 = arith.maximumf %5, %6 : vector<176x64xf32>
    %8 = arith.truncf %7 : vector<176x64xf32> to vector<176x64xbf16>
    %c0_6 = arith.constant 0 : index
    %c0_7 = arith.constant 0 : index
    %9 = vector.load %arg4[%c0_6, %c0_7] : memref<176x64xbf16, #tpu.memory_space<vmem>>, vector<176x64xbf16>
    tpu.vector_store %arg4[%c0_6, %c0_7], %8 {strides = array<i32>} : memref<176x64xbf16, #tpu.memory_space<vmem>>, vector<176x64xbf16>,
    return
  }
  func.func @transform_0(%arg0: i32) -> (i32, i32) {
    %c0_i32 = arith.constant 0 : i32
    %c0_i32_0 = arith.constant 0 : i32
    return %arg0, %c0_i32 : i32, i32
  }
  func.func @transform_1(%arg0: i32) -> (i32, i32) {
    %c0_i32 = arith.constant 0 : i32
    %c0_i32_0 = arith.constant 0 : i32
    %c0_i32_1 = arith.constant 0 : i32
    return %c0_i32, %c0_i32_0 : i32, i32
  }
  func.func @transform_2(%arg0: i32) -> (i32, i32) {
    %c0_i32 = arith.constant 0 : i32
    %c0_i32_0 = arith.constant 0 : i32
    %c0_i32_1 = arith.constant 0 : i32
    return %c0_i32, %c0_i32_0 : i32, i32
  }
  func.func @transform_3(%arg0: i32) -> (i32, i32) {
    %c0_i32 = arith.constant 0 : i32
    %c0_i32_0 = arith.constant 0 : i32
    return %arg0, %c0_i32 : i32, i32
  }
}

module attributes {stable_mosaic.version = 11 : i64} {
  func.func @_linear_act_kernel(%arg0: i32, %arg1: memref<112x640xbf16, #tpu.memory_space<vmem>>, %arg2: memref<640x64xbf16, #tpu.memory_space<vmem>>, %arg3: memref<1x64xf32, #tpu.memory_space<vmem>>, %arg4: memref<112x64xbf16, #tpu.memory_space<vmem>>) attributes {dimension_semantics = [#tpu.dimension_semantics<parallel>], iteration_bounds = array<i64: 1>, scalar_prefetch = 0 : i64, scratch_operands = 0 : i64, tpu.core_type = #tpu.core_type<tc>, window_params = [{transform_indices = @transform_0, window_bounds = array<i64: 112, 640>}, {pipeline_mode = #tpu.pipeline_mode<synchronous>, transform_indices = @transform_1, window_bounds = array<i64: 640, 64>}, {pipeline_mode = #tpu.pipeline_mode<synchronous>, transform_indices = @transform_2, window_bounds = array<i64: 1, 64>}, {transform_indices = @transform_3, window_bounds = array<i64: 112, 64>}]} {
    %c0 = arith.constant 0 : index
    %c0_0 = arith.constant 0 : index
    %0 = vector.load %arg1[%c0, %c0_0] : memref<112x640xbf16, #tpu.memory_space<vmem>>, vector<112x640xbf16>
    %c0_1 = arith.constant 0 : index
    %c0_2 = arith.constant 0 : index
    %1 = vector.load %arg2[%c0_1, %c0_2] : memref<640x64xbf16, #tpu.memory_space<vmem>>, vector<640x64xbf16>
    %cst = arith.constant dense<0.000000e+00> : vector<112x64xf32>
    %2 = tpu.matmul %0, %1, %cst {dimension_numbers = #tpu.dot_dimension_numbers<[1], [0], [0], [1], [0, 0, 1, 1], [], []>} : vector<112x640xbf16>, vector<640x64xbf16>, vector<112x64xf32> -> vector<112x64xf32>
    %c0_3 = arith.constant 0 : index
    %c0_4 = arith.constant 0 : index
    %3 = vector.load %arg3[%c0_3, %c0_4] : memref<1x64xf32, #tpu.memory_space<vmem>>, vector<1x64xf32>
    %4 = vector.broadcast %3 : vector<1x64xf32> to vector<112x64xf32>
    %5 = arith.addf %2, %4 : vector<112x64xf32>
    %cst_5 = arith.constant 0.000000e+00 : f32
    %6 = vector.broadcast %cst_5 : f32 to vector<112x64xf32>
    %7 = arith.maximumf %5, %6 : vector<112x64xf32>
    %8 = arith.truncf %7 : vector<112x64xf32> to vector<112x64xbf16>
    %c0_6 = arith.constant 0 : index
    %c0_7 = arith.constant 0 : index
    %9 = vector.load %arg4[%c0_6, %c0_7] : memref<112x64xbf16, #tpu.memory_space<vmem>>, vector<112x64xbf16>
    tpu.vector_store %arg4[%c0_6, %c0_7], %8 {strides = array<i32>} : memref<112x64xbf16, #tpu.memory_space<vmem>>, vector<112x64xbf16>,
    return
  }
  func.func @transform_0(%arg0: i32) -> (i32, i32) {
    %c0_i32 = arith.constant 0 : i32
    %c0_i32_0 = arith.constant 0 : i32
    return %arg0, %c0_i32 : i32, i32
  }
  func.func @transform_1(%arg0: i32) -> (i32, i32) {
    %c0_i32 = arith.constant 0 : i32
    %c0_i32_0 = arith.constant 0 : i32
    %c0_i32_1 = arith.constant 0 : i32
    return %c0_i32, %c0_i32_0 : i32, i32
  }
  func.func @transform_2(%arg0: i32) -> (i32, i32) {
    %c0_i32 = arith.constant 0 : i32
    %c0_i32_0 = arith.constant 0 : i32
    %c0_i32_1 = arith.constant 0 : i32
    return %c0_i32, %c0_i32_0 : i32, i32
  }
  func.func @transform_3(%arg0: i32) -> (i32, i32) {
    %c0_i32 = arith.constant 0 : i32
    %c0_i32_0 = arith.constant 0 : i32
    return %arg0, %c0_i32 : i32, i32
  }
}

module attributes {stable_mosaic.version = 11 : i64} {
  func.func @_fc_dueling_kernel(%arg0: i32, %arg1: memref<16x3200xbf16, #tpu.memory_space<vmem>>, %arg2: memref<3200x512xbf16, #tpu.memory_space<vmem>>, %arg3: memref<1x512xf32, #tpu.memory_space<vmem>>, %arg4: memref<512x7xbf16, #tpu.memory_space<vmem>>, %arg5: memref<1x7xf32, #tpu.memory_space<vmem>>, %arg6: memref<16x7xf32, #tpu.memory_space<vmem>>) attributes {dimension_semantics = [#tpu.dimension_semantics<parallel>], iteration_bounds = array<i64: 1>, scalar_prefetch = 0 : i64, scratch_operands = 0 : i64, tpu.core_type = #tpu.core_type<tc>, window_params = [{transform_indices = @transform_0, window_bounds = array<i64: 16, 3200>}, {pipeline_mode = #tpu.pipeline_mode<synchronous>, transform_indices = @transform_1, window_bounds = array<i64: 3200, 512>}, {pipeline_mode = #tpu.pipeline_mode<synchronous>, transform_indices = @transform_2, window_bounds = array<i64: 1, 512>}, {pipeline_mode = #tpu.pipeline_mode<synchronous>, transform_indices = @transform_3, window_bounds = array<i64: 512, 7>}, {pipeline_mode = #tpu.pipeline_mode<synchronous>, transform_indices = @transform_4, window_bounds = array<i64: 1, 7>}, {transform_indices = @transform_5, window_bounds = array<i64: 16, 7>}]} {
    %c0 = arith.constant 0 : index
    %c0_0 = arith.constant 0 : index
    %0 = vector.load %arg1[%c0, %c0_0] : memref<16x3200xbf16, #tpu.memory_space<vmem>>, vector<16x3200xbf16>
    %c0_1 = arith.constant 0 : index
    %c0_2 = arith.constant 0 : index
    %1 = vector.load %arg2[%c0_1, %c0_2] : memref<3200x512xbf16, #tpu.memory_space<vmem>>, vector<3200x512xbf16>
    %cst = arith.constant dense<0.000000e+00> : vector<16x512xf32>
    %2 = tpu.matmul %0, %1, %cst {dimension_numbers = #tpu.dot_dimension_numbers<[1], [0], [0], [1], [0, 0, 1, 1], [], []>} : vector<16x3200xbf16>, vector<3200x512xbf16>, vector<16x512xf32> -> vector<16x512xf32>
    %c0_3 = arith.constant 0 : index
    %c0_4 = arith.constant 0 : index
    %3 = vector.load %arg3[%c0_3, %c0_4] : memref<1x512xf32, #tpu.memory_space<vmem>>, vector<1x512xf32>
    %4 = vector.broadcast %3 : vector<1x512xf32> to vector<16x512xf32>
    %5 = arith.addf %2, %4 : vector<16x512xf32>
    %cst_5 = arith.constant 0.000000e+00 : f32
    %6 = vector.broadcast %cst_5 : f32 to vector<16x512xf32>
    %7 = arith.cmpf ogt, %5, %6 : vector<16x512xf32>
    %cst_6 = arith.constant 0.00999999977 : f32
    %8 = vector.broadcast %cst_6 : f32 to vector<16x512xf32>
    %9 = arith.mulf %8, %5 : vector<16x512xf32>
    %10 = arith.select %7, %5, %9 : vector<16x512xi1>, vector<16x512xf32>
    %11 = arith.truncf %10 : vector<16x512xf32> to vector<16x512xbf16>
    %c0_7 = arith.constant 0 : index
    %c0_8 = arith.constant 0 : index
    %12 = vector.load %arg4[%c0_7, %c0_8] : memref<512x7xbf16, #tpu.memory_space<vmem>>, vector<512x7xbf16>
    %cst_9 = arith.constant dense<0.000000e+00> : vector<16x7xf32>
    %13 = tpu.matmul %11, %12, %cst_9 {dimension_numbers = #tpu.dot_dimension_numbers<[1], [0], [0], [1], [0, 0, 1, 1], [], []>} : vector<16x512xbf16>, vector<512x7xbf16>, vector<16x7xf32> -> vector<16x7xf32>
    %c0_10 = arith.constant 0 : index
    %c0_11 = arith.constant 0 : index
    %14 = vector.load %arg5[%c0_10, %c0_11] : memref<1x7xf32, #tpu.memory_space<vmem>>, vector<1x7xf32>
    %15 = vector.broadcast %14 : vector<1x7xf32> to vector<16x7xf32>
    %16 = arith.addf %13, %15 : vector<16x7xf32>
    %c0_12 = arith.constant 0 : index
    %c0_13 = arith.constant 0 : index
    %17 = vector.load %arg6[%c0_12, %c0_13] : memref<16x7xf32, #tpu.memory_space<vmem>>, vector<16x7xf32>
    tpu.vector_store %arg6[%c0_12, %c0_13], %16 {strides = array<i32>} : memref<16x7xf32, #tpu.memory_space<vmem>>, vector<16x7xf32>,
    return
  }
  func.func @transform_0(%arg0: i32) -> (i32, i32) {
    %c0_i32 = arith.constant 0 : i32
    %c0_i32_0 = arith.constant 0 : i32
    return %arg0, %c0_i32 : i32, i32
  }
  func.func @transform_1(%arg0: i32) -> (i32, i32) {
    %c0_i32 = arith.constant 0 : i32
    %c0_i32_0 = arith.constant 0 : i32
    %c0_i32_1 = arith.constant 0 : i32
    return %c0_i32, %c0_i32_0 : i32, i32
  }
  func.func @transform_2(%arg0: i32) -> (i32, i32) {
    %c0_i32 = arith.constant 0 : i32
    %c0_i32_0 = arith.constant 0 : i32
    %c0_i32_1 = arith.constant 0 : i32
    return %c0_i32, %c0_i32_0 : i32, i32
  }
  func.func @transform_3(%arg0: i32) -> (i32, i32) {
    %c0_i32 = arith.constant 0 : i32
    %c0_i32_0 = arith.constant 0 : i32
    %c0_i32_1 = arith.constant 0 : i32
    return %c0_i32, %c0_i32_0 : i32, i32
  }
  func.func @transform_4(%arg0: i32) -> (i32, i32) {
    %c0_i32 = arith.constant 0 : i32
    %c0_i32_0 = arith.constant 0 : i32
    %c0_i32_1 = arith.constant 0 : i32
    return %c0_i32, %c0_i32_0 : i32, i32
  }
  func.func @transform_5(%arg0: i32) -> (i32, i32) {
    %c0_i32 = arith.constant 0 : i32
    %c0_i32_0 = arith.constant 0 : i32
    return %arg0, %c0_i32 : i32, i32
  }
}

</mosaic_0001>

<bundles_post_ra>
// kernel: dueling_dqn_forward.4
= control target key start
LH: loop header
LB: loop body
LE: loop exit
PB: predicated region body
PF: predicated region fallthrough
CT: control target
= control target key end

     0   :  { %s1747_s12 = smov 0   ;;  %s2139_s0 = inlined_call_operand.vmem [shape: bf16[1024,256], index: 0, kind: input, shape index: {}]   ;;  %s2140_s1 = inlined_call_operand.vmem [shape: bf16[256,32], index: 1, kind: input, shape index: {}]   ;;  %s2141_s2 = inlined_call_operand.vmem [shape: f32[1,32], index: 2, kind: input, shape index: {}]   ;;  %s2142_s3 = inlined_call_operand.vmem [shape: bf16[1024,32], index: 3, kind: output, shape index: {}]  }
   0x1 LB: > { %s1280_s13 = sadd.s32 4294967295, %s1725_s12   ;;  %p1284_p0 = scmp.ge.s32.totalorder %s1725_s12, 1  ;;  %s1725_s12 = sphi %s1747_s12, %s13_s12  }
   0x2   : > { %p139_p1 = scmp.lt.s32.totalorder %s1725_s12, 3 }
   0x4   : > { %p140_p2 = pnand %p1284_p0, %p139_p1 }
   0x5   : > { %s1285_s26 = sshll.u32 (!%p140_p2), %s1280_s13, 6 }
   0x6   : > { %143 = sbr.rel (%p140_p2) target bundleno = 432 (0x1b0), region = 32  ;;  %p165_p3 = scmp.lt.s32.totalorder (!%p140_p2), %s1285_s26, 127 }
   0xb   : > { %v1684_v0 = vld [vmem:[%s2140_s1 + $0x38] sm:$0xff]  ;;  %v1683_v2 = vld [vmem:[%s2140_s1 + $0x30] sm:$0xff]  ;;  %v1682_v4 = vld [vmem:[%s2140_s1 + $0x28] sm:$0xff]  ;;  %s2144_s26 = smov (!%p165_p3, %s1285_s26), 127  ;;  %vm1159_vm0 = vcmask 257024  }
   0xc   : > { %v1692_v1 = vld [vmem:[%s2140_s1 + $0x78] sm:$0xff]  ;;  %693 = vmatpush.bf16.msra.mxu0 %v1684_v0  ;;  %1693 = vmatpush.bf16.msra.mxu2 %v1684_v0  ;;  %v1691_v3 = vld [vmem:[%s2140_s1 + $0x70] sm:$0xff]  ;;  %v1690_v5 = vld [vmem:[%s2140_s1 + $0x68] sm:$0xff]  ;;  %s1612_s13 = sshll.u32 %s2144_s26, 3  ;;  %s1289_s28 = sshll.u32 %s2144_s26, 2 }
   0xd   : > { %862 = vmatpush.bf16.msra.mxu1 %v1692_v1  ;;  %1701 = vmatpush.bf16.msra.mxu3 %v1692_v1  ;;  %v1681_v6 = vld [vmem:[%s2140_s1 + $0x20] sm:$0xff]  ;;  %v1680_v8 = vld [vmem:[%s2140_s1 + $0x18] sm:$0xff]  ;;  %v1679_v10 = vld [vmem:[%s2140_s1 + $0x10] sm:$0xff]  ;;  %s1800_s18 = scalar_lea.vmem %s2139_s0, %s1612_s13  ;;  %s1893_s4 = scalar_lea.vmem %s2142_s3, %s1289_s28 }
   0xe   : > { %v1689_v7 = vld [vmem:[%s2140_s1 + $0x60] sm:$0xff]  ;;  %v1688_v9 = vld [vmem:[%s2140_s1 + $0x58] sm:$0xff]  ;;  %v1687_v11 = vld [vmem:[%s2140_s1 + $0x50] sm:$0xff] }
   0xf   : > { %v1678_v12 = vld [vmem:[%s2140_s1 + $0x8] sm:$0xff]  ;;  %v1677_v14 = vld [vmem:[%s2140_s1] sm:$0xff]  ;;  %v1300_v28 = vld [vmem:[%s1800_s18 + $0x10] sm:$0xf] }
  0x10   : > { %694 = vmatpush.bf16.msra.mxu0 %v1683_v2  ;;  %1694 = vmatpush.bf16.msra.mxu2 %v1683_v2  ;;  %v1686_v13 = vld [vmem:[%s2140_s1 + $0x48] sm:$0xff]  ;;  %v1685_v15 = vld [vmem:[%s2140_s1 + $0x40] sm:$0xff]  ;;  %v1616_v29 = vld [vmem:[%s1800_s18 + $0x14] sm:$0xf0] }
  0x11   : > { %863 = vmatpush.bf16.msra.mxu1 %v1691_v3  ;;  %1702 = vmatpush.bf16.msra.mxu3 %v1691_v3  ;;  %v1292_v16 = vld [vmem:[%s1800_s18] sm:$0xf]  ;;  %v1614_v17 = vld [vmem:[%s1800_s18 + $0x4] sm:$0xf0]  ;;  %v1613_v20 = vld [vmem:[%s1800_s18 + $0x4] sm:$0xf]  ;;  %v1301_v36 = vor.u32 %v1616_v29, %v1300_v28 }
  0x12   : > { %v1420_v18 = vld [vmem:[%s1800_s18 + $0x100] sm:$0xf]  ;;  %v1646_v19 = vld [vmem:[%s1800_s18 + $0x104] sm:$0xf0]  ;;  %v1294_v21 = vld [vmem:[%s1800_s18 + $0x8] sm:$0xf0]  ;;  %v1293_v24 = vor.u32 %v1614_v17, %v1292_v16 }
  0x13   : > { %v1645_v22 = vld [vmem:[%s1800_s18 + $0x104] sm:$0xf]  ;;  %v1422_v23 = vld [vmem:[%s1800_s18 + $0x108] sm:$0xf0]  ;;  %v1421_v25 = vor.u32 %v1646_v19, %v1420_v18  ;;  %v1297_v26 = vor.u32 %v1613_v20, %v1294_v21  ;;  %v1428_v30 = vld [vmem:[%s1800_s18 + $0x110] sm:$0xf] }
  0x14   : > { %695 = vmatpush.bf16.msra.mxu0 %v1682_v4  ;;  %1695 = vmatpush.bf16.msra.mxu2 %v1682_v4  ;;  %v1425_v27 = vor.u32 %v1645_v22, %v1422_v23  ;;  %v1648_v31 = vld [vmem:[%s1800_s18 + $0x114] sm:$0xf0]  ;;  %v1615_v32 = vld [vmem:[%s1800_s18 + $0x14] sm:$0xf]  ;;  %v1302_v33 = vld [vmem:[%s1800_s18 + $0x18] sm:$0xf0] }
  0x15   : > { %864 = vmatpush.bf16.msra.mxu1 %v1690_v5  ;;  %1703 = vmatpush.bf16.msra.mxu3 %v1690_v5  ;;  %v1647_v34 = vld [vmem:[%s1800_s18 + $0x114] sm:$0xf]  ;;  %v1430_v35 = vld [vmem:[%s1800_s18 + $0x118] sm:$0xf0]  ;;  %v1429_v37 = vor.u32 %v1648_v31, %v1428_v30  ;;  %v1305_v38 = vor.u32 %v1615_v32, %v1302_v33  ;;  %v1308_v40 = vld [vmem:[%s1800_s18 + $0x20] sm:$0xf] }
  0x16   : > { %v1433_v39 = vor.u32 %v1647_v34, %v1430_v35  ;;  %v1618_v41 = vld [vmem:[%s1800_s18 + $0x24] sm:$0xf0]  ;;  %v1436_v42 = vld [vmem:[%s1800_s18 + $0x120] sm:$0xf]  ;;  %v1617_v44 = vld [vmem:[%s1800_s18 + $0x24] sm:$0xf] }
  0x17   : > { %v1650_v43 = vld [vmem:[%s1800_s18 + $0x124] sm:$0xf0]  ;;  %v1310_v45 = vld [vmem:[%s1800_s18 + $0x28] sm:$0xf0]  ;;  %v1649_v46 = vld [vmem:[%s1800_s18 + $0x124] sm:$0xf]  ;;  %v1309_v48 = vor.u32 %v1618_v41, %v1308_v40 }
  0x18   : > { %696 = vmatpush.bf16.msra.mxu0 %v1681_v6  ;;  %1696 = vmatpush.bf16.msra.mxu2 %v1681_v6  ;;  %v1438_v47 = vld [vmem:[%s1800_s18 + $0x128] sm:$0xf0]  ;;  %v1437_v49 = vor.u32 %v1650_v43, %v1436_v42  ;;  %v1313_v50 = vor.u32 %v1617_v44, %v1310_v45  ;;  %v1316_v52 = vld [vmem:[%s1800_s18 + $0x30] sm:$0xf]  ;;  %v1620_v53 = vld [vmem:[%s1800_s18 + $0x34] sm:$0xf0] }
  0x19   : > { %865 = vmatpush.bf16.msra.mxu1 %v1689_v7  ;;  %1704 = vmatpush.bf16.msra.mxu3 %v1689_v7  ;;  %v1441_v51 = vor.u32 %v1649_v46, %v1438_v47  ;;  %v1444_v54 = vld [vmem:[%s1800_s18 + $0x130] sm:$0xf]  ;;  %v1652_v55 = vld [vmem:[%s1800_s18 + $0x134] sm:$0xf0]  ;;  %v1619_v56 = vld [vmem:[%s1800_s18 + $0x34] sm:$0xf]  ;;  %v1317_v60 = vor.u32 %v1620_v53, %v1316_v52 }
  0x1a   : > { %v1318_v57 = vld [vmem:[%s1800_s18 + $0x38] sm:$0xf0]  ;;  %v1651_v58 = vld [vmem:[%s1800_s18 + $0x134] sm:$0xf]  ;;  %v1445_v61 = vor.u32 %v1652_v55, %v1444_v54  ;;  %v1324_v0 = vld [vmem:[%s1800_s18 + $0x40] sm:$0xf] }
  0x1b   : > { %v1446_v59 = vld [vmem:[%s1800_s18 + $0x138] sm:$0xf0]  ;;  %v1321_v62 = vor.u32 %v1619_v56, %v1318_v57  ;;  %v1622_v1 = vld [vmem:[%s1800_s18 + $0x44] sm:$0xf0]  ;;  %v1452_v2 = vld [vmem:[%s1800_s18 + $0x140] sm:$0xf] }
  0x1c   : > { %697 = vmatpush.bf16.msra.mxu0 %v1680_v8  ;;  %1697 = vmatpush.bf16.msra.mxu2 %v1680_v8  ;;  %v1449_v63 = vor.u32 %v1651_v58, %v1446_v59  ;;  %v1654_v3 = vld [vmem:[%s1800_s18 + $0x144] sm:$0xf0]  ;;  %v1621_v4 = vld [vmem:[%s1800_s18 + $0x44] sm:$0xf]  ;;  %v1326_v5 = vld [vmem:[%s1800_s18 + $0x48] sm:$0xf0]  ;;  %v1325_v8 = vor.u32 %v1622_v1, %v1324_v0 }
  0x1d   : > { %866 = vmatpush.bf16.msra.mxu1 %v1688_v9  ;;  %1705 = vmatpush.bf16.msra.mxu3 %v1688_v9  ;;  %v1653_v6 = vld [vmem:[%s1800_s18 + $0x144] sm:$0xf]  ;;  %v1454_v7 = vld [vmem:[%s1800_s18 + $0x148] sm:$0xf0]  ;;  %v1453_v9 = vor.u32 %v1654_v3, %v1452_v2  ;;  %v1623_v16 = vld [vmem:[%s1800_s18 + $0x54] sm:$0xf] }
  0x1e   : > { %v1334_v17 = vld [vmem:[%s1800_s18 + $0x58] sm:$0xf0]  ;;  %v1655_v18 = vld [vmem:[%s1800_s18 + $0x154] sm:$0xf]  ;;  %v1625_v28 = vld [vmem:[%s1800_s18 + $0x64] sm:$0xf] }
  0x1f   : > { %v1462_v19 = vld [vmem:[%s1800_s18 + $0x158] sm:$0xf0]  ;;  %v1337_v22 = vor.u32 %v1623_v16, %v1334_v17  ;;  %v1342_v29 = vld [vmem:[%s1800_s18 + $0x68] sm:$0xf0]  ;;  %v1657_v30 = vld [vmem:[%s1800_s18 + $0x164] sm:$0xf] }
  0x20   : > { %698 = vmatpush.bf16.msra.mxu0 %v1679_v10  ;;  %1698 = vmatpush.bf16.msra.mxu2 %v1679_v10  ;;  %v1329_v10 = vor.u32 %v1621_v4, %v1326_v5  ;;  %v1465_v23 = vor.u32 %v1655_v18, %v1462_v19  ;;  %v1470_v31 = vld [vmem:[%s1800_s18 + $0x168] sm:$0xf0]  ;;  %v1345_v34 = vor.u32 %v1625_v28, %v1342_v29  ;;  %v1627_v40 = vld [vmem:[%s1800_s18 + $0x74] sm:$0xf]  ;;  %v1350_v41 = vld [vmem:[%s1800_s18 + $0x78] sm:$0xf0] }
  0x21   : > { %867 = vmatpush.bf16.msra.mxu1 %v1687_v11  ;;  %1706 = vmatpush.bf16.msra.mxu3 %v1687_v11  ;;  %v1457_v11 = vor.u32 %v1653_v6, %v1454_v7  ;;  %v1473_v35 = vor.u32 %v1657_v30, %v1470_v31  ;;  %v1659_v42 = vld [vmem:[%s1800_s18 + $0x174] sm:$0xf]  ;;  %v1478_v43 = vld [vmem:[%s1800_s18 + $0x178] sm:$0xf0]  ;;  %v1353_v46 = vor.u32 %v1627_v40, %v1350_v41  ;;  %v1662_v52 = vld [vmem:[%s1800_s18 + $0x184] sm:$0xf0] }
  0x22   : > { %v1481_v47 = vor.u32 %v1659_v42, %v1478_v43  ;;  %v1629_v53 = vld [vmem:[%s1800_s18 + $0x84] sm:$0xf]  ;;  %v1358_v54 = vld [vmem:[%s1800_s18 + $0x88] sm:$0xf0]  ;;  %v1631_v16 = vld [vmem:[%s1800_s18 + $0x94] sm:$0xf] }
  0x23   : > { %v1661_v55 = vld [vmem:[%s1800_s18 + $0x184] sm:$0xf]  ;;  %v1486_v56 = vld [vmem:[%s1800_s18 + $0x188] sm:$0xf0]  ;;  %v1366_v17 = vld [vmem:[%s1800_s18 + $0x98] sm:$0xf0] }
  0x24   : > { %699 = vmatpush.bf16.msra.mxu0 %v1678_v12  ;;  %1699 = vmatpush.bf16.msra.mxu2 %v1678_v12  ;;  %v1332_v12 = vld [vmem:[%s1800_s18 + $0x50] sm:$0xf]  ;;  %v1369_v29 = vor.u32 %v1631_v16, %v1366_v17 }
  0x25   : > { %868 = vmatpush.bf16.msra.mxu1 %v1686_v13  ;;  %1707 = vmatpush.bf16.msra.mxu3 %v1686_v13  ;;  %v1624_v13 = vld [vmem:[%s1800_s18 + $0x54] sm:$0xf0] }
  0x26   : > { %v1333_v20 = vor.u32 %v1624_v13, %v1332_v12  ;;  %v1632_v13 = vld [vmem:[%s1800_s18 + $0x94] sm:$0xf0] }
  0x28   : > { %700 = vmatpush.bf16.msra.mxu0 %v1677_v14  ;;  %1700 = vmatpush.bf16.msra.mxu2 %v1677_v14  ;;  %v1460_v14 = vld [vmem:[%s1800_s18 + $0x150] sm:$0xf] }
  0x29   : > { %869 = vmatpush.bf16.msra.mxu1 %v1685_v15  ;;  %1708 = vmatpush.bf16.msra.mxu3 %v1685_v15  ;;  %v1656_v15 = vld [vmem:[%s1800_s18 + $0x154] sm:$0xf0] }
  0x2a   : > { %v1461_v21 = vor.u32 %v1656_v15, %v1460_v14  ;;  %v1492_v14 = vld [vmem:[%s1800_s18 + $0x190] sm:$0xf]  ;;  %v1664_v15 = vld [vmem:[%s1800_s18 + $0x194] sm:$0xf0] }
  0x2b   : > { %701 = vmatmul.bf16.vlgmr.msra.gmra.mxu0 %v1293_v24  ;;  %781 = vmatmul.bf16.vlgmr.msra.gmra.mxu2 %v1421_v25  ;;  %v1340_v24 = vld [vmem:[%s1800_s18 + $0x60] sm:$0xf]  ;;  %v1626_v25 = vld [vmem:[%s1800_s18 + $0x64] sm:$0xf0] }
  0x2c   : > { %870 = vmatmul.bf16.vlgmr.msra.gmra.mxu1 %v1297_v26  ;;  %950 = vmatmul.bf16.vlgmr.msra.gmra.mxu3 %v1425_v27  ;;  %v1468_v26 = vld [vmem:[%s1800_s18 + $0x160] sm:$0xf]  ;;  %v1658_v27 = vld [vmem:[%s1800_s18 + $0x164] sm:$0xf0]  ;;  %v1341_v32 = vor.u32 %v1626_v25, %v1340_v24 }
  0x2d   : > { %v1469_v33 = vor.u32 %v1658_v27, %v1468_v26  ;;  %v1493_v27 = vor.u32 %v1664_v15, %v1492_v14 }
  0x3b   : > { %706 = vmatmul.bf16.gmra.mxu0 %v1301_v36  ;;  %786 = vmatmul.bf16.gmra.mxu2 %v1429_v37  ;;  %v1348_v36 = vld [vmem:[%s1800_s18 + $0x70] sm:$0xf]  ;;  %v1628_v37 = vld [vmem:[%s1800_s18 + $0x74] sm:$0xf0] }
  0x3c   : > { %875 = vmatmul.bf16.gmra.mxu1 %v1305_v38  ;;  %955 = vmatmul.bf16.gmra.mxu3 %v1433_v39  ;;  %v1476_v38 = vld [vmem:[%s1800_s18 + $0x170] sm:$0xf]  ;;  %v1660_v39 = vld [vmem:[%s1800_s18 + $0x174] sm:$0xf0]  ;;  %v1349_v44 = vor.u32 %v1628_v37, %v1348_v36 }
  0x3d   : > { %v1477_v45 = vor.u32 %v1660_v39, %v1476_v38 }
  0x4b   : > { %711 = vmatmul.bf16.gmra.mxu0 %v1309_v48  ;;  %791 = vmatmul.bf16.gmra.mxu2 %v1437_v49  ;;  %v1878_v48 = vld [vmem:[%s2141_s2] ss:$0 sm:$0xff] }
  0x4c   : > { %880 = vmatmul.bf16.gmra.mxu1 %v1313_v50  ;;  %960 = vmatmul.bf16.gmra.mxu3 %v1441_v51  ;;  %v1356_v49 = vld [vmem:[%s1800_s18 + $0x80] sm:$0xf]  ;;  %v1630_v50 = vld [vmem:[%s1800_s18 + $0x84] sm:$0xf0] }
  0x4d   : > { %v1484_v51 = vld [vmem:[%s1800_s18 + $0x180] sm:$0xf]  ;;  %v1357_v57 = vor.u32 %v1630_v50, %v1356_v49  ;;  %v1634_v50 = vld [vmem:[%s1800_s18 + $0xa4] sm:$0xf0] }
  0x4e   : > { %v1485_v58 = vor.u32 %v1662_v52, %v1484_v51  ;;  %v1500_v51 = vld [vmem:[%s1800_s18 + $0x1a0] sm:$0xf]  ;;  %v1666_v52 = vld [vmem:[%s1800_s18 + $0x1a4] sm:$0xf0] }
  0x5b   : > { %716 = vmatmul.bf16.gmra.mxu0 %v1317_v60  ;;  %796 = vmatmul.bf16.gmra.mxu2 %v1445_v61  ;;  %v1361_v60 = vor.u32 %v1629_v53, %v1358_v54  ;;  %v1489_v61 = vor.u32 %v1661_v55, %v1486_v56  ;;  %v1633_v53 = vld [vmem:[%s1800_s18 + $0xa4] sm:$0xf]  ;;  %v1374_v54 = vld [vmem:[%s1800_s18 + $0xa8] sm:$0xf0] }
  0x5c   : > { %885 = vmatmul.bf16.gmra.mxu1 %v1321_v62  ;;  %965 = vmatmul.bf16.gmra.mxu3 %v1449_v63 }
  0x6b   : > { %721 = vmatmul.bf16.gmra.mxu0 %v1325_v8  ;;  %801 = vmatmul.bf16.gmra.mxu2 %v1453_v9 }
  0x6c   : > { %890 = vmatmul.bf16.gmra.mxu1 %v1329_v10  ;;  %970 = vmatmul.bf16.gmra.mxu3 %v1457_v11  ;;  %v1364_v10 = vld [vmem:[%s1800_s18 + $0x90] sm:$0xf] }
  0x6d   : > { %v1365_v26 = vor.u32 %v1632_v13, %v1364_v10 }
  0x7b   : > { %726 = vmatmul.bf16.gmra.mxu0 %v1333_v20  ;;  %806 = vmatmul.bf16.gmra.mxu2 %v1461_v21  ;;  %v1663_v20 = vld [vmem:[%s1800_s18 + $0x194] sm:$0xf]  ;;  %v1494_v21 = vld [vmem:[%s1800_s18 + $0x198] sm:$0xf0] }
  0x7c   : > { %895 = vmatmul.bf16.gmra.mxu1 %v1337_v22  ;;  %975 = vmatmul.bf16.gmra.mxu3 %v1465_v23  ;;  %v1497_v30 = vor.u32 %v1663_v20, %v1494_v21 }
  0x8b   : > { %731 = vmatmul.bf16.gmra.mxu0 %v1341_v32  ;;  %811 = vmatmul.bf16.gmra.mxu2 %v1469_v33 }
  0x8c   : > { %900 = vmatmul.bf16.gmra.mxu1 %v1345_v34  ;;  %980 = vmatmul.bf16.gmra.mxu3 %v1473_v35 }
  0x9b   : > { %736 = vmatmul.bf16.gmra.mxu0 %v1349_v44  ;;  %816 = vmatmul.bf16.gmra.mxu2 %v1477_v45 }
  0x9c   : > { %905 = vmatmul.bf16.gmra.mxu1 %v1353_v46  ;;  %985 = vmatmul.bf16.gmra.mxu3 %v1481_v47  ;;  %v1372_v46 = vld [vmem:[%s1800_s18 + $0xa0] sm:$0xf] }
  0xa8   : > { %v702_v59 = vpop.f32.mrf.mxu0 }
  0xa9   : > { %v703_v62 = vadd.f32 %v1878_v48, %v702_v59  ;;  %v871_v63 = vpop.f32.mrf.mxu1 }
  0xab   : > { %v872_v0 = vadd.f32 %v871_v63, %v703_v62  ;;  %741 = vmatmul.bf16.gmra.mxu0 %v1357_v57  ;;  %821 = vmatmul.bf16.gmra.mxu2 %v1485_v58  ;;  %v1665_v57 = vld [vmem:[%s1800_s18 + $0x1a4] sm:$0xf]  ;;  %v1502_v58 = vld [vmem:[%s1800_s18 + $0x1a8] sm:$0xf0]  ;;  %v1373_v63 = vor.u32 %v1634_v50, %v1372_v46 }
  0xac   : > { %910 = vmatmul.bf16.gmra.mxu1 %v1361_v60  ;;  %990 = vmatmul.bf16.gmra.mxu3 %v1489_v61 }
  0xad   : > { %v1031_v1 = vmax.f32 %v872_v0, 0.0  ;;  %v1501_v0 = vor.u32 %v1666_v52, %v1500_v51 }
  0xae   : > { %v782_v2 = vpop.f32.mrf.mxu2 }
  0xaf   : > { %v1095_v3 = vpack.c.bf16 %v1031_v1, %v1031_v1  ;;  %v783_v4 = vadd.f32 %v1878_v48, %v782_v2  ;;  %v951_v5 = vpop.f32.mrf.mxu3  ;;  %v1377_v2 = vor.u32 %v1633_v53, %v1374_v54 }
  0xb0   : > { %v704_v6 = vpop.f32.mrf.mxu0 }
  0xb1   : > { %1160 = vst.msk [vmem:[%s1893_s4] sm:$0xf] %vm1159_vm0, %v1095_v3  ;;  %v952_v7 = vadd.f32 %v951_v5, %v783_v4  ;;  %v705_v8 = vadd.f32 %v1878_v48, %v704_v6  ;;  %v873_v9 = vpop.f32.mrf.mxu1  ;;  %v1505_v3 = vor.u32 %v1665_v57, %v1502_v58 }
  0xb3   : > { %v1063_v11 = vmax.f32 %v952_v7, 0.0  ;;  %v874_v12 = vadd.f32 %v873_v9, %v705_v8 }
  0xb5   : > { %v1127_v18 = vpack.c.bf16 %v1063_v11, %v1063_v11  ;;  %v1032_v19 = vmax.f32 %v874_v12, 0.0 }
  0xb6   : > { %v784_v22 = vpop.f32.mrf.mxu2 }
  0xb7   : > { %1192 = vst.msk [vmem:[%s1893_s4 + $0x80] sm:$0xf] %vm1159_vm0, %v1127_v18  ;;  %v1096_v23 = vpack.c.bf16 %v1032_v19, %v1032_v19  ;;  %v785_v24 = vadd.f32 %v1878_v48, %v784_v22  ;;  %v953_v25 = vpop.f32.mrf.mxu3  ;;  %v1380_v19 = vld [vmem:[%s1800_s18 + $0xb0] sm:$0xf]  ;;  %v1636_v22 = vld [vmem:[%s1800_s18 + $0xb4] sm:$0xf0] }
  0xb8   : > { %v707_v28 = vpop.f32.mrf.mxu0 }
  0xb9   : > { %1161 = vst.msk [vmem:[%s1893_s4 + $0x4] sm:$0xf] %vm1159_vm0, %v1096_v23  ;;  %v954_v31 = vadd.f32 %v953_v25, %v785_v24  ;;  %v708_v32 = vadd.f32 %v1878_v48, %v707_v28  ;;  %v876_v33 = vpop.f32.mrf.mxu1  ;;  %v1508_v23 = vld [vmem:[%s1800_s18 + $0x1b0] sm:$0xf]  ;;  %v1668_v24 = vld [vmem:[%s1800_s18 + $0x1b4] sm:$0xf0] }
  0xba   : > { %v1635_v25 = vld [vmem:[%s1800_s18 + $0xb4] sm:$0xf] }
  0xbb   : > { %v1064_v34 = vmax.f32 %v954_v31, 0.0  ;;  %v877_v35 = vadd.f32 %v876_v33, %v708_v32  ;;  %746 = vmatmul.bf16.gmra.mxu0 %v1365_v26  ;;  %826 = vmatmul.bf16.gmra.mxu2 %v1493_v27  ;;  %v1382_v26 = vld [vmem:[%s1800_s18 + $0xb8] sm:$0xf0] }
  0xbc   : > { %915 = vmatmul.bf16.gmra.mxu1 %v1369_v29  ;;  %995 = vmatmul.bf16.gmra.mxu3 %v1497_v30  ;;  %v1667_v29 = vld [vmem:[%s1800_s18 + $0x1b4] sm:$0xf]  ;;  %v1510_v30 = vld [vmem:[%s1800_s18 + $0x1b8] sm:$0xf0] }
  0xbd   : > { %v1128_v36 = vpack.c.bf16 %v1064_v34, %v1064_v34  ;;  %v1033_v37 = vmax.f32 %v877_v35, 0.0  ;;  %v1381_v35 = vor.u32 %v1636_v22, %v1380_v19 }
  0xbe   : > { %v787_v38 = vpop.f32.mrf.mxu2 }
  0xbf   : > { %1193 = vst.msk [vmem:[%s1893_s4 + $0x84] sm:$0xf] %vm1159_vm0, %v1128_v36  ;;  %v1097_v39 = vpack.c.bf16 %v1033_v37, %v1033_v37  ;;  %v788_v40 = vadd.f32 %v1878_v48, %v787_v38  ;;  %v956_v41 = vpop.f32.mrf.mxu3  ;;  %v1509_v36 = vor.u32 %v1668_v24, %v1508_v23  ;;  %v1385_v38 = vor.u32 %v1635_v25, %v1382_v26 }
  0xc0   : > { %v709_v42 = vpop.f32.mrf.mxu0 }
  0xc1   : > { %1162 = vst.msk [vmem:[%s1893_s4 + $0x8] sm:$0xf] %vm1159_vm0, %v1097_v39  ;;  %v957_v43 = vadd.f32 %v956_v41, %v788_v40  ;;  %v710_v44 = vadd.f32 %v1878_v48, %v709_v42  ;;  %v878_v45 = vpop.f32.mrf.mxu1  ;;  %v1513_v39 = vor.u32 %v1667_v29, %v1510_v30 }
  0xc3   : > { %v1065_v47 = vmax.f32 %v957_v43, 0.0  ;;  %v879_v49 = vadd.f32 %v878_v45, %v710_v44 }
  0xc5   : > { %v1129_v55 = vpack.c.bf16 %v1065_v47, %v1065_v47  ;;  %v1034_v56 = vmax.f32 %v879_v49, 0.0 }
  0xc6   : > { %v789_v59 = vpop.f32.mrf.mxu2 }
  0xc7   : > { %1194 = vst.msk [vmem:[%s1893_s4 + $0x88] sm:$0xf] %vm1159_vm0, %v1129_v55  ;;  %v1098_v60 = vpack.c.bf16 %v1034_v56, %v1034_v56  ;;  %v790_v61 = vadd.f32 %v1878_v48, %v789_v59  ;;  %v958_v62 = vpop.f32.mrf.mxu3  ;;  %v1388_v56 = vld [vmem:[%s1800_s18 + $0xc0] sm:$0xf]  ;;  %v1638_v59 = vld [vmem:[%s1800_s18 + $0xc4] sm:$0xf0] }
  0xc8   : > { %v712_v1 = vpop.f32.mrf.mxu0 }
  0xc9   : > { %1163 = vst.msk [vmem:[%s1893_s4 + $0xc] sm:$0xf] %vm1159_vm0, %v1098_v60  ;;  %v959_v4 = vadd.f32 %v958_v62, %v790_v61  ;;  %v713_v5 = vadd.f32 %v1878_v48, %v712_v1  ;;  %v881_v6 = vpop.f32.mrf.mxu1  ;;  %v1516_v60 = vld [vmem:[%s1800_s18 + $0x1c0] sm:$0xf]  ;;  %v1670_v61 = vld [vmem:[%s1800_s18 + $0x1c4] sm:$0xf0] }
  0xca   : > { %v1637_v62 = vld [vmem:[%s1800_s18 + $0xc4] sm:$0xf] }
  0xcb   : > { %v1066_v7 = vmax.f32 %v959_v4, 0.0  ;;  %v882_v8 = vadd.f32 %v881_v6, %v713_v5  ;;  %751 = vmatmul.bf16.gmra.mxu0 %v1373_v63  ;;  %831 = vmatmul.bf16.gmra.mxu2 %v1501_v0  ;;  %v1390_v63 = vld [vmem:[%s1800_s18 + $0xc8] sm:$0xf0] }
  0xcc   : > { %920 = vmatmul.bf16.gmra.mxu1 %v1377_v2  ;;  %1000 = vmatmul.bf16.gmra.mxu3 %v1505_v3  ;;  %v1669_v2 = vld [vmem:[%s1800_s18 + $0x1c4] sm:$0xf]  ;;  %v1518_v3 = vld [vmem:[%s1800_s18 + $0x1c8] sm:$0xf0] }
  0xcd   : > { %v1130_v9 = vpack.c.bf16 %v1066_v7, %v1066_v7  ;;  %v1035_v10 = vmax.f32 %v882_v8, 0.0  ;;  %v1389_v8 = vor.u32 %v1638_v59, %v1388_v56 }
  0xce   : > { %v792_v11 = vpop.f32.mrf.mxu2 }
  0xcf   : > { %1195 = vst.msk [vmem:[%s1893_s4 + $0x8c] sm:$0xf] %vm1159_vm0, %v1130_v9  ;;  %v1099_v12 = vpack.c.bf16 %v1035_v10, %v1035_v10  ;;  %v793_v13 = vadd.f32 %v1878_v48, %v792_v11  ;;  %v961_v14 = vpop.f32.mrf.mxu3  ;;  %v1517_v9 = vor.u32 %v1670_v61, %v1516_v60  ;;  %v1393_v11 = vor.u32 %v1637_v62, %v1390_v63 }
  0xd0   : > { %v714_v15 = vpop.f32.mrf.mxu0 }
  0xd1   : > { %1164 = vst.msk [vmem:[%s1893_s4 + $0x10] sm:$0xf] %vm1159_vm0, %v1099_v12  ;;  %v962_v16 = vadd.f32 %v961_v14, %v793_v13  ;;  %v715_v17 = vadd.f32 %v1878_v48, %v714_v15  ;;  %v883_v18 = vpop.f32.mrf.mxu1  ;;  %v1521_v12 = vor.u32 %v1669_v2, %v1518_v3 }
  0xd3   : > { %v1067_v20 = vmax.f32 %v962_v16, 0.0  ;;  %v884_v21 = vadd.f32 %v883_v18, %v715_v17 }
  0xd5   : > { %v1131_v27 = vpack.c.bf16 %v1067_v20, %v1067_v20  ;;  %v1036_v28 = vmax.f32 %v884_v21, 0.0 }
  0xd6   : > { %v794_v31 = vpop.f32.mrf.mxu2 }
  0xd7   : > { %1196 = vst.msk [vmem:[%s1893_s4 + $0x90] sm:$0xf] %vm1159_vm0, %v1131_v27  ;;  %v1100_v32 = vpack.c.bf16 %v1036_v28, %v1036_v28  ;;  %v795_v33 = vadd.f32 %v1878_v48, %v794_v31  ;;  %v963_v34 = vpop.f32.mrf.mxu3  ;;  %v1396_v28 = vld [vmem:[%s1800_s18 + $0xd0] sm:$0xf]  ;;  %v1640_v31 = vld [vmem:[%s1800_s18 + $0xd4] sm:$0xf0] }
  0xd8   : > { %v717_v37 = vpop.f32.mrf.mxu0 }
  0xd9   : > { %1165 = vst.msk [vmem:[%s1893_s4 + $0x14] sm:$0xf] %vm1159_vm0, %v1100_v32  ;;  %v964_v40 = vadd.f32 %v963_v34, %v795_v33  ;;  %v718_v41 = vadd.f32 %v1878_v48, %v717_v37  ;;  %v886_v42 = vpop.f32.mrf.mxu1  ;;  %v1524_v32 = vld [vmem:[%s1800_s18 + $0x1d0] sm:$0xf]  ;;  %v1672_v33 = vld [vmem:[%s1800_s18 + $0x1d4] sm:$0xf0] }
  0xda   : > { %v1639_v34 = vld [vmem:[%s1800_s18 + $0xd4] sm:$0xf] }
  0xdb   : > { %v1068_v43 = vmax.f32 %v964_v40, 0.0  ;;  %v887_v44 = vadd.f32 %v886_v42, %v718_v41  ;;  %756 = vmatmul.bf16.gmra.mxu0 %v1381_v35  ;;  %836 = vmatmul.bf16.gmra.mxu2 %v1509_v36  ;;  %v1398_v35 = vld [vmem:[%s1800_s18 + $0xd8] sm:$0xf0] }
  0xdc   : > { %925 = vmatmul.bf16.gmra.mxu1 %v1385_v38  ;;  %1005 = vmatmul.bf16.gmra.mxu3 %v1513_v39  ;;  %v1671_v38 = vld [vmem:[%s1800_s18 + $0x1d4] sm:$0xf]  ;;  %v1526_v39 = vld [vmem:[%s1800_s18 + $0x1d8] sm:$0xf0] }
  0xdd   : > { %v1132_v45 = vpack.c.bf16 %v1068_v43, %v1068_v43  ;;  %v1037_v46 = vmax.f32 %v887_v44, 0.0  ;;  %v1397_v44 = vor.u32 %v1640_v31, %v1396_v28 }
  0xde   : > { %v797_v47 = vpop.f32.mrf.mxu2 }
  0xdf   : > { %1197 = vst.msk [vmem:[%s1893_s4 + $0x94] sm:$0xf] %vm1159_vm0, %v1132_v45  ;;  %v1101_v49 = vpack.c.bf16 %v1037_v46, %v1037_v46  ;;  %v798_v50 = vadd.f32 %v1878_v48, %v797_v47  ;;  %v966_v51 = vpop.f32.mrf.mxu3  ;;  %v1525_v45 = vor.u32 %v1672_v33, %v1524_v32  ;;  %v1401_v47 = vor.u32 %v1639_v34, %v1398_v35 }
  0xe0   : > { %v719_v52 = vpop.f32.mrf.mxu0 }
  0xe1   : > { %1166 = vst.msk [vmem:[%s1893_s4 + $0x18] sm:$0xf] %vm1159_vm0, %v1101_v49  ;;  %v967_v53 = vadd.f32 %v966_v51, %v798_v50  ;;  %v720_v54 = vadd.f32 %v1878_v48, %v719_v52  ;;  %v888_v55 = vpop.f32.mrf.mxu1  ;;  %v1529_v49 = vor.u32 %v1671_v38, %v1526_v39 }
  0xe3   : > { %v1069_v57 = vmax.f32 %v967_v53, 0.0  ;;  %v889_v58 = vadd.f32 %v888_v55, %v720_v54 }
  0xe5   : > { %v1133_v0 = vpack.c.bf16 %v1069_v57, %v1069_v57  ;;  %v1038_v1 = vmax.f32 %v889_v58, 0.0 }
  0xe6   : > { %v799_v4 = vpop.f32.mrf.mxu2 }
  0xe7   : > { %1198 = vst.msk [vmem:[%s1893_s4 + $0x98] sm:$0xf] %vm1159_vm0, %v1133_v0  ;;  %v1102_v5 = vpack.c.bf16 %v1038_v1, %v1038_v1  ;;  %v800_v6 = vadd.f32 %v1878_v48, %v799_v4  ;;  %v968_v7 = vpop.f32.mrf.mxu3  ;;  %v1404_v1 = vld [vmem:[%s1800_s18 + $0xe0] sm:$0xf]  ;;  %v1642_v4 = vld [vmem:[%s1800_s18 + $0xe4] sm:$0xf0] }
  0xe8   : > { %v722_v10 = vpop.f32.mrf.mxu0 }
  0xe9   : > { %1167 = vst.msk [vmem:[%s1893_s4 + $0x1c] sm:$0xf] %vm1159_vm0, %v1102_v5  ;;  %v969_v13 = vadd.f32 %v968_v7, %v800_v6  ;;  %v723_v14 = vadd.f32 %v1878_v48, %v722_v10  ;;  %v891_v15 = vpop.f32.mrf.mxu1  ;;  %v1532_v5 = vld [vmem:[%s1800_s18 + $0x1e0] sm:$0xf]  ;;  %v1674_v6 = vld [vmem:[%s1800_s18 + $0x1e4] sm:$0xf0] }
  0xea   : > { %v1641_v7 = vld [vmem:[%s1800_s18 + $0xe4] sm:$0xf] }
  0xeb   : > { %v1070_v16 = vmax.f32 %v969_v13, 0.0  ;;  %v892_v17 = vadd.f32 %v891_v15, %v723_v14  ;;  %761 = vmatmul.bf16.gmra.mxu0 %v1389_v8  ;;  %841 = vmatmul.bf16.gmra.mxu2 %v1517_v9  ;;  %v1406_v8 = vld [vmem:[%s1800_s18 + $0xe8] sm:$0xf0] }
  0xec   : > { %930 = vmatmul.bf16.gmra.mxu1 %v1393_v11  ;;  %1010 = vmatmul.bf16.gmra.mxu3 %v1521_v12  ;;  %v1673_v11 = vld [vmem:[%s1800_s18 + $0x1e4] sm:$0xf]  ;;  %v1534_v12 = vld [vmem:[%s1800_s18 + $0x1e8] sm:$0xf0] }
  0xed   : > { %v1134_v18 = vpack.c.bf16 %v1070_v16, %v1070_v16  ;;  %v1039_v19 = vmax.f32 %v892_v17, 0.0  ;;  %v1405_v17 = vor.u32 %v1642_v4, %v1404_v1 }
  0xee   : > { %v802_v20 = vpop.f32.mrf.mxu2 }
  0xef   : > { %1199 = vst.msk [vmem:[%s1893_s4 + $0x9c] sm:$0xf] %vm1159_vm0, %v1134_v18  ;;  %v1103_v21 = vpack.c.bf16 %v1039_v19, %v1039_v19  ;;  %v803_v22 = vadd.f32 %v1878_v48, %v802_v20  ;;  %v971_v23 = vpop.f32.mrf.mxu3  ;;  %v1533_v18 = vor.u32 %v1674_v6, %v1532_v5  ;;  %v1409_v20 = vor.u32 %v1641_v7, %v1406_v8 }
  0xf0   : > { %v724_v24 = vpop.f32.mrf.mxu0 }
  0xf1   : > { %1168 = vst.msk [vmem:[%s1893_s4 + $0x20] sm:$0xf] %vm1159_vm0, %v1103_v21  ;;  %v972_v25 = vadd.f32 %v971_v23, %v803_v22  ;;  %v725_v26 = vadd.f32 %v1878_v48, %v724_v24  ;;  %v893_v27 = vpop.f32.mrf.mxu1  ;;  %v1537_v21 = vor.u32 %v1673_v11, %v1534_v12 }
  0xf3   : > { %v1071_v29 = vmax.f32 %v972_v25, 0.0  ;;  %v894_v30 = vadd.f32 %v893_v27, %v725_v26 }
  0xf5   : > { %v1135_v36 = vpack.c.bf16 %v1071_v29, %v1071_v29  ;;  %v1040_v37 = vmax.f32 %v894_v30, 0.0 }
  0xf6   : > { %v804_v40 = vpop.f32.mrf.mxu2 }
  0xf7   : > { %1200 = vst.msk [vmem:[%s1893_s4 + $0xa0] sm:$0xf] %vm1159_vm0, %v1135_v36  ;;  %v1104_v41 = vpack.c.bf16 %v1040_v37, %v1040_v37  ;;  %v805_v42 = vadd.f32 %v1878_v48, %v804_v40  ;;  %v973_v43 = vpop.f32.mrf.mxu3  ;;  %v1412_v37 = vld [vmem:[%s1800_s18 + $0xf0] sm:$0xf]  ;;  %v1644_v40 = vld [vmem:[%s1800_s18 + $0xf4] sm:$0xf0] }
  0xf8   : > { %v727_v46 = vpop.f32.mrf.mxu0 }
  0xf9   : > { %1169 = vst.msk [vmem:[%s1893_s4 + $0x24] sm:$0xf] %vm1159_vm0, %v1104_v41  ;;  %v974_v50 = vadd.f32 %v973_v43, %v805_v42  ;;  %v728_v51 = vadd.f32 %v1878_v48, %v727_v46  ;;  %v896_v52 = vpop.f32.mrf.mxu1  ;;  %v1540_v41 = vld [vmem:[%s1800_s18 + $0x1f0] sm:$0xf]  ;;  %v1676_v42 = vld [vmem:[%s1800_s18 + $0x1f4] sm:$0xf0] }
  0xfa   : > { %v1643_v43 = vld [vmem:[%s1800_s18 + $0xf4] sm:$0xf] }
  0xfb   : > { %v1072_v53 = vmax.f32 %v974_v50, 0.0  ;;  %v897_v54 = vadd.f32 %v896_v52, %v728_v51  ;;  %766 = vmatmul.bf16.gmra.mxu0 %v1397_v44  ;;  %846 = vmatmul.bf16.gmra.mxu2 %v1525_v45  ;;  %v1414_v44 = vld [vmem:[%s1800_s18 + $0xf8] sm:$0xf0] }
  0xfc   : > { %935 = vmatmul.bf16.gmra.mxu1 %v1401_v47  ;;  %1015 = vmatmul.bf16.gmra.mxu3 %v1529_v49  ;;  %v1675_v47 = vld [vmem:[%s1800_s18 + $0x1f4] sm:$0xf]  ;;  %v1542_v49 = vld [vmem:[%s1800_s18 + $0x1f8] sm:$0xf0] }
  0xfd   : > { %v1136_v55 = vpack.c.bf16 %v1072_v53, %v1072_v53  ;;  %v1041_v56 = vmax.f32 %v897_v54, 0.0  ;;  %v1413_v54 = vor.u32 %v1644_v40, %v1412_v37 }
  0xfe   : > { %v807_v57 = vpop.f32.mrf.mxu2 }
  0xff   : > { %1201 = vst.msk [vmem:[%s1893_s4 + $0xa4] sm:$0xf] %vm1159_vm0, %v1136_v55  ;;  %v1105_v58 = vpack.c.bf16 %v1041_v56, %v1041_v56  ;;  %v808_v59 = vadd.f32 %v1878_v48, %v807_v57  ;;  %v976_v60 = vpop.f32.mrf.mxu3  ;;  %v1541_v55 = vor.u32 %v1676_v42, %v1540_v41  ;;  %v1417_v57 = vor.u32 %v1643_v43, %v1414_v44 }
 0x100   : > { %v729_v61 = vpop.f32.mrf.mxu0 }
 0x101   : > { %1170 = vst.msk [vmem:[%s1893_s4 + $0x28] sm:$0xf] %vm1159_vm0, %v1105_v58  ;;  %v977_v62 = vadd.f32 %v976_v60, %v808_v59  ;;  %v730_v63 = vadd.f32 %v1878_v48, %v729_v61  ;;  %v898_v0 = vpop.f32.mrf.mxu1  ;;  %v1545_v58 = vor.u32 %v1675_v47, %v1542_v49 }
 0x103   : > { %v1073_v2 = vmax.f32 %v977_v62, 0.0  ;;  %v899_v3 = vadd.f32 %v898_v0, %v730_v63 }
 0x105   : > { %v1137_v9 = vpack.c.bf16 %v1073_v2, %v1073_v2  ;;  %v1042_v10 = vmax.f32 %v899_v3, 0.0 }
 0x106   : > { %v809_v13 = vpop.f32.mrf.mxu2 }
 0x107   : > { %1202 = vst.msk [vmem:[%s1893_s4 + $0xa8] sm:$0xf] %vm1159_vm0, %v1137_v9  ;;  %v1106_v14 = vpack.c.bf16 %v1042_v10, %v1042_v10  ;;  %v810_v15 = vadd.f32 %v1878_v48, %v809_v13  ;;  %v978_v16 = vpop.f32.mrf.mxu3 }
 0x108   : > { %v732_v19 = vpop.f32.mrf.mxu0 }
 0x109   : > { %1171 = vst.msk [vmem:[%s1893_s4 + $0x2c] sm:$0xf] %vm1159_vm0, %v1106_v14  ;;  %v979_v22 = vadd.f32 %v978_v16, %v810_v15  ;;  %v733_v23 = vadd.f32 %v1878_v48, %v732_v19  ;;  %v901_v24 = vpop.f32.mrf.mxu1 }
 0x10b   : > { %v1074_v25 = vmax.f32 %v979_v22, 0.0  ;;  %v902_v26 = vadd.f32 %v901_v24, %v733_v23  ;;  %771 = vmatmul.bf16.gmra.mxu0 %v1405_v17  ;;  %851 = vmatmul.bf16.gmra.mxu2 %v1533_v18 }
 0x10c   : > { %940 = vmatmul.bf16.gmra.mxu1 %v1409_v20  ;;  %1020 = vmatmul.bf16.gmra.mxu3 %v1537_v21 }
 0x10d   : > { %v1138_v27 = vpack.c.bf16 %v1074_v25, %v1074_v25  ;;  %v1043_v28 = vmax.f32 %v902_v26, 0.0 }
 0x10e   : > { %v812_v29 = vpop.f32.mrf.mxu2 }
 0x10f   : > { %1203 = vst.msk [vmem:[%s1893_s4 + $0xac] sm:$0xf] %vm1159_vm0, %v1138_v27  ;;  %v1107_v30 = vpack.c.bf16 %v1043_v28, %v1043_v28  ;;  %v813_v31 = vadd.f32 %v1878_v48, %v812_v29  ;;  %v981_v32 = vpop.f32.mrf.mxu3 }
 0x110   : > { %v734_v33 = vpop.f32.mrf.mxu0 }
 0x111   : > { %1172 = vst.msk [vmem:[%s1893_s4 + $0x30] sm:$0xf] %vm1159_vm0, %v1107_v30  ;;  %v982_v34 = vadd.f32 %v981_v32, %v813_v31  ;;  %v735_v35 = vadd.f32 %v1878_v48, %v734_v33  ;;  %v903_v36 = vpop.f32.mrf.mxu1 }
 0x113   : > { %v1075_v38 = vmax.f32 %v982_v34, 0.0  ;;  %v904_v39 = vadd.f32 %v903_v36, %v735_v35 }
 0x115   : > { %v1139_v45 = vpack.c.bf16 %v1075_v38, %v1075_v38  ;;  %v1044_v46 = vmax.f32 %v904_v39, 0.0 }
 0x116   : > { %v814_v50 = vpop.f32.mrf.mxu2 }
 0x117   : > { %1204 = vst.msk [vmem:[%s1893_s4 + $0xb0] sm:$0xf] %vm1159_vm0, %v1139_v45  ;;  %v1108_v51 = vpack.c.bf16 %v1044_v46, %v1044_v46  ;;  %v815_v52 = vadd.f32 %v1878_v48, %v814_v50  ;;  %v983_v53 = vpop.f32.mrf.mxu3 }
 0x118   : > { %v737_v56 = vpop.f32.mrf.mxu0 }
 0x119   : > { %1173 = vst.msk [vmem:[%s1893_s4 + $0x34] sm:$0xf] %vm1159_vm0, %v1108_v51  ;;  %v984_v59 = vadd.f32 %v983_v53, %v815_v52  ;;  %v738_v60 = vadd.f32 %v1878_v48, %v737_v56  ;;  %v906_v61 = vpop.f32.mrf.mxu1 }
 0x11b   : > { %v1076_v62 = vmax.f32 %v984_v59, 0.0  ;;  %v907_v63 = vadd.f32 %v906_v61, %v738_v60  ;;  %776 = vmatmul.bf16.gmra.mxu0 %v1413_v54  ;;  %856 = vmatmul.bf16.gmra.mxu2 %v1541_v55 }
 0x11c   : > { %945 = vmatmul.bf16.gmra.mxu1 %v1417_v57  ;;  %1025 = vmatmul.bf16.gmra.mxu3 %v1545_v58 }
 0x11d   : > { %v1140_v0 = vpack.c.bf16 %v1076_v62, %v1076_v62  ;;  %v1045_v1 = vmax.f32 %v907_v63, 0.0 }
 0x11e   : > { %v817_v2 = vpop.f32.mrf.mxu2 }
 0x11f   : > { %1205 = vst.msk [vmem:[%s1893_s4 + $0xb4] sm:$0xf] %vm1159_vm0, %v1140_v0  ;;  %v1109_v3 = vpack.c.bf16 %v1045_v1, %v1045_v1  ;;  %v818_v4 = vadd.f32 %v1878_v48, %v817_v2  ;;  %v986_v5 = vpop.f32.mrf.mxu3 }
 0x120   : > { %v739_v6 = vpop.f32.mrf.mxu0 }
 0x121   : > { %1174 = vst.msk [vmem:[%s1893_s4 + $0x38] sm:$0xf] %vm1159_vm0, %v1109_v3  ;;  %v987_v7 = vadd.f32 %v986_v5, %v818_v4  ;;  %v740_v8 = vadd.f32 %v1878_v48, %v739_v6  ;;  %v908_v9 = vpop.f32.mrf.mxu1 }
 0x123   : > { %v1077_v10 = vmax.f32 %v987_v7, 0.0  ;;  %v909_v11 = vadd.f32 %v908_v9, %v740_v8 }
 0x125   : > { %v1141_v12 = vpack.c.bf16 %v1077_v10, %v1077_v10  ;;  %v1046_v13 = vmax.f32 %v909_v11, 0.0 }
 0x126   : > { %v819_v14 = vpop.f32.mrf.mxu2 }
 0x127   : > { %1206 = vst.msk [vmem:[%s1893_s4 + $0xb8] sm:$0xf] %vm1159_vm0, %v1141_v12  ;;  %v1110_v15 = vpack.c.bf16 %v1046_v13, %v1046_v13  ;;  %v820_v16 = vadd.f32 %v1878_v48, %v819_v14  ;;  %v988_v17 = vpop.f32.mrf.mxu3 }
 0x128   : > { %v742_v18 = vpop.f32.mrf.mxu0 }
 0x129   : > { %1175 = vst.msk [vmem:[%s1893_s4 + $0x3c] sm:$0xf] %vm1159_vm0, %v1110_v15  ;;  %v989_v19 = vadd.f32 %v988_v17, %v820_v16  ;;  %v743_v20 = vadd.f32 %v1878_v48, %v742_v18  ;;  %v911_v21 = vpop.f32.mrf.mxu1 }
 0x12b   : > { %v1078_v22 = vmax.f32 %v989_v19, 0.0  ;;  %v912_v23 = vadd.f32 %v911_v21, %v743_v20 }
 0x12d   : > { %v1142_v24 = vpack.c.bf16 %v1078_v22, %v1078_v22  ;;  %v1047_v25 = vmax.f32 %v912_v23, 0.0 }
 0x12e   : > { %v822_v26 = vpop.f32.mrf.mxu2 }
 0x12f   : > { %1207 = vst.msk [vmem:[%s1893_s4 + $0xbc] sm:$0xf] %vm1159_vm0, %v1142_v24  ;;  %v1111_v27 = vpack.c.bf16 %v1047_v25, %v1047_v25  ;;  %v823_v28 = vadd.f32 %v1878_v48, %v822_v26  ;;  %v991_v29 = vpop.f32.mrf.mxu3 }
 0x130   : > { %v744_v30 = vpop.f32.mrf.mxu0 }
 0x131   : > { %1176 = vst.msk [vmem:[%s1893_s4 + $0x40] sm:$0xf] %vm1159_vm0, %v1111_v27  ;;  %v992_v31 = vadd.f32 %v991_v29, %v823_v28  ;;  %v745_v32 = vadd.f32 %v1878_v48, %v744_v30  ;;  %v913_v33 = vpop.f32.mrf.mxu1 }
 0x133   : > { %v1079_v34 = vmax.f32 %v992_v31, 0.0  ;;  %v914_v35 = vadd.f32 %v913_v33, %v745_v32 }
 0x135   : > { %v1143_v36 = vpack.c.bf16 %v1079_v34, %v1079_v34  ;;  %v1048_v37 = vmax.f32 %v914_v35, 0.0 }
 0x136   : > { %v824_v38 = vpop.f32.mrf.mxu2 }
 0x137   : > { %1208 = vst.msk [vmem:[%s1893_s4 + $0xc0] sm:$0xf] %vm1159_vm0, %v1143_v36  ;;  %v1112_v39 = vpack.c.bf16 %v1048_v37, %v1048_v37  ;;  %v825_v40 = vadd.f32 %v1878_v48, %v824_v38  ;;  %v993_v41 = vpop.f32.mrf.mxu3 }
 0x138   : > { %v747_v42 = vpop.f32.mrf.mxu0 }
 0x139   : > { %1177 = vst.msk [vmem:[%s1893_s4 + $0x44] sm:$0xf] %vm1159_vm0, %v1112_v39  ;;  %v994_v43 = vadd.f32 %v993_v41, %v825_v40  ;;  %v748_v44 = vadd.f32 %v1878_v48, %v747_v42  ;;  %v916_v45 = vpop.f32.mrf.mxu1 }
 0x13b   : > { %v1080_v46 = vmax.f32 %v994_v43, 0.0  ;;  %v917_v47 = vadd.f32 %v916_v45, %v748_v44 }
 0x13d   : > { %v1144_v49 = vpack.c.bf16 %v1080_v46, %v1080_v46  ;;  %v1049_v50 = vmax.f32 %v917_v47, 0.0 }
 0x13e   : > { %v827_v51 = vpop.f32.mrf.mxu2 }
 0x13f   : > { %1209 = vst.msk [vmem:[%s1893_s4 + $0xc4] sm:$0xf] %vm1159_vm0, %v1144_v49  ;;  %v1113_v52 = vpack.c.bf16 %v1049_v50, %v1049_v50  ;;  %v828_v53 = vadd.f32 %v1878_v48, %v827_v51  ;;  %v996_v54 = vpop.f32.mrf.mxu3 }
 0x140   : > { %v749_v55 = vpop.f32.mrf.mxu0 }
 0x141   : > { %1178 = vst.msk [vmem:[%s1893_s4 + $0x48] sm:$0xf] %vm1159_vm0, %v1113_v52  ;;  %v997_v56 = vadd.f32 %v996_v54, %v828_v53  ;;  %v750_v57 = vadd.f32 %v1878_v48, %v749_v55  ;;  %v918_v58 = vpop.f32.mrf.mxu1 }
 0x143   : > { %v1081_v59 = vmax.f32 %v997_v56, 0.0  ;;  %v919_v60 = vadd.f32 %v918_v58, %v750_v57 }
 0x145   : > { %v1145_v61 = vpack.c.bf16 %v1081_v59, %v1081_v59  ;;  %v1050_v62 = vmax.f32 %v919_v60, 0.0 }
 0x146   : > { %v829_v63 = vpop.f32.mrf.mxu2 }
 0x147   : > { %1210 = vst.msk [vmem:[%s1893_s4 + $0xc8] sm:$0xf] %vm1159_vm0, %v1145_v61  ;;  %v1114_v0 = vpack.c.bf16 %v1050_v62, %v1050_v62  ;;  %v830_v1 = vadd.f32 %v1878_v48, %v829_v63  ;;  %v998_v2 = vpop.f32.mrf.mxu3 }
 0x148   : > { %v752_v3 = vpop.f32.mrf.mxu0 }
 0x149   : > { %1179 = vst.msk [vmem:[%s1893_s4 + $0x4c] sm:$0xf] %vm1159_vm0, %v1114_v0  ;;  %v999_v4 = vadd.f32 %v998_v2, %v830_v1  ;;  %v753_v5 = vadd.f32 %v1878_v48, %v752_v3  ;;  %v921_v6 = vpop.f32.mrf.mxu1 }
 0x14b   : > { %v1082_v7 = vmax.f32 %v999_v4, 0.0  ;;  %v922_v8 = vadd.f32 %v921_v6, %v753_v5 }
 0x14d   : > { %v1146_v9 = vpack.c.bf16 %v1082_v7, %v1082_v7  ;;  %v1051_v10 = vmax.f32 %v922_v8, 0.0 }
 0x14e   : > { %v832_v11 = vpop.f32.mrf.mxu2 }
 0x14f   : > { %1211 = vst.msk [vmem:[%s1893_s4 + $0xcc] sm:$0xf] %vm1159_vm0, %v1146_v9  ;;  %v1115_v12 = vpack.c.bf16 %v1051_v10, %v1051_v10  ;;  %v833_v13 = vadd.f32 %v1878_v48, %v832_v11  ;;  %v1001_v14 = vpop.f32.mrf.mxu3 }
 0x150   : > { %v754_v15 = vpop.f32.mrf.mxu0 }
 0x151   : > { %1180 = vst.msk [vmem:[%s1893_s4 + $0x50] sm:$0xf] %vm1159_vm0, %v1115_v12  ;;  %v1002_v16 = vadd.f32 %v1001_v14, %v833_v13  ;;  %v755_v17 = vadd.f32 %v1878_v48, %v754_v15  ;;  %v923_v18 = vpop.f32.mrf.mxu1 }
 0x153   : > { %v1083_v19 = vmax.f32 %v1002_v16, 0.0  ;;  %v924_v20 = vadd.f32 %v923_v18, %v755_v17 }
 0x155   : > { %v1147_v21 = vpack.c.bf16 %v1083_v19, %v1083_v19  ;;  %v1052_v22 = vmax.f32 %v924_v20, 0.0 }
 0x156   : > { %v834_v23 = vpop.f32.mrf.mxu2 }
 0x157   : > { %1212 = vst.msk [vmem:[%s1893_s4 + $0xd0] sm:$0xf] %vm1159_vm0, %v1147_v21  ;;  %v1116_v24 = vpack.c.bf16 %v1052_v22, %v1052_v22  ;;  %v835_v25 = vadd.f32 %v1878_v48, %v834_v23  ;;  %v1003_v26 = vpop.f32.mrf.mxu3 }
 0x158   : > { %v757_v27 = vpop.f32.mrf.mxu0 }
 0x159   : > { %1181 = vst.msk [vmem:[%s1893_s4 + $0x54] sm:$0xf] %vm1159_vm0, %v1116_v24  ;;  %v1004_v28 = vadd.f32 %v1003_v26, %v835_v25  ;;  %v758_v29 = vadd.f32 %v1878_v48, %v757_v27  ;;  %v926_v30 = vpop.f32.mrf.mxu1 }
 0x15b   : > { %v1084_v31 = vmax.f32 %v1004_v28, 0.0  ;;  %v927_v32 = vadd.f32 %v926_v30, %v758_v29 }
 0x15d   : > { %v1148_v33 = vpack.c.bf16 %v1084_v31, %v1084_v31  ;;  %v1053_v34 = vmax.f32 %v927_v32, 0.0 }
 0x15e   : > { %v837_v35 = vpop.f32.mrf.mxu2 }
 0x15f   : > { %1213 = vst.msk [vmem:[%s1893_s4 + $0xd4] sm:$0xf] %vm1159_vm0, %v1148_v33  ;;  %v1117_v36 = vpack.c.bf16 %v1053_v34, %v1053_v34  ;;  %v838_v37 = vadd.f32 %v1878_v48, %v837_v35  ;;  %v1006_v38 = vpop.f32.mrf.mxu3  ;;  %v1718_v34 = vld [vmem:[%s2141_s2] ss:$0 sm:$0xff] }
 0x160   : > { %v759_v39 = vpop.f32.mrf.mxu0 }
 0x161   : > { %1182 = vst.msk [vmem:[%s1893_s4 + $0x58] sm:$0xf] %vm1159_vm0, %v1117_v36  ;;  %v1007_v40 = vadd.f32 %v1006_v38, %v838_v37  ;;  %v760_v41 = vadd.f32 %v1878_v48, %v759_v39  ;;  %v928_v42 = vpop.f32.mrf.mxu1 }
 0x163   : > { %v1085_v43 = vmax.f32 %v1007_v40, 0.0  ;;  %v929_v44 = vadd.f32 %v928_v42, %v760_v41 }
 0x165   : > { %v1149_v45 = vpack.c.bf16 %v1085_v43, %v1085_v43  ;;  %v1054_v46 = vmax.f32 %v929_v44, 0.0 }
 0x166   : > { %v839_v47 = vpop.f32.mrf.mxu2 }
 0x167   : > { %1214 = vst.msk [vmem:[%s1893_s4 + $0xd8] sm:$0xf] %vm1159_vm0, %v1149_v45  ;;  %v1118_v49 = vpack.c.bf16 %v1054_v46, %v1054_v46  ;;  %v840_v50 = vadd.f32 %v1878_v48, %v839_v47  ;;  %v1008_v51 = vpop.f32.mrf.mxu3 }
 0x168   : > { %v762_v52 = vpop.f32.mrf.mxu0 }
 0x169   : > { %1183 = vst.msk [vmem:[%s1893_s4 + $0x5c] sm:$0xf] %vm1159_vm0, %v1118_v49  ;;  %v1009_v53 = vadd.f32 %v1008_v51, %v840_v50  ;;  %v763_v54 = vadd.f32 %v1878_v48, %v762_v52  ;;  %v931_v55 = vpop.f32.mrf.mxu1 }
 0x16b   : > { %v1086_v56 = vmax.f32 %v1009_v53, 0.0  ;;  %v932_v57 = vadd.f32 %v931_v55, %v763_v54 }
 0x16d   : > { %v1150_v58 = vpack.c.bf16 %v1086_v56, %v1086_v56  ;;  %v1055_v59 = vmax.f32 %v932_v57, 0.0 }
 0x16e   : > { %v842_v60 = vpop.f32.mrf.mxu2 }
 0x16f   : > { %1215 = vst.msk [vmem:[%s1893_s4 + $0xdc] sm:$0xf] %vm1159_vm0, %v1150_v58  ;;  %v1119_v61 = vpack.c.bf16 %v1055_v59, %v1055_v59  ;;  %v843_v62 = vadd.f32 %v1878_v48, %v842_v60  ;;  %v1011_v63 = vpop.f32.mrf.mxu3 }
 0x170   : > { %v764_v0 = vpop.f32.mrf.mxu0 }
 0x171   : > { %1184 = vst.msk [vmem:[%s1893_s4 + $0x60] sm:$0xf] %vm1159_vm0, %v1119_v61  ;;  %v1012_v1 = vadd.f32 %v1011_v63, %v843_v62  ;;  %v765_v2 = vadd.f32 %v1878_v48, %v764_v0  ;;  %v933_v3 = vpop.f32.mrf.mxu1 }
 0x173   : > { %v1087_v4 = vmax.f32 %v1012_v1, 0.0  ;;  %v934_v5 = vadd.f32 %v933_v3, %v765_v2 }
 0x175   : > { %v1151_v6 = vpack.c.bf16 %v1087_v4, %v1087_v4  ;;  %v1056_v7 = vmax.f32 %v934_v5, 0.0 }
 0x176   : > { %v844_v8 = vpop.f32.mrf.mxu2 }
 0x177   : > { %1216 = vst.msk [vmem:[%s1893_s4 + $0xe0] sm:$0xf] %vm1159_vm0, %v1151_v6  ;;  %v1120_v9 = vpack.c.bf16 %v1056_v7, %v1056_v7  ;;  %v845_v10 = vadd.f32 %v1878_v48, %v844_v8  ;;  %v1013_v11 = vpop.f32.mrf.mxu3 }
 0x178   : > { %v767_v12 = vpop.f32.mrf.mxu0 }
 0x179   : > { %1185 = vst.msk [vmem:[%s1893_s4 + $0x64] sm:$0xf] %vm1159_vm0, %v1120_v9  ;;  %v1014_v13 = vadd.f32 %v1013_v11, %v845_v10  ;;  %v768_v14 = vadd.f32 %v1878_v48, %v767_v12  ;;  %v936_v15 = vpop.f32.mrf.mxu1 }
 0x17b   : > { %v1088_v16 = vmax.f32 %v1014_v13, 0.0  ;;  %v937_v17 = vadd.f32 %v936_v15, %v768_v14 }
 0x17d   : > { %v1152_v18 = vpack.c.bf16 %v1088_v16, %v1088_v16  ;;  %v1057_v19 = vmax.f32 %v937_v17, 0.0 }
 0x17e   : > { %v847_v20 = vpop.f32.mrf.mxu2 }
 0x17f   : > { %1217 = vst.msk [vmem:[%s1893_s4 + $0xe4] sm:$0xf] %vm1159_vm0, %v1152_v18  ;;  %v1121_v21 = vpack.c.bf16 %v1057_v19, %v1057_v19  ;;  %v848_v22 = vadd.f32 %v1878_v48, %v847_v20  ;;  %v1016_v23 = vpop.f32.mrf.mxu3 }
 0x180   : > { %v769_v24 = vpop.f32.mrf.mxu0 }
 0x181   : > { %1186 = vst.msk [vmem:[%s1893_s4 + $0x68] sm:$0xf] %vm1159_vm0, %v1121_v21  ;;  %v1017_v25 = vadd.f32 %v1016_v23, %v848_v22  ;;  %v770_v26 = vadd.f32 %v1878_v48, %v769_v24  ;;  %v938_v27 = vpop.f32.mrf.mxu1 }
 0x183   : > { %v1089_v28 = vmax.f32 %v1017_v25, 0.0  ;;  %v939_v29 = vadd.f32 %v938_v27, %v770_v26 }
 0x185   : > { %v1153_v30 = vpack.c.bf16 %v1089_v28, %v1089_v28  ;;  %v1058_v31 = vmax.f32 %v939_v29, 0.0 }
 0x186   : > { %v849_v32 = vpop.f32.mrf.mxu2 }
 0x187   : > { %1218 = vst.msk [vmem:[%s1893_s4 + $0xe8] sm:$0xf] %vm1159_vm0, %v1153_v30  ;;  %v1122_v33 = vpack.c.bf16 %v1058_v31, %v1058_v31  ;;  %v850_v35 = vadd.f32 %v1718_v34, %v849_v32  ;;  %v1018_v36 = vpop.f32.mrf.mxu3 }
 0x188   : > { %v772_v37 = vpop.f32.mrf.mxu0 }
 0x189   : > { %1187 = vst.msk [vmem:[%s1893_s4 + $0x6c] sm:$0xf] %vm1159_vm0, %v1122_v33  ;;  %v1019_v48 = vadd.f32 %v1018_v36, %v850_v35  ;;  %v773_v38 = vadd.f32 %v1718_v34, %v772_v37  ;;  %v941_v39 = vpop.f32.mrf.mxu1 }
 0x18b   : > { %v1090_v40 = vmax.f32 %v1019_v48, 0.0  ;;  %v942_v41 = vadd.f32 %v941_v39, %v773_v38 }
 0x18d   : > { %v1154_v42 = vpack.c.bf16 %v1090_v40, %v1090_v40  ;;  %v1059_v43 = vmax.f32 %v942_v41, 0.0 }
 0x18e   : > { %v852_v44 = vpop.f32.mrf.mxu2 }
 0x18f   : > { %1219 = vst.msk [vmem:[%s1893_s4 + $0xec] sm:$0xf] %vm1159_vm0, %v1154_v42  ;;  %v1123_v45 = vpack.c.bf16 %v1059_v43, %v1059_v43  ;;  %v853_v46 = vadd.f32 %v1718_v34, %v852_v44  ;;  %v1021_v47 = vpop.f32.mrf.mxu3 }
 0x190   : > { %v774_v49 = vpop.f32.mrf.mxu0 }
 0x191   : > { %1188 = vst.msk [vmem:[%s1893_s4 + $0x70] sm:$0xf] %vm1159_vm0, %v1123_v45  ;;  %v1022_v50 = vadd.f32 %v1021_v47, %v853_v46  ;;  %v775_v51 = vadd.f32 %v1718_v34, %v774_v49  ;;  %v943_v52 = vpop.f32.mrf.mxu1 }
 0x193   : > { %v1091_v53 = vmax.f32 %v1022_v50, 0.0  ;;  %v944_v54 = vadd.f32 %v943_v52, %v775_v51 }
 0x195   : > { %v1155_v55 = vpack.c.bf16 %v1091_v53, %v1091_v53  ;;  %v1060_v56 = vmax.f32 %v944_v54, 0.0 }
 0x196   : > { %v854_v57 = vpop.f32.mrf.mxu2 }
 0x197   : > { %1220 = vst.msk [vmem:[%s1893_s4 + $0xf0] sm:$0xf] %vm1159_vm0, %v1155_v55  ;;  %v1124_v58 = vpack.c.bf16 %v1060_v56, %v1060_v56  ;;  %v855_v59 = vadd.f32 %v1718_v34, %v854_v57  ;;  %v1023_v60 = vpop.f32.mrf.mxu3 }
 0x198   : > { %v777_v61 = vpop.f32.mrf.mxu0 }
 0x199   : > { %1189 = vst.msk [vmem:[%s1893_s4 + $0x74] sm:$0xf] %vm1159_vm0, %v1124_v58  ;;  %v1024_v62 = vadd.f32 %v1023_v60, %v855_v59  ;;  %v778_v63 = vadd.f32 %v1718_v34, %v777_v61  ;;  %v946_v0 = vpop.f32.mrf.mxu1 }
 0x19b   : > { %v1092_v1 = vmax.f32 %v1024_v62, 0.0  ;;  %v947_v2 = vadd.f32 %v946_v0, %v778_v63 }
 0x19d   : > { %v1156_v3 = vpack.c.bf16 %v1092_v1, %v1092_v1  ;;  %v1061_v4 = vmax.f32 %v947_v2, 0.0 }
 0x19e   : > { %v857_v5 = vpop.f32.mrf.mxu2 }
 0x19f   : > { %1221 = vst.msk [vmem:[%s1893_s4 + $0xf4] sm:$0xf] %vm1159_vm0, %v1156_v3  ;;  %v1125_v6 = vpack.c.bf16 %v1061_v4, %v1061_v4  ;;  %v858_v7 = vadd.f32 %v1718_v34, %v857_v5  ;;  %v1026_v8 = vpop.f32.mrf.mxu3 }
 0x1a0   : > { %v779_v9 = vpop.f32.mrf.mxu0 }
 0x1a1   : > { %1190 = vst.msk [vmem:[%s1893_s4 + $0x78] sm:$0xf] %vm1159_vm0, %v1125_v6  ;;  %v1027_v10 = vadd.f32 %v1026_v8, %v858_v7  ;;  %v780_v11 = vadd.f32 %v1718_v34, %v779_v9  ;;  %v948_v12 = vpop.f32.mrf.mxu1 }
 0x1a3   : > { %v1093_v13 = vmax.f32 %v1027_v10, 0.0  ;;  %v949_v14 = vadd.f32 %v948_v12, %v780_v11 }
 0x1a5   : > { %v1157_v15 = vpack.c.bf16 %v1093_v13, %v1093_v13  ;;  %v1062_v16 = vmax.f32 %v949_v14, 0.0 }
 0x1a6   : > { %v859_v17 = vpop.f32.mrf.mxu2 }
 0x1a7   : > { %1222 = vst.msk [vmem:[%s1893_s4 + $0xf8] sm:$0xf] %vm1159_vm0, %v1157_v15  ;;  %v1126_v18 = vpack.c.bf16 %v1062_v16, %v1062_v16  ;;  %v860_v19 = vadd.f32 %v1718_v34, %v859_v17  ;;  %v1028_v20 = vpop.f32.mrf.mxu3 }
 0x1a9   : > { %1191 = vst.msk [vmem:[%s1893_s4 + $0x7c] sm:$0xf] %vm1159_vm0, %v1126_v18  ;;  %v1029_v21 = vadd.f32 %v1028_v20, %v860_v19 }
 0x1ab   : > { %v1094_v22 = vmax.f32 %v1029_v21, 0.0 }
 0x1ad   : > { %v1158_v23 = vpack.c.bf16 %v1094_v22, %v1094_v22 }
 0x1af   : > { %1223 = vst.msk [vmem:[%s1893_s4 + $0xfc] sm:$0xf] %vm1159_vm0, %v1158_v23 }
 0x1b0 PF: > { %s13_s12 = sadd.s32 1, %s1725_s12  }
 0x1b1   : > { %p10_p4 = scmp.ge.s32.totalorder %s13_s12, 4  }
 0x1b3   :  { %12 = sbr.rel (!%p10_p4) target bundleno = 1 (0x1), region = 62 }

// kernel: dueling_dqn_forward.5
= control target key start
LH: loop header
LB: loop body
LE: loop exit
PB: predicated region body
PF: predicated region fallthrough
CT: control target
= control target key end

     0   :  { %vm838_vm0 = vcmask 519168   ;;  %s1741_s1 = inlined_call_operand.vmem [shape: bf16[512,64], index: 1, kind: input, shape index: {}]   ;;  %s1742_s2 = inlined_call_operand.vmem [shape: f32[1,64], index: 2, kind: input, shape index: {}]   ;;  %s1743_s0 = inlined_call_operand.vmem [shape: bf16[176,512], index: 0, kind: input, shape index: {}]   ;;  %s1744_s3 = inlined_call_operand.vmem [shape: bf16[176,64], index: 3, kind: output, shape index: {}]  }
   0x1   :  { %v1220_v0 = vld [vmem:[%s1741_s1 + $0x38] sm:$0xff]  ;;  %v1219_v4 = vld [vmem:[%s1741_s1 + $0x30] sm:$0xff]  ;;  %v1218_v8 = vld [vmem:[%s1741_s1 + $0x28] sm:$0xff] }
   0x2   :  { %v1228_v1 = vld [vmem:[%s1741_s1 + $0x78] sm:$0xff]  ;;  %538 = vmatpush.bf16.msra.mxu0 %v1220_v0  ;;  %v1227_v5 = vld [vmem:[%s1741_s1 + $0x70] sm:$0xff]  ;;  %v1226_v9 = vld [vmem:[%s1741_s1 + $0x68] sm:$0xff] }
   0x3   :  { %v1236_v2 = vld [vmem:[%s1741_s1 + $0xb8] sm:$0xff]  ;;  %602 = vmatpush.bf16.msra.mxu1 %v1228_v1  ;;  %v1235_v6 = vld [vmem:[%s1741_s1 + $0xb0] sm:$0xff]  ;;  %v1234_v10 = vld [vmem:[%s1741_s1 + $0xa8] sm:$0xff] }
   0x4   :  { %v1244_v3 = vld [vmem:[%s1741_s1 + $0xf8] sm:$0xff]  ;;  %666 = vmatpush.bf16.msra.mxu2 %v1236_v2  ;;  %v1243_v7 = vld [vmem:[%s1741_s1 + $0xf0] sm:$0xff]  ;;  %v1242_v11 = vld [vmem:[%s1741_s1 + $0xe8] sm:$0xff] }
   0x5   :  { %730 = vmatpush.bf16.msra.mxu3 %v1244_v3  ;;  %v1217_v12 = vld [vmem:[%s1741_s1 + $0x20] sm:$0xff]  ;;  %v1216_v16 = vld [vmem:[%s1741_s1 + $0x18] sm:$0xff]  ;;  %v1215_v20 = vld [vmem:[%s1741_s1 + $0x10] sm:$0xff] }
   0x6   :  { %539 = vmatpush.bf16.msra.mxu0 %v1219_v4  ;;  %v1225_v13 = vld [vmem:[%s1741_s1 + $0x60] sm:$0xff]  ;;  %v1224_v17 = vld [vmem:[%s1741_s1 + $0x58] sm:$0xff]  ;;  %v1223_v21 = vld [vmem:[%s1741_s1 + $0x50] sm:$0xff] }
   0x7   :  { %603 = vmatpush.bf16.msra.mxu1 %v1227_v5  ;;  %v1233_v14 = vld [vmem:[%s1741_s1 + $0xa0] sm:$0xff]  ;;  %v1232_v18 = vld [vmem:[%s1741_s1 + $0x98] sm:$0xff]  ;;  %v1231_v22 = vld [vmem:[%s1741_s1 + $0x90] sm:$0xff] }
   0x8   :  { %667 = vmatpush.bf16.msra.mxu2 %v1235_v6  ;;  %v1241_v15 = vld [vmem:[%s1741_s1 + $0xe0] sm:$0xff]  ;;  %v1240_v19 = vld [vmem:[%s1741_s1 + $0xd8] sm:$0xff]  ;;  %v1239_v23 = vld [vmem:[%s1741_s1 + $0xd0] sm:$0xff] }
   0x9   :  { %731 = vmatpush.bf16.msra.mxu3 %v1243_v7  ;;  %v1214_v24 = vld [vmem:[%s1741_s1 + $0x8] sm:$0xff]  ;;  %v1213_v28 = vld [vmem:[%s1741_s1] sm:$0xff]  ;;  %v1171_v33 = vld [vmem:[%s1743_s0 + $0xc] sm:$0xf0] }
   0xa   :  { %540 = vmatpush.bf16.msra.mxu0 %v1218_v8  ;;  %v1222_v25 = vld [vmem:[%s1741_s1 + $0x48] sm:$0xff]  ;;  %v1221_v29 = vld [vmem:[%s1741_s1 + $0x40] sm:$0xff]  ;;  %v869_v35 = vld [vmem:[%s1743_s0 + $0x10] sm:$0xf0] }
   0xb   :  { %604 = vmatpush.bf16.msra.mxu1 %v1226_v9  ;;  %v1230_v26 = vld [vmem:[%s1741_s1 + $0x88] sm:$0xff]  ;;  %v1229_v30 = vld [vmem:[%s1741_s1 + $0x80] sm:$0xff]  ;;  %v1172_v37 = vld [vmem:[%s1743_s0 + $0x14] sm:$0xf0] }
   0xc   :  { %668 = vmatpush.bf16.msra.mxu2 %v1234_v10  ;;  %v1238_v27 = vld [vmem:[%s1741_s1 + $0xc8] sm:$0xff]  ;;  %v1237_v31 = vld [vmem:[%s1741_s1 + $0xc0] sm:$0xff]  ;;  %v877_v39 = vld [vmem:[%s1743_s0 + $0x18] sm:$0xf0] }
   0xd   :  { %732 = vmatpush.bf16.msra.mxu3 %v1242_v11  ;;  %v867_v32 = vld [vmem:[%s1743_s0] sm:$0xf]  ;;  %v1169_v34 = vld [vmem:[%s1743_s0 + $0x4] sm:$0xf]  ;;  %v875_v36 = vld [vmem:[%s1743_s0 + $0x8] sm:$0xf] }
   0xe   :  { %541 = vmatpush.bf16.msra.mxu0 %v1217_v12  ;;  %v1170_v38 = vld [vmem:[%s1743_s0 + $0xc] sm:$0xf]  ;;  %v868_v40 = vor.u32 %v1171_v33, %v867_v32  ;;  %v872_v41 = vor.u32 %v1169_v34, %v869_v35  ;;  %v876_v42 = vor.u32 %v1172_v37, %v875_v36  ;;  %v883_v44 = vld [vmem:[%s1743_s0 + $0x20] sm:$0xf]  ;;  %v1175_v45 = vld [vmem:[%s1743_s0 + $0x2c] sm:$0xf0] }
   0xf   :  { %605 = vmatpush.bf16.msra.mxu1 %v1225_v13  ;;  %v880_v43 = vor.u32 %v1170_v38, %v877_v39  ;;  %v1173_v46 = vld [vmem:[%s1743_s0 + $0x24] sm:$0xf]  ;;  %v885_v47 = vld [vmem:[%s1743_s0 + $0x30] sm:$0xf0]  ;;  %v891_v48 = vld [vmem:[%s1743_s0 + $0x28] sm:$0xf]  ;;  %v884_v52 = vor.u32 %v1175_v45, %v883_v44 }
  0x10   :  { %669 = vmatpush.bf16.msra.mxu2 %v1233_v14  ;;  %v1176_v49 = vld [vmem:[%s1743_s0 + $0x34] sm:$0xf0]  ;;  %v1174_v50 = vld [vmem:[%s1743_s0 + $0x2c] sm:$0xf]  ;;  %v893_v51 = vld [vmem:[%s1743_s0 + $0x38] sm:$0xf0]  ;;  %v888_v53 = vor.u32 %v1173_v46, %v885_v47 }
  0x11   :  { %733 = vmatpush.bf16.msra.mxu3 %v1241_v15  ;;  %v892_v54 = vor.u32 %v1176_v49, %v891_v48  ;;  %v896_v55 = vor.u32 %v1174_v50, %v893_v51  ;;  %v899_v56 = vld [vmem:[%s1743_s0 + $0x40] sm:$0xf]  ;;  %v1179_v57 = vld [vmem:[%s1743_s0 + $0x4c] sm:$0xf0]  ;;  %v1177_v58 = vld [vmem:[%s1743_s0 + $0x44] sm:$0xf] }
  0x12   :  { %542 = vmatpush.bf16.msra.mxu0 %v1216_v16  ;;  %v901_v59 = vld [vmem:[%s1743_s0 + $0x50] sm:$0xf0]  ;;  %v907_v60 = vld [vmem:[%s1743_s0 + $0x48] sm:$0xf]  ;;  %v1180_v61 = vld [vmem:[%s1743_s0 + $0x54] sm:$0xf0]  ;;  %v900_v0 = vor.u32 %v1179_v57, %v899_v56 }
  0x13   :  { %606 = vmatpush.bf16.msra.mxu1 %v1224_v17  ;;  %v1178_v62 = vld [vmem:[%s1743_s0 + $0x4c] sm:$0xf]  ;;  %v909_v63 = vld [vmem:[%s1743_s0 + $0x58] sm:$0xf0]  ;;  %v904_v1 = vor.u32 %v1177_v58, %v901_v59  ;;  %v908_v2 = vor.u32 %v1180_v61, %v907_v60  ;;  %v915_v4 = vld [vmem:[%s1743_s0 + $0x60] sm:$0xf] }
  0x14   :  { %670 = vmatpush.bf16.msra.mxu2 %v1232_v18  ;;  %v912_v3 = vor.u32 %v1178_v62, %v909_v63  ;;  %v1183_v5 = vld [vmem:[%s1743_s0 + $0x6c] sm:$0xf0]  ;;  %v1181_v6 = vld [vmem:[%s1743_s0 + $0x64] sm:$0xf]  ;;  %v917_v7 = vld [vmem:[%s1743_s0 + $0x70] sm:$0xf0] }
  0x15   :  { %734 = vmatpush.bf16.msra.mxu3 %v1240_v19  ;;  %v923_v8 = vld [vmem:[%s1743_s0 + $0x68] sm:$0xf]  ;;  %v1184_v9 = vld [vmem:[%s1743_s0 + $0x74] sm:$0xf0]  ;;  %v1182_v10 = vld [vmem:[%s1743_s0 + $0x6c] sm:$0xf]  ;;  %v916_v12 = vor.u32 %v1183_v5, %v915_v4  ;;  %v920_v13 = vor.u32 %v1181_v6, %v917_v7 }
  0x16   :  { %543 = vmatpush.bf16.msra.mxu0 %v1215_v20  ;;  %v925_v11 = vld [vmem:[%s1743_s0 + $0x78] sm:$0xf0]  ;;  %v924_v14 = vor.u32 %v1184_v9, %v923_v8  ;;  %v931_v16 = vld [vmem:[%s1743_s0 + $0x80] sm:$0xf]  ;;  %v1187_v17 = vld [vmem:[%s1743_s0 + $0x8c] sm:$0xf0] }
  0x17   :  { %607 = vmatpush.bf16.msra.mxu1 %v1223_v21  ;;  %v928_v15 = vor.u32 %v1182_v10, %v925_v11  ;;  %v1185_v18 = vld [vmem:[%s1743_s0 + $0x84] sm:$0xf]  ;;  %v933_v19 = vld [vmem:[%s1743_s0 + $0x90] sm:$0xf0]  ;;  %v939_v20 = vld [vmem:[%s1743_s0 + $0x88] sm:$0xf] }
  0x18   :  { %671 = vmatpush.bf16.msra.mxu2 %v1231_v22  ;;  %v1188_v21 = vld [vmem:[%s1743_s0 + $0x94] sm:$0xf0]  ;;  %v1186_v22 = vld [vmem:[%s1743_s0 + $0x8c] sm:$0xf]  ;;  %v955_v32 = vld [vmem:[%s1743_s0 + $0xa8] sm:$0xf] }
  0x19   :  { %735 = vmatpush.bf16.msra.mxu3 %v1239_v23  ;;  %v941_v23 = vld [vmem:[%s1743_s0 + $0x98] sm:$0xf0]  ;;  %v1192_v33 = vld [vmem:[%s1743_s0 + $0xb4] sm:$0xf0]  ;;  %v1190_v34 = vld [vmem:[%s1743_s0 + $0xac] sm:$0xf] }
  0x1a   :  { %544 = vmatpush.bf16.msra.mxu0 %v1214_v24  ;;  %v932_v24 = vor.u32 %v1187_v17, %v931_v16  ;;  %v957_v35 = vld [vmem:[%s1743_s0 + $0xb8] sm:$0xf0]  ;;  %v956_v38 = vor.u32 %v1192_v33, %v955_v32  ;;  %v971_v44 = vld [vmem:[%s1743_s0 + $0xc8] sm:$0xf]  ;;  %v1196_v45 = vld [vmem:[%s1743_s0 + $0xd4] sm:$0xf0] }
  0x1b   :  { %608 = vmatpush.bf16.msra.mxu1 %v1222_v25  ;;  %v936_v25 = vor.u32 %v1185_v18, %v933_v19  ;;  %v960_v39 = vor.u32 %v1190_v34, %v957_v35  ;;  %v1194_v46 = vld [vmem:[%s1743_s0 + $0xcc] sm:$0xf]  ;;  %v973_v47 = vld [vmem:[%s1743_s0 + $0xd8] sm:$0xf0]  ;;  %v972_v50 = vor.u32 %v1196_v45, %v971_v44  ;;  %v987_v56 = vld [vmem:[%s1743_s0 + $0xe8] sm:$0xf] }
  0x1c   :  { %672 = vmatpush.bf16.msra.mxu2 %v1230_v26  ;;  %v940_v26 = vor.u32 %v1188_v21, %v939_v20  ;;  %v976_v51 = vor.u32 %v1194_v46, %v973_v47  ;;  %v1200_v57 = vld [vmem:[%s1743_s0 + $0xf4] sm:$0xf0]  ;;  %v1198_v58 = vld [vmem:[%s1743_s0 + $0xec] sm:$0xf]  ;;  %v989_v59 = vld [vmem:[%s1743_s0 + $0xf8] sm:$0xf0] }
  0x1d   :  { %736 = vmatpush.bf16.msra.mxu3 %v1238_v27  ;;  %v944_v27 = vor.u32 %v1186_v22, %v941_v23  ;;  %v988_v62 = vor.u32 %v1200_v57, %v987_v56  ;;  %v992_v63 = vor.u32 %v1198_v58, %v989_v59  ;;  %v997_v4 = vld [vmem:[%s1743_s0 + $0x110] sm:$0xf0]  ;;  %v1003_v5 = vld [vmem:[%s1743_s0 + $0x108] sm:$0xf]  ;;  %v1204_v6 = vld [vmem:[%s1743_s0 + $0x114] sm:$0xf0] }
  0x1e   :  { %545 = vmatpush.bf16.msra.mxu0 %v1213_v28  ;;  %v947_v28 = vld [vmem:[%s1743_s0 + $0xa0] sm:$0xf]  ;;  %v1202_v7 = vld [vmem:[%s1743_s0 + $0x10c] sm:$0xf]  ;;  %v1005_v8 = vld [vmem:[%s1743_s0 + $0x118] sm:$0xf0] }
  0x1f   :  { %609 = vmatpush.bf16.msra.mxu1 %v1221_v29  ;;  %v1191_v29 = vld [vmem:[%s1743_s0 + $0xac] sm:$0xf0]  ;;  %v1021_v32 = vld [vmem:[%s1743_s0 + $0x138] sm:$0xf0]  ;;  %v1027_v56 = vld [vmem:[%s1743_s0 + $0x140] sm:$0xf] }
  0x20   :  { %673 = vmatpush.bf16.msra.mxu2 %v1229_v30  ;;  %v1189_v30 = vld [vmem:[%s1743_s0 + $0xa4] sm:$0xf]  ;;  %v948_v36 = vor.u32 %v1191_v29, %v947_v28  ;;  %v1013_v28 = vld [vmem:[%s1743_s0 + $0x130] sm:$0xf0]  ;;  %v1019_v29 = vld [vmem:[%s1743_s0 + $0x128] sm:$0xf] }
  0x21   :  { %737 = vmatpush.bf16.msra.mxu3 %v1237_v31  ;;  %546 = vmatmul.bf16.vlgmr.msra.gmra.mxu0 %v868_v40  ;;  %v949_v31 = vld [vmem:[%s1743_s0 + $0xb0] sm:$0xf0]  ;;  %v963_v40 = vld [vmem:[%s1743_s0 + $0xc0] sm:$0xf]  ;;  %v1211_v57 = vld [vmem:[%s1743_s0 + $0x14c] sm:$0xf0] }
  0x22   :  { %610 = vmatmul.bf16.vlgmr.msra.gmra.mxu1 %v872_v41  ;;  %v952_v37 = vor.u32 %v1189_v30, %v949_v31  ;;  %v1195_v41 = vld [vmem:[%s1743_s0 + $0xcc] sm:$0xf0]  ;;  %v1208_v30 = vld [vmem:[%s1743_s0 + $0x134] sm:$0xf0]  ;;  %v1206_v31 = vld [vmem:[%s1743_s0 + $0x12c] sm:$0xf] }
  0x23   :  { %674 = vmatmul.bf16.vlgmr.msra.gmra.mxu2 %v876_v42  ;;  %v1193_v42 = vld [vmem:[%s1743_s0 + $0xc4] sm:$0xf]  ;;  %v964_v48 = vor.u32 %v1195_v41, %v963_v40 }
  0x24   :  { %738 = vmatmul.bf16.vlgmr.msra.gmra.mxu3 %v880_v43  ;;  %v965_v43 = vld [vmem:[%s1743_s0 + $0xd0] sm:$0xf0]  ;;  %v1209_v58 = vld [vmem:[%s1743_s0 + $0x144] sm:$0xf] }
  0x25   :  { %v968_v49 = vor.u32 %v1193_v42, %v965_v43  ;;  %v1020_v42 = vor.u32 %v1208_v30, %v1019_v29  ;;  %v1024_v43 = vor.u32 %v1206_v31, %v1021_v32 }
  0x31   :  { %551 = vmatmul.bf16.gmra.mxu0 %v884_v52  ;;  %v979_v52 = vld [vmem:[%s1743_s0 + $0xe0] sm:$0xf] }
  0x32   :  { %615 = vmatmul.bf16.gmra.mxu1 %v888_v53  ;;  %v1199_v53 = vld [vmem:[%s1743_s0 + $0xec] sm:$0xf0] }
  0x33   :  { %679 = vmatmul.bf16.gmra.mxu2 %v892_v54  ;;  %v1197_v54 = vld [vmem:[%s1743_s0 + $0xe4] sm:$0xf]  ;;  %v980_v60 = vor.u32 %v1199_v53, %v979_v52 }
  0x34   :  { %743 = vmatmul.bf16.gmra.mxu3 %v896_v55  ;;  %v981_v55 = vld [vmem:[%s1743_s0 + $0xf0] sm:$0xf0] }
  0x35   :  { %v984_v61 = vor.u32 %v1197_v54, %v981_v55 }
  0x41   :  { %556 = vmatmul.bf16.gmra.mxu0 %v900_v0  ;;  %v1557_v0 = vld [vmem:[%s1742_s2] ss:$0 sm:$0xff] }
  0x42   :  { %620 = vmatmul.bf16.gmra.mxu1 %v904_v1  ;;  %v995_v1 = vld [vmem:[%s1743_s0 + $0x100] sm:$0xf] }
  0x43   :  { %684 = vmatmul.bf16.gmra.mxu2 %v908_v2  ;;  %v1203_v2 = vld [vmem:[%s1743_s0 + $0x10c] sm:$0xf0] }
  0x44   :  { %748 = vmatmul.bf16.gmra.mxu3 %v912_v3  ;;  %v1201_v3 = vld [vmem:[%s1743_s0 + $0x104] sm:$0xf]  ;;  %v996_v9 = vor.u32 %v1203_v2, %v995_v1  ;;  %v1037_v1 = vld [vmem:[%s1743_s0 + $0x158] sm:$0xf0] }
  0x45   :  { %v1000_v10 = vor.u32 %v1201_v3, %v997_v4 }
  0x51   :  { %561 = vmatmul.bf16.gmra.mxu0 %v916_v12 }
  0x52   :  { %625 = vmatmul.bf16.gmra.mxu1 %v920_v13  ;;  %v1004_v13 = vor.u32 %v1204_v6, %v1003_v5  ;;  %v1028_v6 = vor.u32 %v1211_v57, %v1027_v56 }
  0x53   :  { %689 = vmatmul.bf16.gmra.mxu2 %v924_v14  ;;  %v1008_v14 = vor.u32 %v1202_v7, %v1005_v8 }
  0x54   :  { %753 = vmatmul.bf16.gmra.mxu3 %v928_v15 }
  0x61   :  { %566 = vmatmul.bf16.gmra.mxu0 %v932_v24  ;;  %v1011_v24 = vld [vmem:[%s1743_s0 + $0x120] sm:$0xf] }
  0x62   :  { %630 = vmatmul.bf16.gmra.mxu1 %v936_v25  ;;  %v1207_v25 = vld [vmem:[%s1743_s0 + $0x12c] sm:$0xf0] }
  0x63   :  { %694 = vmatmul.bf16.gmra.mxu2 %v940_v26  ;;  %v1205_v26 = vld [vmem:[%s1743_s0 + $0x124] sm:$0xf] }
  0x64   :  { %758 = vmatmul.bf16.gmra.mxu3 %v944_v27 }
  0x71   :  { %571 = vmatmul.bf16.gmra.mxu0 %v948_v36 }
  0x72   :  { %635 = vmatmul.bf16.gmra.mxu1 %v952_v37  ;;  %v1012_v37 = vor.u32 %v1207_v25, %v1011_v24 }
  0x73   :  { %699 = vmatmul.bf16.gmra.mxu2 %v956_v38  ;;  %v1016_v38 = vor.u32 %v1205_v26, %v1013_v28 }
  0x74   :  { %763 = vmatmul.bf16.gmra.mxu3 %v960_v39 }
  0x81   :  { %576 = vmatmul.bf16.gmra.mxu0 %v964_v48 }
  0x82   :  { %640 = vmatmul.bf16.gmra.mxu1 %v968_v49 }
  0x83   :  { %704 = vmatmul.bf16.gmra.mxu2 %v972_v50 }
  0x84   :  { %768 = vmatmul.bf16.gmra.mxu3 %v976_v51 }
  0x91   :  { %581 = vmatmul.bf16.gmra.mxu0 %v980_v60  ;;  %v1029_v60 = vld [vmem:[%s1743_s0 + $0x150] sm:$0xf0] }
  0x92   :  { %645 = vmatmul.bf16.gmra.mxu1 %v984_v61  ;;  %v1035_v61 = vld [vmem:[%s1743_s0 + $0x148] sm:$0xf]  ;;  %v1032_v7 = vor.u32 %v1209_v58, %v1029_v60 }
  0x93   :  { %709 = vmatmul.bf16.gmra.mxu2 %v988_v62  ;;  %v1212_v62 = vld [vmem:[%s1743_s0 + $0x154] sm:$0xf0] }
  0x94   :  { %773 = vmatmul.bf16.gmra.mxu3 %v992_v63  ;;  %v1210_v63 = vld [vmem:[%s1743_s0 + $0x14c] sm:$0xf] }
  0x9e   :  { %v547_v11 = vpop.f32.mrf.mxu0 }
  0x9f   :  { %v611_v12 = vpop.f32.mrf.mxu1  ;;  %v548_v15 = vadd.f32 %v1557_v0, %v547_v11  ;;  %v1036_v11 = vor.u32 %v1212_v62, %v1035_v61 }
  0xa1   :  { %586 = vmatmul.bf16.gmra.mxu0 %v996_v9  ;;  %v612_v16 = vadd.f32 %v611_v12, %v548_v15  ;;  %v1040_v12 = vor.u32 %v1210_v63, %v1037_v1 }
  0xa2   :  { %650 = vmatmul.bf16.gmra.mxu1 %v1000_v10 }
  0xa3   :  { %714 = vmatmul.bf16.gmra.mxu2 %v1004_v13 }
  0xa4   :  { %778 = vmatmul.bf16.gmra.mxu3 %v1008_v14 }
  0xa6   :  { %v675_v17 = vpop.f32.mrf.mxu2  ;;  %v549_v20 = vpop.f32.mrf.mxu0 }
  0xa7   :  { %v739_v18 = vpop.f32.mrf.mxu3  ;;  %v676_v19 = vadd.f32 %v675_v17, %v612_v16  ;;  %v613_v21 = vpop.f32.mrf.mxu1  ;;  %v550_v23 = vadd.f32 %v1557_v0, %v549_v20 }
  0xa9   :  { %v740_v22 = vadd.f32 %v739_v18, %v676_v19  ;;  %v614_v34 = vadd.f32 %v613_v21, %v550_v23 }
  0xab   :  { %v794_v27 = vmax.f32 %v740_v22, 0.0 }
  0xad   :  { %v816_v33 = vpack.c.bf16 %v794_v27, %v794_v27 }
  0xae   :  { %v677_v35 = vpop.f32.mrf.mxu2  ;;  %v552_v40 = vpop.f32.mrf.mxu0 }
  0xaf   :  { %v741_v36 = vpop.f32.mrf.mxu3  ;;  %839 = vst.msk [vmem:[%s1744_s3] sm:$0xf] %vm838_vm0, %v816_v33  ;;  %v678_v39 = vadd.f32 %v677_v35, %v614_v34  ;;  %v616_v41 = vpop.f32.mrf.mxu1  ;;  %v553_v44 = vadd.f32 %v1557_v0, %v552_v40 }
  0xb1   :  { %v742_v45 = vadd.f32 %v741_v36, %v678_v39  ;;  %591 = vmatmul.bf16.gmra.mxu0 %v1012_v37  ;;  %v617_v47 = vadd.f32 %v616_v41, %v553_v44 }
  0xb2   :  { %655 = vmatmul.bf16.gmra.mxu1 %v1016_v38 }
  0xb3   :  { %v795_v46 = vmax.f32 %v742_v45, 0.0  ;;  %719 = vmatmul.bf16.gmra.mxu2 %v1020_v42 }
  0xb4   :  { %783 = vmatmul.bf16.gmra.mxu3 %v1024_v43 }
  0xb5   :  { %v817_v48 = vpack.c.bf16 %v795_v46, %v795_v46 }
  0xb6   :  { %v680_v49 = vpop.f32.mrf.mxu2  ;;  %v554_v52 = vpop.f32.mrf.mxu0 }
  0xb7   :  { %v744_v50 = vpop.f32.mrf.mxu3  ;;  %840 = vst.msk [vmem:[%s1744_s3 + $0x4] sm:$0xf] %vm838_vm0, %v817_v48  ;;  %v681_v51 = vadd.f32 %v680_v49, %v617_v47  ;;  %v618_v53 = vpop.f32.mrf.mxu1  ;;  %v555_v55 = vadd.f32 %v1557_v0, %v554_v52 }
  0xb9   :  { %v745_v54 = vadd.f32 %v744_v50, %v681_v51  ;;  %v619_v3 = vadd.f32 %v618_v53, %v555_v55 }
  0xbb   :  { %v796_v59 = vmax.f32 %v745_v54, 0.0 }
  0xbd   :  { %v818_v2 = vpack.c.bf16 %v796_v59, %v796_v59 }
  0xbe   :  { %v682_v4 = vpop.f32.mrf.mxu2  ;;  %v557_v9 = vpop.f32.mrf.mxu0 }
  0xbf   :  { %v746_v5 = vpop.f32.mrf.mxu3  ;;  %841 = vst.msk [vmem:[%s1744_s3 + $0x8] sm:$0xf] %vm838_vm0, %v818_v2  ;;  %v683_v8 = vadd.f32 %v682_v4, %v619_v3  ;;  %v621_v10 = vpop.f32.mrf.mxu1  ;;  %v558_v13 = vadd.f32 %v1557_v0, %v557_v9 }
  0xc1   :  { %v747_v14 = vadd.f32 %v746_v5, %v683_v8  ;;  %596 = vmatmul.bf16.gmra.mxu0 %v1028_v6  ;;  %v622_v16 = vadd.f32 %v621_v10, %v558_v13 }
  0xc2   :  { %660 = vmatmul.bf16.gmra.mxu1 %v1032_v7 }
  0xc3   :  { %v797_v15 = vmax.f32 %v747_v14, 0.0  ;;  %724 = vmatmul.bf16.gmra.mxu2 %v1036_v11 }
  0xc4   :  { %788 = vmatmul.bf16.gmra.mxu3 %v1040_v12 }
  0xc5   :  { %v819_v17 = vpack.c.bf16 %v797_v15, %v797_v15 }
  0xc6   :  { %v685_v18 = vpop.f32.mrf.mxu2  ;;  %v559_v21 = vpop.f32.mrf.mxu0 }
  0xc7   :  { %v749_v19 = vpop.f32.mrf.mxu3  ;;  %842 = vst.msk [vmem:[%s1744_s3 + $0xc] sm:$0xf] %vm838_vm0, %v819_v17  ;;  %v686_v20 = vadd.f32 %v685_v18, %v622_v16  ;;  %v623_v22 = vpop.f32.mrf.mxu1  ;;  %v560_v24 = vadd.f32 %v1557_v0, %v559_v21 }
  0xc9   :  { %v750_v23 = vadd.f32 %v749_v19, %v686_v20  ;;  %v624_v27 = vadd.f32 %v623_v22, %v560_v24 }
  0xcb   :  { %v798_v25 = vmax.f32 %v750_v23, 0.0 }
  0xcd   :  { %v820_v26 = vpack.c.bf16 %v798_v25, %v798_v25 }
  0xce   :  { %v687_v28 = vpop.f32.mrf.mxu2  ;;  %v562_v31 = vpop.f32.mrf.mxu0 }
  0xcf   :  { %v751_v29 = vpop.f32.mrf.mxu3  ;;  %843 = vst.msk [vmem:[%s1744_s3 + $0x10] sm:$0xf] %vm838_vm0, %v820_v26  ;;  %v688_v30 = vadd.f32 %v687_v28, %v624_v27  ;;  %v626_v32 = vpop.f32.mrf.mxu1  ;;  %v563_v33 = vadd.f32 %v1557_v0, %v562_v31 }
  0xd1   :  { %v752_v34 = vadd.f32 %v751_v29, %v688_v30  ;;  %v627_v36 = vadd.f32 %v626_v32, %v563_v33 }
  0xd3   :  { %v799_v35 = vmax.f32 %v752_v34, 0.0 }
  0xd5   :  { %v821_v37 = vpack.c.bf16 %v799_v35, %v799_v35 }
  0xd6   :  { %v690_v38 = vpop.f32.mrf.mxu2  ;;  %v564_v41 = vpop.f32.mrf.mxu0 }
  0xd7   :  { %v754_v39 = vpop.f32.mrf.mxu3  ;;  %844 = vst.msk [vmem:[%s1744_s3 + $0x14] sm:$0xf] %vm838_vm0, %v821_v37  ;;  %v691_v40 = vadd.f32 %v690_v38, %v627_v36  ;;  %v628_v42 = vpop.f32.mrf.mxu1  ;;  %v565_v44 = vadd.f32 %v1557_v0, %v564_v41 }
  0xd9   :  { %v755_v43 = vadd.f32 %v754_v39, %v691_v40  ;;  %v629_v47 = vadd.f32 %v628_v42, %v565_v44 }
  0xdb   :  { %v800_v45 = vmax.f32 %v755_v43, 0.0 }
  0xdd   :  { %v822_v46 = vpack.c.bf16 %v800_v45, %v800_v45 }
  0xde   :  { %v692_v48 = vpop.f32.mrf.mxu2  ;;  %v567_v51 = vpop.f32.mrf.mxu0 }
  0xdf   :  { %v756_v49 = vpop.f32.mrf.mxu3  ;;  %845 = vst.msk [vmem:[%s1744_s3 + $0x18] sm:$0xf] %vm838_vm0, %v822_v46  ;;  %v693_v50 = vadd.f32 %v692_v48, %v629_v47  ;;  %v631_v52 = vpop.f32.mrf.mxu1  ;;  %v568_v53 = vadd.f32 %v1557_v0, %v567_v51 }
  0xe1   :  { %v757_v54 = vadd.f32 %v756_v49, %v693_v50  ;;  %v632_v56 = vadd.f32 %v631_v52, %v568_v53 }
  0xe3   :  { %v801_v55 = vmax.f32 %v757_v54, 0.0 }
  0xe5   :  { %v823_v57 = vpack.c.bf16 %v801_v55, %v801_v55 }
  0xe6   :  { %v695_v58 = vpop.f32.mrf.mxu2  ;;  %v569_v61 = vpop.f32.mrf.mxu0 }
  0xe7   :  { %v759_v59 = vpop.f32.mrf.mxu3  ;;  %846 = vst.msk [vmem:[%s1744_s3 + $0x1c] sm:$0xf] %vm838_vm0, %v823_v57  ;;  %v696_v60 = vadd.f32 %v695_v58, %v632_v56  ;;  %v633_v62 = vpop.f32.mrf.mxu1  ;;  %v570_v1 = vadd.f32 %v1557_v0, %v569_v61 }
  0xe9   :  { %v760_v63 = vadd.f32 %v759_v59, %v696_v60  ;;  %v634_v4 = vadd.f32 %v633_v62, %v570_v1 }
  0xeb   :  { %v802_v2 = vmax.f32 %v760_v63, 0.0 }
  0xed   :  { %v824_v3 = vpack.c.bf16 %v802_v2, %v802_v2 }
  0xee   :  { %v697_v5 = vpop.f32.mrf.mxu2  ;;  %v572_v8 = vpop.f32.mrf.mxu0 }
  0xef   :  { %v761_v6 = vpop.f32.mrf.mxu3  ;;  %847 = vst.msk [vmem:[%s1744_s3 + $0x20] sm:$0xf] %vm838_vm0, %v824_v3  ;;  %v698_v7 = vadd.f32 %v697_v5, %v634_v4  ;;  %v636_v9 = vpop.f32.mrf.mxu1  ;;  %v573_v10 = vadd.f32 %v1557_v0, %v572_v8 }
  0xf1   :  { %v762_v11 = vadd.f32 %v761_v6, %v698_v7  ;;  %v637_v13 = vadd.f32 %v636_v9, %v573_v10 }
  0xf3   :  { %v803_v12 = vmax.f32 %v762_v11, 0.0 }
  0xf5   :  { %v825_v14 = vpack.c.bf16 %v803_v12, %v803_v12 }
  0xf6   :  { %v700_v15 = vpop.f32.mrf.mxu2  ;;  %v574_v18 = vpop.f32.mrf.mxu0 }
  0xf7   :  { %v764_v16 = vpop.f32.mrf.mxu3  ;;  %848 = vst.msk [vmem:[%s1744_s3 + $0x24] sm:$0xf] %vm838_vm0, %v825_v14  ;;  %v701_v17 = vadd.f32 %v700_v15, %v637_v13  ;;  %v638_v19 = vpop.f32.mrf.mxu1  ;;  %v575_v21 = vadd.f32 %v1557_v0, %v574_v18 }
  0xf9   :  { %v765_v20 = vadd.f32 %v764_v16, %v701_v17  ;;  %v639_v24 = vadd.f32 %v638_v19, %v575_v21 }
  0xfb   :  { %v804_v22 = vmax.f32 %v765_v20, 0.0 }
  0xfd   :  { %v826_v23 = vpack.c.bf16 %v804_v22, %v804_v22 }
  0xfe   :  { %v702_v25 = vpop.f32.mrf.mxu2  ;;  %v577_v28 = vpop.f32.mrf.mxu0 }
  0xff   :  { %v766_v26 = vpop.f32.mrf.mxu3  ;;  %849 = vst.msk [vmem:[%s1744_s3 + $0x28] sm:$0xf] %vm838_vm0, %v826_v23  ;;  %v703_v27 = vadd.f32 %v702_v25, %v639_v24  ;;  %v641_v29 = vpop.f32.mrf.mxu1  ;;  %v578_v30 = vadd.f32 %v1557_v0, %v577_v28 }
 0x101   :  { %v767_v31 = vadd.f32 %v766_v26, %v703_v27  ;;  %v642_v33 = vadd.f32 %v641_v29, %v578_v30 }
 0x103   :  { %v805_v32 = vmax.f32 %v767_v31, 0.0 }
 0x105   :  { %v827_v34 = vpack.c.bf16 %v805_v32, %v805_v32 }
 0x106   :  { %v705_v35 = vpop.f32.mrf.mxu2  ;;  %v579_v38 = vpop.f32.mrf.mxu0 }
 0x107   :  { %v769_v36 = vpop.f32.mrf.mxu3  ;;  %850 = vst.msk [vmem:[%s1744_s3 + $0x2c] sm:$0xf] %vm838_vm0, %v827_v34  ;;  %v706_v37 = vadd.f32 %v705_v35, %v642_v33  ;;  %v643_v39 = vpop.f32.mrf.mxu1  ;;  %v580_v41 = vadd.f32 %v1557_v0, %v579_v38 }
 0x109   :  { %v770_v40 = vadd.f32 %v769_v36, %v706_v37  ;;  %v644_v44 = vadd.f32 %v643_v39, %v580_v41 }
 0x10b   :  { %v806_v42 = vmax.f32 %v770_v40, 0.0 }
 0x10d   :  { %v828_v43 = vpack.c.bf16 %v806_v42, %v806_v42 }
 0x10e   :  { %v707_v45 = vpop.f32.mrf.mxu2  ;;  %v582_v48 = vpop.f32.mrf.mxu0 }
 0x10f   :  { %v771_v46 = vpop.f32.mrf.mxu3  ;;  %851 = vst.msk [vmem:[%s1744_s3 + $0x30] sm:$0xf] %vm838_vm0, %v828_v43  ;;  %v708_v47 = vadd.f32 %v707_v45, %v644_v44  ;;  %v646_v49 = vpop.f32.mrf.mxu1  ;;  %v583_v50 = vadd.f32 %v1557_v0, %v582_v48 }
 0x111   :  { %v772_v51 = vadd.f32 %v771_v46, %v708_v47  ;;  %v647_v53 = vadd.f32 %v646_v49, %v583_v50 }
 0x113   :  { %v807_v52 = vmax.f32 %v772_v51, 0.0 }
 0x115   :  { %v829_v54 = vpack.c.bf16 %v807_v52, %v807_v52 }
 0x116   :  { %v710_v55 = vpop.f32.mrf.mxu2  ;;  %v584_v58 = vpop.f32.mrf.mxu0 }
 0x117   :  { %v774_v56 = vpop.f32.mrf.mxu3  ;;  %852 = vst.msk [vmem:[%s1744_s3 + $0x34] sm:$0xf] %vm838_vm0, %v829_v54  ;;  %v711_v57 = vadd.f32 %v710_v55, %v647_v53  ;;  %v648_v59 = vpop.f32.mrf.mxu1  ;;  %v585_v61 = vadd.f32 %v1557_v0, %v584_v58 }
 0x119   :  { %v775_v60 = vadd.f32 %v774_v56, %v711_v57  ;;  %v649_v1 = vadd.f32 %v648_v59, %v585_v61 }
 0x11b   :  { %v808_v62 = vmax.f32 %v775_v60, 0.0 }
 0x11d   :  { %v830_v63 = vpack.c.bf16 %v808_v62, %v808_v62 }
 0x11e   :  { %v712_v2 = vpop.f32.mrf.mxu2  ;;  %v587_v5 = vpop.f32.mrf.mxu0 }
 0x11f   :  { %v776_v3 = vpop.f32.mrf.mxu3  ;;  %853 = vst.msk [vmem:[%s1744_s3 + $0x38] sm:$0xf] %vm838_vm0, %v830_v63  ;;  %v713_v4 = vadd.f32 %v712_v2, %v649_v1  ;;  %v651_v6 = vpop.f32.mrf.mxu1  ;;  %v588_v7 = vadd.f32 %v1557_v0, %v587_v5 }
 0x121   :  { %v777_v8 = vadd.f32 %v776_v3, %v713_v4  ;;  %v652_v10 = vadd.f32 %v651_v6, %v588_v7 }
 0x123   :  { %v809_v9 = vmax.f32 %v777_v8, 0.0 }
 0x125   :  { %v831_v11 = vpack.c.bf16 %v809_v9, %v809_v9 }
 0x126   :  { %v715_v12 = vpop.f32.mrf.mxu2  ;;  %v589_v15 = vpop.f32.mrf.mxu0 }
 0x127   :  { %v779_v13 = vpop.f32.mrf.mxu3  ;;  %854 = vst.msk [vmem:[%s1744_s3 + $0x3c] sm:$0xf] %vm838_vm0, %v831_v11  ;;  %v716_v14 = vadd.f32 %v715_v12, %v652_v10  ;;  %v653_v16 = vpop.f32.mrf.mxu1  ;;  %v590_v18 = vadd.f32 %v1557_v0, %v589_v15 }
 0x129   :  { %v780_v17 = vadd.f32 %v779_v13, %v716_v14  ;;  %v654_v21 = vadd.f32 %v653_v16, %v590_v18 }
 0x12b   :  { %v810_v19 = vmax.f32 %v780_v17, 0.0 }
 0x12d   :  { %v832_v20 = vpack.c.bf16 %v810_v19, %v810_v19 }
 0x12e   :  { %v717_v22 = vpop.f32.mrf.mxu2  ;;  %v592_v25 = vpop.f32.mrf.mxu0 }
 0x12f   :  { %v781_v23 = vpop.f32.mrf.mxu3  ;;  %855 = vst.msk [vmem:[%s1744_s3 + $0x40] sm:$0xf] %vm838_vm0, %v832_v20  ;;  %v718_v24 = vadd.f32 %v717_v22, %v654_v21  ;;  %v656_v26 = vpop.f32.mrf.mxu1  ;;  %v593_v27 = vadd.f32 %v1557_v0, %v592_v25 }
 0x131   :  { %v782_v28 = vadd.f32 %v781_v23, %v718_v24  ;;  %v657_v30 = vadd.f32 %v656_v26, %v593_v27 }
 0x133   :  { %v811_v29 = vmax.f32 %v782_v28, 0.0 }
 0x135   :  { %v833_v31 = vpack.c.bf16 %v811_v29, %v811_v29 }
 0x136   :  { %v720_v32 = vpop.f32.mrf.mxu2  ;;  %v594_v35 = vpop.f32.mrf.mxu0 }
 0x137   :  { %v784_v33 = vpop.f32.mrf.mxu3  ;;  %856 = vst.msk [vmem:[%s1744_s3 + $0x44] sm:$0xf] %vm838_vm0, %v833_v31  ;;  %v721_v34 = vadd.f32 %v720_v32, %v657_v30  ;;  %v658_v36 = vpop.f32.mrf.mxu1  ;;  %v595_v38 = vadd.f32 %v1557_v0, %v594_v35 }
 0x139   :  { %v785_v37 = vadd.f32 %v784_v33, %v721_v34  ;;  %v659_v41 = vadd.f32 %v658_v36, %v595_v38 }
 0x13b   :  { %v812_v39 = vmax.f32 %v785_v37, 0.0 }
 0x13d   :  { %v834_v40 = vpack.c.bf16 %v812_v39, %v812_v39 }
 0x13e   :  { %v722_v42 = vpop.f32.mrf.mxu2  ;;  %v597_v45 = vpop.f32.mrf.mxu0 }
 0x13f   :  { %v786_v43 = vpop.f32.mrf.mxu3  ;;  %857 = vst.msk [vmem:[%s1744_s3 + $0x48] sm:$0xf] %vm838_vm0, %v834_v40  ;;  %v723_v44 = vadd.f32 %v722_v42, %v659_v41  ;;  %v598_v46 = vadd.f32 %v1557_v0, %v597_v45  ;;  %v661_v48 = vpop.f32.mrf.mxu1 }
 0x141   :  { %v787_v47 = vadd.f32 %v786_v43, %v723_v44  ;;  %v662_v50 = vadd.f32 %v661_v48, %v598_v46 }
 0x143   :  { %v813_v49 = vmax.f32 %v787_v47, 0.0 }
 0x145   :  { %v835_v51 = vpack.c.bf16 %v813_v49, %v813_v49 }
 0x146   :  { %v725_v52 = vpop.f32.mrf.mxu2  ;;  %v599_v55 = vpop.f32.mrf.mxu0 }
 0x147   :  { %v789_v53 = vpop.f32.mrf.mxu3  ;;  %858 = vst.msk [vmem:[%s1744_s3 + $0x4c] sm:$0xf] %vm838_vm0, %v835_v51  ;;  %v726_v54 = vadd.f32 %v725_v52, %v662_v50  ;;  %v600_v57 = vadd.f32 %v1557_v0, %v599_v55  ;;  %v663_v59 = vpop.f32.mrf.mxu1 }
 0x149   :  { %v790_v56 = vadd.f32 %v789_v53, %v726_v54  ;;  %v664_v61 = vadd.f32 %v663_v59, %v600_v57 }
 0x14b   :  { %v814_v58 = vmax.f32 %v790_v56, 0.0 }
 0x14d   :  { %v836_v60 = vpack.c.bf16 %v814_v58, %v814_v58 }
 0x14e   :  { %v727_v62 = vpop.f32.mrf.mxu2 }
 0x14f   :  { %859 = vst.msk [vmem:[%s1744_s3 + $0x50] sm:$0xf] %vm838_vm0, %v836_v60  ;;  %v728_v63 = vadd.f32 %v727_v62, %v664_v61  ;;  %v791_v1 = vpop.f32.mrf.mxu3 }
 0x151   :  { %v792_v2 = vadd.f32 %v791_v1, %v728_v63 }
 0x153   :  { %v815_v3 = vmax.f32 %v792_v2, 0.0 }
 0x155   :  { %v837_v4 = vpack.c.bf16 %v815_v3, %v815_v3 }
 0x157   :  { %860 = vst.msk [vmem:[%s1744_s3 + $0x54] sm:$0xf] %vm838_vm0, %v837_v4 }

// kernel: dueling_dqn_forward.6
= control target key start
LH: loop header
LB: loop body
LE: loop exit
PB: predicated region body
PF: predicated region fallthrough
CT: control target
= control target key end

     0   :  { %vm810_vm0 = vcmask 519168   ;;  %s1684_s1 = inlined_call_operand.vmem [shape: bf16[640,64], index: 1, kind: input, shape index: {}]   ;;  %s1685_s2 = inlined_call_operand.vmem [shape: f32[1,64], index: 2, kind: input, shape index: {}]   ;;  %s1686_s0 = inlined_call_operand.vmem [shape: bf16[112,640], index: 0, kind: input, shape index: {}]   ;;  %s1687_s3 = inlined_call_operand.vmem [shape: bf16[112,64], index: 3, kind: output, shape index: {}]  }
   0x1   :  { %v1171_v0 = vld [vmem:[%s1684_s1 + $0x38] sm:$0xff]  ;;  %v1170_v1 = vld [vmem:[%s1684_s1 + $0x30] sm:$0xff]  ;;  %v1169_v2 = vld [vmem:[%s1684_s1 + $0x28] sm:$0xff] }
   0x2   :  { %1204 = vmatpush.bf16.msra.mxu1 %v1171_v0  ;;  %1205 = vmatpush.bf16.msra.mxu2 %v1171_v0  ;;  %v1168_v3 = vld [vmem:[%s1684_s1 + $0x20] sm:$0xff]  ;;  %v1167_v4 = vld [vmem:[%s1684_s1 + $0x18] sm:$0xff]  ;;  %v1166_v5 = vld [vmem:[%s1684_s1 + $0x10] sm:$0xff] }
   0x3   :  { %1206 = vmatpush.bf16.msra.mxu3 %v1171_v0  ;;  %562 = vmatpush.bf16.msra.mxu0 %v1171_v0  ;;  %v1165_v6 = vld [vmem:[%s1684_s1 + $0x8] sm:$0xff]  ;;  %v1164_v7 = vld [vmem:[%s1684_s1] sm:$0xff]  ;;  %v871_v8 = vld [vmem:[%s1686_s0 + $0x50] sm:$0xf] }
   0x4   :  { %v1141_v9 = vld [vmem:[%s1686_s0 + $0x60] sm:$0xf0]  ;;  %v911_v10 = vld [vmem:[%s1686_s0 + $0xa0] sm:$0xf]  ;;  %v1151_v11 = vld [vmem:[%s1686_s0 + $0xb0] sm:$0xf0] }
   0x5   :  { %v1195_v12 = vld [vmem:[%s1684_s1 + $0xf8] sm:$0xff]  ;;  %v831_v13 = vld [vmem:[%s1686_s0] sm:$0xf]  ;;  %v1131_v14 = vld [vmem:[%s1686_s0 + $0x10] sm:$0xf0]  ;;  %v872_v18 = vor.u32 %v1141_v9, %v871_v8  ;;  %v912_v19 = vor.u32 %v1151_v11, %v911_v10 }
   0x6   :  { %1207 = vmatpush.bf16.msra.mxu1 %v1170_v1  ;;  %1208 = vmatpush.bf16.msra.mxu2 %v1170_v1  ;;  %v1187_v15 = vld [vmem:[%s1684_s1 + $0xb8] sm:$0xff]  ;;  %v951_v16 = vld [vmem:[%s1686_s0 + $0xf0] sm:$0xf]  ;;  %v1161_v17 = vld [vmem:[%s1686_s0 + $0x100] sm:$0xf0]  ;;  %v832_v21 = vor.u32 %v1131_v14, %v831_v13 }
   0x7   :  { %1209 = vmatpush.bf16.msra.mxu3 %v1170_v1  ;;  %563 = vmatpush.bf16.msra.mxu0 %v1170_v1  ;;  %v1179_v20 = vld [vmem:[%s1684_s1 + $0x78] sm:$0xff]  ;;  %v952_v23 = vor.u32 %v1161_v17, %v951_v16  ;;  %v1194_v24 = vld [vmem:[%s1684_s1 + $0xf0] sm:$0xff]  ;;  %v1193_v28 = vld [vmem:[%s1684_s1 + $0xe8] sm:$0xff] }
   0x8   :  { %v1203_v22 = vld [vmem:[%s1684_s1 + $0x138] sm:$0xff]  ;;  %v1186_v25 = vld [vmem:[%s1684_s1 + $0xb0] sm:$0xff]  ;;  %v1185_v29 = vld [vmem:[%s1684_s1 + $0xa8] sm:$0xff] }
   0x9   :  { %v1178_v26 = vld [vmem:[%s1684_s1 + $0x70] sm:$0xff]  ;;  %v1177_v30 = vld [vmem:[%s1684_s1 + $0x68] sm:$0xff]  ;;  %v1192_v32 = vld [vmem:[%s1684_s1 + $0xe0] sm:$0xff] }
   0xa   :  { %1210 = vmatpush.bf16.msra.mxu1 %v1169_v2  ;;  %1211 = vmatpush.bf16.msra.mxu2 %v1169_v2  ;;  %v1202_v27 = vld [vmem:[%s1684_s1 + $0x130] sm:$0xff]  ;;  %v1201_v31 = vld [vmem:[%s1684_s1 + $0x128] sm:$0xff]  ;;  %v1184_v33 = vld [vmem:[%s1684_s1 + $0xa0] sm:$0xff] }
   0xb   :  { %1212 = vmatpush.bf16.msra.mxu3 %v1169_v2  ;;  %564 = vmatpush.bf16.msra.mxu0 %v1169_v2  ;;  %v1176_v34 = vld [vmem:[%s1684_s1 + $0x60] sm:$0xff]  ;;  %v891_v35 = vld [vmem:[%s1686_s0 + $0x78] sm:$0xf]  ;;  %v1146_v36 = vld [vmem:[%s1686_s0 + $0x88] sm:$0xf0] }
   0xc   :  { %v931_v37 = vld [vmem:[%s1686_s0 + $0xc8] sm:$0xf]  ;;  %v1156_v38 = vld [vmem:[%s1686_s0 + $0xd8] sm:$0xf0]  ;;  %v1200_v39 = vld [vmem:[%s1684_s1 + $0x120] sm:$0xff]  ;;  %v892_v44 = vor.u32 %v1146_v36, %v891_v35 }
   0xd   :  { %v851_v40 = vld [vmem:[%s1686_s0 + $0x28] sm:$0xf]  ;;  %v1136_v41 = vld [vmem:[%s1686_s0 + $0x38] sm:$0xf0]  ;;  %v932_v45 = vor.u32 %v1156_v38, %v931_v37  ;;  %v1190_v49 = vld [vmem:[%s1684_s1 + $0xd0] sm:$0xff] }
   0xe   :  { %1213 = vmatpush.bf16.msra.mxu1 %v1168_v3  ;;  %1214 = vmatpush.bf16.msra.mxu2 %v1168_v3  ;;  %v1191_v42 = vld [vmem:[%s1684_s1 + $0xd8] sm:$0xff]  ;;  %v852_v47 = vor.u32 %v1136_v41, %v851_v40  ;;  %v1182_v50 = vld [vmem:[%s1684_s1 + $0x90] sm:$0xff]  ;;  %v1189_v53 = vld [vmem:[%s1684_s1 + $0xc8] sm:$0xff] }
   0xf   :  { %1215 = vmatpush.bf16.msra.mxu3 %v1168_v3  ;;  %565 = vmatpush.bf16.msra.mxu0 %v1168_v3  ;;  %v1183_v43 = vld [vmem:[%s1684_s1 + $0x98] sm:$0xff]  ;;  %v1174_v51 = vld [vmem:[%s1684_s1 + $0x50] sm:$0xff]  ;;  %v1181_v54 = vld [vmem:[%s1684_s1 + $0x88] sm:$0xff] }
  0x10   :  { %v1175_v46 = vld [vmem:[%s1684_s1 + $0x58] sm:$0xff]  ;;  %v1198_v52 = vld [vmem:[%s1684_s1 + $0x110] sm:$0xff]  ;;  %v1173_v55 = vld [vmem:[%s1684_s1 + $0x48] sm:$0xff] }
  0x11   :  { %v1199_v48 = vld [vmem:[%s1684_s1 + $0x118] sm:$0xff]  ;;  %v1188_v56 = vld [vmem:[%s1684_s1 + $0xc0] sm:$0xff]  ;;  %v1197_v57 = vld [vmem:[%s1684_s1 + $0x108] sm:$0xff] }
  0x12   :  { %1216 = vmatpush.bf16.msra.mxu1 %v1167_v4  ;;  %1217 = vmatpush.bf16.msra.mxu2 %v1167_v4  ;;  %v1180_v58 = vld [vmem:[%s1684_s1 + $0x80] sm:$0xff]  ;;  %v1130_v59 = vld [vmem:[%s1686_s0 + $0xc] sm:$0xf]  ;;  %v833_v63 = vld [vmem:[%s1686_s0 + $0x14] sm:$0xf0] }
  0x13   :  { %1218 = vmatpush.bf16.msra.mxu3 %v1167_v4  ;;  %566 = vmatpush.bf16.msra.mxu0 %v1167_v4  ;;  %v841_v60 = vld [vmem:[%s1686_s0 + $0x1c] sm:$0xf0]  ;;  %v1129_v62 = vld [vmem:[%s1686_s0 + $0x4] sm:$0xf]  ;;  %v839_v0 = vld [vmem:[%s1686_s0 + $0x8] sm:$0xf] }
  0x14   :  { %v1172_v61 = vld [vmem:[%s1684_s1 + $0x40] sm:$0xff]  ;;  %v1132_v1 = vld [vmem:[%s1686_s0 + $0x18] sm:$0xf0]  ;;  %v844_v2 = vor.u32 %v1130_v59, %v841_v60  ;;  %v847_v4 = vld [vmem:[%s1686_s0 + $0x10] sm:$0xf] }
  0x15   :  { %v1196_v3 = vld [vmem:[%s1684_s1 + $0x100] sm:$0xff]  ;;  %v1135_v9 = vld [vmem:[%s1686_s0 + $0x34] sm:$0xf]  ;;  %v861_v10 = vld [vmem:[%s1686_s0 + $0x44] sm:$0xf0] }
  0x16   :  { %1219 = vmatpush.bf16.msra.mxu1 %v1166_v5  ;;  %1220 = vmatpush.bf16.msra.mxu2 %v1166_v5  ;;  %v1134_v11 = vld [vmem:[%s1686_s0 + $0x2c] sm:$0xf]  ;;  %v859_v13 = vld [vmem:[%s1686_s0 + $0x30] sm:$0xf]  ;;  %v1137_v14 = vld [vmem:[%s1686_s0 + $0x40] sm:$0xf0] }
  0x17   :  { %1221 = vmatpush.bf16.msra.mxu3 %v1166_v5  ;;  %567 = vmatpush.bf16.msra.mxu0 %v1166_v5  ;;  %v1133_v5 = vld [vmem:[%s1686_s0 + $0x20] sm:$0xf0]  ;;  %v867_v16 = vld [vmem:[%s1686_s0 + $0x38] sm:$0xf]  ;;  %v1138_v17 = vld [vmem:[%s1686_s0 + $0x48] sm:$0xf0] }
  0x18   :  { %v848_v8 = vor.u32 %v1133_v5, %v847_v4  ;;  %v1144_v35 = vld [vmem:[%s1686_s0 + $0x7c] sm:$0xf]  ;;  %v893_v36 = vld [vmem:[%s1686_s0 + $0x8c] sm:$0xf0]  ;;  %v899_v37 = vld [vmem:[%s1686_s0 + $0x80] sm:$0xf] }
  0x19   :  { %v1147_v38 = vld [vmem:[%s1686_s0 + $0x90] sm:$0xf0]  ;;  %v907_v40 = vld [vmem:[%s1686_s0 + $0x88] sm:$0xf]  ;;  %v1148_v41 = vld [vmem:[%s1686_s0 + $0x98] sm:$0xf0] }
  0x1a   :  { %1222 = vmatpush.bf16.msra.mxu1 %v1165_v6  ;;  %1223 = vmatpush.bf16.msra.mxu2 %v1165_v6  ;;  %v1154_v59 = vld [vmem:[%s1686_s0 + $0xcc] sm:$0xf]  ;;  %v933_v60 = vld [vmem:[%s1686_s0 + $0xdc] sm:$0xf0]  ;;  %v1160_v5 = vld [vmem:[%s1686_s0 + $0xfc] sm:$0xf] }
  0x1b   :  { %1224 = vmatpush.bf16.msra.mxu3 %v1165_v6  ;;  %568 = vmatpush.bf16.msra.mxu0 %v1165_v6  ;;  %v836_v6 = vor.u32 %v1129_v62, %v833_v63  ;;  %v1157_v62 = vld [vmem:[%s1686_s0 + $0xe0] sm:$0xf0] }
  0x1e   :  { %1225 = vmatpush.bf16.msra.mxu1 %v1164_v7  ;;  %1226 = vmatpush.bf16.msra.mxu2 %v1164_v7 }
  0x1f   :  { %1227 = vmatpush.bf16.msra.mxu3 %v1164_v7  ;;  %569 = vmatpush.bf16.msra.mxu0 %v1164_v7  ;;  %v840_v7 = vor.u32 %v1132_v1, %v839_v0  ;;  %v947_v0 = vld [vmem:[%s1686_s0 + $0xd8] sm:$0xf]  ;;  %v1158_v1 = vld [vmem:[%s1686_s0 + $0xe8] sm:$0xf0] }
  0x20   :  { %v948_v4 = vor.u32 %v1158_v1, %v947_v0 }
  0x21   :  { %580 = vmatmul.bf16.vlgmr.msra.gmra.mxu1 %v872_v18  ;;  %590 = vmatmul.bf16.vlgmr.msra.gmra.mxu2 %v912_v19  ;;  %v860_v19 = vor.u32 %v1137_v14, %v859_v13  ;;  %v1163_v13 = vld [vmem:[%s1686_s0 + $0x110] sm:$0xf0] }
  0x22   :  { %650 = vmatpush.bf16.msrb.mxu2 %v1187_v15  ;;  %606 = vmatpush.bf16.msrb.mxu1 %v1179_v20  ;;  %v864_v15 = vor.u32 %v1135_v9, %v861_v10  ;;  %v868_v20 = vor.u32 %v1138_v17, %v867_v16  ;;  %v959_v9 = vld [vmem:[%s1686_s0 + $0xf8] sm:$0xf]  ;;  %v1162_v10 = vld [vmem:[%s1686_s0 + $0x108] sm:$0xf0] }
  0x23   :  { %694 = vmatpush.bf16.msrb.mxu3 %v1195_v12  ;;  %570 = vmatmul.bf16.vlgmr.msra.gmra.mxu0 %v832_v21  ;;  %v853_v12 = vld [vmem:[%s1686_s0 + $0x3c] sm:$0xf0]  ;;  %v1140_v21 = vld [vmem:[%s1686_s0 + $0x5c] sm:$0xf] }
  0x24   :  { %738 = vmatpush.bf16.msrb.mxu0 %v1203_v22  ;;  %600 = vmatmul.bf16.vlgmr.msra.gmra.mxu3 %v952_v23  ;;  %v856_v18 = vor.u32 %v1134_v11, %v853_v12  ;;  %v881_v22 = vld [vmem:[%s1686_s0 + $0x6c] sm:$0xf0]  ;;  %v1139_v23 = vld [vmem:[%s1686_s0 + $0x54] sm:$0xf]  ;;  %v967_v12 = vld [vmem:[%s1686_s0 + $0x100] sm:$0xf] }
  0x25   :  { %v968_v17 = vor.u32 %v1163_v13, %v967_v12 }
  0x26   :  { %651 = vmatpush.bf16.msrb.mxu2 %v1186_v25  ;;  %607 = vmatpush.bf16.msrb.mxu1 %v1178_v26  ;;  %v879_v25 = vld [vmem:[%s1686_s0 + $0x58] sm:$0xf]  ;;  %v1142_v26 = vld [vmem:[%s1686_s0 + $0x68] sm:$0xf0] }
  0x27   :  { %695 = vmatpush.bf16.msrb.mxu3 %v1194_v24  ;;  %v873_v24 = vld [vmem:[%s1686_s0 + $0x64] sm:$0xf0] }
  0x28   :  { %739 = vmatpush.bf16.msrb.mxu0 %v1202_v27  ;;  %v884_v27 = vor.u32 %v1140_v21, %v881_v22 }
  0x2a   :  { %652 = vmatpush.bf16.msrb.mxu2 %v1185_v29  ;;  %608 = vmatpush.bf16.msrb.mxu1 %v1177_v30  ;;  %v1143_v29 = vld [vmem:[%s1686_s0 + $0x70] sm:$0xf0]  ;;  %v876_v30 = vor.u32 %v1139_v23, %v873_v24 }
  0x2b   :  { %696 = vmatpush.bf16.msrb.mxu3 %v1193_v28  ;;  %v887_v28 = vld [vmem:[%s1686_s0 + $0x60] sm:$0xf] }
  0x2c   :  { %740 = vmatpush.bf16.msrb.mxu0 %v1201_v31  ;;  %v880_v31 = vor.u32 %v1142_v26, %v879_v25 }
  0x2e   :  { %653 = vmatpush.bf16.msrb.mxu2 %v1184_v33  ;;  %609 = vmatpush.bf16.msrb.mxu1 %v1176_v34  ;;  %v1145_v33 = vld [vmem:[%s1686_s0 + $0x84] sm:$0xf]  ;;  %v901_v34 = vld [vmem:[%s1686_s0 + $0x94] sm:$0xf0] }
  0x2f   :  { %697 = vmatpush.bf16.msrb.mxu3 %v1192_v32  ;;  %v888_v32 = vor.u32 %v1143_v29, %v887_v28 }
  0x30   :  { %741 = vmatpush.bf16.msrb.mxu0 %v1200_v39  ;;  %v904_v39 = vor.u32 %v1145_v33, %v901_v34 }
  0x31   :  { %585 = vmatmul.bf16.gmra.mxu1 %v892_v44  ;;  %595 = vmatmul.bf16.gmra.mxu2 %v932_v45  ;;  %v908_v44 = vor.u32 %v1148_v41, %v907_v40  ;;  %v1150_v45 = vld [vmem:[%s1686_s0 + $0xac] sm:$0xf] }
  0x32   :  { %654 = vmatpush.bf16.msrb.mxu2 %v1183_v43  ;;  %610 = vmatpush.bf16.msrb.mxu1 %v1175_v46  ;;  %v900_v43 = vor.u32 %v1147_v38, %v899_v37  ;;  %v921_v46 = vld [vmem:[%s1686_s0 + $0xbc] sm:$0xf0] }
  0x33   :  { %698 = vmatpush.bf16.msrb.mxu3 %v1191_v42  ;;  %575 = vmatmul.bf16.gmra.mxu0 %v852_v47  ;;  %v896_v42 = vor.u32 %v1144_v35, %v893_v36  ;;  %v1149_v47 = vld [vmem:[%s1686_s0 + $0xa4] sm:$0xf] }
  0x34   :  { %742 = vmatpush.bf16.msrb.mxu0 %v1199_v48  ;;  %v913_v48 = vld [vmem:[%s1686_s0 + $0xb4] sm:$0xf0] }
  0x36   :  { %655 = vmatpush.bf16.msrb.mxu2 %v1182_v50  ;;  %611 = vmatpush.bf16.msrb.mxu1 %v1174_v51  ;;  %v1152_v50 = vld [vmem:[%s1686_s0 + $0xb8] sm:$0xf0]  ;;  %v924_v51 = vor.u32 %v1150_v45, %v921_v46 }
  0x37   :  { %699 = vmatpush.bf16.msrb.mxu3 %v1190_v49  ;;  %v919_v49 = vld [vmem:[%s1686_s0 + $0xa8] sm:$0xf] }
  0x38   :  { %743 = vmatpush.bf16.msrb.mxu0 %v1198_v52  ;;  %v927_v52 = vld [vmem:[%s1686_s0 + $0xb0] sm:$0xf] }
  0x3a   :  { %656 = vmatpush.bf16.msrb.mxu2 %v1181_v54  ;;  %612 = vmatpush.bf16.msrb.mxu1 %v1173_v55  ;;  %v916_v54 = vor.u32 %v1149_v47, %v913_v48  ;;  %v920_v55 = vor.u32 %v1152_v50, %v919_v49 }
  0x3b   :  { %700 = vmatpush.bf16.msrb.mxu3 %v1189_v53  ;;  %v1153_v53 = vld [vmem:[%s1686_s0 + $0xc0] sm:$0xf0] }
  0x3c   :  { %744 = vmatpush.bf16.msrb.mxu0 %v1197_v57  ;;  %v1155_v57 = vld [vmem:[%s1686_s0 + $0xd4] sm:$0xf] }
  0x3e   :  { %657 = vmatpush.bf16.msrb.mxu2 %v1180_v58  ;;  %613 = vmatpush.bf16.msrb.mxu1 %v1172_v61  ;;  %v941_v58 = vld [vmem:[%s1686_s0 + $0xe4] sm:$0xf0]  ;;  %v939_v61 = vld [vmem:[%s1686_s0 + $0xd0] sm:$0xf] }
  0x3f   :  { %701 = vmatpush.bf16.msrb.mxu3 %v1188_v56  ;;  %v928_v56 = vor.u32 %v1153_v53, %v927_v52  ;;  %v944_v63 = vor.u32 %v1155_v57, %v941_v58 }
  0x40   :  { %745 = vmatpush.bf16.msrb.mxu0 %v1196_v3  ;;  %v940_v3 = vor.u32 %v1157_v62, %v939_v61 }
  0x41   :  { %614 = vmatmul.bf16.vlgmr.msrb.gmra.mxu1 %v836_v6  ;;  %658 = vmatmul.bf16.vlgmr.msrb.gmra.mxu2 %v840_v7  ;;  %v961_v6 = vld [vmem:[%s1686_s0 + $0x10c] sm:$0xf0]  ;;  %v1159_v7 = vld [vmem:[%s1686_s0 + $0xf4] sm:$0xf] }
  0x42   :  { %702 = vmatmul.bf16.vlgmr.msrb.gmra.mxu3 %v844_v2  ;;  %v936_v2 = vor.u32 %v1154_v59, %v933_v60  ;;  %v964_v11 = vor.u32 %v1160_v5, %v961_v6 }
  0x43   :  { %746 = vmatmul.bf16.vlgmr.msrb.gmra.mxu0 %v848_v8  ;;  %v953_v8 = vld [vmem:[%s1686_s0 + $0x104] sm:$0xf0] }
  0x44   :  { %v956_v14 = vor.u32 %v1159_v7, %v953_v8 }
  0x51   :  { %619 = vmatmul.bf16.gmra.mxu1 %v856_v18  ;;  %663 = vmatmul.bf16.gmra.mxu2 %v860_v19  ;;  %v1584_v19 = vld [vmem:[%s1685_s2] ss:$0 sm:$0xff] }
  0x52   :  { %707 = vmatmul.bf16.gmra.mxu3 %v864_v15  ;;  %v960_v15 = vor.u32 %v1162_v10, %v959_v9 }
  0x53   :  { %751 = vmatmul.bf16.gmra.mxu0 %v868_v20 }
  0x61   :  { %624 = vmatmul.bf16.gmra.mxu1 %v876_v30  ;;  %668 = vmatmul.bf16.gmra.mxu2 %v880_v31 }
  0x62   :  { %712 = vmatmul.bf16.gmra.mxu3 %v884_v27 }
  0x63   :  { %756 = vmatmul.bf16.gmra.mxu0 %v888_v32 }
  0x71   :  { %629 = vmatmul.bf16.gmra.mxu1 %v896_v42  ;;  %673 = vmatmul.bf16.gmra.mxu2 %v900_v43 }
  0x72   :  { %717 = vmatmul.bf16.gmra.mxu3 %v904_v39 }
  0x73   :  { %761 = vmatmul.bf16.gmra.mxu0 %v908_v44 }
  0x81   :  { %634 = vmatmul.bf16.gmra.mxu1 %v916_v54  ;;  %678 = vmatmul.bf16.gmra.mxu2 %v920_v55 }
  0x82   :  { %722 = vmatmul.bf16.gmra.mxu3 %v924_v51 }
  0x83   :  { %766 = vmatmul.bf16.gmra.mxu0 %v928_v56 }
  0x91   :  { %639 = vmatmul.bf16.gmra.mxu1 %v936_v2  ;;  %683 = vmatmul.bf16.gmra.mxu2 %v940_v3 }
  0x92   :  { %727 = vmatmul.bf16.gmra.mxu3 %v944_v63 }
  0x93   :  { %771 = vmatmul.bf16.gmra.mxu0 %v948_v4 }
  0x9e   :  { %v1579_v16 = vpop.f32.mrf.mxu1 }
  0xa0   :  { %v571_v18 = vpop.f32.mrf.mxu0 }
  0xa1   :  { %644 = vmatmul.bf16.gmra.mxu1 %v956_v14  ;;  %688 = vmatmul.bf16.gmra.mxu2 %v960_v15  ;;  %v572_v40 = vadd.f32 %v1584_v19, %v571_v18  ;;  %v582_v18 = vadd.f32 %v1584_v19, %v1579_v16 }
  0xa2   :  { %732 = vmatmul.bf16.gmra.mxu3 %v964_v11 }
  0xa3   :  { %776 = vmatmul.bf16.gmra.mxu0 %v968_v17 }
  0xa4   :  { %v591_v20 = vpop.f32.mrf.mxu2 }
  0xa5   :  { %v1587_v21 = vadd.f32 %v1584_v19, %v591_v20 }
  0xa6   :  { %v1589_v22 = vpop.f32.mrf.mxu1 }
  0xa7   :  { %v601_v23 = vpop.f32.mrf.mxu3 }
  0xa8   :  { %v573_v24 = vpop.f32.mrf.mxu0  ;;  %v1592_v25 = vadd.f32 %v1584_v19, %v601_v23 }
  0xa9   :  { %v574_v48 = vadd.f32 %v1584_v19, %v573_v24 }
  0xac   :  { %v593_v26 = vpop.f32.mrf.mxu2 }
  0xad   :  { %v1595_v27 = vadd.f32 %v1584_v19, %v593_v26 }
  0xae   :  { %v1597_v28 = vpop.f32.mrf.mxu1 }
  0xaf   :  { %v603_v29 = vpop.f32.mrf.mxu3 }
  0xb0   :  { %v576_v30 = vpop.f32.mrf.mxu0  ;;  %v1600_v31 = vadd.f32 %v1584_v19, %v603_v29 }
  0xb1   :  { %v577_v59 = vadd.f32 %v1584_v19, %v576_v30 }
  0xb4   :  { %v596_v32 = vpop.f32.mrf.mxu2 }
  0xb5   :  { %v1603_v33 = vadd.f32 %v1584_v19, %v596_v32 }
  0xb6   :  { %v1605_v34 = vpop.f32.mrf.mxu1 }
  0xb8   :  { %v578_v35 = vpop.f32.mrf.mxu0 }
  0xb9   :  { %v579_v6 = vadd.f32 %v1584_v19, %v578_v35 }
  0xbc   :  { %v598_v36 = vpop.f32.mrf.mxu2 }
  0xbd   :  { %v1608_v37 = vadd.f32 %v1584_v19, %v598_v36 }
  0xbe   :  { %v615_v38 = vpop.f32.mrf.mxu1 }
  0xbf   :  { %v616_v42 = vadd.f32 %v615_v38, %v572_v40 }
  0xc0   :  { %v747_v39 = vpop.f32.mrf.mxu0 }
  0xc4   :  { %v659_v43 = vpop.f32.mrf.mxu2 }
  0xc5   :  { %v703_v41 = vpop.f32.mrf.mxu3  ;;  %v660_v44 = vadd.f32 %v659_v43, %v616_v42 }
  0xc6   :  { %v617_v45 = vpop.f32.mrf.mxu1 }
  0xc7   :  { %v704_v46 = vadd.f32 %v703_v41, %v660_v44  ;;  %v618_v52 = vadd.f32 %v617_v45, %v574_v48 }
  0xc8   :  { %v749_v47 = vpop.f32.mrf.mxu0 }
  0xc9   :  { %v748_v49 = vadd.f32 %v747_v39, %v704_v46  ;;  %v584_v39 = vadd.f32 %v1584_v19, %v1589_v22 }
  0xcb   :  { %v782_v51 = vmax.f32 %v748_v49, 0.0  ;;  %v587_v49 = vadd.f32 %v1584_v19, %v1597_v28 }
  0xcc   :  { %v661_v53 = vpop.f32.mrf.mxu2 }
  0xcd   :  { %v705_v50 = vpop.f32.mrf.mxu3  ;;  %v796_v54 = vpack.c.bf16 %v782_v51, %v782_v51  ;;  %v662_v55 = vadd.f32 %v661_v53, %v618_v52 }
  0xce   :  { %v620_v56 = vpop.f32.mrf.mxu1 }
  0xcf   :  { %811 = vst.msk [vmem:[%s1687_s3] sm:$0xf] %vm810_vm0, %v796_v54  ;;  %v706_v57 = vadd.f32 %v705_v50, %v662_v55  ;;  %v621_v63 = vadd.f32 %v620_v56, %v577_v59  ;;  %v589_v59 = vadd.f32 %v1584_v19, %v1605_v34 }
  0xd0   :  { %v752_v58 = vpop.f32.mrf.mxu0 }
  0xd1   :  { %v750_v60 = vadd.f32 %v749_v47, %v706_v57 }
  0xd3   :  { %v783_v62 = vmax.f32 %v750_v60, 0.0 }
  0xd4   :  { %v664_v0 = vpop.f32.mrf.mxu2 }
  0xd5   :  { %v708_v61 = vpop.f32.mrf.mxu3  ;;  %v797_v1 = vpack.c.bf16 %v783_v62, %v783_v62  ;;  %v665_v2 = vadd.f32 %v664_v0, %v621_v63 }
  0xd6   :  { %v622_v3 = vpop.f32.mrf.mxu1 }
  0xd7   :  { %812 = vst.msk [vmem:[%s1687_s3 + $0x4] sm:$0xf] %vm810_vm0, %v797_v1  ;;  %v709_v4 = vadd.f32 %v708_v61, %v665_v2  ;;  %v623_v10 = vadd.f32 %v622_v3, %v579_v6 }
  0xd8   :  { %v754_v5 = vpop.f32.mrf.mxu0 }
  0xd9   :  { %v753_v7 = vadd.f32 %v752_v58, %v709_v4 }
  0xdb   :  { %v784_v9 = vmax.f32 %v753_v7, 0.0 }
  0xdc   :  { %v666_v11 = vpop.f32.mrf.mxu2 }
  0xdd   :  { %v710_v8 = vpop.f32.mrf.mxu3  ;;  %v798_v12 = vpack.c.bf16 %v784_v9, %v784_v9  ;;  %v667_v13 = vadd.f32 %v666_v11, %v623_v10 }
  0xde   :  { %v625_v14 = vpop.f32.mrf.mxu1 }
  0xdf   :  { %813 = vst.msk [vmem:[%s1687_s3 + $0x8] sm:$0xf] %vm810_vm0, %v798_v12  ;;  %v711_v15 = vadd.f32 %v710_v8, %v667_v13  ;;  %v626_v26 = vadd.f32 %v625_v14, %v582_v18 }
  0xe0   :  { %v757_v17 = vpop.f32.mrf.mxu0 }
  0xe1   :  { %v755_v20 = vadd.f32 %v754_v5, %v711_v15 }
  0xe3   :  { %v785_v24 = vmax.f32 %v755_v20, 0.0 }
  0xe4   :  { %v669_v29 = vpop.f32.mrf.mxu2 }
  0xe5   :  { %v713_v23 = vpop.f32.mrf.mxu3  ;;  %v799_v30 = vpack.c.bf16 %v785_v24, %v785_v24  ;;  %v670_v32 = vadd.f32 %v669_v29, %v626_v26 }
  0xe6   :  { %v627_v35 = vpop.f32.mrf.mxu1 }
  0xe7   :  { %814 = vst.msk [vmem:[%s1687_s3 + $0xc] sm:$0xf] %vm810_vm0, %v799_v30  ;;  %v714_v36 = vadd.f32 %v713_v23, %v670_v32  ;;  %v628_v42 = vadd.f32 %v627_v35, %v584_v39 }
  0xe8   :  { %v759_v38 = vpop.f32.mrf.mxu0 }
  0xe9   :  { %v758_v40 = vadd.f32 %v757_v17, %v714_v36 }
  0xeb   :  { %v786_v41 = vmax.f32 %v758_v40, 0.0 }
  0xec   :  { %v671_v43 = vpop.f32.mrf.mxu2 }
  0xed   :  { %v715_v16 = vpop.f32.mrf.mxu3  ;;  %v800_v44 = vpack.c.bf16 %v786_v41, %v786_v41  ;;  %v672_v45 = vadd.f32 %v671_v43, %v628_v42 }
  0xee   :  { %v630_v46 = vpop.f32.mrf.mxu1 }
  0xef   :  { %815 = vst.msk [vmem:[%s1687_s3 + $0x10] sm:$0xf] %vm810_vm0, %v800_v44  ;;  %v716_v47 = vadd.f32 %v715_v16, %v672_v45  ;;  %v631_v52 = vadd.f32 %v630_v46, %v587_v49 }
  0xf0   :  { %v762_v48 = vpop.f32.mrf.mxu0 }
  0xf1   :  { %v760_v50 = vadd.f32 %v759_v38, %v716_v47 }
  0xf3   :  { %v787_v51 = vmax.f32 %v760_v50, 0.0 }
  0xf4   :  { %v674_v53 = vpop.f32.mrf.mxu2 }
  0xf5   :  { %v718_v22 = vpop.f32.mrf.mxu3  ;;  %v801_v54 = vpack.c.bf16 %v787_v51, %v787_v51  ;;  %v675_v55 = vadd.f32 %v674_v53, %v631_v52 }
  0xf6   :  { %v632_v56 = vpop.f32.mrf.mxu1 }
  0xf7   :  { %816 = vst.msk [vmem:[%s1687_s3 + $0x14] sm:$0xf] %vm810_vm0, %v801_v54  ;;  %v719_v57 = vadd.f32 %v718_v22, %v675_v55  ;;  %v633_v62 = vadd.f32 %v632_v56, %v589_v59 }
  0xf8   :  { %v764_v58 = vpop.f32.mrf.mxu0 }
  0xf9   :  { %v763_v60 = vadd.f32 %v762_v48, %v719_v57 }
  0xfb   :  { %v788_v61 = vmax.f32 %v763_v60, 0.0 }
  0xfc   :  { %v676_v63 = vpop.f32.mrf.mxu2 }
  0xfd   :  { %v720_v28 = vpop.f32.mrf.mxu3  ;;  %v802_v0 = vpack.c.bf16 %v788_v61, %v788_v61  ;;  %v677_v1 = vadd.f32 %v676_v63, %v633_v62 }
  0xfe   :  { %v635_v2 = vpop.f32.mrf.mxu1 }
  0xff   :  { %817 = vst.msk [vmem:[%s1687_s3 + $0x18] sm:$0xf] %vm810_vm0, %v802_v0  ;;  %v721_v3 = vadd.f32 %v720_v28, %v677_v1  ;;  %v636_v19 = vadd.f32 %v635_v2, %v1587_v21 }
 0x100   :  { %v767_v4 = vpop.f32.mrf.mxu0 }
 0x101   :  { %v765_v5 = vadd.f32 %v764_v58, %v721_v3 }
 0x103   :  { %v789_v7 = vmax.f32 %v765_v5, 0.0 }
 0x104   :  { %v679_v34 = vpop.f32.mrf.mxu2 }
 0x105   :  { %v723_v6 = vpop.f32.mrf.mxu3  ;;  %v803_v8 = vpack.c.bf16 %v789_v7, %v789_v7  ;;  %v680_v9 = vadd.f32 %v679_v34, %v636_v19 }
 0x106   :  { %v637_v10 = vpop.f32.mrf.mxu1 }
 0x107   :  { %818 = vst.msk [vmem:[%s1687_s3 + $0x1c] sm:$0xf] %vm810_vm0, %v803_v8  ;;  %v724_v11 = vadd.f32 %v723_v6, %v680_v9  ;;  %v638_v17 = vadd.f32 %v637_v10, %v1595_v27 }
 0x108   :  { %v769_v12 = vpop.f32.mrf.mxu0 }
 0x109   :  { %v768_v13 = vadd.f32 %v767_v4, %v724_v11 }
 0x10b   :  { %v790_v15 = vmax.f32 %v768_v13, 0.0 }
 0x10c   :  { %v681_v18 = vpop.f32.mrf.mxu2 }
 0x10d   :  { %v725_v14 = vpop.f32.mrf.mxu3  ;;  %v804_v20 = vpack.c.bf16 %v790_v15, %v790_v15  ;;  %v682_v23 = vadd.f32 %v681_v18, %v638_v17 }
 0x10e   :  { %v640_v21 = vpop.f32.mrf.mxu1 }
 0x10f   :  { %819 = vst.msk [vmem:[%s1687_s3 + $0x20] sm:$0xf] %vm810_vm0, %v804_v20  ;;  %v726_v24 = vadd.f32 %v725_v14, %v682_v23  ;;  %v641_v35 = vadd.f32 %v640_v21, %v1603_v33 }
 0x110   :  { %v772_v29 = vpop.f32.mrf.mxu0 }
 0x111   :  { %v770_v26 = vadd.f32 %v769_v12, %v726_v24 }
 0x113   :  { %v791_v32 = vmax.f32 %v770_v26, 0.0 }
 0x114   :  { %v684_v36 = vpop.f32.mrf.mxu2 }
 0x115   :  { %v728_v30 = vpop.f32.mrf.mxu3  ;;  %v805_v38 = vpack.c.bf16 %v791_v32, %v791_v32  ;;  %v685_v39 = vadd.f32 %v684_v36, %v641_v35 }
 0x116   :  { %v642_v27 = vpop.f32.mrf.mxu1 }
 0x117   :  { %820 = vst.msk [vmem:[%s1687_s3 + $0x24] sm:$0xf] %vm810_vm0, %v805_v38  ;;  %v729_v40 = vadd.f32 %v728_v30, %v685_v39  ;;  %v643_v43 = vadd.f32 %v642_v27, %v1608_v37 }
 0x118   :  { %v774_v44 = vpop.f32.mrf.mxu0 }
 0x119   :  { %v773_v16 = vadd.f32 %v772_v29, %v729_v40 }
 0x11b   :  { %v792_v42 = vmax.f32 %v773_v16, 0.0 }
 0x11c   :  { %v686_v45 = vpop.f32.mrf.mxu2 }
 0x11d   :  { %v730_v41 = vpop.f32.mrf.mxu3  ;;  %v806_v46 = vpack.c.bf16 %v792_v42, %v792_v42  ;;  %v687_v47 = vadd.f32 %v686_v45, %v643_v43 }
 0x11e   :  { %v645_v33 = vpop.f32.mrf.mxu1 }
 0x11f   :  { %821 = vst.msk [vmem:[%s1687_s3 + $0x28] sm:$0xf] %vm810_vm0, %v806_v46  ;;  %v731_v48 = vadd.f32 %v730_v41, %v687_v47  ;;  %v646_v22 = vadd.f32 %v645_v33, %v1592_v25 }
 0x120   :  { %v777_v37 = vpop.f32.mrf.mxu0 }
 0x121   :  { %v775_v49 = vadd.f32 %v774_v44, %v731_v48 }
 0x123   :  { %v793_v50 = vmax.f32 %v775_v49, 0.0 }
 0x124   :  { %v689_v52 = vpop.f32.mrf.mxu2 }
 0x125   :  { %v733_v51 = vpop.f32.mrf.mxu3  ;;  %v807_v53 = vpack.c.bf16 %v793_v50, %v793_v50  ;;  %v690_v54 = vadd.f32 %v689_v52, %v646_v22 }
 0x126   :  { %v647_v56 = vpop.f32.mrf.mxu1 }
 0x127   :  { %822 = vst.msk [vmem:[%s1687_s3 + $0x2c] sm:$0xf] %vm810_vm0, %v807_v53  ;;  %v734_v55 = vadd.f32 %v733_v51, %v690_v54  ;;  %v648_v59 = vadd.f32 %v647_v56, %v1600_v31 }
 0x128   :  { %v779_v63 = vpop.f32.mrf.mxu0 }
 0x129   :  { %v778_v57 = vadd.f32 %v777_v37, %v734_v55 }
 0x12b   :  { %v794_v58 = vmax.f32 %v778_v57, 0.0 }
 0x12c   :  { %v691_v60 = vpop.f32.mrf.mxu2 }
 0x12d   :  { %v808_v28 = vpack.c.bf16 %v794_v58, %v794_v58  ;;  %v692_v61 = vadd.f32 %v691_v60, %v648_v59  ;;  %v735_v25 = vpop.f32.mrf.mxu3 }
 0x12f   :  { %823 = vst.msk [vmem:[%s1687_s3 + $0x30] sm:$0xf] %vm810_vm0, %v808_v28  ;;  %v736_v62 = vadd.f32 %v735_v25, %v692_v61 }
 0x131   :  { %v780_v0 = vadd.f32 %v779_v63, %v736_v62 }
 0x133   :  { %v795_v1 = vmax.f32 %v780_v0, 0.0 }
 0x135   :  { %v809_v2 = vpack.c.bf16 %v795_v1, %v795_v1 }
 0x137   :  { %824 = vst.msk [vmem:[%s1687_s3 + $0x34] sm:$0xf] %vm810_vm0, %v809_v2 }

// kernel: dueling_dqn_forward.7
= control target key start
LH: loop header
LB: loop body
LE: loop exit
PB: predicated region body
PF: predicated region fallthrough
CT: control target
= control target key end

     0   :  { %vm6726_vm8 = vcmask 56320   ;;  %s16596_s1 = inlined_call_operand.vmem [shape: bf16[3200,512], index: 1, kind: input, shape index: {}]   ;;  %s16597_s0 = inlined_call_operand.vmem [shape: bf16[16,3200], index: 0, kind: input, shape index: {}]   ;;  %s16598_s2 = inlined_call_operand.vmem [shape: f32[1,512], index: 2, kind: input, shape index: {}]   ;;  %s16599_s3 = inlined_call_operand.vmem [shape: bf16[512,7], index: 3, kind: input, shape index: {}]   ;;  %s16600_s4 = inlined_call_operand.vmem [shape: f32[1,7], index: 4, kind: input, shape index: {}]   ;;  %s16601_s5 = inlined_call_operand.vmem [shape: f32[16,7], index: 5, kind: output, shape index: {}]  }
   0x1   :  { %v6947_v0 = vld [vmem:[%s16596_s1 + $0xe0] sm:$0xf]  ;;  %v10216_v1 = vld [vmem:[%s16596_s1 + $0xec] sm:$0xf0] }
   0x2   :  { %v7075_v2 = vld [vmem:[%s16596_s1 + $0x1e0] sm:$0xf]  ;;  %v6948_v3 = vor.u32 %v10216_v1, %v6947_v0  ;;  %v10248_v4 = vld [vmem:[%s16596_s1 + $0x1ec] sm:$0xf0] }
   0x3   :  { %v7203_v5 = vld [vmem:[%s16596_s1 + $0x2e0] sm:$0xf]  ;;  %v10280_v6 = vld [vmem:[%s16596_s1 + $0x2ec] sm:$0xf0]  ;;  %v7076_v7 = vor.u32 %v10248_v4, %v7075_v2 }
   0x4   :  { %v7204_v8 = vor.u32 %v10280_v6, %v7203_v5  ;;  %v7331_v9 = vld [vmem:[%s16596_s1 + $0x3e0] sm:$0xf]  ;;  %v10312_v10 = vld [vmem:[%s16596_s1 + $0x3ec] sm:$0xf0]  ;;  %4982 = vmatpush.bf16.msra.mxu0 %v6948_v3 }
   0x5   :  { %v6931_v11 = vld [vmem:[%s16596_s1 + $0xc0] sm:$0xf]  ;;  %v7332_v12 = vor.u32 %v10312_v10, %v7331_v9  ;;  %v10212_v13 = vld [vmem:[%s16596_s1 + $0xcc] sm:$0xf0]  ;;  %4996 = vmatpush.bf16.msra.mxu1 %v7076_v7 }
   0x6   :  { %v7059_v14 = vld [vmem:[%s16596_s1 + $0x1c0] sm:$0xf]  ;;  %v10244_v15 = vld [vmem:[%s16596_s1 + $0x1cc] sm:$0xf0]  ;;  %5010 = vmatpush.bf16.msra.mxu2 %v7204_v8  ;;  %v6932_v16 = vor.u32 %v10212_v13, %v6931_v11 }
   0x7   :  { %v7060_v17 = vor.u32 %v10244_v15, %v7059_v14  ;;  %v7187_v18 = vld [vmem:[%s16596_s1 + $0x2c0] sm:$0xf]  ;;  %v10276_v19 = vld [vmem:[%s16596_s1 + $0x2cc] sm:$0xf0]  ;;  %5024 = vmatpush.bf16.msra.mxu3 %v7332_v12 }
   0x8   :  { %v7315_v20 = vld [vmem:[%s16596_s1 + $0x3c0] sm:$0xf]  ;;  %v7188_v21 = vor.u32 %v10276_v19, %v7187_v18  ;;  %v10308_v22 = vld [vmem:[%s16596_s1 + $0x3cc] sm:$0xf0]  ;;  %4983 = vmatpush.bf16.msra.mxu0 %v6932_v16 }
   0x9   :  { %v6915_v23 = vld [vmem:[%s16596_s1 + $0xa0] sm:$0xf]  ;;  %v10208_v24 = vld [vmem:[%s16596_s1 + $0xac] sm:$0xf0]  ;;  %v7316_v25 = vor.u32 %v10308_v22, %v7315_v20  ;;  %4997 = vmatpush.bf16.msra.mxu1 %v7060_v17 }
   0xa   :  { %v7043_v26 = vld [vmem:[%s16596_s1 + $0x1a0] sm:$0xf]  ;;  %v10240_v27 = vld [vmem:[%s16596_s1 + $0x1ac] sm:$0xf0]  ;;  %v6916_v29 = vor.u32 %v10208_v24, %v6915_v23  ;;  %5011 = vmatpush.bf16.msra.mxu2 %v7188_v21 }
   0xb   :  { %v7171_v28 = vld [vmem:[%s16596_s1 + $0x2a0] sm:$0xf]  ;;  %v10272_v30 = vld [vmem:[%s16596_s1 + $0x2ac] sm:$0xf0]  ;;  %v7044_v33 = vor.u32 %v10240_v27, %v7043_v26  ;;  %5025 = vmatpush.bf16.msra.mxu3 %v7316_v25 }
   0xc   :  { %v7299_v31 = vld [vmem:[%s16596_s1 + $0x3a0] sm:$0xf]  ;;  %v10304_v32 = vld [vmem:[%s16596_s1 + $0x3ac] sm:$0xf0]  ;;  %v7172_v34 = vor.u32 %v10272_v30, %v7171_v28  ;;  %4984 = vmatpush.bf16.msra.mxu0 %v6916_v29 }
   0xd   :  { %v6899_v35 = vld [vmem:[%s16596_s1 + $0x80] sm:$0xf]  ;;  %v10204_v36 = vld [vmem:[%s16596_s1 + $0x8c] sm:$0xf0]  ;;  %v7300_v38 = vor.u32 %v10304_v32, %v7299_v31  ;;  %4998 = vmatpush.bf16.msra.mxu1 %v7044_v33 }
   0xe   :  { %v7027_v37 = vld [vmem:[%s16596_s1 + $0x180] sm:$0xf]  ;;  %v10236_v39 = vld [vmem:[%s16596_s1 + $0x18c] sm:$0xf0]  ;;  %v6900_v44 = vor.u32 %v10204_v36, %v6899_v35  ;;  %5012 = vmatpush.bf16.msra.mxu2 %v7172_v34 }
   0xf   :  { %v7155_v40 = vld [vmem:[%s16596_s1 + $0x280] sm:$0xf]  ;;  %v10268_v41 = vld [vmem:[%s16596_s1 + $0x28c] sm:$0xf0]  ;;  %v7028_v45 = vor.u32 %v10236_v39, %v7027_v37  ;;  %5026 = vmatpush.bf16.msra.mxu3 %v7300_v38 }
  0x10   :  { %v7283_v42 = vld [vmem:[%s16596_s1 + $0x380] sm:$0xf]  ;;  %v10300_v43 = vld [vmem:[%s16596_s1 + $0x38c] sm:$0xf0]  ;;  %v7156_v46 = vor.u32 %v10268_v41, %v7155_v40  ;;  %4985 = vmatpush.bf16.msra.mxu0 %v6900_v44 }
  0x11   :  { %v6883_v47 = vld [vmem:[%s16596_s1 + $0x60] sm:$0xf]  ;;  %v10200_v48 = vld [vmem:[%s16596_s1 + $0x6c] sm:$0xf0]  ;;  %v7284_v50 = vor.u32 %v10300_v43, %v7283_v42  ;;  %4999 = vmatpush.bf16.msra.mxu1 %v7028_v45 }
  0x12   :  { %v7011_v49 = vld [vmem:[%s16596_s1 + $0x160] sm:$0xf]  ;;  %v10232_v51 = vld [vmem:[%s16596_s1 + $0x16c] sm:$0xf0]  ;;  %v6884_v56 = vor.u32 %v10200_v48, %v6883_v47  ;;  %5013 = vmatpush.bf16.msra.mxu2 %v7156_v46 }
  0x13   :  { %v7139_v52 = vld [vmem:[%s16596_s1 + $0x260] sm:$0xf]  ;;  %v10264_v53 = vld [vmem:[%s16596_s1 + $0x26c] sm:$0xf0]  ;;  %v7012_v57 = vor.u32 %v10232_v51, %v7011_v49  ;;  %5027 = vmatpush.bf16.msra.mxu3 %v7284_v50 }
  0x14   :  { %v7267_v54 = vld [vmem:[%s16596_s1 + $0x360] sm:$0xf]  ;;  %v10296_v55 = vld [vmem:[%s16596_s1 + $0x36c] sm:$0xf0]  ;;  %v7140_v58 = vor.u32 %v10264_v53, %v7139_v52  ;;  %4986 = vmatpush.bf16.msra.mxu0 %v6884_v56  ;;  %v10173_v53 = vld [vmem:[%s16597_s0 + $0x60] sm:$0xf0] }
  0x15   :  { %v6867_v59 = vld [vmem:[%s16596_s1 + $0x40] sm:$0xf]  ;;  %v10196_v60 = vld [vmem:[%s16596_s1 + $0x4c] sm:$0xf0]  ;;  %v7268_v62 = vor.u32 %v10296_v55, %v7267_v54  ;;  %5000 = vmatpush.bf16.msra.mxu1 %v7012_v57  ;;  %v6743_v54 = vld [vmem:[%s16597_s0 + $0x8] sm:$0xf] }
  0x16   :  { %v6995_v61 = vld [vmem:[%s16596_s1 + $0x140] sm:$0xf]  ;;  %v10228_v63 = vld [vmem:[%s16596_s1 + $0x14c] sm:$0xf0]  ;;  %v6868_v4 = vor.u32 %v10196_v60, %v6867_v59  ;;  %5014 = vmatpush.bf16.msra.mxu2 %v7140_v58  ;;  %v10174_v59 = vld [vmem:[%s16597_s0 + $0x68] sm:$0xf0] }
  0x17   :  { %v7123_v0 = vld [vmem:[%s16596_s1 + $0x240] sm:$0xf]  ;;  %v10260_v1 = vld [vmem:[%s16596_s1 + $0x24c] sm:$0xf0]  ;;  %v6996_v5 = vor.u32 %v10228_v63, %v6995_v61  ;;  %5028 = vmatpush.bf16.msra.mxu3 %v7268_v62 }
  0x18   :  { %v7251_v2 = vld [vmem:[%s16596_s1 + $0x340] sm:$0xf]  ;;  %v10292_v3 = vld [vmem:[%s16596_s1 + $0x34c] sm:$0xf0]  ;;  %v7124_v6 = vor.u32 %v10260_v1, %v7123_v0  ;;  %4987 = vmatpush.bf16.msra.mxu0 %v6868_v4  ;;  %v11320_v1 = vor.u32 %v10174_v59, %v6743_v54 }
  0x19   :  { %v6851_v7 = vld [vmem:[%s16596_s1 + $0x20] sm:$0xf]  ;;  %v10192_v8 = vld [vmem:[%s16596_s1 + $0x2c] sm:$0xf0]  ;;  %v7252_v10 = vor.u32 %v10292_v3, %v7251_v2  ;;  %5001 = vmatpush.bf16.msra.mxu1 %v6996_v5 }
  0x1a   :  { %v6979_v9 = vld [vmem:[%s16596_s1 + $0x120] sm:$0xf]  ;;  %v10224_v11 = vld [vmem:[%s16596_s1 + $0x12c] sm:$0xf0]  ;;  %v6852_v16 = vor.u32 %v10192_v8, %v6851_v7  ;;  %5015 = vmatpush.bf16.msra.mxu2 %v7124_v6  ;;  %v10161_v6 = vld [vmem:[%s16597_s0 + $0x4] sm:$0xf] }
  0x1b   :  { %v7107_v12 = vld [vmem:[%s16596_s1 + $0x220] sm:$0xf]  ;;  %v10256_v13 = vld [vmem:[%s16596_s1 + $0x22c] sm:$0xf0]  ;;  %v6980_v19 = vor.u32 %v10224_v11, %v6979_v9  ;;  %5029 = vmatpush.bf16.msra.mxu3 %v7252_v10  ;;  %v6737_v7 = vld [vmem:[%s16597_s0 + $0x64] sm:$0xf0] }
  0x1c   :  { %v7235_v14 = vld [vmem:[%s16596_s1 + $0x320] sm:$0xf]  ;;  %v10288_v15 = vld [vmem:[%s16596_s1 + $0x32c] sm:$0xf0]  ;;  %v7108_v20 = vor.u32 %v10256_v13, %v7107_v12  ;;  %4988 = vmatpush.bf16.msra.mxu0 %v6852_v16  ;;  %v10162_v8 = vld [vmem:[%s16597_s0 + $0xc] sm:$0xf]  ;;  %v11342_v10 = vor.u32 %v10161_v6, %v6737_v7 }
  0x1d   :  { %v6835_v17 = vld [vmem:[%s16596_s1] sm:$0xf]  ;;  %v10188_v18 = vld [vmem:[%s16596_s1 + $0xc] sm:$0xf0]  ;;  %v7236_v24 = vor.u32 %v10288_v15, %v7235_v14  ;;  %5002 = vmatpush.bf16.msra.mxu1 %v6980_v19 }
  0x1e   :  { %v6963_v21 = vld [vmem:[%s16596_s1 + $0x100] sm:$0xf]  ;;  %v10220_v22 = vld [vmem:[%s16596_s1 + $0x10c] sm:$0xf0]  ;;  %v6836_v31 = vor.u32 %v10188_v18, %v6835_v17  ;;  %5016 = vmatpush.bf16.msra.mxu2 %v7108_v20 }
  0x1f   :  { %v7091_v23 = vld [vmem:[%s16596_s1 + $0x200] sm:$0xf]  ;;  %v10252_v25 = vld [vmem:[%s16596_s1 + $0x20c] sm:$0xf0]  ;;  %v6964_v35 = vor.u32 %v10220_v22, %v6963_v21  ;;  %5030 = vmatpush.bf16.msra.mxu3 %v7236_v24 }
  0x20   :  { %v7219_v26 = vld [vmem:[%s16596_s1 + $0x300] sm:$0xf]  ;;  %v10284_v27 = vld [vmem:[%s16596_s1 + $0x30c] sm:$0xf0]  ;;  %v7092_v36 = vor.u32 %v10252_v25, %v7091_v23  ;;  %4989 = vmatpush.bf16.msra.mxu0 %v6836_v31 }
  0x21   :  { %v7459_v28 = vld [vmem:[%s16596_s1 + $0x4e0] sm:$0xf]  ;;  %v10344_v29 = vld [vmem:[%s16596_s1 + $0x4ec] sm:$0xf0]  ;;  %v7220_v39 = vor.u32 %v10284_v27, %v7219_v26  ;;  %5003 = vmatpush.bf16.msra.mxu1 %v6964_v35 }
  0x22   :  { %v7587_v30 = vld [vmem:[%s16596_s1 + $0x5e0] sm:$0xf]  ;;  %v10376_v32 = vld [vmem:[%s16596_s1 + $0x5ec] sm:$0xf0]  ;;  %v7460_v40 = vor.u32 %v10344_v29, %v7459_v28  ;;  %5017 = vmatpush.bf16.msra.mxu2 %v7092_v36 }
  0x23   :  { %v7715_v33 = vld [vmem:[%s16596_s1 + $0x6e0] sm:$0xf]  ;;  %v10408_v34 = vld [vmem:[%s16596_s1 + $0x6ec] sm:$0xf0]  ;;  %v7588_v43 = vor.u32 %v10376_v32, %v7587_v30  ;;  %5031 = vmatpush.bf16.msra.mxu3 %v7220_v39 }
  0x24   :  { %v7843_v37 = vld [vmem:[%s16596_s1 + $0x7e0] sm:$0xf]  ;;  %v10440_v38 = vld [vmem:[%s16596_s1 + $0x7ec] sm:$0xf0]  ;;  %v7716_v44 = vor.u32 %v10408_v34, %v7715_v33  ;;  %5038 = vmatpush.bf16.msrb.mxu0 %v7460_v40  ;;  %5004 = vmatmul.bf16.vlgmr.msra.gmra.mxu1 %v11342_v10 }
  0x25   :  { %v7443_v41 = vld [vmem:[%s16596_s1 + $0x4c0] sm:$0xf]  ;;  %v10340_v42 = vld [vmem:[%s16596_s1 + $0x4cc] sm:$0xf0]  ;;  %v7844_v48 = vor.u32 %v10440_v38, %v7843_v37  ;;  %5052 = vmatpush.bf16.msrb.mxu1 %v7588_v43  ;;  %5018 = vmatmul.bf16.vlgmr.msra.gmra.mxu2 %v11320_v1 }
  0x26   :  { %v7571_v45 = vld [vmem:[%s16596_s1 + $0x5c0] sm:$0xf]  ;;  %v10372_v46 = vld [vmem:[%s16596_s1 + $0x5cc] sm:$0xf0]  ;;  %v7444_v55 = vor.u32 %v10340_v42, %v7443_v41  ;;  %5066 = vmatpush.bf16.msrb.mxu2 %v7716_v44 }
  0x27   :  { %v7699_v47 = vld [vmem:[%s16596_s1 + $0x6c0] sm:$0xf]  ;;  %v10404_v49 = vld [vmem:[%s16596_s1 + $0x6cc] sm:$0xf0]  ;;  %v7572_v60 = vor.u32 %v10372_v46, %v7571_v45  ;;  %5080 = vmatpush.bf16.msrb.mxu3 %v7844_v48 }
  0x28   :  { %v7827_v50 = vld [vmem:[%s16596_s1 + $0x7c0] sm:$0xf]  ;;  %v10436_v51 = vld [vmem:[%s16596_s1 + $0x7cc] sm:$0xf0]  ;;  %v7700_v61 = vor.u32 %v10404_v49, %v7699_v47  ;;  %5039 = vmatpush.bf16.msrb.mxu0 %v7444_v55 }
  0x29   :  { %v6735_v52 = vld [vmem:[%s16597_s0] sm:$0xf]  ;;  %v10336_v57 = vld [vmem:[%s16596_s1 + $0x4ac] sm:$0xf0]  ;;  %v7828_v2 = vor.u32 %v10436_v51, %v7827_v50  ;;  %5053 = vmatpush.bf16.msrb.mxu1 %v7572_v60 }
  0x2a   :  { %v7427_v56 = vld [vmem:[%s16596_s1 + $0x4a0] sm:$0xf]  ;;  %v11306_v58 = vor.u32 %v10173_v53, %v6735_v52  ;;  %v10368_v63 = vld [vmem:[%s16596_s1 + $0x5ac] sm:$0xf0]  ;;  %5067 = vmatpush.bf16.msrb.mxu2 %v7700_v61 }
  0x2b   :  { %v7555_v62 = vld [vmem:[%s16596_s1 + $0x5a0] sm:$0xf]  ;;  %v10400_v3 = vld [vmem:[%s16596_s1 + $0x6ac] sm:$0xf0]  ;;  %v7428_v9 = vor.u32 %v10336_v57, %v7427_v56  ;;  %5081 = vmatpush.bf16.msrb.mxu3 %v7828_v2 }
  0x2c   :  { %v7683_v0 = vld [vmem:[%s16596_s1 + $0x6a0] sm:$0xf]  ;;  %v10432_v5 = vld [vmem:[%s16596_s1 + $0x7ac] sm:$0xf0]  ;;  %4990 = vmatmul.bf16.vlgmr.msra.gmra.mxu0 %v11306_v58  ;;  %v7556_v12 = vor.u32 %v10368_v63, %v7555_v62 }
  0x2d   :  { %v7811_v4 = vld [vmem:[%s16596_s1 + $0x7a0] sm:$0xf]  ;;  %v6745_v11 = vld [vmem:[%s16597_s0 + $0x6c] sm:$0xf0]  ;;  %v7684_v13 = vor.u32 %v10400_v3, %v7683_v0  ;;  %5040 = vmatpush.bf16.msrb.mxu0 %v7428_v9 }
  0x2e   :  { %v7411_v14 = vld [vmem:[%s16596_s1 + $0x480] sm:$0xf]  ;;  %v10332_v15 = vld [vmem:[%s16596_s1 + $0x48c] sm:$0xf0]  ;;  %v11356_v17 = vor.u32 %v10162_v8, %v6745_v11  ;;  %v7812_v18 = vor.u32 %v10432_v5, %v7811_v4  ;;  %5054 = vmatpush.bf16.msrb.mxu1 %v7556_v12 }
  0x2f   :  { %v7539_v16 = vld [vmem:[%s16596_s1 + $0x580] sm:$0xf]  ;;  %v10364_v19 = vld [vmem:[%s16596_s1 + $0x58c] sm:$0xf0]  ;;  %v7412_v24 = vor.u32 %v10332_v15, %v7411_v14  ;;  %5068 = vmatpush.bf16.msrb.mxu2 %v7684_v13 }
  0x30   :  { %v7667_v20 = vld [vmem:[%s16596_s1 + $0x680] sm:$0xf]  ;;  %v10396_v21 = vld [vmem:[%s16596_s1 + $0x68c] sm:$0xf0]  ;;  %5032 = vmatmul.bf16.vlgmr.msra.gmra.mxu3 %v11356_v17  ;;  %v7540_v25 = vor.u32 %v10364_v19, %v7539_v16 }
  0x31   :  { %v7795_v22 = vld [vmem:[%s16596_s1 + $0x780] sm:$0xf]  ;;  %v10428_v23 = vld [vmem:[%s16596_s1 + $0x78c] sm:$0xf0]  ;;  %v7668_v26 = vor.u32 %v10396_v21, %v7667_v20  ;;  %5082 = vmatpush.bf16.msrb.mxu3 %v7812_v18  ;;  %5041 = vmatpush.bf16.msrb.mxu0 %v7412_v24 }
  0x32   :  { %v7395_v27 = vld [vmem:[%s16596_s1 + $0x460] sm:$0xf]  ;;  %v10328_v28 = vld [vmem:[%s16596_s1 + $0x46c] sm:$0xf0]  ;;  %v7796_v30 = vor.u32 %v10428_v23, %v7795_v22  ;;  %5055 = vmatpush.bf16.msrb.mxu1 %v7540_v25  ;;  %v10175_v22 = vld [vmem:[%s16597_s0 + $0x70] sm:$0xf0] }
  0x33   :  { %v7523_v29 = vld [vmem:[%s16596_s1 + $0x560] sm:$0xf]  ;;  %v10360_v31 = vld [vmem:[%s16596_s1 + $0x56c] sm:$0xf0]  ;;  %v7396_v36 = vor.u32 %v10328_v28, %v7395_v27  ;;  %5069 = vmatpush.bf16.msrb.mxu2 %v7668_v26  ;;  %v6759_v25 = vld [vmem:[%s16597_s0 + $0x18] sm:$0xf] }
  0x34   :  { %v7651_v32 = vld [vmem:[%s16596_s1 + $0x660] sm:$0xf]  ;;  %v10392_v33 = vld [vmem:[%s16596_s1 + $0x66c] sm:$0xf0]  ;;  %v7524_v37 = vor.u32 %v10360_v31, %v7523_v29  ;;  %v10176_v26 = vld [vmem:[%s16597_s0 + $0x78] sm:$0xf0] }
  0x35   :  { %v7779_v34 = vld [vmem:[%s16596_s1 + $0x760] sm:$0xf]  ;;  %v10424_v35 = vld [vmem:[%s16596_s1 + $0x76c] sm:$0xf0]  ;;  %v7652_v38 = vor.u32 %v10392_v33, %v7651_v32  ;;  %5083 = vmatpush.bf16.msrb.mxu3 %v7796_v30  ;;  %5042 = vmatpush.bf16.msrb.mxu0 %v7396_v36  ;;  %v10163_v27 = vld [vmem:[%s16597_s0 + $0x14] sm:$0xf] }
  0x36   :  { %v7379_v39 = vld [vmem:[%s16596_s1 + $0x440] sm:$0xf]  ;;  %v10324_v40 = vld [vmem:[%s16596_s1 + $0x44c] sm:$0xf0]  ;;  %v7780_v42 = vor.u32 %v10424_v35, %v7779_v34  ;;  %5056 = vmatpush.bf16.msrb.mxu1 %v7524_v37  ;;  %v6753_v30 = vld [vmem:[%s16597_s0 + $0x74] sm:$0xf0] }
  0x37   :  { %v7507_v41 = vld [vmem:[%s16596_s1 + $0x540] sm:$0xf]  ;;  %v10356_v43 = vld [vmem:[%s16596_s1 + $0x54c] sm:$0xf0]  ;;  %v7380_v48 = vor.u32 %v10324_v40, %v7379_v39  ;;  %5070 = vmatpush.bf16.msrb.mxu2 %v7652_v38  ;;  %v10164_v31 = vld [vmem:[%s16597_s0 + $0x1c] sm:$0xf] }
  0x38   :  { %v7635_v44 = vld [vmem:[%s16596_s1 + $0x640] sm:$0xf]  ;;  %v10388_v45 = vld [vmem:[%s16596_s1 + $0x64c] sm:$0xf0]  ;;  %v7508_v50 = vor.u32 %v10356_v43, %v7507_v41  ;;  %v11539_v43 = vor.u32 %v10176_v26, %v6759_v25 }
  0x39   :  { %v7763_v46 = vld [vmem:[%s16596_s1 + $0x740] sm:$0xf]  ;;  %v10420_v47 = vld [vmem:[%s16596_s1 + $0x74c] sm:$0xf0]  ;;  %v7636_v51 = vor.u32 %v10388_v45, %v7635_v44  ;;  %5084 = vmatpush.bf16.msrb.mxu3 %v7780_v42  ;;  %5043 = vmatpush.bf16.msrb.mxu0 %v7380_v48  ;;  %v11541_v44 = vor.u32 %v10163_v27, %v6753_v30 }
  0x3a   :  { %v7363_v49 = vld [vmem:[%s16596_s1 + $0x420] sm:$0xf]  ;;  %v10320_v52 = vld [vmem:[%s16596_s1 + $0x42c] sm:$0xf0]  ;;  %v7764_v55 = vor.u32 %v10420_v47, %v7763_v46  ;;  %5057 = vmatpush.bf16.msrb.mxu1 %v7508_v50 }
  0x3b   :  { %v7491_v53 = vld [vmem:[%s16596_s1 + $0x520] sm:$0xf]  ;;  %v10352_v54 = vld [vmem:[%s16596_s1 + $0x52c] sm:$0xf0]  ;;  %v7364_v63 = vor.u32 %v10320_v52, %v7363_v49  ;;  %5071 = vmatpush.bf16.msrb.mxu2 %v7636_v51 }
  0x3c   :  { %v7619_v56 = vld [vmem:[%s16596_s1 + $0x620] sm:$0xf]  ;;  %v10384_v57 = vld [vmem:[%s16596_s1 + $0x62c] sm:$0xf0]  ;;  %v7492_v5 = vor.u32 %v10352_v54, %v7491_v53 }
  0x3d   :  { %v7747_v59 = vld [vmem:[%s16596_s1 + $0x720] sm:$0xf]  ;;  %v10416_v60 = vld [vmem:[%s16596_s1 + $0x72c] sm:$0xf0]  ;;  %v7620_v6 = vor.u32 %v10384_v57, %v7619_v56  ;;  %5085 = vmatpush.bf16.msrb.mxu3 %v7764_v55  ;;  %5044 = vmatpush.bf16.msrb.mxu0 %v7364_v63 }
  0x3e   :  { %v7347_v61 = vld [vmem:[%s16596_s1 + $0x400] sm:$0xf]  ;;  %v10316_v62 = vld [vmem:[%s16596_s1 + $0x40c] sm:$0xf0]  ;;  %v7748_v11 = vor.u32 %v10416_v60, %v7747_v59  ;;  %5058 = vmatpush.bf16.msrb.mxu1 %v7492_v5 }
  0x3f   :  { %v7475_v0 = vld [vmem:[%s16596_s1 + $0x500] sm:$0xf]  ;;  %v10348_v2 = vld [vmem:[%s16596_s1 + $0x50c] sm:$0xf0]  ;;  %v7348_v19 = vor.u32 %v10316_v62, %v7347_v61  ;;  %5072 = vmatpush.bf16.msrb.mxu2 %v7620_v6 }
  0x40   :  { %v7603_v3 = vld [vmem:[%s16596_s1 + $0x600] sm:$0xf]  ;;  %v10380_v4 = vld [vmem:[%s16596_s1 + $0x60c] sm:$0xf0]  ;;  %v7476_v23 = vor.u32 %v10348_v2, %v7475_v0 }
  0x41   :  { %v7731_v7 = vld [vmem:[%s16596_s1 + $0x700] sm:$0xf]  ;;  %v10412_v8 = vld [vmem:[%s16596_s1 + $0x70c] sm:$0xf0]  ;;  %v7604_v24 = vor.u32 %v10380_v4, %v7603_v3  ;;  %5086 = vmatpush.bf16.msrb.mxu3 %v7748_v11  ;;  %5045 = vmatpush.bf16.msrb.mxu0 %v7348_v19 }
  0x42   :  { %v7971_v9 = vld [vmem:[%s16596_s1 + $0x8e0] sm:$0xf]  ;;  %v10472_v12 = vld [vmem:[%s16596_s1 + $0x8ec] sm:$0xf0]  ;;  %v7732_v28 = vor.u32 %v10412_v8, %v7731_v7  ;;  %5059 = vmatpush.bf16.msrb.mxu1 %v7476_v23 }
  0x43   :  { %v8099_v13 = vld [vmem:[%s16596_s1 + $0x9e0] sm:$0xf]  ;;  %v10504_v14 = vld [vmem:[%s16596_s1 + $0x9ec] sm:$0xf0]  ;;  %v7972_v29 = vor.u32 %v10472_v12, %v7971_v9  ;;  %5073 = vmatpush.bf16.msrb.mxu2 %v7604_v24 }
  0x44   :  { %v8227_v15 = vld [vmem:[%s16596_s1 + $0xae0] sm:$0xf]  ;;  %v10536_v16 = vld [vmem:[%s16596_s1 + $0xaec] sm:$0xf0]  ;;  %v8100_v33 = vor.u32 %v10504_v14, %v8099_v13 }
  0x45   :  { %v8355_v18 = vld [vmem:[%s16596_s1 + $0xbe0] sm:$0xf]  ;;  %v10568_v20 = vld [vmem:[%s16596_s1 + $0xbec] sm:$0xf0]  ;;  %v8228_v34 = vor.u32 %v10536_v16, %v8227_v15  ;;  %5087 = vmatpush.bf16.msrb.mxu3 %v7732_v28  ;;  %5094 = vmatpush.bf16.msra.mxu0 %v7972_v29 }
  0x46   :  { %v6751_v21 = vld [vmem:[%s16597_s0 + $0x10] sm:$0xf]  ;;  %v6761_v32 = vld [vmem:[%s16597_s0 + $0x7c] sm:$0xf0]  ;;  %v8356_v38 = vor.u32 %v10568_v20, %v8355_v18  ;;  %5108 = vmatpush.bf16.msra.mxu1 %v8100_v33  ;;  %5074 = vmatmul.bf16.vlgmr.msrb.gmra.mxu2 %v11539_v43 }
  0x47   :  { %v7955_v35 = vld [vmem:[%s16596_s1 + $0x8c0] sm:$0xf]  ;;  %v10468_v36 = vld [vmem:[%s16596_s1 + $0x8cc] sm:$0xf0]  ;;  %v11528_v39 = vor.u32 %v10175_v22, %v6751_v21  ;;  %v11549_v47 = vor.u32 %v10164_v31, %v6761_v32  ;;  %5122 = vmatpush.bf16.msra.mxu2 %v8228_v34  ;;  %5060 = vmatmul.bf16.vlgmr.msrb.gmra.mxu1 %v11541_v44 }
  0x48   :  { %v8083_v37 = vld [vmem:[%s16596_s1 + $0x9c0] sm:$0xf]  ;;  %v10500_v40 = vld [vmem:[%s16596_s1 + $0x9cc] sm:$0xf0]  ;;  %v7956_v48 = vor.u32 %v10468_v36, %v7955_v35 }
  0x49   :  { %v8211_v41 = vld [vmem:[%s16596_s1 + $0xac0] sm:$0xf]  ;;  %v10532_v42 = vld [vmem:[%s16596_s1 + $0xacc] sm:$0xf0]  ;;  %v8084_v49 = vor.u32 %v10500_v40, %v8083_v37  ;;  %5136 = vmatpush.bf16.msra.mxu3 %v8356_v38  ;;  %5046 = vmatmul.bf16.vlgmr.msrb.gmra.mxu0 %v11528_v39 }
  0x4a   :  { %v8339_v45 = vld [vmem:[%s16596_s1 + $0xbc0] sm:$0xf]  ;;  %v10564_v46 = vld [vmem:[%s16596_s1 + $0xbcc] sm:$0xf0]  ;;  %v8212_v50 = vor.u32 %v10532_v42, %v8211_v41  ;;  %5088 = vmatmul.bf16.vlgmr.msrb.gmra.mxu3 %v11549_v47  ;;  %5095 = vmatpush.bf16.msra.mxu0 %v7956_v48 }
  0x4b   :  { %v7939_v51 = vld [vmem:[%s16596_s1 + $0x8a0] sm:$0xf]  ;;  %v10464_v52 = vld [vmem:[%s16596_s1 + $0x8ac] sm:$0xf0]  ;;  %v8340_v54 = vor.u32 %v10564_v46, %v8339_v45  ;;  %5109 = vmatpush.bf16.msra.mxu1 %v8084_v49 }
  0x4c   :  { %v8067_v53 = vld [vmem:[%s16596_s1 + $0x9a0] sm:$0xf]  ;;  %v10496_v55 = vld [vmem:[%s16596_s1 + $0x9ac] sm:$0xf0]  ;;  %v7940_v61 = vor.u32 %v10464_v52, %v7939_v51  ;;  %5123 = vmatpush.bf16.msra.mxu2 %v8212_v50 }
  0x4d   :  { %v8195_v56 = vld [vmem:[%s16596_s1 + $0xaa0] sm:$0xf]  ;;  %v10528_v57 = vld [vmem:[%s16596_s1 + $0xaac] sm:$0xf0]  ;;  %v8068_v62 = vor.u32 %v10496_v55, %v8067_v53  ;;  %5137 = vmatpush.bf16.msra.mxu3 %v8340_v54 }
  0x4e   :  { %v8323_v59 = vld [vmem:[%s16596_s1 + $0xba0] sm:$0xf]  ;;  %v10560_v60 = vld [vmem:[%s16596_s1 + $0xbac] sm:$0xf0]  ;;  %v8196_v63 = vor.u32 %v10528_v57, %v8195_v56  ;;  %5096 = vmatpush.bf16.msra.mxu0 %v7940_v61 }
  0x4f   :  { %v7923_v0 = vld [vmem:[%s16596_s1 + $0x880] sm:$0xf]  ;;  %v10460_v2 = vld [vmem:[%s16596_s1 + $0x88c] sm:$0xf0]  ;;  %v8324_v4 = vor.u32 %v10560_v60, %v8323_v59  ;;  %5110 = vmatpush.bf16.msra.mxu1 %v8068_v62 }
  0x50   :  { %v8051_v3 = vld [vmem:[%s16596_s1 + $0x980] sm:$0xf]  ;;  %v10492_v5 = vld [vmem:[%s16596_s1 + $0x98c] sm:$0xf0]  ;;  %v7924_v11 = vor.u32 %v10460_v2, %v7923_v0  ;;  %5124 = vmatpush.bf16.msra.mxu2 %v8196_v63 }
  0x51   :  { %v8179_v6 = vld [vmem:[%s16596_s1 + $0xa80] sm:$0xf]  ;;  %v10524_v7 = vld [vmem:[%s16596_s1 + $0xa8c] sm:$0xf0]  ;;  %v8052_v12 = vor.u32 %v10492_v5, %v8051_v3  ;;  %5138 = vmatpush.bf16.msra.mxu3 %v8324_v4 }
  0x52   :  { %v8307_v8 = vld [vmem:[%s16596_s1 + $0xb80] sm:$0xf]  ;;  %v10556_v9 = vld [vmem:[%s16596_s1 + $0xb8c] sm:$0xf0]  ;;  %v8180_v13 = vor.u32 %v10524_v7, %v8179_v6  ;;  %5097 = vmatpush.bf16.msra.mxu0 %v7924_v11 }
  0x53   :  { %v7907_v14 = vld [vmem:[%s16596_s1 + $0x860] sm:$0xf]  ;;  %v10456_v15 = vld [vmem:[%s16596_s1 + $0x86c] sm:$0xf0]  ;;  %v8308_v18 = vor.u32 %v10556_v9, %v8307_v8  ;;  %5111 = vmatpush.bf16.msra.mxu1 %v8052_v12 }
  0x54   :  { %v8035_v16 = vld [vmem:[%s16596_s1 + $0x960] sm:$0xf]  ;;  %v10488_v19 = vld [vmem:[%s16596_s1 + $0x96c] sm:$0xf0]  ;;  %v7908_v24 = vor.u32 %v10456_v15, %v7907_v14  ;;  %5125 = vmatpush.bf16.msra.mxu2 %v8180_v13  ;;  %v10177_v13 = vld [vmem:[%s16597_s0 + $0x80] sm:$0xf0] }
  0x55   :  { %v8163_v20 = vld [vmem:[%s16596_s1 + $0xa60] sm:$0xf]  ;;  %v10520_v21 = vld [vmem:[%s16596_s1 + $0xa6c] sm:$0xf0]  ;;  %v8036_v25 = vor.u32 %v10488_v19, %v8035_v16  ;;  %5139 = vmatpush.bf16.msra.mxu3 %v8308_v18  ;;  %v6775_v16 = vld [vmem:[%s16597_s0 + $0x28] sm:$0xf] }
  0x56   :  { %v8291_v22 = vld [vmem:[%s16596_s1 + $0xb60] sm:$0xf]  ;;  %v10552_v23 = vld [vmem:[%s16596_s1 + $0xb6c] sm:$0xf0]  ;;  %v8164_v26 = vor.u32 %v10520_v21, %v8163_v20  ;;  %5098 = vmatpush.bf16.msra.mxu0 %v7908_v24  ;;  %v10178_v18 = vld [vmem:[%s16597_s0 + $0x88] sm:$0xf0] }
  0x57   :  { %v7891_v27 = vld [vmem:[%s16596_s1 + $0x840] sm:$0xf]  ;;  %v10452_v28 = vld [vmem:[%s16596_s1 + $0x84c] sm:$0xf0]  ;;  %v8292_v30 = vor.u32 %v10552_v23, %v8291_v22  ;;  %5112 = vmatpush.bf16.msra.mxu1 %v8036_v25  ;;  %v10165_v19 = vld [vmem:[%s16597_s0 + $0x24] sm:$0xf] }
  0x58   :  { %v8019_v29 = vld [vmem:[%s16596_s1 + $0x940] sm:$0xf]  ;;  %v10484_v31 = vld [vmem:[%s16596_s1 + $0x94c] sm:$0xf0]  ;;  %v7892_v36 = vor.u32 %v10452_v28, %v7891_v27  ;;  %5126 = vmatpush.bf16.msra.mxu2 %v8164_v26  ;;  %v6769_v22 = vld [vmem:[%s16597_s0 + $0x84] sm:$0xf0] }
  0x59   :  { %v8147_v32 = vld [vmem:[%s16596_s1 + $0xa40] sm:$0xf]  ;;  %v10516_v33 = vld [vmem:[%s16596_s1 + $0xa4c] sm:$0xf0]  ;;  %v8020_v38 = vor.u32 %v10484_v31, %v8019_v29  ;;  %5140 = vmatpush.bf16.msra.mxu3 %v8292_v30  ;;  %v10166_v23 = vld [vmem:[%s16597_s0 + $0x2c] sm:$0xf] }
  0x5a   :  { %v8275_v34 = vld [vmem:[%s16596_s1 + $0xb40] sm:$0xf]  ;;  %v10548_v35 = vld [vmem:[%s16596_s1 + $0xb4c] sm:$0xf0]  ;;  %v8148_v40 = vor.u32 %v10516_v33, %v8147_v32  ;;  %5099 = vmatpush.bf16.msra.mxu0 %v7892_v36  ;;  %v11769_v36 = vor.u32 %v10165_v19, %v6769_v22 }
  0x5b   :  { %v7875_v37 = vld [vmem:[%s16596_s1 + $0x820] sm:$0xf]  ;;  %v10448_v41 = vld [vmem:[%s16596_s1 + $0x82c] sm:$0xf0]  ;;  %v8276_v46 = vor.u32 %v10548_v35, %v8275_v34  ;;  %5113 = vmatpush.bf16.msra.mxu1 %v8020_v38  ;;  %v11767_v35 = vor.u32 %v10178_v18, %v6775_v16 }
  0x5c   :  { %v8003_v42 = vld [vmem:[%s16596_s1 + $0x920] sm:$0xf]  ;;  %v10480_v45 = vld [vmem:[%s16596_s1 + $0x92c] sm:$0xf0]  ;;  %v7876_v54 = vor.u32 %v10448_v41, %v7875_v37  ;;  %5127 = vmatpush.bf16.msra.mxu2 %v8148_v40 }
  0x5d   :  { %v8131_v48 = vld [vmem:[%s16596_s1 + $0xa20] sm:$0xf]  ;;  %v10512_v49 = vld [vmem:[%s16596_s1 + $0xa2c] sm:$0xf0]  ;;  %v8004_v60 = vor.u32 %v10480_v45, %v8003_v42  ;;  %5141 = vmatpush.bf16.msra.mxu3 %v8276_v46 }
  0x5e   :  { %v8259_v50 = vld [vmem:[%s16596_s1 + $0xb20] sm:$0xf]  ;;  %v10544_v51 = vld [vmem:[%s16596_s1 + $0xb2c] sm:$0xf0]  ;;  %v8132_v61 = vor.u32 %v10512_v49, %v8131_v48  ;;  %5100 = vmatpush.bf16.msra.mxu0 %v7876_v54 }
  0x5f   :  { %v7859_v52 = vld [vmem:[%s16596_s1 + $0x800] sm:$0xf]  ;;  %v10444_v53 = vld [vmem:[%s16596_s1 + $0x80c] sm:$0xf0]  ;;  %v8260_v2 = vor.u32 %v10544_v51, %v8259_v50  ;;  %5114 = vmatpush.bf16.msra.mxu1 %v8004_v60 }
  0x60   :  { %v7987_v55 = vld [vmem:[%s16596_s1 + $0x900] sm:$0xf]  ;;  %v10476_v56 = vld [vmem:[%s16596_s1 + $0x90c] sm:$0xf0]  ;;  %v7860_v9 = vor.u32 %v10444_v53, %v7859_v52  ;;  %5128 = vmatpush.bf16.msra.mxu2 %v8132_v61 }
  0x61   :  { %v8115_v57 = vld [vmem:[%s16596_s1 + $0xa00] sm:$0xf]  ;;  %v10508_v59 = vld [vmem:[%s16596_s1 + $0xa0c] sm:$0xf0]  ;;  %v7988_v14 = vor.u32 %v10476_v56, %v7987_v55  ;;  %5142 = vmatpush.bf16.msra.mxu3 %v8260_v2 }
  0x62   :  { %v8243_v62 = vld [vmem:[%s16596_s1 + $0xb00] sm:$0xf]  ;;  %v10540_v63 = vld [vmem:[%s16596_s1 + $0xb0c] sm:$0xf0]  ;;  %v8116_v15 = vor.u32 %v10508_v59, %v8115_v57  ;;  %5101 = vmatpush.bf16.msra.mxu0 %v7860_v9 }
  0x63   :  { %v8483_v0 = vld [vmem:[%s16596_s1 + $0xce0] sm:$0xf]  ;;  %v10600_v3 = vld [vmem:[%s16596_s1 + $0xcec] sm:$0xf0]  ;;  %v8244_v20 = vor.u32 %v10540_v63, %v8243_v62  ;;  %5115 = vmatpush.bf16.msra.mxu1 %v7988_v14 }
  0x64   :  { %v8611_v4 = vld [vmem:[%s16596_s1 + $0xde0] sm:$0xf]  ;;  %v10632_v5 = vld [vmem:[%s16596_s1 + $0xdec] sm:$0xf0]  ;;  %v8484_v21 = vor.u32 %v10600_v3, %v8483_v0  ;;  %5129 = vmatpush.bf16.msra.mxu2 %v8116_v15 }
  0x65   :  { %v8739_v6 = vld [vmem:[%s16596_s1 + $0xee0] sm:$0xf]  ;;  %v10664_v7 = vld [vmem:[%s16596_s1 + $0xeec] sm:$0xf0]  ;;  %v8612_v25 = vor.u32 %v10632_v5, %v8611_v4  ;;  %5143 = vmatpush.bf16.msra.mxu3 %v8244_v20 }
  0x66   :  { %v8867_v8 = vld [vmem:[%s16596_s1 + $0xfe0] sm:$0xf]  ;;  %v10696_v11 = vld [vmem:[%s16596_s1 + $0xfec] sm:$0xf0]  ;;  %v8740_v26 = vor.u32 %v10664_v7, %v8739_v6  ;;  %5150 = vmatpush.bf16.msrb.mxu0 %v8484_v21  ;;  %5116 = vmatmul.bf16.vlgmr.msra.gmra.mxu1 %v11769_v36 }
  0x67   :  { %v6767_v12 = vld [vmem:[%s16597_s0 + $0x20] sm:$0xf]  ;;  %v6777_v24 = vld [vmem:[%s16597_s0 + $0x8c] sm:$0xf0]  ;;  %v8868_v30 = vor.u32 %v10696_v11, %v8867_v8  ;;  %5164 = vmatpush.bf16.msrb.mxu1 %v8612_v25  ;;  %5130 = vmatmul.bf16.vlgmr.msra.gmra.mxu2 %v11767_v35 }
  0x68   :  { %v8467_v27 = vld [vmem:[%s16596_s1 + $0xcc0] sm:$0xf]  ;;  %v10596_v28 = vld [vmem:[%s16596_s1 + $0xccc] sm:$0xf0]  ;;  %v11756_v31 = vor.u32 %v10177_v13, %v6767_v12  ;;  %v11777_v40 = vor.u32 %v10166_v23, %v6777_v24  ;;  %5178 = vmatpush.bf16.msrb.mxu2 %v8740_v26 }
  0x69   :  { %v8595_v29 = vld [vmem:[%s16596_s1 + $0xdc0] sm:$0xf]  ;;  %v10628_v32 = vld [vmem:[%s16596_s1 + $0xdcc] sm:$0xf0]  ;;  %v8468_v41 = vor.u32 %v10596_v28, %v8467_v27  ;;  %5192 = vmatpush.bf16.msrb.mxu3 %v8868_v30 }
  0x6a   :  { %v8723_v33 = vld [vmem:[%s16596_s1 + $0xec0] sm:$0xf]  ;;  %v10660_v34 = vld [vmem:[%s16596_s1 + $0xecc] sm:$0xf0]  ;;  %v8596_v42 = vor.u32 %v10628_v32, %v8595_v29  ;;  %5102 = vmatmul.bf16.vlgmr.msra.gmra.mxu0 %v11756_v31  ;;  %5144 = vmatmul.bf16.vlgmr.msra.gmra.mxu3 %v11777_v40 }
  0x6b   :  { %v8851_v37 = vld [vmem:[%s16596_s1 + $0xfc0] sm:$0xf]  ;;  %v10692_v38 = vld [vmem:[%s16596_s1 + $0xfcc] sm:$0xf0]  ;;  %v8724_v45 = vor.u32 %v10660_v34, %v8723_v33  ;;  %5151 = vmatpush.bf16.msrb.mxu0 %v8468_v41 }
  0x6c   :  { %v8451_v46 = vld [vmem:[%s16596_s1 + $0xca0] sm:$0xf]  ;;  %v10592_v48 = vld [vmem:[%s16596_s1 + $0xcac] sm:$0xf0]  ;;  %v8852_v50 = vor.u32 %v10692_v38, %v8851_v37  ;;  %5165 = vmatpush.bf16.msrb.mxu1 %v8596_v42 }
  0x6d   :  { %v8579_v49 = vld [vmem:[%s16596_s1 + $0xda0] sm:$0xf]  ;;  %v10624_v51 = vld [vmem:[%s16596_s1 + $0xdac] sm:$0xf0]  ;;  %v8452_v56 = vor.u32 %v10592_v48, %v8451_v46  ;;  %5179 = vmatpush.bf16.msrb.mxu2 %v8724_v45 }
  0x6e   :  { %v8707_v52 = vld [vmem:[%s16596_s1 + $0xea0] sm:$0xf]  ;;  %v10656_v53 = vld [vmem:[%s16596_s1 + $0xeac] sm:$0xf0]  ;;  %v8580_v57 = vor.u32 %v10624_v51, %v8579_v49  ;;  %5193 = vmatpush.bf16.msrb.mxu3 %v8852_v50 }
  0x6f   :  { %v8835_v54 = vld [vmem:[%s16596_s1 + $0xfa0] sm:$0xf]  ;;  %v10688_v55 = vld [vmem:[%s16596_s1 + $0xfac] sm:$0xf0]  ;;  %v8708_v59 = vor.u32 %v10656_v53, %v8707_v52  ;;  %5152 = vmatpush.bf16.msrb.mxu0 %v8452_v56 }
  0x70   :  { %v8435_v60 = vld [vmem:[%s16596_s1 + $0xc80] sm:$0xf]  ;;  %v10588_v61 = vld [vmem:[%s16596_s1 + $0xc8c] sm:$0xf0]  ;;  %v8836_v63 = vor.u32 %v10688_v55, %v8835_v54  ;;  %5166 = vmatpush.bf16.msrb.mxu1 %v8580_v57 }
  0x71   :  { %v8563_v62 = vld [vmem:[%s16596_s1 + $0xd80] sm:$0xf]  ;;  %v10620_v0 = vld [vmem:[%s16596_s1 + $0xd8c] sm:$0xf0]  ;;  %v8436_v6 = vor.u32 %v10588_v61, %v8435_v60  ;;  %5180 = vmatpush.bf16.msrb.mxu2 %v8708_v59 }
  0x72   :  { %v8691_v2 = vld [vmem:[%s16596_s1 + $0xe80] sm:$0xf]  ;;  %v10652_v3 = vld [vmem:[%s16596_s1 + $0xe8c] sm:$0xf0]  ;;  %v8564_v7 = vor.u32 %v10620_v0, %v8563_v62  ;;  %5194 = vmatpush.bf16.msrb.mxu3 %v8836_v63 }
  0x73   :  { %v8819_v4 = vld [vmem:[%s16596_s1 + $0xf80] sm:$0xf]  ;;  %v10684_v5 = vld [vmem:[%s16596_s1 + $0xf8c] sm:$0xf0]  ;;  %v8692_v8 = vor.u32 %v10652_v3, %v8691_v2  ;;  %5153 = vmatpush.bf16.msrb.mxu0 %v8436_v6 }
  0x74   :  { %v8419_v9 = vld [vmem:[%s16596_s1 + $0xc60] sm:$0xf]  ;;  %v10584_v11 = vld [vmem:[%s16596_s1 + $0xc6c] sm:$0xf0]  ;;  %v8820_v13 = vor.u32 %v10684_v5, %v8819_v4  ;;  %5167 = vmatpush.bf16.msrb.mxu1 %v8564_v7 }
  0x75   :  { %v8547_v12 = vld [vmem:[%s16596_s1 + $0xd60] sm:$0xf]  ;;  %v10616_v14 = vld [vmem:[%s16596_s1 + $0xd6c] sm:$0xf0]  ;;  %v8420_v20 = vor.u32 %v10584_v11, %v8419_v9  ;;  %5181 = vmatpush.bf16.msrb.mxu2 %v8692_v8 }
  0x76   :  { %v8675_v15 = vld [vmem:[%s16596_s1 + $0xe60] sm:$0xf]  ;;  %v10648_v16 = vld [vmem:[%s16596_s1 + $0xe6c] sm:$0xf0]  ;;  %v8548_v21 = vor.u32 %v10616_v14, %v8547_v12  ;;  %5195 = vmatpush.bf16.msrb.mxu3 %v8820_v13  ;;  %v10179_v13 = vld [vmem:[%s16597_s0 + $0x90] sm:$0xf0] }
  0x77   :  { %v8803_v18 = vld [vmem:[%s16596_s1 + $0xf60] sm:$0xf]  ;;  %v10680_v19 = vld [vmem:[%s16596_s1 + $0xf6c] sm:$0xf0]  ;;  %v8676_v22 = vor.u32 %v10648_v16, %v8675_v15  ;;  %5154 = vmatpush.bf16.msrb.mxu0 %v8420_v20  ;;  %v6791_v16 = vld [vmem:[%s16597_s0 + $0x38] sm:$0xf] }
  0x78   :  { %v8403_v23 = vld [vmem:[%s16596_s1 + $0xc40] sm:$0xf]  ;;  %v10580_v24 = vld [vmem:[%s16596_s1 + $0xc4c] sm:$0xf0]  ;;  %v8804_v26 = vor.u32 %v10680_v19, %v8803_v18  ;;  %5168 = vmatpush.bf16.msrb.mxu1 %v8548_v21  ;;  %v10180_v18 = vld [vmem:[%s16597_s0 + $0x98] sm:$0xf0] }
  0x79   :  { %v8531_v25 = vld [vmem:[%s16596_s1 + $0xd40] sm:$0xf]  ;;  %v10612_v27 = vld [vmem:[%s16596_s1 + $0xd4c] sm:$0xf0]  ;;  %v8404_v33 = vor.u32 %v10580_v24, %v8403_v23  ;;  %5182 = vmatpush.bf16.msrb.mxu2 %v8676_v22  ;;  %v10167_v19 = vld [vmem:[%s16597_s0 + $0x34] sm:$0xf] }
  0x7a   :  { %v8659_v28 = vld [vmem:[%s16596_s1 + $0xe40] sm:$0xf]  ;;  %v10644_v29 = vld [vmem:[%s16596_s1 + $0xe4c] sm:$0xf0]  ;;  %v8532_v37 = vor.u32 %v10612_v27, %v8531_v25  ;;  %5196 = vmatpush.bf16.msrb.mxu3 %v8804_v26  ;;  %v6785_v22 = vld [vmem:[%s16597_s0 + $0x94] sm:$0xf0] }
  0x7b   :  { %v8787_v30 = vld [vmem:[%s16596_s1 + $0xf40] sm:$0xf]  ;;  %v10676_v32 = vld [vmem:[%s16596_s1 + $0xf4c] sm:$0xf0]  ;;  %v8660_v38 = vor.u32 %v10644_v29, %v8659_v28  ;;  %5155 = vmatpush.bf16.msrb.mxu0 %v8404_v33  ;;  %v10168_v23 = vld [vmem:[%s16597_s0 + $0x3c] sm:$0xf] }
  0x7c   :  { %v8387_v34 = vld [vmem:[%s16596_s1 + $0xc20] sm:$0xf]  ;;  %v10576_v41 = vld [vmem:[%s16596_s1 + $0xc2c] sm:$0xf0]  ;;  %v8788_v46 = vor.u32 %v10676_v32, %v8787_v30  ;;  %5169 = vmatpush.bf16.msrb.mxu1 %v8532_v37 }
  0x7d   :  { %v8515_v42 = vld [vmem:[%s16596_s1 + $0xd20] sm:$0xf]  ;;  %v10608_v45 = vld [vmem:[%s16596_s1 + $0xd2c] sm:$0xf0]  ;;  %v8388_v54 = vor.u32 %v10576_v41, %v8387_v34  ;;  %5183 = vmatpush.bf16.msrb.mxu2 %v8660_v38  ;;  %v11995_v38 = vor.u32 %v10180_v18, %v6791_v16  ;;  %v11997_v41 = vor.u32 %v10167_v19, %v6785_v22 }
  0x7e   :  { %v8643_v48 = vld [vmem:[%s16596_s1 + $0xe20] sm:$0xf]  ;;  %v10640_v49 = vld [vmem:[%s16596_s1 + $0xe2c] sm:$0xf0]  ;;  %v8516_v60 = vor.u32 %v10608_v45, %v8515_v42  ;;  %5197 = vmatpush.bf16.msrb.mxu3 %v8788_v46 }
  0x7f   :  { %v8771_v50 = vld [vmem:[%s16596_s1 + $0xf20] sm:$0xf]  ;;  %v10672_v51 = vld [vmem:[%s16596_s1 + $0xf2c] sm:$0xf0]  ;;  %v8644_v61 = vor.u32 %v10640_v49, %v8643_v48  ;;  %5156 = vmatpush.bf16.msrb.mxu0 %v8388_v54 }
  0x80   :  { %v8371_v52 = vld [vmem:[%s16596_s1 + $0xc00] sm:$0xf]  ;;  %v10572_v53 = vld [vmem:[%s16596_s1 + $0xc0c] sm:$0xf0]  ;;  %v8772_v2 = vor.u32 %v10672_v51, %v8771_v50  ;;  %5170 = vmatpush.bf16.msrb.mxu1 %v8516_v60 }
  0x81   :  { %v8499_v55 = vld [vmem:[%s16596_s1 + $0xd00] sm:$0xf]  ;;  %v10604_v56 = vld [vmem:[%s16596_s1 + $0xd0c] sm:$0xf0]  ;;  %v8372_v9 = vor.u32 %v10572_v53, %v8371_v52  ;;  %5184 = vmatpush.bf16.msrb.mxu2 %v8644_v61 }
  0x82   :  { %v8627_v57 = vld [vmem:[%s16596_s1 + $0xe00] sm:$0xf]  ;;  %v10636_v59 = vld [vmem:[%s16596_s1 + $0xe0c] sm:$0xf0]  ;;  %v8500_v14 = vor.u32 %v10604_v56, %v8499_v55  ;;  %5198 = vmatpush.bf16.msrb.mxu3 %v8772_v2 }
  0x83   :  { %v8755_v62 = vld [vmem:[%s16596_s1 + $0xf00] sm:$0xf]  ;;  %v10668_v63 = vld [vmem:[%s16596_s1 + $0xf0c] sm:$0xf0]  ;;  %v8628_v15 = vor.u32 %v10636_v59, %v8627_v57  ;;  %5157 = vmatpush.bf16.msrb.mxu0 %v8372_v9 }
  0x84   :  { %v8995_v0 = vld [vmem:[%s16596_s1 + $0x10e0] sm:$0xf]  ;;  %v10728_v3 = vld [vmem:[%s16596_s1 + $0x10ec] sm:$0xf0]  ;;  %v8756_v20 = vor.u32 %v10668_v63, %v8755_v62  ;;  %5171 = vmatpush.bf16.msrb.mxu1 %v8500_v14 }
  0x85   :  { %v9123_v4 = vld [vmem:[%s16596_s1 + $0x11e0] sm:$0xf]  ;;  %v10760_v5 = vld [vmem:[%s16596_s1 + $0x11ec] sm:$0xf0]  ;;  %v8996_v21 = vor.u32 %v10728_v3, %v8995_v0  ;;  %5185 = vmatpush.bf16.msrb.mxu2 %v8628_v15 }
  0x86   :  { %v9251_v6 = vld [vmem:[%s16596_s1 + $0x12e0] sm:$0xf]  ;;  %v10792_v7 = vld [vmem:[%s16596_s1 + $0x12ec] sm:$0xf0]  ;;  %v9124_v25 = vor.u32 %v10760_v5, %v9123_v4  ;;  %5199 = vmatpush.bf16.msrb.mxu3 %v8756_v20 }
  0x87   :  { %v9379_v8 = vld [vmem:[%s16596_s1 + $0x13e0] sm:$0xf]  ;;  %v10824_v11 = vld [vmem:[%s16596_s1 + $0x13ec] sm:$0xf0]  ;;  %v9252_v26 = vor.u32 %v10792_v7, %v9251_v6  ;;  %5206 = vmatpush.bf16.msra.mxu0 %v8996_v21  ;;  %5172 = vmatmul.bf16.vlgmr.msrb.gmra.mxu1 %v11997_v41 }
  0x88   :  { %v6783_v12 = vld [vmem:[%s16597_s0 + $0x30] sm:$0xf]  ;;  %v6793_v24 = vld [vmem:[%s16597_s0 + $0x9c] sm:$0xf0]  ;;  %v9380_v30 = vor.u32 %v10824_v11, %v9379_v8  ;;  %5220 = vmatpush.bf16.msra.mxu1 %v9124_v25  ;;  %5186 = vmatmul.bf16.vlgmr.msrb.gmra.mxu2 %v11995_v38 }
  0x89   :  { %v8979_v27 = vld [vmem:[%s16596_s1 + $0x10c0] sm:$0xf]  ;;  %v10724_v28 = vld [vmem:[%s16596_s1 + $0x10cc] sm:$0xf0]  ;;  %v11984_v32 = vor.u32 %v10179_v13, %v6783_v12  ;;  %v12005_v46 = vor.u32 %v10168_v23, %v6793_v24  ;;  %5234 = vmatpush.bf16.msra.mxu2 %v9252_v26 }
  0x8a   :  { %v9107_v29 = vld [vmem:[%s16596_s1 + $0x11c0] sm:$0xf]  ;;  %v10756_v33 = vld [vmem:[%s16596_s1 + $0x11cc] sm:$0xf0]  ;;  %v8980_v48 = vor.u32 %v10724_v28, %v8979_v27  ;;  %5248 = vmatpush.bf16.msra.mxu3 %v9380_v30 }
  0x8b   :  { %v9235_v34 = vld [vmem:[%s16596_s1 + $0x12c0] sm:$0xf]  ;;  %v10788_v37 = vld [vmem:[%s16596_s1 + $0x12cc] sm:$0xf0]  ;;  %v9108_v49 = vor.u32 %v10756_v33, %v9107_v29  ;;  %5158 = vmatmul.bf16.vlgmr.msrb.gmra.mxu0 %v11984_v32  ;;  %5200 = vmatmul.bf16.vlgmr.msrb.gmra.mxu3 %v12005_v46 }
  0x8c   :  { %v9363_v42 = vld [vmem:[%s16596_s1 + $0x13c0] sm:$0xf]  ;;  %v10820_v45 = vld [vmem:[%s16596_s1 + $0x13cc] sm:$0xf0]  ;;  %v9236_v50 = vor.u32 %v10788_v37, %v9235_v34  ;;  %5207 = vmatpush.bf16.msra.mxu0 %v8980_v48 }
  0x8d   :  { %v8963_v51 = vld [vmem:[%s16596_s1 + $0x10a0] sm:$0xf]  ;;  %v10720_v52 = vld [vmem:[%s16596_s1 + $0x10ac] sm:$0xf0]  ;;  %v9364_v54 = vor.u32 %v10820_v45, %v9363_v42  ;;  %5221 = vmatpush.bf16.msra.mxu1 %v9108_v49 }
  0x8e   :  { %v9091_v53 = vld [vmem:[%s16596_s1 + $0x11a0] sm:$0xf]  ;;  %v10752_v55 = vld [vmem:[%s16596_s1 + $0x11ac] sm:$0xf0]  ;;  %v8964_v61 = vor.u32 %v10720_v52, %v8963_v51  ;;  %5235 = vmatpush.bf16.msra.mxu2 %v9236_v50 }
  0x8f   :  { %v9219_v56 = vld [vmem:[%s16596_s1 + $0x12a0] sm:$0xf]  ;;  %v10784_v57 = vld [vmem:[%s16596_s1 + $0x12ac] sm:$0xf0]  ;;  %v9092_v62 = vor.u32 %v10752_v55, %v9091_v53  ;;  %5249 = vmatpush.bf16.msra.mxu3 %v9364_v54 }
  0x90   :  { %v9347_v59 = vld [vmem:[%s16596_s1 + $0x13a0] sm:$0xf]  ;;  %v10816_v60 = vld [vmem:[%s16596_s1 + $0x13ac] sm:$0xf0]  ;;  %v9220_v63 = vor.u32 %v10784_v57, %v9219_v56  ;;  %5208 = vmatpush.bf16.msra.mxu0 %v8964_v61 }
  0x91   :  { %v8947_v0 = vld [vmem:[%s16596_s1 + $0x1080] sm:$0xf]  ;;  %v10716_v2 = vld [vmem:[%s16596_s1 + $0x108c] sm:$0xf0]  ;;  %v9348_v4 = vor.u32 %v10816_v60, %v9347_v59  ;;  %5222 = vmatpush.bf16.msra.mxu1 %v9092_v62 }
  0x92   :  { %v9075_v3 = vld [vmem:[%s16596_s1 + $0x1180] sm:$0xf]  ;;  %v10748_v5 = vld [vmem:[%s16596_s1 + $0x118c] sm:$0xf0]  ;;  %v8948_v11 = vor.u32 %v10716_v2, %v8947_v0  ;;  %5236 = vmatpush.bf16.msra.mxu2 %v9220_v63 }
  0x93   :  { %v9203_v6 = vld [vmem:[%s16596_s1 + $0x1280] sm:$0xf]  ;;  %v10780_v7 = vld [vmem:[%s16596_s1 + $0x128c] sm:$0xf0]  ;;  %v9076_v12 = vor.u32 %v10748_v5, %v9075_v3  ;;  %5250 = vmatpush.bf16.msra.mxu3 %v9348_v4 }
  0x94   :  { %v9331_v8 = vld [vmem:[%s16596_s1 + $0x1380] sm:$0xf]  ;;  %v10812_v9 = vld [vmem:[%s16596_s1 + $0x138c] sm:$0xf0]  ;;  %v9204_v13 = vor.u32 %v10780_v7, %v9203_v6  ;;  %5209 = vmatpush.bf16.msra.mxu0 %v8948_v11 }
  0x95   :  { %v8931_v14 = vld [vmem:[%s16596_s1 + $0x1060] sm:$0xf]  ;;  %v10712_v15 = vld [vmem:[%s16596_s1 + $0x106c] sm:$0xf0]  ;;  %v9332_v18 = vor.u32 %v10812_v9, %v9331_v8  ;;  %5223 = vmatpush.bf16.msra.mxu1 %v9076_v12 }
  0x96   :  { %v9059_v16 = vld [vmem:[%s16596_s1 + $0x1160] sm:$0xf]  ;;  %v10744_v19 = vld [vmem:[%s16596_s1 + $0x116c] sm:$0xf0]  ;;  %v8932_v24 = vor.u32 %v10712_v15, %v8931_v14  ;;  %5237 = vmatpush.bf16.msra.mxu2 %v9204_v13 }
  0x97   :  { %v9187_v20 = vld [vmem:[%s16596_s1 + $0x1260] sm:$0xf]  ;;  %v10776_v21 = vld [vmem:[%s16596_s1 + $0x126c] sm:$0xf0]  ;;  %v9060_v25 = vor.u32 %v10744_v19, %v9059_v16  ;;  %5251 = vmatpush.bf16.msra.mxu3 %v9332_v18 }
  0x98   :  { %v9315_v22 = vld [vmem:[%s16596_s1 + $0x1360] sm:$0xf]  ;;  %v10808_v23 = vld [vmem:[%s16596_s1 + $0x136c] sm:$0xf0]  ;;  %v9188_v26 = vor.u32 %v10776_v21, %v9187_v20  ;;  %5210 = vmatpush.bf16.msra.mxu0 %v8932_v24 }
  0x99   :  { %v8915_v27 = vld [vmem:[%s16596_s1 + $0x1040] sm:$0xf]  ;;  %v10708_v28 = vld [vmem:[%s16596_s1 + $0x104c] sm:$0xf0]  ;;  %v9316_v30 = vor.u32 %v10808_v23, %v9315_v22  ;;  %5224 = vmatpush.bf16.msra.mxu1 %v9060_v25  ;;  %v10181_v22 = vld [vmem:[%s16597_s0 + $0xa0] sm:$0xf0] }
  0x9a   :  { %v9043_v29 = vld [vmem:[%s16596_s1 + $0x1140] sm:$0xf]  ;;  %v10740_v33 = vld [vmem:[%s16596_s1 + $0x114c] sm:$0xf0]  ;;  %v8916_v48 = vor.u32 %v10708_v28, %v8915_v27  ;;  %5238 = vmatpush.bf16.msra.mxu2 %v9188_v26  ;;  %v6807_v25 = vld [vmem:[%s16597_s0 + $0x48] sm:$0xf] }
  0x9b   :  { %v9171_v34 = vld [vmem:[%s16596_s1 + $0x1240] sm:$0xf]  ;;  %v10772_v37 = vld [vmem:[%s16596_s1 + $0x124c] sm:$0xf0]  ;;  %v9044_v50 = vor.u32 %v10740_v33, %v9043_v29  ;;  %5252 = vmatpush.bf16.msra.mxu3 %v9316_v30  ;;  %v10182_v26 = vld [vmem:[%s16597_s0 + $0xa8] sm:$0xf0] }
  0x9c   :  { %v9299_v42 = vld [vmem:[%s16596_s1 + $0x1340] sm:$0xf]  ;;  %v10804_v45 = vld [vmem:[%s16596_s1 + $0x134c] sm:$0xf0]  ;;  %v9172_v51 = vor.u32 %v10772_v37, %v9171_v34  ;;  %5211 = vmatpush.bf16.msra.mxu0 %v8916_v48  ;;  %v10169_v27 = vld [vmem:[%s16597_s0 + $0x44] sm:$0xf] }
  0x9d   :  { %v8899_v49 = vld [vmem:[%s16596_s1 + $0x1020] sm:$0xf]  ;;  %v10704_v52 = vld [vmem:[%s16596_s1 + $0x102c] sm:$0xf0]  ;;  %v9300_v55 = vor.u32 %v10804_v45, %v9299_v42  ;;  %5225 = vmatpush.bf16.msra.mxu1 %v9044_v50  ;;  %v6801_v30 = vld [vmem:[%s16597_s0 + $0xa4] sm:$0xf0] }
  0x9e   :  { %v9027_v53 = vld [vmem:[%s16596_s1 + $0x1120] sm:$0xf]  ;;  %v10736_v54 = vld [vmem:[%s16596_s1 + $0x112c] sm:$0xf0]  ;;  %v8900_v63 = vor.u32 %v10704_v52, %v8899_v49  ;;  %5239 = vmatpush.bf16.msra.mxu2 %v9172_v51  ;;  %v10170_v33 = vld [vmem:[%s16597_s0 + $0x4c] sm:$0xf] }
  0x9f   :  { %v9155_v56 = vld [vmem:[%s16596_s1 + $0x1220] sm:$0xf]  ;;  %v10768_v57 = vld [vmem:[%s16596_s1 + $0x122c] sm:$0xf0]  ;;  %v9028_v5 = vor.u32 %v10736_v54, %v9027_v53  ;;  %5253 = vmatpush.bf16.msra.mxu3 %v9300_v55  ;;  %v12223_v55 = vor.u32 %v10182_v26, %v6807_v25 }
  0xa0   :  { %v9283_v59 = vld [vmem:[%s16596_s1 + $0x1320] sm:$0xf]  ;;  %v10800_v60 = vld [vmem:[%s16596_s1 + $0x132c] sm:$0xf0]  ;;  %v9156_v6 = vor.u32 %v10768_v57, %v9155_v56  ;;  %5212 = vmatpush.bf16.msra.mxu0 %v8900_v63  ;;  %v12225_v56 = vor.u32 %v10169_v27, %v6801_v30 }
  0xa1   :  { %v8883_v61 = vld [vmem:[%s16596_s1 + $0x1000] sm:$0xf]  ;;  %v10700_v62 = vld [vmem:[%s16596_s1 + $0x100c] sm:$0xf0]  ;;  %v9284_v11 = vor.u32 %v10800_v60, %v9283_v59  ;;  %5226 = vmatpush.bf16.msra.mxu1 %v9028_v5 }
  0xa2   :  { %v9011_v0 = vld [vmem:[%s16596_s1 + $0x1100] sm:$0xf]  ;;  %v10732_v2 = vld [vmem:[%s16596_s1 + $0x110c] sm:$0xf0]  ;;  %v8884_v19 = vor.u32 %v10700_v62, %v8883_v61  ;;  %5240 = vmatpush.bf16.msra.mxu2 %v9156_v6 }
  0xa3   :  { %v9139_v3 = vld [vmem:[%s16596_s1 + $0x1200] sm:$0xf]  ;;  %v10764_v4 = vld [vmem:[%s16596_s1 + $0x120c] sm:$0xf0]  ;;  %v9012_v23 = vor.u32 %v10732_v2, %v9011_v0  ;;  %5254 = vmatpush.bf16.msra.mxu3 %v9284_v11 }
  0xa4   :  { %v9267_v7 = vld [vmem:[%s16596_s1 + $0x1300] sm:$0xf]  ;;  %v10796_v8 = vld [vmem:[%s16596_s1 + $0x130c] sm:$0xf0]  ;;  %v9140_v24 = vor.u32 %v10764_v4, %v9139_v3  ;;  %5213 = vmatpush.bf16.msra.mxu0 %v8884_v19 }
  0xa5   :  { %v9507_v9 = vld [vmem:[%s16596_s1 + $0x14e0] sm:$0xf]  ;;  %v10856_v12 = vld [vmem:[%s16596_s1 + $0x14ec] sm:$0xf0]  ;;  %v9268_v28 = vor.u32 %v10796_v8, %v9267_v7  ;;  %5227 = vmatpush.bf16.msra.mxu1 %v9012_v23 }
  0xa6   :  { %v9635_v13 = vld [vmem:[%s16596_s1 + $0x15e0] sm:$0xf]  ;;  %v10888_v14 = vld [vmem:[%s16596_s1 + $0x15ec] sm:$0xf0]  ;;  %v9508_v29 = vor.u32 %v10856_v12, %v9507_v9  ;;  %5241 = vmatpush.bf16.msra.mxu2 %v9140_v24 }
  0xa7   :  { %v9763_v15 = vld [vmem:[%s16596_s1 + $0x16e0] sm:$0xf]  ;;  %v10920_v16 = vld [vmem:[%s16596_s1 + $0x16ec] sm:$0xf0]  ;;  %v9636_v37 = vor.u32 %v10888_v14, %v9635_v13  ;;  %5255 = vmatpush.bf16.msra.mxu3 %v9268_v28 }
  0xa8   :  { %v9891_v18 = vld [vmem:[%s16596_s1 + $0x17e0] sm:$0xf]  ;;  %v10952_v20 = vld [vmem:[%s16596_s1 + $0x17ec] sm:$0xf0]  ;;  %v9764_v42 = vor.u32 %v10920_v16, %v9763_v15  ;;  %5262 = vmatpush.bf16.msrb.mxu0 %v9508_v29  ;;  %5228 = vmatmul.bf16.vlgmr.msra.gmra.mxu1 %v12225_v56 }
  0xa9   :  { %v6799_v21 = vld [vmem:[%s16597_s0 + $0x40] sm:$0xf]  ;;  %v6809_v34 = vld [vmem:[%s16597_s0 + $0xac] sm:$0xf0]  ;;  %v9892_v50 = vor.u32 %v10952_v20, %v9891_v18  ;;  %5276 = vmatpush.bf16.msrb.mxu1 %v9636_v37  ;;  %5242 = vmatmul.bf16.vlgmr.msra.gmra.mxu2 %v12223_v55  ;;  %v4991_v26 = vpop.f32.mrf.mxu0 }
  0xaa   :  { %v9491_v45 = vld [vmem:[%s16596_s1 + $0x14c0] sm:$0xf]  ;;  %v10852_v48 = vld [vmem:[%s16596_s1 + $0x14cc] sm:$0xf0]  ;;  %v12212_v51 = vor.u32 %v10181_v22, %v6799_v21  ;;  %v12233_v60 = vor.u32 %v10170_v33, %v6809_v34  ;;  %5290 = vmatpush.bf16.msrb.mxu2 %v9764_v42 }
  0xab   :  { %v9619_v49 = vld [vmem:[%s16596_s1 + $0x15c0] sm:$0xf]  ;;  %v10884_v52 = vld [vmem:[%s16596_s1 + $0x15cc] sm:$0xf0]  ;;  %v9492_v61 = vor.u32 %v10852_v48, %v9491_v45  ;;  %5304 = vmatpush.bf16.msrb.mxu3 %v9892_v50 }
  0xac   :  { %v9747_v53 = vld [vmem:[%s16596_s1 + $0x16c0] sm:$0xf]  ;;  %v10916_v54 = vld [vmem:[%s16596_s1 + $0x16cc] sm:$0xf0]  ;;  %v9620_v63 = vor.u32 %v10884_v52, %v9619_v49  ;;  %5214 = vmatmul.bf16.vlgmr.msra.gmra.mxu0 %v12212_v51  ;;  %5256 = vmatmul.bf16.vlgmr.msra.gmra.mxu3 %v12233_v60 }
  0xad   :  { %v9875_v57 = vld [vmem:[%s16596_s1 + $0x17c0] sm:$0xf]  ;;  %v10948_v59 = vld [vmem:[%s16596_s1 + $0x17cc] sm:$0xf0]  ;;  %v9748_v0 = vor.u32 %v10916_v54, %v9747_v53  ;;  %5263 = vmatpush.bf16.msrb.mxu0 %v9492_v61  ;;  %v5005_v53 = vpop.f32.mrf.mxu1 }
  0xae   :  { %v9475_v62 = vld [vmem:[%s16596_s1 + $0x14a0] sm:$0xf]  ;;  %v10848_v2 = vld [vmem:[%s16596_s1 + $0x14ac] sm:$0xf0]  ;;  %v9876_v5 = vor.u32 %v10948_v59, %v9875_v57  ;;  %5277 = vmatpush.bf16.msrb.mxu1 %v9620_v63 }
  0xaf   :  { %v9603_v3 = vld [vmem:[%s16596_s1 + $0x15a0] sm:$0xf]  ;;  %v10880_v6 = vld [vmem:[%s16596_s1 + $0x15ac] sm:$0xf0]  ;;  %v9476_v12 = vor.u32 %v10848_v2, %v9475_v62  ;;  %5291 = vmatpush.bf16.msrb.mxu2 %v9748_v0 }
  0xb0   :  { %v12247_v4 = vld [vmem:[%s16598_s2] sm:$0xf]  ;;  %v10912_v8 = vld [vmem:[%s16596_s1 + $0x16ac] sm:$0xf0]  ;;  %v9604_v14 = vor.u32 %v10880_v6, %v9603_v3  ;;  %5305 = vmatpush.bf16.msrb.mxu3 %v9876_v5 }
  0xb1   :  { %v9731_v7 = vld [vmem:[%s16596_s1 + $0x16a0] sm:$0xf]  ;;  %v10944_v11 = vld [vmem:[%s16596_s1 + $0x17ac] sm:$0xf0]  ;;  %v16602_v13 = vperm.slane %v12247_v4, 0  ;;  %5264 = vmatpush.bf16.msrb.mxu0 %v9476_v12 }
  0xb2   :  { %v9859_v9 = vld [vmem:[%s16596_s1 + $0x17a0] sm:$0xf]  ;;  %v9732_v15 = vor.u32 %v10912_v8, %v9731_v7  ;;  %v10844_v18 = vld [vmem:[%s16596_s1 + $0x148c] sm:$0xf0]  ;;  %5278 = vmatpush.bf16.msrb.mxu1 %v9604_v14  ;;  %v5019_v7 = vpop.f32.mrf.mxu2 }
  0xb3   :  { %v9459_v16 = vld [vmem:[%s16596_s1 + $0x1480] sm:$0xf]  ;;  %v9860_v20 = vor.u32 %v10944_v11, %v9859_v9  ;;  %v10876_v21 = vld [vmem:[%s16596_s1 + $0x158c] sm:$0xf0]  ;;  %v4992_v28 = vadd.f32 %v4991_v26, %v16602_v13 }
  0xb4   :  { %v9587_v19 = vld [vmem:[%s16596_s1 + $0x1580] sm:$0xf]  ;;  %v10908_v23 = vld [vmem:[%s16596_s1 + $0x168c] sm:$0xf0]  ;;  %v9460_v27 = vor.u32 %v10844_v18, %v9459_v16  ;;  %5292 = vmatpush.bf16.msrb.mxu2 %v9732_v15 }
  0xb5   :  { %v9715_v22 = vld [vmem:[%s16596_s1 + $0x1680] sm:$0xf]  ;;  %v10940_v25 = vld [vmem:[%s16596_s1 + $0x178c] sm:$0xf0]  ;;  %v9588_v29 = vor.u32 %v10876_v21, %v9587_v19  ;;  %5306 = vmatpush.bf16.msrb.mxu3 %v9860_v20  ;;  %v5006_v57 = vadd.f32 %v5005_v53, %v4992_v28 }
  0xb6   :  { %v9843_v24 = vld [vmem:[%s16596_s1 + $0x1780] sm:$0xf]  ;;  %v9716_v30 = vor.u32 %v10908_v23, %v9715_v22  ;;  %v10840_v34 = vld [vmem:[%s16596_s1 + $0x146c] sm:$0xf0]  ;;  %5265 = vmatpush.bf16.msrb.mxu0 %v9460_v27 }
  0xb7   :  { %v9443_v33 = vld [vmem:[%s16596_s1 + $0x1460] sm:$0xf]  ;;  %v9844_v42 = vor.u32 %v10940_v25, %v9843_v24  ;;  %v10872_v45 = vld [vmem:[%s16596_s1 + $0x156c] sm:$0xf0]  ;;  %5279 = vmatpush.bf16.msrb.mxu1 %v9588_v29  ;;  %v5020_v11 = vadd.f32 %v5019_v7, %v5006_v57  ;;  %v5033_v25 = vpop.f32.mrf.mxu3  ;;  %v10214_v57 = vld [vmem:[%s16596_s1 + $0xe4] sm:$0xf] }
  0xb8   :  { %v9571_v37 = vld [vmem:[%s16596_s1 + $0x1560] sm:$0xf]  ;;  %v10904_v49 = vld [vmem:[%s16596_s1 + $0x166c] sm:$0xf0]  ;;  %v9444_v54 = vor.u32 %v10840_v34, %v9443_v33  ;;  %5293 = vmatpush.bf16.msrb.mxu2 %v9716_v30 }
  0xb9   :  { %v9699_v48 = vld [vmem:[%s16596_s1 + $0x1660] sm:$0xf]  ;;  %v10936_v52 = vld [vmem:[%s16596_s1 + $0x176c] sm:$0xf0]  ;;  %v9572_v59 = vor.u32 %v10872_v45, %v9571_v37  ;;  %5307 = vmatpush.bf16.msrb.mxu3 %v9844_v42  ;;  %v12373_v29 = vadd.f32 %v5033_v25, %v5020_v11  ;;  %v10171_v11 = vld [vmem:[%s16597_s0 + $0x54] sm:$0xf] }
  0xba   :  { %v9827_v50 = vld [vmem:[%s16596_s1 + $0x1760] sm:$0xf]  ;;  %v9700_v61 = vor.u32 %v10904_v49, %v9699_v48  ;;  %v10836_v63 = vld [vmem:[%s16596_s1 + $0x144c] sm:$0xf0]  ;;  %5266 = vmatpush.bf16.msrb.mxu0 %v9444_v54 }
  0xbb   :  { %v9427_v62 = vld [vmem:[%s16596_s1 + $0x1440] sm:$0xf]  ;;  %v9828_v2 = vor.u32 %v10936_v52, %v9827_v50  ;;  %v10868_v3 = vld [vmem:[%s16596_s1 + $0x154c] sm:$0xf0]  ;;  %5280 = vmatpush.bf16.msrb.mxu1 %v9572_v59  ;;  %v6949_v59 = vld [vmem:[%s16596_s1 + $0xf0] sm:$0xf0] }
  0xbc   :  { %v9555_v0 = vld [vmem:[%s16596_s1 + $0x1540] sm:$0xf]  ;;  %v10900_v6 = vld [vmem:[%s16596_s1 + $0x164c] sm:$0xf0]  ;;  %v9428_v12 = vor.u32 %v10836_v63, %v9427_v62  ;;  %5294 = vmatpush.bf16.msrb.mxu2 %v9700_v61  ;;  %v10246_v61 = vld [vmem:[%s16596_s1 + $0x1e4] sm:$0xf] }
  0xbd   :  { %v9683_v5 = vld [vmem:[%s16596_s1 + $0x1640] sm:$0xf]  ;;  %v10932_v9 = vld [vmem:[%s16596_s1 + $0x174c] sm:$0xf0]  ;;  %v9556_v15 = vor.u32 %v10868_v3, %v9555_v0  ;;  %5308 = vmatpush.bf16.msrb.mxu3 %v9828_v2  ;;  %v7077_v62 = vld [vmem:[%s16596_s1 + $0x1f0] sm:$0xf0] }
  0xbe   :  { %v9811_v8 = vld [vmem:[%s16596_s1 + $0x1740] sm:$0xf]  ;;  %v9684_v16 = vor.u32 %v10900_v6, %v9683_v5  ;;  %v10832_v18 = vld [vmem:[%s16596_s1 + $0x142c] sm:$0xf0]  ;;  %5267 = vmatpush.bf16.msrb.mxu0 %v9428_v12  ;;  %v10278_v63 = vld [vmem:[%s16596_s1 + $0x2e4] sm:$0xf] }
  0xbf   :  { %v9411_v14 = vld [vmem:[%s16596_s1 + $0x1420] sm:$0xf]  ;;  %v10864_v20 = vld [vmem:[%s16596_s1 + $0x152c] sm:$0xf0]  ;;  %v9812_v21 = vor.u32 %v10932_v9, %v9811_v8  ;;  %5281 = vmatpush.bf16.msrb.mxu1 %v9556_v15  ;;  %v7205_v2 = vld [vmem:[%s16596_s1 + $0x2f0] sm:$0xf0] }
  0xc0   :  { %v9539_v19 = vld [vmem:[%s16596_s1 + $0x1520] sm:$0xf]  ;;  %v10896_v23 = vld [vmem:[%s16596_s1 + $0x162c] sm:$0xf0]  ;;  %v9412_v30 = vor.u32 %v10832_v18, %v9411_v14  ;;  %5295 = vmatpush.bf16.msrb.mxu2 %v9684_v16  ;;  %v10183_v5 = vld [vmem:[%s16597_s0 + $0xb0] sm:$0xf0]  ;;  %v7208_v25 = vor.u32 %v10278_v63, %v7205_v2 }
  0xc1   :  { %v9667_v22 = vld [vmem:[%s16596_s1 + $0x1620] sm:$0xf]  ;;  %v10928_v26 = vld [vmem:[%s16596_s1 + $0x172c] sm:$0xf0]  ;;  %v9540_v45 = vor.u32 %v10864_v20, %v9539_v19  ;;  %5309 = vmatpush.bf16.msrb.mxu3 %v9812_v21  ;;  %v6823_v8 = vld [vmem:[%s16597_s0 + $0x58] sm:$0xf]  ;;  %v6952_v19 = vor.u32 %v10214_v57, %v6949_v59  ;;  %v7080_v20 = vor.u32 %v10246_v61, %v7077_v62  ;;  %v12441_v21 = vpop.f32.mrf.mxu0 }
  0xc2   :  { %v9795_v24 = vld [vmem:[%s16596_s1 + $0x1720] sm:$0xf]  ;;  %v10828_v28 = vld [vmem:[%s16596_s1 + $0x140c] sm:$0xf0]  ;;  %v9668_v48 = vor.u32 %v10896_v23, %v9667_v22  ;;  %5268 = vmatpush.bf16.msrb.mxu0 %v9412_v30  ;;  %v10184_v9 = vld [vmem:[%s16597_s0 + $0xb8] sm:$0xf0] }
  0xc3   :  { %v9395_v27 = vld [vmem:[%s16596_s1 + $0x1400] sm:$0xf]  ;;  %v10860_v34 = vld [vmem:[%s16596_s1 + $0x150c] sm:$0xf0]  ;;  %v9796_v53 = vor.u32 %v10928_v26, %v9795_v24  ;;  %5282 = vmatpush.bf16.msrb.mxu1 %v9540_v45  ;;  %v6817_v15 = vld [vmem:[%s16597_s0 + $0xb4] sm:$0xf0]  ;;  %v12473_v45 = vpop.f32.mrf.mxu1 }
  0xc4   :  { %v9523_v33 = vld [vmem:[%s16596_s1 + $0x1500] sm:$0xf]  ;;  %v10892_v42 = vld [vmem:[%s16596_s1 + $0x160c] sm:$0xf0]  ;;  %v9396_v0 = vor.u32 %v10828_v28, %v9395_v27  ;;  %5296 = vmatpush.bf16.msrb.mxu2 %v9668_v48  ;;  %v10172_v16 = vld [vmem:[%s16597_s0 + $0x5c] sm:$0xf] }
  0xc5   :  { %v9651_v37 = vld [vmem:[%s16596_s1 + $0x1600] sm:$0xf]  ;;  %v10924_v50 = vld [vmem:[%s16596_s1 + $0x170c] sm:$0xf0]  ;;  %v9524_v6 = vor.u32 %v10860_v34, %v9523_v33  ;;  %5310 = vmatpush.bf16.msrb.mxu3 %v9796_v53  ;;  %v10210_v24 = vld [vmem:[%s16596_s1 + $0xc4] sm:$0xf]  ;;  %v12463_v33 = vor.u32 %v10184_v9, %v6823_v8  ;;  %v12465_v34 = vor.u32 %v10171_v11, %v6817_v15 }
  0xc6   :  { %v9779_v49 = vld [vmem:[%s16596_s1 + $0x1700] sm:$0xf]  ;;  %v10984_v54 = vld [vmem:[%s16596_s1 + $0x18ec] sm:$0xf0]  ;;  %v9652_v7 = vor.u32 %v10892_v42, %v9651_v37  ;;  %5269 = vmatpush.bf16.msrb.mxu0 %v9396_v0  ;;  %v6933_v27 = vld [vmem:[%s16596_s1 + $0xd0] sm:$0xf0] }
  0xc7   :  { %v10019_v52 = vld [vmem:[%s16596_s1 + $0x18e0] sm:$0xf]  ;;  %v6815_v3 = vld [vmem:[%s16597_s0 + $0x50] sm:$0xf]  ;;  %v9780_v12 = vor.u32 %v10924_v50, %v9779_v49  ;;  %v10242_v28 = vld [vmem:[%s16596_s1 + $0x1c4] sm:$0xf]  ;;  %5283 = vmatpush.bf16.msrb.mxu1 %v9524_v6  ;;  %v6936_v50 = vor.u32 %v10210_v24, %v6933_v27 }
  0xc8   :  { %v10020_v14 = vor.u32 %v10984_v54, %v10019_v52  ;;  %v6825_v18 = vld [vmem:[%s16597_s0 + $0xbc] sm:$0xf0]  ;;  %v10980_v23 = vld [vmem:[%s16596_s1 + $0x18cc] sm:$0xf0]  ;;  %v12452_v26 = vor.u32 %v10183_v5, %v6815_v3  ;;  %v7061_v30 = vld [vmem:[%s16596_s1 + $0x1d0] sm:$0xf0]  ;;  %5297 = vmatpush.bf16.msrb.mxu2 %v9652_v7  ;;  %v12505_v5 = vpop.f32.mrf.mxu2 }
  0xc9   :  { %v10003_v22 = vld [vmem:[%s16596_s1 + $0x18c0] sm:$0xf]  ;;  %v10274_v37 = vld [vmem:[%s16596_s1 + $0x2c4] sm:$0xf]  ;;  %v7189_v42 = vld [vmem:[%s16596_s1 + $0x2d0] sm:$0xf0]  ;;  %5311 = vmatpush.bf16.msrb.mxu3 %v9780_v12  ;;  %v12475_v48 = vor.u32 %v10172_v16, %v6825_v18  ;;  %v7064_v52 = vor.u32 %v10242_v28, %v7061_v30 }
  0xca   :  { %5318 = vmatpush.bf16.msra.mxu0 %v10020_v14  ;;  %v10004_v49 = vor.u32 %v10980_v23, %v10003_v22  ;;  %v9987_v53 = vld [vmem:[%s16596_s1 + $0x18a0] sm:$0xf]  ;;  %v10976_v54 = vld [vmem:[%s16596_s1 + $0x18ac] sm:$0xf0]  ;;  %v10206_v57 = vld [vmem:[%s16596_s1 + $0xa4] sm:$0xf]  ;;  %v7192_v59 = vor.u32 %v10274_v37, %v7189_v42  ;;  %5284 = vmatmul.bf16.vlgmr.msrb.gmra.mxu1 %v12465_v34  ;;  %v12516_v14 = vpop.f32.mrf.mxu3 }
  0xcb   :  { %16608 = vst [vmem:[#allocation2_spill] sm:$0xff] %v12475_v48  ;;  %5332 = vmatpush.bf16.msra.mxu1 %v6952_v19  ;;  %5270 = vmatmul.bf16.vlgmr.msrb.gmra.mxu0 %v12452_v26  ;;  %v6917_v61 = vld [vmem:[%s16596_s1 + $0xb0] sm:$0xf0]  ;;  %v10238_v62 = vld [vmem:[%s16596_s1 + $0x1a4] sm:$0xf]  ;;  %v9988_v3 = vor.u32 %v10976_v54, %v9987_v53  ;;  %v5047_v19 = vpop.f32.mrf.mxu0  ;;  %v5061_v28 = vpop.f32.mrf.mxu1 }
  0xcc   :  { %5346 = vmatpush.bf16.msra.mxu2 %v7080_v20  ;;  %v7045_v63 = vld [vmem:[%s16596_s1 + $0x1b0] sm:$0xf0]  ;;  %v10270_v0 = vld [vmem:[%s16596_s1 + $0x2a4] sm:$0xf]  ;;  %5312 = vmatmul.bf16.vlgmr.msrb.gmra.mxu3 %v12475_v48  ;;  %v6920_v6 = vor.u32 %v10206_v57, %v6917_v61  ;;  %v9971_v8 = vld [vmem:[%s16596_s1 + $0x1880] sm:$0xf]  ;;  %v5048_v23 = vadd.f32 %v5047_v19, %v12373_v29 }
  0xcd   :  { %5360 = vmatpush.bf16.msra.mxu3 %v7208_v25  ;;  %5298 = vmatmul.bf16.vlgmr.msrb.gmra.mxu2 %v12463_v33  ;;  %v7173_v2 = vld [vmem:[%s16596_s1 + $0x2b0] sm:$0xf0]  ;;  %v7048_v7 = vor.u32 %v10238_v62, %v7045_v63  ;;  %v10972_v9 = vld [vmem:[%s16596_s1 + $0x188c] sm:$0xf0]  ;;  %v10202_v11 = vld [vmem:[%s16596_s1 + $0x84] sm:$0xf] }
  0xce   :  { %5319 = vmatpush.bf16.msra.mxu0 %v10004_v49  ;;  %v7176_v12 = vor.u32 %v10270_v0, %v7173_v2  ;;  %v6901_v15 = vld [vmem:[%s16596_s1 + $0x90] sm:$0xf0]  ;;  %v10234_v16 = vld [vmem:[%s16596_s1 + $0x184] sm:$0xf]  ;;  %v9972_v24 = vor.u32 %v10972_v9, %v9971_v8  ;;  %v9955_v30 = vld [vmem:[%s16596_s1 + $0x1860] sm:$0xf]  ;;  %v5062_v49 = vadd.f32 %v5061_v28, %v5048_v23 }
  0xcf   :  { %5333 = vmatpush.bf16.msra.mxu1 %v6936_v50  ;;  %v7029_v18 = vld [vmem:[%s16596_s1 + $0x190] sm:$0xf0]  ;;  %v10266_v20 = vld [vmem:[%s16596_s1 + $0x284] sm:$0xf]  ;;  %v6904_v25 = vor.u32 %v10202_v11, %v6901_v15  ;;  %v10968_v37 = vld [vmem:[%s16596_s1 + $0x186c] sm:$0xf0] }
  0xd0   :  { %5347 = vmatpush.bf16.msra.mxu2 %v7064_v52  ;;  %v7157_v22 = vld [vmem:[%s16596_s1 + $0x290] sm:$0xf0]  ;;  %v7032_v27 = vor.u32 %v10234_v16, %v7029_v18  ;;  %v10198_v42 = vld [vmem:[%s16596_s1 + $0x64] sm:$0xf]  ;;  %v9939_v63 = vld [vmem:[%s16596_s1 + $0x1840] sm:$0xf] }
  0xd1   :  { %5361 = vmatpush.bf16.msra.mxu3 %v7192_v59  ;;  %v7160_v29 = vor.u32 %v10266_v20, %v7157_v22  ;;  %v6885_v50 = vld [vmem:[%s16596_s1 + $0x70] sm:$0xf0]  ;;  %v10230_v52 = vld [vmem:[%s16596_s1 + $0x164] sm:$0xf]  ;;  %v9956_v59 = vor.u32 %v10968_v37, %v9955_v30  ;;  %v10964_v0 = vld [vmem:[%s16596_s1 + $0x184c] sm:$0xf0] }
  0xd2   :  { %5320 = vmatpush.bf16.msra.mxu0 %v9988_v3  ;;  %v7013_v53 = vld [vmem:[%s16596_s1 + $0x170] sm:$0xf0]  ;;  %v10262_v54 = vld [vmem:[%s16596_s1 + $0x264] sm:$0xf]  ;;  %v6888_v61 = vor.u32 %v10198_v42, %v6885_v50  ;;  %v5089_v16 = vpop.f32.mrf.mxu3  ;;  %v9940_v18 = vor.u32 %v10964_v0, %v9939_v63  ;;  %v9923_v23 = vld [vmem:[%s16596_s1 + $0x1820] sm:$0xf] }
  0xd3   :  { %5334 = vmatpush.bf16.msra.mxu1 %v6920_v6  ;;  %v7141_v57 = vld [vmem:[%s16596_s1 + $0x270] sm:$0xf0]  ;;  %v7016_v62 = vor.u32 %v10230_v52, %v7013_v53  ;;  %v10194_v2 = vld [vmem:[%s16596_s1 + $0x44] sm:$0xf]  ;;  %v5075_v6 = vpop.f32.mrf.mxu2  ;;  %v9907_v50 = vld [vmem:[%s16596_s1 + $0x1800] sm:$0xf] }
  0xd4   :  { %5348 = vmatpush.bf16.msra.mxu2 %v7048_v7  ;;  %v7144_v3 = vor.u32 %v10262_v54, %v7141_v57  ;;  %v6869_v7 = vld [vmem:[%s16596_s1 + $0x50] sm:$0xf0]  ;;  %v10226_v8 = vld [vmem:[%s16596_s1 + $0x144] sm:$0xf]  ;;  %v5076_v11 = vadd.f32 %v5075_v6, %v5062_v49  ;;  %v10956_v52 = vld [vmem:[%s16596_s1 + $0x180c] sm:$0xf0] }
  0xd5   :  { %5362 = vmatpush.bf16.msra.mxu3 %v7176_v12  ;;  %v6997_v9 = vld [vmem:[%s16596_s1 + $0x150] sm:$0xf0]  ;;  %v10258_v12 = vld [vmem:[%s16596_s1 + $0x244] sm:$0xf]  ;;  %v6872_v20 = vor.u32 %v10194_v2, %v6869_v7 }
  0xd6   :  { %5321 = vmatpush.bf16.msra.mxu0 %v9972_v24  ;;  %v7125_v15 = vld [vmem:[%s16596_s1 + $0x250] sm:$0xf0]  ;;  %v12582_v19 = vadd.f32 %v5089_v16, %v5076_v11  ;;  %v7000_v22 = vor.u32 %v10226_v8, %v6997_v9  ;;  %v10960_v24 = vld [vmem:[%s16596_s1 + $0x182c] sm:$0xf0]  ;;  %v10222_v30 = vld [vmem:[%s16596_s1 + $0x124] sm:$0xf]  ;;  %v9908_v9 = vor.u32 %v10956_v52, %v9907_v50 }
  0xd7   :  { %5335 = vmatpush.bf16.msra.mxu1 %v6904_v25  ;;  %v10190_v25 = vld [vmem:[%s16596_s1 + $0x24] sm:$0xf]  ;;  %v6853_v28 = vld [vmem:[%s16596_s1 + $0x30] sm:$0xf0]  ;;  %v9924_v49 = vor.u32 %v10960_v24, %v9923_v23 }
  0xd8   :  { %5349 = vmatpush.bf16.msra.mxu2 %v7032_v27  ;;  %v7128_v27 = vor.u32 %v10258_v12, %v7125_v15  ;;  %v6981_v37 = vld [vmem:[%s16596_s1 + $0x130] sm:$0xf0]  ;;  %v10254_v42 = vld [vmem:[%s16596_s1 + $0x224] sm:$0xf]  ;;  %v6856_v54 = vor.u32 %v10190_v25, %v6853_v28 }
  0xd9   :  { %5363 = vmatpush.bf16.msra.mxu3 %v7160_v29  ;;  %v7109_v29 = vld [vmem:[%s16596_s1 + $0x230] sm:$0xf0]  ;;  %v10186_v53 = vld [vmem:[%s16596_s1 + $0x4] sm:$0xf]  ;;  %v6984_v57 = vor.u32 %v10222_v30, %v6981_v37 }
  0xda   :  { %5322 = vmatpush.bf16.msra.mxu0 %v9956_v59  ;;  %v6837_v59 = vld [vmem:[%s16596_s1 + $0x10] sm:$0xf0]  ;;  %v7112_v63 = vor.u32 %v10254_v42, %v7109_v29  ;;  %v10250_v0 = vld [vmem:[%s16596_s1 + $0x204] sm:$0xf] }
  0xdb   :  { %5336 = vmatpush.bf16.msra.mxu1 %v6888_v61  ;;  %v10218_v61 = vld [vmem:[%s16596_s1 + $0x104] sm:$0xf]  ;;  %v7093_v2 = vld [vmem:[%s16596_s1 + $0x210] sm:$0xf0]  ;;  %v6840_v16 = vor.u32 %v10186_v53, %v6837_v59 }
  0xdc   :  { %5350 = vmatpush.bf16.msra.mxu2 %v7016_v62  ;;  %v6965_v62 = vld [vmem:[%s16596_s1 + $0x110] sm:$0xf0]  ;;  %v10342_v7 = vld [vmem:[%s16596_s1 + $0x4e4] sm:$0xf]  ;;  %v7096_v24 = vor.u32 %v10250_v0, %v7093_v2 }
  0xdd   :  { %5364 = vmatpush.bf16.msra.mxu3 %v7144_v3  ;;  %v10310_v3 = vld [vmem:[%s16596_s1 + $0x3e4] sm:$0xf]  ;;  %v7333_v6 = vld [vmem:[%s16596_s1 + $0x3f0] sm:$0xf0] }
  0xde   :  { %5323 = vmatpush.bf16.msra.mxu0 %v9940_v18  ;;  %v7461_v8 = vld [vmem:[%s16596_s1 + $0x4f0] sm:$0xf0]  ;;  %v10374_v11 = vld [vmem:[%s16596_s1 + $0x5e4] sm:$0xf]  ;;  %v6968_v18 = vor.u32 %v10218_v61, %v6965_v62  ;;  %v7336_v25 = vor.u32 %v10310_v3, %v7333_v6  ;;  %v12690_v61 = vpop.f32.mrf.mxu1 }
  0xdf   :  { %5337 = vmatpush.bf16.msra.mxu1 %v6872_v20  ;;  %v7589_v12 = vld [vmem:[%s16596_s1 + $0x5f0] sm:$0xf0]  ;;  %v10406_v15 = vld [vmem:[%s16596_s1 + $0x6e4] sm:$0xf] }
  0xe0   :  { %5351 = vmatpush.bf16.msra.mxu2 %v7000_v22  ;;  %v7717_v20 = vld [vmem:[%s16596_s1 + $0x6f0] sm:$0xf0]  ;;  %v6831_v22 = vld [vmem:[%s16597_s0 + $0x60] sm:$0xf]  ;;  %v10185_v23 = vld [vmem:[%s16597_s0 + $0xc0] sm:$0xf0]  ;;  %v7592_v28 = vor.u32 %v10374_v11, %v7589_v12 }
  0xe1   :  { %5365 = vmatpush.bf16.msra.mxu3 %v7128_v27  ;;  %v7464_v27 = vor.u32 %v10342_v7, %v7461_v8  ;;  %v10306_v30 = vld [vmem:[%s16596_s1 + $0x3c4] sm:$0xf]  ;;  %v7317_v37 = vld [vmem:[%s16596_s1 + $0x3d0] sm:$0xf0]  ;;  %v7720_v29 = vor.u32 %v10406_v15, %v7717_v20 }
  0xe2   :  { %5324 = vmatpush.bf16.msra.mxu0 %v9924_v49  ;;  %v10338_v42 = vld [vmem:[%s16596_s1 + $0x4c4] sm:$0xf]  ;;  %v12671_v49 = vor.u32 %v10185_v23, %v6831_v22  ;;  %v7445_v50 = vld [vmem:[%s16596_s1 + $0x4d0] sm:$0xf0]  ;;  %v7320_v62 = vor.u32 %v10306_v30, %v7317_v37 }
  0xe3   :  { %5338 = vmatpush.bf16.msra.mxu1 %v6856_v54  ;;  %v10370_v52 = vld [vmem:[%s16596_s1 + $0x5c4] sm:$0xf]  ;;  %v7573_v53 = vld [vmem:[%s16596_s1 + $0x5d0] sm:$0xf0]  ;;  %v12682_v54 = vpop.f32.mrf.mxu0 }
  0xe4   :  { %5352 = vmatpush.bf16.msra.mxu2 %v6984_v57  ;;  %16609 = vst [vmem:[#allocation3_spill] sm:$0xff] %v12671_v49  ;;  %v10402_v57 = vld [vmem:[%s16596_s1 + $0x6c4] sm:$0xf]  ;;  %v7701_v59 = vld [vmem:[%s16596_s1 + $0x6d0] sm:$0xf0]  ;;  %v7576_v0 = vor.u32 %v10370_v52, %v7573_v53 }
  0xe5   :  { %5366 = vmatpush.bf16.msra.mxu3 %v7112_v63  ;;  %v7448_v63 = vor.u32 %v10338_v42, %v7445_v50  ;;  %v10302_v2 = vld [vmem:[%s16596_s1 + $0x3a4] sm:$0xf]  ;;  %v7301_v3 = vld [vmem:[%s16596_s1 + $0x3b0] sm:$0xf0]  ;;  %v7704_v7 = vor.u32 %v10402_v57, %v7701_v59  ;;  %v12740_v42 = vpop.f32.mrf.mxu3 }
  0xe6   :  { %5325 = vmatpush.bf16.msra.mxu0 %v9908_v9  ;;  %v10334_v6 = vld [vmem:[%s16596_s1 + $0x4a4] sm:$0xf]  ;;  %v7429_v8 = vld [vmem:[%s16596_s1 + $0x4b0] sm:$0xf0]  ;;  %16611 = vst [vmem:[#allocation5_spill] sm:$0xff] %v12740_v42  ;;  %v5117_v59 = vpop.f32.mrf.mxu1 }
  0xe7   :  { %5339 = vmatpush.bf16.msra.mxu1 %v6840_v16  ;;  %v10366_v9 = vld [vmem:[%s16596_s1 + $0x5a4] sm:$0xf]  ;;  %v7557_v11 = vld [vmem:[%s16596_s1 + $0x5b0] sm:$0xf0]  ;;  %v7304_v16 = vor.u32 %v10302_v2, %v7301_v3 }
  0xe8   :  { %5353 = vmatpush.bf16.msra.mxu2 %v6968_v18  ;;  %v10398_v12 = vld [vmem:[%s16596_s1 + $0x6a4] sm:$0xf]  ;;  %v7685_v15 = vld [vmem:[%s16596_s1 + $0x6b0] sm:$0xf0]  ;;  %v7432_v18 = vor.u32 %v10334_v6, %v7429_v8  ;;  %v7560_v20 = vor.u32 %v10366_v9, %v7557_v11 }
  0xe9   :  { %5367 = vmatpush.bf16.msra.mxu3 %v7096_v24  ;;  %5326 = vmatmul.bf16.vlgmr.msra.gmra.mxu0 %v12671_v49  ;;  %v10298_v22 = vld [vmem:[%s16596_s1 + $0x384] sm:$0xf]  ;;  %v7285_v23 = vld [vmem:[%s16596_s1 + $0x390] sm:$0xf0] }
  0xea   :  { %5374 = vmatpush.bf16.msrb.mxu0 %v7336_v25  ;;  %5340 = vmatmul.bf16.vlgmr.msra.gmra.mxu1 %v11306_v58  ;;  %v10330_v24 = vld [vmem:[%s16596_s1 + $0x484] sm:$0xf]  ;;  %v12729_v25 = vpop.f32.mrf.mxu2  ;;  %v7541_v37 = vld [vmem:[%s16596_s1 + $0x590] sm:$0xf0]  ;;  %v7288_v57 = vor.u32 %v10298_v22, %v7285_v23 }
  0xeb   :  { %5388 = vmatpush.bf16.msrb.mxu1 %v7464_v27  ;;  %5354 = vmatmul.bf16.vlgmr.msra.gmra.mxu2 %v11342_v10  ;;  %16610 = vst [vmem:[#allocation4_spill] sm:$0xff] %v12729_v25  ;;  %v7688_v27 = vor.u32 %v10398_v12, %v7685_v15  ;;  %v10362_v30 = vld [vmem:[%s16596_s1 + $0x584] sm:$0xf]  ;;  %v7669_v52 = vld [vmem:[%s16596_s1 + $0x690] sm:$0xf0] }
  0xec   :  { %5402 = vmatpush.bf16.msrb.mxu2 %v7592_v28  ;;  %5368 = vmatmul.bf16.vlgmr.msra.gmra.mxu3 %v11320_v1  ;;  %v7413_v28 = vld [vmem:[%s16596_s1 + $0x490] sm:$0xf0]  ;;  %v10394_v50 = vld [vmem:[%s16596_s1 + $0x684] sm:$0xf] }
  0xed   :  { %5416 = vmatpush.bf16.msrb.mxu3 %v7720_v29  ;;  %v5103_v29 = vpop.f32.mrf.mxu0  ;;  %v7269_v2 = vld [vmem:[%s16596_s1 + $0x370] sm:$0xf0]  ;;  %v10326_v3 = vld [vmem:[%s16596_s1 + $0x464] sm:$0xf] }
  0xee   :  { %5375 = vmatpush.bf16.msrb.mxu0 %v7320_v62  ;;  %v5104_v53 = vadd.f32 %v5103_v29, %v12582_v19  ;;  %v7416_v62 = vor.u32 %v10330_v24, %v7413_v28  ;;  %v7672_v19 = vor.u32 %v10394_v50, %v7669_v52  ;;  %v10358_v8 = vld [vmem:[%s16596_s1 + $0x564] sm:$0xf]  ;;  %v7525_v9 = vld [vmem:[%s16596_s1 + $0x570] sm:$0xf0]  ;;  %v5145_v50 = vpop.f32.mrf.mxu3 }
  0xef   :  { %5389 = vmatpush.bf16.msrb.mxu1 %v7448_v63  ;;  %v7544_v63 = vor.u32 %v10362_v30, %v7541_v37  ;;  %v10390_v11 = vld [vmem:[%s16596_s1 + $0x664] sm:$0xf]  ;;  %v7653_v12 = vld [vmem:[%s16596_s1 + $0x670] sm:$0xf0] }
  0xf0   :  { %5403 = vmatpush.bf16.msrb.mxu2 %v7576_v0  ;;  %v10294_v0 = vld [vmem:[%s16596_s1 + $0x364] sm:$0xf]  ;;  %v5118_v6 = vadd.f32 %v5117_v59, %v5104_v53  ;;  %v7253_v22 = vld [vmem:[%s16596_s1 + $0x350] sm:$0xf0]  ;;  %v7656_v24 = vor.u32 %v10390_v11, %v7653_v12 }
  0xf1   :  { %5417 = vmatpush.bf16.msrb.mxu3 %v7704_v7  ;;  %v7397_v7 = vld [vmem:[%s16596_s1 + $0x470] sm:$0xf0]  ;;  %v7272_v15 = vor.u32 %v10294_v0, %v7269_v2  ;;  %v10322_v23 = vld [vmem:[%s16596_s1 + $0x444] sm:$0xf] }
  0xf2   :  { %5376 = vmatpush.bf16.msrb.mxu0 %v7304_v16  ;;  %v7400_v16 = vor.u32 %v10326_v3, %v7397_v7  ;;  %v7381_v28 = vld [vmem:[%s16596_s1 + $0x450] sm:$0xf0]  ;;  %v10354_v30 = vld [vmem:[%s16596_s1 + $0x544] sm:$0xf] }
  0xf3   :  { %5390 = vmatpush.bf16.msrb.mxu1 %v7432_v18  ;;  %v7528_v18 = vor.u32 %v10358_v8, %v7525_v9  ;;  %v7509_v37 = vld [vmem:[%s16596_s1 + $0x550] sm:$0xf0]  ;;  %v10386_v52 = vld [vmem:[%s16596_s1 + $0x644] sm:$0xf] }
  0xf4   :  { %5404 = vmatpush.bf16.msrb.mxu2 %v7560_v20  ;;  %v10290_v20 = vld [vmem:[%s16596_s1 + $0x344] sm:$0xf]  ;;  %v7637_v53 = vld [vmem:[%s16596_s1 + $0x650] sm:$0xf0] }
  0xf5   :  { %5418 = vmatpush.bf16.msrb.mxu3 %v7688_v27  ;;  %v5131_v27 = vpop.f32.mrf.mxu2  ;;  %v10286_v0 = vld [vmem:[%s16596_s1 + $0x324] sm:$0xf]  ;;  %v7237_v2 = vld [vmem:[%s16596_s1 + $0x330] sm:$0xf0] }
  0xf6   :  { %5377 = vmatpush.bf16.msrb.mxu0 %v7288_v57  ;;  %v5132_v29 = vadd.f32 %v5131_v27, %v5118_v6  ;;  %v7256_v57 = vor.u32 %v10290_v20, %v7253_v22  ;;  %v10318_v3 = vld [vmem:[%s16596_s1 + $0x424] sm:$0xf]  ;;  %v7365_v6 = vld [vmem:[%s16596_s1 + $0x430] sm:$0xf0]  ;;  %v7240_v12 = vor.u32 %v10286_v0, %v7237_v2 }
  0xf7   :  { %5391 = vmatpush.bf16.msrb.mxu1 %v7416_v62  ;;  %v7384_v62 = vor.u32 %v10322_v23, %v7381_v28  ;;  %v10350_v7 = vld [vmem:[%s16596_s1 + $0x524] sm:$0xf]  ;;  %v7493_v8 = vld [vmem:[%s16596_s1 + $0x530] sm:$0xf0] }
  0xf8   :  { %5405 = vmatpush.bf16.msrb.mxu2 %v7544_v63  ;;  %v12797_v59 = vadd.f32 %v5145_v50, %v5132_v29  ;;  %v7512_v63 = vor.u32 %v10354_v30, %v7509_v37  ;;  %v10382_v9 = vld [vmem:[%s16596_s1 + $0x624] sm:$0xf]  ;;  %v7621_v11 = vld [vmem:[%s16596_s1 + $0x630] sm:$0xf0]  ;;  %v7496_v20 = vor.u32 %v10350_v7, %v7493_v8 }
  0xf9   :  { %5419 = vmatpush.bf16.msrb.mxu3 %v7672_v19  ;;  %v7640_v19 = vor.u32 %v10386_v52, %v7637_v53  ;;  %v10314_v22 = vld [vmem:[%s16596_s1 + $0x404] sm:$0xf]  ;;  %v7349_v23 = vld [vmem:[%s16596_s1 + $0x410] sm:$0xf0]  ;;  %v7624_v27 = vor.u32 %v10382_v9, %v7621_v11 }
  0xfa   :  { %5378 = vmatpush.bf16.msrb.mxu0 %v7272_v15  ;;  %v10282_v15 = vld [vmem:[%s16596_s1 + $0x304] sm:$0xf]  ;;  %v7477_v28 = vld [vmem:[%s16596_s1 + $0x510] sm:$0xf0]  ;;  %v7352_v0 = vor.u32 %v10314_v22, %v7349_v23  ;;  %v12889_v23 = vpop.f32.mrf.mxu0 }
  0xfb   :  { %5392 = vmatpush.bf16.msrb.mxu1 %v7400_v16  ;;  %v7221_v16 = vld [vmem:[%s16596_s1 + $0x310] sm:$0xf0]  ;;  %v10378_v30 = vld [vmem:[%s16596_s1 + $0x604] sm:$0xf]  ;;  %16612 = vst [vmem:[#allocation6_spill] sm:$0xff] %v12889_v23 }
  0xfc   :  { %5406 = vmatpush.bf16.msrb.mxu2 %v7528_v18  ;;  %v7368_v18 = vor.u32 %v10318_v3, %v7365_v6  ;;  %v7605_v37 = vld [vmem:[%s16596_s1 + $0x610] sm:$0xf0]  ;;  %v10438_v29 = vld [vmem:[%s16596_s1 + $0x7e4] sm:$0xf]  ;;  %v7224_v53 = vor.u32 %v10282_v15, %v7221_v16 }
  0xfd   :  { %5420 = vmatpush.bf16.msrb.mxu3 %v7656_v24  ;;  %v10346_v24 = vld [vmem:[%s16596_s1 + $0x504] sm:$0xf]  ;;  %v7845_v50 = vld [vmem:[%s16596_s1 + $0x7f0] sm:$0xf0]  ;;  %v7608_v6 = vor.u32 %v10378_v30, %v7605_v37 }
  0xfe   :  { %5379 = vmatpush.bf16.msrb.mxu0 %v7256_v57  ;;  %v10470_v52 = vld [vmem:[%s16596_s1 + $0x8e4] sm:$0xf]  ;;  %v7973_v57 = vld [vmem:[%s16596_s1 + $0x8f0] sm:$0xf0]  ;;  %v7480_v2 = vor.u32 %v10346_v24, %v7477_v28  ;;  %v7848_v7 = vor.u32 %v10438_v29, %v7845_v50  ;;  %v12897_v28 = vpop.f32.mrf.mxu1 }
  0xff   :  { %5393 = vmatpush.bf16.msrb.mxu1 %v7384_v62  ;;  %v10502_v62 = vld [vmem:[%s16596_s1 + $0x9e4] sm:$0xf]  ;;  %v7976_v8 = vor.u32 %v10470_v52, %v7973_v57  ;;  %v8085_v22 = vld [vmem:[%s16596_s1 + $0x9d0] sm:$0xf0]  ;;  %16613 = vst [vmem:[#allocation7_spill] sm:$0xff] %v12897_v28 }
 0x100   :  { %5407 = vmatpush.bf16.msrb.mxu2 %v7512_v63  ;;  %v8101_v63 = vld [vmem:[%s16596_s1 + $0x9f0] sm:$0xf0]  ;;  %v10534_v3 = vld [vmem:[%s16596_s1 + $0xae4] sm:$0xf] }
 0x101   :  { %5421 = vmatpush.bf16.msrb.mxu3 %v7640_v19  ;;  %v8229_v19 = vld [vmem:[%s16596_s1 + $0xaf0] sm:$0xf0]  ;;  %v8104_v9 = vor.u32 %v10502_v62, %v8101_v63  ;;  %v10434_v11 = vld [vmem:[%s16596_s1 + $0x7c4] sm:$0xf] }
 0x102   :  { %5380 = vmatpush.bf16.msrb.mxu0 %v7240_v12  ;;  %v7829_v12 = vld [vmem:[%s16596_s1 + $0x7d0] sm:$0xf0]  ;;  %v10466_v15 = vld [vmem:[%s16596_s1 + $0x8c4] sm:$0xf]  ;;  %v8232_v16 = vor.u32 %v10534_v3, %v8229_v19 }
 0x103   :  { %5394 = vmatpush.bf16.msrb.mxu1 %v7368_v18  ;;  %v7957_v18 = vld [vmem:[%s16596_s1 + $0x8d0] sm:$0xf0]  ;;  %v10530_v24 = vld [vmem:[%s16596_s1 + $0xac4] sm:$0xf]  ;;  %v7832_v30 = vor.u32 %v10434_v11, %v7829_v12  ;;  %v12936_v12 = vpop.f32.mrf.mxu2 }
 0x104   :  { %5408 = vmatpush.bf16.msrb.mxu2 %v7496_v20  ;;  %v10498_v20 = vld [vmem:[%s16596_s1 + $0x9c4] sm:$0xf]  ;;  %v7960_v37 = vor.u32 %v10466_v15, %v7957_v18  ;;  %v7813_v52 = vld [vmem:[%s16596_s1 + $0x7b0] sm:$0xf0]  ;;  %16614 = vst [vmem:[#allocation8_spill] sm:$0xff] %v12936_v12 }
 0x105   :  { %5422 = vmatpush.bf16.msrb.mxu3 %v7624_v27  ;;  %v8213_v27 = vld [vmem:[%s16596_s1 + $0xad0] sm:$0xf0]  ;;  %v8088_v29 = vor.u32 %v10498_v20, %v8085_v22  ;;  %v10430_v50 = vld [vmem:[%s16596_s1 + $0x7a4] sm:$0xf]  ;;  %v12947_v22 = vpop.f32.mrf.mxu3 }
 0x106   :  { %5381 = vmatpush.bf16.msrb.mxu0 %v7224_v53  ;;  %v10462_v53 = vld [vmem:[%s16596_s1 + $0x8a4] sm:$0xf]  ;;  %v8216_v57 = vor.u32 %v10530_v24, %v8213_v27  ;;  %v7941_v62 = vld [vmem:[%s16596_s1 + $0x8b0] sm:$0xf0]  ;;  %v7816_v19 = vor.u32 %v10430_v50, %v7813_v52  ;;  %16615 = vst [vmem:[#allocation9_spill] sm:$0xff] %v12947_v22  ;;  %v5173_v50 = vpop.f32.mrf.mxu1 }
 0x107   :  { %5395 = vmatpush.bf16.msrb.mxu1 %v7352_v0  ;;  %v10494_v63 = vld [vmem:[%s16596_s1 + $0x9a4] sm:$0xf]  ;;  %v8069_v0 = vld [vmem:[%s16596_s1 + $0x9b0] sm:$0xf0] }
 0x108   :  { %5409 = vmatpush.bf16.msrb.mxu2 %v7480_v2  ;;  %v10526_v2 = vld [vmem:[%s16596_s1 + $0xaa4] sm:$0xf]  ;;  %v8197_v3 = vld [vmem:[%s16596_s1 + $0xab0] sm:$0xf0]  ;;  %v5159_v24 = vpop.f32.mrf.mxu0 }
 0x109   :  { %5423 = vmatpush.bf16.msrb.mxu3 %v7608_v6  ;;  %5382 = vmatmul.bf16.vlgmr.msrb.gmra.mxu0 %v11356_v17  ;;  %v7944_v6 = vor.u32 %v10462_v53, %v7941_v62  ;;  %v10458_v11 = vld [vmem:[%s16596_s1 + $0x884] sm:$0xf]  ;;  %v8200_v15 = vor.u32 %v10526_v2, %v8197_v3  ;;  %v8053_v20 = vld [vmem:[%s16596_s1 + $0x990] sm:$0xf0] }
 0x10a   :  { %5430 = vmatpush.bf16.msra.mxu0 %v7848_v7  ;;  %5396 = vmatmul.bf16.vlgmr.msrb.gmra.mxu1 %v11528_v39  ;;  %v8072_v7 = vor.u32 %v10494_v63, %v8069_v0  ;;  %v10490_v18 = vld [vmem:[%s16596_s1 + $0x984] sm:$0xf]  ;;  %v7781_v62 = vld [vmem:[%s16596_s1 + $0x770] sm:$0xf0] }
 0x10b   :  { %5444 = vmatpush.bf16.msra.mxu1 %v7976_v8  ;;  %5410 = vmatmul.bf16.vlgmr.msrb.gmra.mxu2 %v11541_v44  ;;  %v10426_v8 = vld [vmem:[%s16596_s1 + $0x784] sm:$0xf]  ;;  %v8056_v53 = vor.u32 %v10490_v18, %v8053_v20  ;;  %v7909_v2 = vld [vmem:[%s16596_s1 + $0x870] sm:$0xf0] }
 0x10c   :  { %5458 = vmatpush.bf16.msra.mxu2 %v8104_v9  ;;  %5424 = vmatmul.bf16.vlgmr.msrb.gmra.mxu3 %v11539_v43  ;;  %v7797_v9 = vld [vmem:[%s16596_s1 + $0x790] sm:$0xf0]  ;;  %v10522_v27 = vld [vmem:[%s16596_s1 + $0xa84] sm:$0xf] }
 0x10d   :  { %5472 = vmatpush.bf16.msra.mxu3 %v8232_v16  ;;  %v7925_v16 = vld [vmem:[%s16596_s1 + $0x890] sm:$0xf0]  ;;  %v10454_v63 = vld [vmem:[%s16596_s1 + $0x864] sm:$0xf] }
 0x10e   :  { %5431 = vmatpush.bf16.msra.mxu0 %v7832_v30  ;;  %v8181_v30 = vld [vmem:[%s16596_s1 + $0xa90] sm:$0xf0]  ;;  %v7928_v52 = vor.u32 %v10458_v11, %v7925_v16  ;;  %v10486_v3 = vld [vmem:[%s16596_s1 + $0x964] sm:$0xf] }
 0x10f   :  { %5445 = vmatpush.bf16.msra.mxu1 %v7960_v37  ;;  %v5160_v37 = vadd.f32 %v5159_v24, %v12797_v59  ;;  %v8184_v59 = vor.u32 %v10522_v27, %v8181_v30  ;;  %v7765_v16 = vld [vmem:[%s16596_s1 + $0x750] sm:$0xf0]  ;;  %v10450_v18 = vld [vmem:[%s16596_s1 + $0x844] sm:$0xf]  ;;  %v5187_v24 = vpop.f32.mrf.mxu2 }
 0x110   :  { %5459 = vmatpush.bf16.msra.mxu2 %v8088_v29  ;;  %v7800_v29 = vor.u32 %v10426_v8, %v7797_v9  ;;  %v7912_v9 = vor.u32 %v10454_v63, %v7909_v2  ;;  %v7893_v27 = vld [vmem:[%s16596_s1 + $0x850] sm:$0xf0]  ;;  %v10482_v30 = vld [vmem:[%s16596_s1 + $0x944] sm:$0xf] }
 0x111   :  { %5473 = vmatpush.bf16.msra.mxu3 %v8216_v57  ;;  %v10422_v57 = vld [vmem:[%s16596_s1 + $0x764] sm:$0xf]  ;;  %v5174_v0 = vadd.f32 %v5173_v50, %v5160_v37  ;;  %v8021_v37 = vld [vmem:[%s16596_s1 + $0x950] sm:$0xf0]  ;;  %v5201_v50 = vpop.f32.mrf.mxu3  ;;  %v7896_v63 = vor.u32 %v10450_v18, %v7893_v27 }
 0x112   :  { %5432 = vmatpush.bf16.msra.mxu0 %v7816_v19  ;;  %v8037_v19 = vld [vmem:[%s16596_s1 + $0x970] sm:$0xf0]  ;;  %v7784_v8 = vor.u32 %v10422_v57, %v7781_v62  ;;  %v10442_v27 = vld [vmem:[%s16596_s1 + $0x804] sm:$0xf] }
 0x113   :  { %5446 = vmatpush.bf16.msra.mxu1 %v7944_v6  ;;  %v10518_v6 = vld [vmem:[%s16596_s1 + $0xa64] sm:$0xf]  ;;  %v8040_v11 = vor.u32 %v10486_v3, %v8037_v19  ;;  %v7749_v2 = vld [vmem:[%s16596_s1 + $0x730] sm:$0xf0] }
 0x114   :  { %5460 = vmatpush.bf16.msra.mxu2 %v8072_v7  ;;  %v8165_v7 = vld [vmem:[%s16596_s1 + $0xa70] sm:$0xf0]  ;;  %v10446_v3 = vld [vmem:[%s16596_s1 + $0x824] sm:$0xf] }
 0x115   :  { %5474 = vmatpush.bf16.msra.mxu3 %v8200_v15  ;;  %v10418_v15 = vld [vmem:[%s16596_s1 + $0x744] sm:$0xf]  ;;  %v8168_v20 = vor.u32 %v10518_v6, %v8165_v7  ;;  %v7877_v6 = vld [vmem:[%s16596_s1 + $0x830] sm:$0xf0] }
 0x116   :  { %5433 = vmatpush.bf16.msra.mxu0 %v7800_v29  ;;  %v5188_v29 = vadd.f32 %v5187_v24, %v5174_v0  ;;  %v7768_v57 = vor.u32 %v10418_v15, %v7765_v16  ;;  %v10414_v0 = vld [vmem:[%s16596_s1 + $0x724] sm:$0xf]  ;;  %v7733_v18 = vld [vmem:[%s16596_s1 + $0x710] sm:$0xf0] }
 0x117   :  { %5447 = vmatpush.bf16.msra.mxu1 %v7928_v52  ;;  %v10514_v52 = vld [vmem:[%s16596_s1 + $0xa44] sm:$0xf]  ;;  %v7752_v15 = vor.u32 %v10414_v0, %v7749_v2  ;;  %v8485_v2 = vld [vmem:[%s16596_s1 + $0xcf0] sm:$0xf0] }
 0x118   :  { %5461 = vmatpush.bf16.msra.mxu2 %v8056_v53  ;;  %v8149_v53 = vld [vmem:[%s16596_s1 + $0xa50] sm:$0xf0]  ;;  %v13004_v62 = vadd.f32 %v5201_v50, %v5188_v29  ;;  %v10478_v7 = vld [vmem:[%s16596_s1 + $0x924] sm:$0xf] }
 0x119   :  { %5475 = vmatpush.bf16.msra.mxu3 %v8184_v59  ;;  %v8024_v59 = vor.u32 %v10482_v30, %v8021_v37  ;;  %v8152_v19 = vor.u32 %v10514_v52, %v8149_v53  ;;  %v10410_v16 = vld [vmem:[%s16596_s1 + $0x704] sm:$0xf]  ;;  %v7861_v30 = vld [vmem:[%s16596_s1 + $0x810] sm:$0xf0] }
 0x11a   :  { %5434 = vmatpush.bf16.msra.mxu0 %v7784_v8  ;;  %v8005_v8 = vld [vmem:[%s16596_s1 + $0x930] sm:$0xf0]  ;;  %v10474_v37 = vld [vmem:[%s16596_s1 + $0x904] sm:$0xf]  ;;  %v7736_v0 = vor.u32 %v10410_v16, %v7733_v18 }
 0x11b   :  { %5448 = vmatpush.bf16.msra.mxu1 %v7912_v9  ;;  %v10510_v9 = vld [vmem:[%s16596_s1 + $0xa24] sm:$0xf]  ;;  %v8008_v24 = vor.u32 %v10478_v7, %v8005_v8  ;;  %v7989_v50 = vld [vmem:[%s16596_s1 + $0x910] sm:$0xf0] }
 0x11c   :  { %5462 = vmatpush.bf16.msra.mxu2 %v8040_v11  ;;  %v8133_v11 = vld [vmem:[%s16596_s1 + $0xa30] sm:$0xf0]  ;;  %v10506_v52 = vld [vmem:[%s16596_s1 + $0xa04] sm:$0xf]  ;;  %v7992_v7 = vor.u32 %v10474_v37, %v7989_v50 }
 0x11d   :  { %5476 = vmatpush.bf16.msra.mxu3 %v8168_v20  ;;  %v7880_v20 = vor.u32 %v10446_v3, %v7877_v6  ;;  %v8136_v29 = vor.u32 %v10510_v9, %v8133_v11  ;;  %v8117_v53 = vld [vmem:[%s16596_s1 + $0xa10] sm:$0xf0]  ;;  %v10630_v3 = vld [vmem:[%s16596_s1 + $0xde4] sm:$0xf]  ;;  %v7864_v6 = vor.u32 %v10442_v27, %v7861_v30 }
 0x11e   :  { %5435 = vmatpush.bf16.msra.mxu0 %v7768_v57  ;;  %v10566_v57 = vld [vmem:[%s16596_s1 + $0xbe4] sm:$0xf]  ;;  %v8741_v9 = vld [vmem:[%s16596_s1 + $0xef0] sm:$0xf0]  ;;  %v8120_v11 = vor.u32 %v10506_v52, %v8117_v53  ;;  %v13096_v52 = vpop.f32.mrf.mxu0 }
 0x11f   :  { %5449 = vmatpush.bf16.msra.mxu1 %v7896_v63  ;;  %v8357_v63 = vld [vmem:[%s16596_s1 + $0xbf0] sm:$0xf0]  ;;  %v10662_v8 = vld [vmem:[%s16596_s1 + $0xee4] sm:$0xf]  ;;  %16616 = vst [vmem:[#allocation10_spill] sm:$0xff] %v13096_v52 }
 0x120   :  { %5463 = vmatpush.bf16.msra.mxu2 %v8024_v59  ;;  %v10598_v59 = vld [vmem:[%s16596_s1 + $0xce4] sm:$0xf]  ;;  %v8744_v30 = vor.u32 %v10662_v8, %v8741_v9  ;;  %v8469_v37 = vld [vmem:[%s16596_s1 + $0xcd0] sm:$0xf0] }
 0x121   :  { %5477 = vmatpush.bf16.msra.mxu3 %v8152_v19  ;;  %v8613_v19 = vld [vmem:[%s16596_s1 + $0xdf0] sm:$0xf0]  ;;  %v8488_v16 = vor.u32 %v10598_v59, %v8485_v2  ;;  %v10594_v27 = vld [vmem:[%s16596_s1 + $0xcc4] sm:$0xf] }
 0x122   :  { %5436 = vmatpush.bf16.msra.mxu0 %v7752_v15  ;;  %v8360_v15 = vor.u32 %v10566_v57, %v8357_v63  ;;  %v8616_v18 = vor.u32 %v10630_v3, %v8613_v19  ;;  %v8597_v50 = vld [vmem:[%s16596_s1 + $0xdd0] sm:$0xf0]  ;;  %v10658_v53 = vld [vmem:[%s16596_s1 + $0xec4] sm:$0xf]  ;;  %v13104_v63 = vpop.f32.mrf.mxu1 }
 0x123   :  { %5450 = vmatpush.bf16.msra.mxu1 %v7880_v20  ;;  %v10562_v20 = vld [vmem:[%s16596_s1 + $0xbc4] sm:$0xf]  ;;  %v8725_v57 = vld [vmem:[%s16596_s1 + $0xed0] sm:$0xf0]  ;;  %16617 = vst [vmem:[#allocation11_spill] sm:$0xff] %v13104_v63 }
 0x124   :  { %5464 = vmatpush.bf16.msra.mxu2 %v8008_v24  ;;  %v8341_v24 = vld [vmem:[%s16596_s1 + $0xbd0] sm:$0xf0]  ;;  %v10558_v3 = vld [vmem:[%s16596_s1 + $0xba4] sm:$0xf] }
 0x125   :  { %5478 = vmatpush.bf16.msra.mxu3 %v8136_v29  ;;  %v10626_v29 = vld [vmem:[%s16596_s1 + $0xdc4] sm:$0xf]  ;;  %v8344_v59 = vor.u32 %v10562_v20, %v8341_v24  ;;  %v8325_v19 = vld [vmem:[%s16596_s1 + $0xbb0] sm:$0xf0] }
 0x126   :  { %5437 = vmatpush.bf16.msra.mxu0 %v7736_v0  ;;  %v8472_v0 = vor.u32 %v10594_v27, %v8469_v37  ;;  %v8600_v2 = vor.u32 %v10626_v29, %v8597_v50  ;;  %v8453_v8 = vld [vmem:[%s16596_s1 + $0xcb0] sm:$0xf0]  ;;  %v10622_v9 = vld [vmem:[%s16596_s1 + $0xda4] sm:$0xf]  ;;  %v13143_v29 = vpop.f32.mrf.mxu2 }
 0x127   :  { %5451 = vmatpush.bf16.msra.mxu1 %v7864_v6  ;;  %v10590_v6 = vld [vmem:[%s16596_s1 + $0xca4] sm:$0xf]  ;;  %16618 = vst [vmem:[#allocation12_spill] sm:$0xff] %v13143_v29 }
 0x128   :  { %5465 = vmatpush.bf16.msra.mxu2 %v7992_v7  ;;  %v8728_v7 = vor.u32 %v10658_v53, %v8725_v57  ;;  %v8456_v20 = vor.u32 %v10590_v6, %v8453_v8  ;;  %v10554_v27 = vld [vmem:[%s16596_s1 + $0xb84] sm:$0xf]  ;;  %v8437_v53 = vld [vmem:[%s16596_s1 + $0xc90] sm:$0xf0] }
 0x129   :  { %5479 = vmatpush.bf16.msra.mxu3 %v8120_v11  ;;  %5438 = vmatmul.bf16.vlgmr.msra.gmra.mxu0 %v11549_v47  ;;  %v8581_v11 = vld [vmem:[%s16596_s1 + $0xdb0] sm:$0xf0]  ;;  %v10586_v37 = vld [vmem:[%s16596_s1 + $0xc84] sm:$0xf] }
 0x12a   :  { %5486 = vmatpush.bf16.msrb.mxu0 %v8360_v15  ;;  %5452 = vmatmul.bf16.vlgmr.msra.gmra.mxu1 %v11756_v31  ;;  %v10654_v15 = vld [vmem:[%s16596_s1 + $0xea4] sm:$0xf]  ;;  %v8584_v24 = vor.u32 %v10622_v9, %v8581_v11  ;;  %v5229_v8 = vpop.f32.mrf.mxu1  ;;  %v8440_v9 = vor.u32 %v10586_v37, %v8437_v53 }
 0x12b   :  { %5500 = vmatpush.bf16.msrb.mxu1 %v8488_v16  ;;  %5466 = vmatmul.bf16.vlgmr.msra.gmra.mxu2 %v11769_v36  ;;  %v8709_v16 = vld [vmem:[%s16596_s1 + $0xeb0] sm:$0xf0]  ;;  %v10618_v57 = vld [vmem:[%s16596_s1 + $0xd84] sm:$0xf] }
 0x12c   :  { %5514 = vmatpush.bf16.msrb.mxu2 %v8616_v18  ;;  %5480 = vmatmul.bf16.vlgmr.msra.gmra.mxu3 %v11767_v35  ;;  %v8328_v18 = vor.u32 %v10558_v3, %v8325_v19  ;;  %v8712_v50 = vor.u32 %v10654_v15, %v8709_v16  ;;  %v10650_v3 = vld [vmem:[%s16596_s1 + $0xe84] sm:$0xf]  ;;  %v8693_v19 = vld [vmem:[%s16596_s1 + $0xe90] sm:$0xf0] }
 0x12d   :  { %5528 = vmatpush.bf16.msrb.mxu3 %v8744_v30  ;;  %v8309_v30 = vld [vmem:[%s16596_s1 + $0xb90] sm:$0xf0]  ;;  %v10550_v15 = vld [vmem:[%s16596_s1 + $0xb64] sm:$0xf] }
 0x12e   :  { %5487 = vmatpush.bf16.msrb.mxu0 %v8344_v59  ;;  %v8565_v59 = vld [vmem:[%s16596_s1 + $0xd90] sm:$0xf0]  ;;  %v10646_v37 = vld [vmem:[%s16596_s1 + $0xe64] sm:$0xf] }
 0x12f   :  { %5501 = vmatpush.bf16.msrb.mxu1 %v8472_v0  ;;  %v13154_v0 = vpop.f32.mrf.mxu3  ;;  %v8568_v11 = vor.u32 %v10618_v57, %v8565_v59  ;;  %v8293_v16 = vld [vmem:[%s16596_s1 + $0xb70] sm:$0xf0] }
 0x130   :  { %5515 = vmatpush.bf16.msrb.mxu2 %v8600_v2  ;;  %16619 = vst [vmem:[#allocation13_spill] sm:$0xff] %v13154_v0  ;;  %v5215_v2 = vpop.f32.mrf.mxu0  ;;  %v8296_v53 = vor.u32 %v10550_v15, %v8293_v16 }
 0x131   :  { %5529 = vmatpush.bf16.msrb.mxu3 %v8728_v7  ;;  %v5216_v6 = vadd.f32 %v5215_v2, %v13004_v62  ;;  %v8312_v7 = vor.u32 %v10554_v27, %v8309_v30  ;;  %v8696_v62 = vor.u32 %v10650_v3, %v8693_v19  ;;  %v8549_v30 = vld [vmem:[%s16596_s1 + $0xd70] sm:$0xf0]  ;;  %v10546_v2 = vld [vmem:[%s16596_s1 + $0xb44] sm:$0xf] }
 0x132   :  { %5488 = vmatpush.bf16.msrb.mxu0 %v8328_v18  ;;  %v10582_v18 = vld [vmem:[%s16596_s1 + $0xc64] sm:$0xf]  ;;  %v8277_v3 = vld [vmem:[%s16596_s1 + $0xb50] sm:$0xf0] }
 0x133   :  { %5502 = vmatpush.bf16.msrb.mxu1 %v8456_v20  ;;  %v5230_v27 = vadd.f32 %v5229_v8, %v5216_v6  ;;  %v8421_v20 = vld [vmem:[%s16596_s1 + $0xc70] sm:$0xf0]  ;;  %v10578_v19 = vld [vmem:[%s16596_s1 + $0xc44] sm:$0xf] }
 0x134   :  { %5516 = vmatpush.bf16.msrb.mxu2 %v8584_v24  ;;  %v10614_v24 = vld [vmem:[%s16596_s1 + $0xd64] sm:$0xf]  ;;  %v8424_v57 = vor.u32 %v10582_v18, %v8421_v20  ;;  %v8405_v8 = vld [vmem:[%s16596_s1 + $0xc50] sm:$0xf0]  ;;  %v8280_v20 = vor.u32 %v10546_v2, %v8277_v3 }
 0x135   :  { %5530 = vmatpush.bf16.msrb.mxu3 %v8712_v50  ;;  %v8677_v50 = vld [vmem:[%s16596_s1 + $0xe70] sm:$0xf0]  ;;  %v8552_v59 = vor.u32 %v10614_v24, %v8549_v30  ;;  %v10642_v18 = vld [vmem:[%s16596_s1 + $0xe44] sm:$0xf]  ;;  %v8408_v30 = vor.u32 %v10578_v19, %v8405_v8 }
 0x136   :  { %5489 = vmatpush.bf16.msrb.mxu0 %v8312_v7  ;;  %v8680_v6 = vor.u32 %v10646_v37, %v8677_v50  ;;  %v5243_v7 = vpop.f32.mrf.mxu2  ;;  %v8261_v50 = vld [vmem:[%s16596_s1 + $0xb30] sm:$0xf0]  ;;  %v10638_v3 = vld [vmem:[%s16596_s1 + $0xe24] sm:$0xf] }
 0x137   :  { %5503 = vmatpush.bf16.msrb.mxu1 %v8440_v9  ;;  %v10610_v9 = vld [vmem:[%s16596_s1 + $0xd44] sm:$0xf]  ;;  %v5244_v15 = vadd.f32 %v5243_v7, %v5230_v27  ;;  %v5257_v16 = vpop.f32.mrf.mxu3  ;;  %v8517_v2 = vld [vmem:[%s16596_s1 + $0xd30] sm:$0xf0] }
 0x138   :  { %5517 = vmatpush.bf16.msrb.mxu2 %v8568_v11  ;;  %v8533_v11 = vld [vmem:[%s16596_s1 + $0xd50] sm:$0xf0]  ;;  %v10542_v27 = vld [vmem:[%s16596_s1 + $0xb24] sm:$0xf] }
 0x139   :  { %5531 = vmatpush.bf16.msrb.mxu3 %v8696_v62  ;;  %v8661_v62 = vld [vmem:[%s16596_s1 + $0xe50] sm:$0xf0]  ;;  %v13211_v24 = vadd.f32 %v5257_v16, %v5244_v15  ;;  %v8536_v37 = vor.u32 %v10610_v9, %v8533_v11  ;;  %v10574_v7 = vld [vmem:[%s16596_s1 + $0xc24] sm:$0xf] }
 0x13a   :  { %5490 = vmatpush.bf16.msrb.mxu0 %v8296_v53  ;;  %v8664_v53 = vor.u32 %v10642_v18, %v8661_v62  ;;  %v8645_v19 = vld [vmem:[%s16596_s1 + $0xe30] sm:$0xf0]  ;;  %v10538_v8 = vld [vmem:[%s16596_s1 + $0xb04] sm:$0xf] }
 0x13b   :  { %5504 = vmatpush.bf16.msrb.mxu1 %v8424_v57  ;;  %v8389_v57 = vld [vmem:[%s16596_s1 + $0xc30] sm:$0xf0]  ;;  %v10570_v16 = vld [vmem:[%s16596_s1 + $0xc04] sm:$0xf] }
 0x13c   :  { %5518 = vmatpush.bf16.msrb.mxu2 %v8552_v59  ;;  %v10606_v59 = vld [vmem:[%s16596_s1 + $0xd24] sm:$0xf]  ;;  %v8245_v9 = vld [vmem:[%s16596_s1 + $0xb10] sm:$0xf0]  ;;  %v8392_v11 = vor.u32 %v10574_v7, %v8389_v57 }
 0x13d   :  { %5532 = vmatpush.bf16.msrb.mxu3 %v8680_v6  ;;  %v8264_v6 = vor.u32 %v10542_v27, %v8261_v50  ;;  %v8520_v15 = vor.u32 %v10606_v59, %v8517_v2  ;;  %v8373_v18 = vld [vmem:[%s16596_s1 + $0xc10] sm:$0xf0]  ;;  %v10602_v62 = vld [vmem:[%s16596_s1 + $0xd04] sm:$0xf]  ;;  %v8248_v57 = vor.u32 %v10538_v8, %v8245_v9 }
 0x13e   :  { %5491 = vmatpush.bf16.msrb.mxu0 %v8280_v20  ;;  %v8648_v20 = vor.u32 %v10638_v3, %v8645_v19  ;;  %v8629_v27 = vld [vmem:[%s16596_s1 + $0xe10] sm:$0xf0]  ;;  %v10694_v50 = vld [vmem:[%s16596_s1 + $0xfe4] sm:$0xf]  ;;  %v8376_v19 = vor.u32 %v10570_v16, %v8373_v18 }
 0x13f   :  { %5505 = vmatpush.bf16.msrb.mxu1 %v8408_v30  ;;  %v8501_v30 = vld [vmem:[%s16596_s1 + $0xd10] sm:$0xf0]  ;;  %v10758_v2 = vld [vmem:[%s16596_s1 + $0x11e4] sm:$0xf] }
 0x140   :  { %5519 = vmatpush.bf16.msrb.mxu2 %v8536_v37  ;;  %v10634_v37 = vld [vmem:[%s16596_s1 + $0xe04] sm:$0xf]  ;;  %v8869_v7 = vld [vmem:[%s16596_s1 + $0xff0] sm:$0xf0]  ;;  %v8504_v13 = vor.u32 %v10602_v62, %v8501_v30 }
 0x141   :  { %5533 = vmatpush.bf16.msrb.mxu3 %v8664_v53  ;;  %v10726_v53 = vld [vmem:[%s16596_s1 + $0x10e4] sm:$0xf]  ;;  %v8997_v59 = vld [vmem:[%s16596_s1 + $0x10f0] sm:$0xf0]  ;;  %v8632_v9 = vor.u32 %v10634_v37, %v8629_v27  ;;  %v8872_v0 = vor.u32 %v10694_v50, %v8869_v7  ;;  %v13303_v37 = vpop.f32.mrf.mxu0  ;;  %v13311_v7 = vpop.f32.mrf.mxu1 }
 0x142   :  { %5492 = vmatpush.bf16.msrb.mxu0 %v8264_v6  ;;  %v9125_v3 = vld [vmem:[%s16596_s1 + $0x11f0] sm:$0xf0]  ;;  %v10790_v6 = vld [vmem:[%s16596_s1 + $0x12e4] sm:$0xf]  ;;  %v9000_v29 = vor.u32 %v10726_v53, %v8997_v59  ;;  %16620 = vst [vmem:[#allocation14_spill] sm:$0xff] %v13303_v37 }
 0x143   :  { %5506 = vmatpush.bf16.msrb.mxu1 %v8392_v11  ;;  %v9253_v8 = vld [vmem:[%s16596_s1 + $0x12f0] sm:$0xf0]  ;;  %v9128_v63 = vor.u32 %v10758_v2, %v9125_v3  ;;  %v10690_v11 = vld [vmem:[%s16596_s1 + $0xfc4] sm:$0xf]  ;;  %16621 = vst [vmem:[#allocation15_spill] sm:$0xff] %v13311_v7 }
 0x144   :  { %5520 = vmatpush.bf16.msrb.mxu2 %v8520_v15  ;;  %v8853_v15 = vld [vmem:[%s16596_s1 + $0xfd0] sm:$0xf0]  ;;  %v10722_v16 = vld [vmem:[%s16596_s1 + $0x10c4] sm:$0xf]  ;;  %v9256_v18 = vor.u32 %v10790_v6, %v9253_v8 }
 0x145   :  { %5534 = vmatpush.bf16.msrb.mxu3 %v8648_v20  ;;  %v8981_v62 = vld [vmem:[%s16596_s1 + $0x10d0] sm:$0xf0]  ;;  %v10754_v20 = vld [vmem:[%s16596_s1 + $0x11c4] sm:$0xf]  ;;  %v8856_v53 = vor.u32 %v10690_v11, %v8853_v15 }
 0x146   :  { %5493 = vmatpush.bf16.msrb.mxu0 %v8248_v57  ;;  %v9109_v30 = vld [vmem:[%s16596_s1 + $0x11d0] sm:$0xf0]  ;;  %v10786_v27 = vld [vmem:[%s16596_s1 + $0x12c4] sm:$0xf]  ;;  %v8984_v57 = vor.u32 %v10722_v16, %v8981_v62 }
 0x147   :  { %5507 = vmatpush.bf16.msrb.mxu1 %v8376_v19  ;;  %v9237_v50 = vld [vmem:[%s16596_s1 + $0x12d0] sm:$0xf0]  ;;  %v9112_v59 = vor.u32 %v10754_v20, %v9109_v30  ;;  %v10718_v3 = vld [vmem:[%s16596_s1 + $0x10a4] sm:$0xf]  ;;  %v13350_v20 = vpop.f32.mrf.mxu2 }
 0x148   :  { %5521 = vmatpush.bf16.msrb.mxu2 %v8504_v13  ;;  %v10686_v13 = vld [vmem:[%s16596_s1 + $0xfa4] sm:$0xf]  ;;  %v8837_v2 = vld [vmem:[%s16596_s1 + $0xfb0] sm:$0xf0]  ;;  %16622 = vst [vmem:[#allocation16_spill] sm:$0xff] %v13350_v20 }
 0x149   :  { %5535 = vmatpush.bf16.msrb.mxu3 %v8632_v9  ;;  %5494 = vmatmul.bf16.vlgmr.msrb.gmra.mxu0 %v11777_v40  ;;  %v9093_v19 = vld [vmem:[%s16596_s1 + $0x11b0] sm:$0xf0]  ;;  %v10782_v6 = vld [vmem:[%s16596_s1 + $0x12a4] sm:$0xf]  ;;  %v8840_v9 = vor.u32 %v10686_v13, %v8837_v2 }
 0x14a   :  { %5542 = vmatpush.bf16.msra.mxu0 %v8872_v0  ;;  %v9240_v0 = vor.u32 %v10786_v27, %v9237_v50  ;;  %5508 = vmatmul.bf16.vlgmr.msrb.gmra.mxu1 %v11984_v32  ;;  %v9221_v8 = vld [vmem:[%s16596_s1 + $0x12b0] sm:$0xf0]  ;;  %v10682_v16 = vld [vmem:[%s16596_s1 + $0xf84] sm:$0xf] }
 0x14b   :  { %5556 = vmatpush.bf16.msra.mxu1 %v9000_v29  ;;  %v10750_v29 = vld [vmem:[%s16596_s1 + $0x11a4] sm:$0xf]  ;;  %5522 = vmatmul.bf16.vlgmr.msrb.gmra.mxu2 %v11997_v41  ;;  %v9224_v30 = vor.u32 %v10782_v6, %v9221_v8  ;;  %v8949_v27 = vld [vmem:[%s16596_s1 + $0x1090] sm:$0xf0] }
 0x14c   :  { %5570 = vmatpush.bf16.msra.mxu2 %v9128_v63  ;;  %v8965_v63 = vld [vmem:[%s16596_s1 + $0x10b0] sm:$0xf0]  ;;  %5536 = vmatmul.bf16.vlgmr.msrb.gmra.mxu3 %v11995_v38  ;;  %v9096_v15 = vor.u32 %v10750_v29, %v9093_v19  ;;  %v10714_v62 = vld [vmem:[%s16596_s1 + $0x1084] sm:$0xf] }
 0x14d   :  { %5584 = vmatpush.bf16.msra.mxu3 %v9256_v18  ;;  %v8968_v11 = vor.u32 %v10718_v3, %v8965_v63  ;;  %v8821_v18 = vld [vmem:[%s16596_s1 + $0xf90] sm:$0xf0]  ;;  %v10746_v50 = vld [vmem:[%s16596_s1 + $0x1184] sm:$0xf]  ;;  %v5285_v63 = vpop.f32.mrf.mxu1  ;;  %v8952_v29 = vor.u32 %v10714_v62, %v8949_v27 }
 0x14e   :  { %5543 = vmatpush.bf16.msra.mxu0 %v8856_v53  ;;  %v9077_v53 = vld [vmem:[%s16596_s1 + $0x1190] sm:$0xf0]  ;;  %v10778_v13 = vld [vmem:[%s16596_s1 + $0x1284] sm:$0xf] }
 0x14f   :  { %5557 = vmatpush.bf16.msra.mxu1 %v8984_v57  ;;  %v13361_v57 = vpop.f32.mrf.mxu3  ;;  %v9205_v2 = vld [vmem:[%s16596_s1 + $0x1290] sm:$0xf0]  ;;  %v9080_v19 = vor.u32 %v10746_v50, %v9077_v53  ;;  %v10678_v6 = vld [vmem:[%s16596_s1 + $0xf64] sm:$0xf] }
 0x150   :  { %5571 = vmatpush.bf16.msra.mxu2 %v9112_v59  ;;  %16623 = vst [vmem:[#allocation17_spill] sm:$0xff] %v13361_v57  ;;  %v5271_v59 = vpop.f32.mrf.mxu0  ;;  %v8805_v8 = vld [vmem:[%s16596_s1 + $0xf70] sm:$0xf0]  ;;  %v10774_v62 = vld [vmem:[%s16596_s1 + $0x1264] sm:$0xf] }
 0x151   :  { %5585 = vmatpush.bf16.msra.mxu3 %v9240_v0  ;;  %v5272_v3 = vadd.f32 %v5271_v59, %v13211_v24  ;;  %v8824_v0 = vor.u32 %v10682_v16, %v8821_v18  ;;  %v9208_v24 = vor.u32 %v10778_v13, %v9205_v2  ;;  %v9061_v18 = vld [vmem:[%s16596_s1 + $0x1170] sm:$0xf0]  ;;  %v8808_v27 = vor.u32 %v10678_v6, %v8805_v8  ;;  %v10674_v59 = vld [vmem:[%s16596_s1 + $0xf44] sm:$0xf] }
 0x152   :  { %5544 = vmatpush.bf16.msra.mxu0 %v8840_v9  ;;  %v10710_v9 = vld [vmem:[%s16596_s1 + $0x1064] sm:$0xf]  ;;  %v8789_v13 = vld [vmem:[%s16596_s1 + $0xf50] sm:$0xf0] }
 0x153   :  { %5558 = vmatpush.bf16.msra.mxu1 %v8968_v11  ;;  %v5286_v16 = vadd.f32 %v5285_v63, %v5272_v3  ;;  %v8933_v11 = vld [vmem:[%s16596_s1 + $0x1070] sm:$0xf0]  ;;  %v10706_v2 = vld [vmem:[%s16596_s1 + $0x1044] sm:$0xf] }
 0x154   :  { %5572 = vmatpush.bf16.msra.mxu2 %v9096_v15  ;;  %v10742_v15 = vld [vmem:[%s16596_s1 + $0x1164] sm:$0xf]  ;;  %v8936_v50 = vor.u32 %v10710_v9, %v8933_v11  ;;  %v8917_v63 = vld [vmem:[%s16596_s1 + $0x1050] sm:$0xf0]  ;;  %v8792_v11 = vor.u32 %v10674_v59, %v8789_v13 }
 0x155   :  { %5586 = vmatpush.bf16.msra.mxu3 %v9224_v30  ;;  %v9189_v30 = vld [vmem:[%s16596_s1 + $0x1270] sm:$0xf0]  ;;  %v9064_v53 = vor.u32 %v10742_v15, %v9061_v18  ;;  %v10770_v9 = vld [vmem:[%s16596_s1 + $0x1244] sm:$0xf]  ;;  %v8920_v18 = vor.u32 %v10706_v2, %v8917_v63 }
 0x156   :  { %5545 = vmatpush.bf16.msra.mxu0 %v8824_v0  ;;  %v9192_v3 = vor.u32 %v10774_v62, %v9189_v30  ;;  %v5299_v0 = vpop.f32.mrf.mxu2  ;;  %v8773_v30 = vld [vmem:[%s16596_s1 + $0xf30] sm:$0xf0]  ;;  %v10766_v13 = vld [vmem:[%s16596_s1 + $0x1224] sm:$0xf] }
 0x157   :  { %5559 = vmatpush.bf16.msra.mxu1 %v8952_v29  ;;  %v10738_v29 = vld [vmem:[%s16596_s1 + $0x1144] sm:$0xf]  ;;  %v5300_v6 = vadd.f32 %v5299_v0, %v5286_v16  ;;  %v5313_v8 = vpop.f32.mrf.mxu3  ;;  %v9029_v59 = vld [vmem:[%s16596_s1 + $0x1130] sm:$0xf0] }
 0x158   :  { %5573 = vmatpush.bf16.msra.mxu2 %v9080_v19  ;;  %v9045_v19 = vld [vmem:[%s16596_s1 + $0x1150] sm:$0xf0]  ;;  %v10670_v16 = vld [vmem:[%s16596_s1 + $0xf24] sm:$0xf] }
 0x159   :  { %5587 = vmatpush.bf16.msra.mxu3 %v9208_v24  ;;  %v9173_v24 = vld [vmem:[%s16596_s1 + $0x1250] sm:$0xf0]  ;;  %v13418_v15 = vadd.f32 %v5313_v8, %v5300_v6  ;;  %v9048_v62 = vor.u32 %v10738_v29, %v9045_v19  ;;  %v10702_v0 = vld [vmem:[%s16596_s1 + $0x1024] sm:$0xf] }
 0x15a   :  { %5546 = vmatpush.bf16.msra.mxu0 %v8808_v27  ;;  %v9176_v27 = vor.u32 %v10770_v9, %v9173_v24  ;;  %v9157_v2 = vld [vmem:[%s16596_s1 + $0x1230] sm:$0xf0]  ;;  %v10666_v63 = vld [vmem:[%s16596_s1 + $0xf04] sm:$0xf] }
 0x15b   :  { %5560 = vmatpush.bf16.msra.mxu1 %v8936_v50  ;;  %v8901_v50 = vld [vmem:[%s16596_s1 + $0x1030] sm:$0xf0]  ;;  %v10698_v8 = vld [vmem:[%s16596_s1 + $0x1004] sm:$0xf] }
 0x15c   :  { %5574 = vmatpush.bf16.msra.mxu2 %v9064_v53  ;;  %v10734_v53 = vld [vmem:[%s16596_s1 + $0x1124] sm:$0xf]  ;;  %v8757_v29 = vld [vmem:[%s16596_s1 + $0xf10] sm:$0xf0]  ;;  %v8904_v19 = vor.u32 %v10702_v0, %v8901_v50 }
 0x15d   :  { %5588 = vmatpush.bf16.msra.mxu3 %v9192_v3  ;;  %v8776_v3 = vor.u32 %v10670_v16, %v8773_v30  ;;  %v9032_v6 = vor.u32 %v10734_v53, %v9029_v59  ;;  %v8885_v9 = vld [vmem:[%s16596_s1 + $0x1010] sm:$0xf0]  ;;  %v10730_v24 = vld [vmem:[%s16596_s1 + $0x1104] sm:$0xf]  ;;  %v8760_v50 = vor.u32 %v10666_v63, %v8757_v29 }
 0x15e   :  { %5547 = vmatpush.bf16.msra.mxu0 %v8792_v11  ;;  %v9160_v11 = vor.u32 %v10766_v13, %v9157_v2  ;;  %v9141_v16 = vld [vmem:[%s16596_s1 + $0x1210] sm:$0xf0]  ;;  %v10822_v30 = vld [vmem:[%s16596_s1 + $0x13e4] sm:$0xf]  ;;  %v8888_v2 = vor.u32 %v10698_v8, %v8885_v9 }
 0x15f   :  { %5561 = vmatpush.bf16.msra.mxu1 %v8920_v18  ;;  %v9013_v18 = vld [vmem:[%s16596_s1 + $0x1110] sm:$0xf0]  ;;  %v10886_v59 = vld [vmem:[%s16596_s1 + $0x15e4] sm:$0xf] }
 0x160   :  { %5575 = vmatpush.bf16.msra.mxu2 %v9048_v62  ;;  %v10762_v62 = vld [vmem:[%s16596_s1 + $0x1204] sm:$0xf]  ;;  %v9381_v0 = vld [vmem:[%s16596_s1 + $0x13f0] sm:$0xf0]  ;;  %v9016_v57 = vor.u32 %v10730_v24, %v9013_v18 }
 0x161   :  { %5589 = vmatpush.bf16.msra.mxu3 %v9176_v27  ;;  %v10854_v27 = vld [vmem:[%s16596_s1 + $0x14e4] sm:$0xf]  ;;  %v9509_v53 = vld [vmem:[%s16596_s1 + $0x14f0] sm:$0xf0]  ;;  %v9144_v29 = vor.u32 %v10762_v62, %v9141_v16  ;;  %v9384_v20 = vor.u32 %v10822_v30, %v9381_v0  ;;  %v13510_v62 = vpop.f32.mrf.mxu0 }
 0x162   :  { %5548 = vmatpush.bf16.msra.mxu0 %v8776_v3  ;;  %v9637_v13 = vld [vmem:[%s16596_s1 + $0x15f0] sm:$0xf0]  ;;  %v10918_v3 = vld [vmem:[%s16596_s1 + $0x16e4] sm:$0xf]  ;;  %v9512_v7 = vor.u32 %v10854_v27, %v9509_v53  ;;  %16624 = vst [vmem:[#allocation18_spill] sm:$0xff] %v13510_v62 }
 0x163   :  { %5562 = vmatpush.bf16.msra.mxu1 %v8904_v19  ;;  %v9765_v63 = vld [vmem:[%s16596_s1 + $0x16f0] sm:$0xf0]  ;;  %v9640_v37 = vor.u32 %v10886_v59, %v9637_v13  ;;  %v10818_v19 = vld [vmem:[%s16596_s1 + $0x13c4] sm:$0xf]  ;;  %v13527_v13 = vpop.f32.mrf.mxu1 }
 0x164   :  { %5576 = vmatpush.bf16.msra.mxu2 %v9032_v6  ;;  %v9365_v6 = vld [vmem:[%s16596_s1 + $0x13d0] sm:$0xf0]  ;;  %v10850_v8 = vld [vmem:[%s16596_s1 + $0x14c4] sm:$0xf]  ;;  %v9768_v9 = vor.u32 %v10918_v3, %v9765_v63  ;;  %16625 = vst [vmem:[#allocation19_spill] sm:$0xff] %v13527_v13 }
 0x165   :  { %5590 = vmatpush.bf16.msra.mxu3 %v9160_v11  ;;  %v9493_v24 = vld [vmem:[%s16596_s1 + $0x14d0] sm:$0xf0]  ;;  %v10882_v11 = vld [vmem:[%s16596_s1 + $0x15c4] sm:$0xf]  ;;  %v9368_v0 = vor.u32 %v10818_v19, %v9365_v6 }
 0x166   :  { %5549 = vmatpush.bf16.msra.mxu0 %v8760_v50  ;;  %v9621_v18 = vld [vmem:[%s16596_s1 + $0x15d0] sm:$0xf0]  ;;  %v10914_v16 = vld [vmem:[%s16596_s1 + $0x16c4] sm:$0xf]  ;;  %v9496_v27 = vor.u32 %v10850_v8, %v9493_v24 }
 0x167   :  { %5563 = vmatpush.bf16.msra.mxu1 %v8888_v2  ;;  %v9749_v30 = vld [vmem:[%s16596_s1 + $0x16d0] sm:$0xf0]  ;;  %v9624_v50 = vor.u32 %v10882_v11, %v9621_v18  ;;  %v10814_v53 = vld [vmem:[%s16596_s1 + $0x13a4] sm:$0xf]  ;;  %v13557_v11 = vpop.f32.mrf.mxu2 }
 0x168   :  { %5577 = vmatpush.bf16.msra.mxu2 %v9016_v57  ;;  %v9349_v57 = vld [vmem:[%s16596_s1 + $0x13b0] sm:$0xf0]  ;;  %v10846_v59 = vld [vmem:[%s16596_s1 + $0x14a4] sm:$0xf]  ;;  %16626 = vst [vmem:[#allocation20_spill] sm:$0xff] %v13557_v11 }
 0x169   :  { %5591 = vmatpush.bf16.msra.mxu3 %v9144_v29  ;;  %5550 = vmatmul.bf16.vlgmr.msra.gmra.mxu0 %v12005_v46  ;;  %v9605_v2 = vld [vmem:[%s16596_s1 + $0x15b0] sm:$0xf0]  ;;  %v10910_v3 = vld [vmem:[%s16596_s1 + $0x16a4] sm:$0xf]  ;;  %v9352_v29 = vor.u32 %v10814_v53, %v9349_v57  ;;  %v13577_v57 = vld [vmem:[%s16598_s2] sm:$0xf] }
 0x16a   :  { %5598 = vmatpush.bf16.msrb.mxu0 %v9384_v20  ;;  %v10878_v20 = vld [vmem:[%s16596_s1 + $0x15a4] sm:$0xf]  ;;  %5564 = vmatmul.bf16.vlgmr.msra.gmra.mxu1 %v12212_v51  ;;  %v9733_v63 = vld [vmem:[%s16596_s1 + $0x16b0] sm:$0xf0] }
 0x16b   :  { %5612 = vmatpush.bf16.msrb.mxu1 %v9512_v7  ;;  %v9477_v7 = vld [vmem:[%s16596_s1 + $0x14b0] sm:$0xf0]  ;;  %5578 = vmatmul.bf16.vlgmr.msra.gmra.mxu2 %v12225_v56  ;;  %v9608_v6 = vor.u32 %v10878_v20, %v9605_v2  ;;  %v10810_v8 = vld [vmem:[%s16596_s1 + $0x1384] sm:$0xf]  ;;  %v9736_v18 = vor.u32 %v10910_v3, %v9733_v63 }
 0x16c   :  { %5626 = vmatpush.bf16.msrb.mxu2 %v9640_v37  ;;  %v9752_v37 = vor.u32 %v10914_v16, %v9749_v30  ;;  %5592 = vmatmul.bf16.vlgmr.msra.gmra.mxu3 %v12223_v55  ;;  %v9480_v19 = vor.u32 %v10846_v59, %v9477_v7  ;;  %v10842_v24 = vld [vmem:[%s16596_s1 + $0x1484] sm:$0xf]  ;;  %v9461_v16 = vld [vmem:[%s16596_s1 + $0x1490] sm:$0xf0]  ;;  %v16604_v59 = vperm.slane %v13577_v57, 1 }
 0x16d   :  { %5640 = vmatpush.bf16.msrb.mxu3 %v9768_v9  ;;  %v9333_v9 = vld [vmem:[%s16596_s1 + $0x1390] sm:$0xf0]  ;;  %v10874_v30 = vld [vmem:[%s16596_s1 + $0x1584] sm:$0xf]  ;;  %v9464_v2 = vor.u32 %v10842_v24, %v9461_v16 }
 0x16e   :  { %5599 = vmatpush.bf16.msrb.mxu0 %v9368_v0  ;;  %v9589_v0 = vld [vmem:[%s16596_s1 + $0x1590] sm:$0xf0]  ;;  %v9336_v20 = vor.u32 %v10810_v8, %v9333_v9  ;;  %v10806_v63 = vld [vmem:[%s16596_s1 + $0x1364] sm:$0xf]  ;;  %v5341_v9 = vpop.f32.mrf.mxu1 }
 0x16f   :  { %5613 = vmatpush.bf16.msrb.mxu1 %v9496_v27  ;;  %v5327_v27 = vpop.f32.mrf.mxu0  ;;  %v9717_v53 = vld [vmem:[%s16596_s1 + $0x1690] sm:$0xf0]  ;;  %v9592_v3 = vor.u32 %v10874_v30, %v9589_v0  ;;  %v10902_v24 = vld [vmem:[%s16596_s1 + $0x1664] sm:$0xf]  ;;  %v5342_v16 = vadd.f32 %v5341_v9, %v16604_v59 }
 0x170   :  { %5627 = vmatpush.bf16.msrb.mxu2 %v9624_v50  ;;  %v10906_v50 = vld [vmem:[%s16596_s1 + $0x1684] sm:$0xf]  ;;  %v13583_v7 = vadd.f32 %v5327_v27, %v13418_v15  ;;  %v9317_v11 = vld [vmem:[%s16596_s1 + $0x1370] sm:$0xf0] }
 0x171   :  { %5641 = vmatpush.bf16.msrb.mxu3 %v9752_v37  ;;  %v13580_v37 = vpop.f32.mrf.mxu3  ;;  %v9720_v15 = vor.u32 %v10906_v50, %v9717_v53  ;;  %v9573_v8 = vld [vmem:[%s16596_s1 + $0x1570] sm:$0xf0]  ;;  %v9320_v30 = vor.u32 %v10806_v63, %v9317_v11  ;;  %v10802_v50 = vld [vmem:[%s16596_s1 + $0x1344] sm:$0xf] }
 0x172   :  { %16627 = vst [vmem:[#allocation21_spill] sm:$0xff] %v13580_v37  ;;  %5600 = vmatpush.bf16.msrb.mxu0 %v9352_v29  ;;  %v10838_v29 = vld [vmem:[%s16596_s1 + $0x1464] sm:$0xf]  ;;  %v9301_v53 = vld [vmem:[%s16596_s1 + $0x1350] sm:$0xf0] }
 0x173   :  { %16628 = vst [vmem:[#allocation22_spill] sm:$0xff] %v13583_v7  ;;  %5614 = vmatpush.bf16.msrb.mxu1 %v9480_v19  ;;  %v9445_v19 = vld [vmem:[%s16596_s1 + $0x1470] sm:$0xf0]  ;;  %v10834_v7 = vld [vmem:[%s16596_s1 + $0x1444] sm:$0xf] }
 0x174   :  { %5628 = vmatpush.bf16.msrb.mxu2 %v9608_v6  ;;  %v10870_v6 = vld [vmem:[%s16596_s1 + $0x1564] sm:$0xf]  ;;  %v9448_v0 = vor.u32 %v10838_v29, %v9445_v19  ;;  %v9429_v11 = vld [vmem:[%s16596_s1 + $0x1450] sm:$0xf0]  ;;  %v9304_v19 = vor.u32 %v10802_v50, %v9301_v53 }
 0x175   :  { %5642 = vmatpush.bf16.msrb.mxu3 %v9736_v18  ;;  %v9701_v18 = vld [vmem:[%s16596_s1 + $0x1670] sm:$0xf0]  ;;  %v9576_v27 = vor.u32 %v10870_v6, %v9573_v8  ;;  %v10898_v63 = vld [vmem:[%s16596_s1 + $0x1644] sm:$0xf]  ;;  %v9432_v8 = vor.u32 %v10834_v7, %v9429_v11 }
 0x176   :  { %5601 = vmatpush.bf16.msrb.mxu0 %v9336_v20  ;;  %v9704_v9 = vor.u32 %v10902_v24, %v9701_v18  ;;  %v10866_v20 = vld [vmem:[%s16596_s1 + $0x1544] sm:$0xf]  ;;  %v9685_v29 = vld [vmem:[%s16596_s1 + $0x1650] sm:$0xf0] }
 0x177   :  { %5615 = vmatpush.bf16.msrb.mxu1 %v9464_v2  ;;  %v9557_v2 = vld [vmem:[%s16596_s1 + $0x1550] sm:$0xf0]  ;;  %v10798_v18 = vld [vmem:[%s16596_s1 + $0x1324] sm:$0xf] }
 0x178   :  { %5629 = vmatpush.bf16.msrb.mxu2 %v9592_v3  ;;  %v5355_v3 = vpop.f32.mrf.mxu2  ;;  %v9560_v24 = vor.u32 %v10866_v20, %v9557_v2  ;;  %v9285_v59 = vld [vmem:[%s16596_s1 + $0x1330] sm:$0xf0]  ;;  %v10830_v37 = vld [vmem:[%s16596_s1 + $0x1424] sm:$0xf] }
 0x179   :  { %5643 = vmatpush.bf16.msrb.mxu3 %v9720_v15  ;;  %v5356_v15 = vadd.f32 %v5355_v3, %v5342_v16  ;;  %v5369_v6 = vpop.f32.mrf.mxu3  ;;  %v9413_v7 = vld [vmem:[%s16596_s1 + $0x1430] sm:$0xf0]  ;;  %v10894_v50 = vld [vmem:[%s16596_s1 + $0x1624] sm:$0xf] }
 0x17a   :  { %5602 = vmatpush.bf16.msrb.mxu0 %v9320_v30  ;;  %v9688_v30 = vor.u32 %v10898_v63, %v9685_v29  ;;  %v9669_v53 = vld [vmem:[%s16596_s1 + $0x1630] sm:$0xf0]  ;;  %v10794_v11 = vld [vmem:[%s16596_s1 + $0x1304] sm:$0xf]  ;;  %v9416_v2 = vor.u32 %v10830_v37, %v9413_v7 }
 0x17b   :  { %5616 = vmatpush.bf16.msrb.mxu1 %v9448_v0  ;;  %v13644_v16 = vadd.f32 %v5369_v6, %v5356_v15  ;;  %v10862_v0 = vld [vmem:[%s16596_s1 + $0x1524] sm:$0xf]  ;;  %v9269_v20 = vld [vmem:[%s16596_s1 + $0x1310] sm:$0xf0]  ;;  %v9672_v15 = vor.u32 %v10894_v50, %v9669_v53 }
 0x17c   :  { %5630 = vmatpush.bf16.msrb.mxu2 %v9576_v27  ;;  %v9541_v27 = vld [vmem:[%s16596_s1 + $0x1530] sm:$0xf0]  ;;  %v10826_v63 = vld [vmem:[%s16596_s1 + $0x1404] sm:$0xf] }
 0x17d   :  { %5644 = vmatpush.bf16.msrb.mxu3 %v9704_v9  ;;  %v9288_v9 = vor.u32 %v10798_v18, %v9285_v59  ;;  %v9544_v3 = vor.u32 %v10862_v0, %v9541_v27  ;;  %v9397_v59 = vld [vmem:[%s16596_s1 + $0x1410] sm:$0xf0]  ;;  %v10858_v29 = vld [vmem:[%s16596_s1 + $0x1504] sm:$0xf]  ;;  %v6955_v0 = vld [vmem:[%s16596_s1 + $0xe8] sm:$0xf] }
 0x17e   :  { %5603 = vmatpush.bf16.msrb.mxu0 %v9304_v19  ;;  %v9525_v19 = vld [vmem:[%s16596_s1 + $0x1510] sm:$0xf0]  ;;  %v10890_v37 = vld [vmem:[%s16596_s1 + $0x1604] sm:$0xf]  ;;  %v10217_v27 = vld [vmem:[%s16596_s1 + $0xf4] sm:$0xf0]  ;;  %v9400_v50 = vor.u32 %v10826_v63, %v9397_v59 }
 0x17f   :  { %5617 = vmatpush.bf16.msrb.mxu1 %v9432_v8  ;;  %v9653_v6 = vld [vmem:[%s16596_s1 + $0x1610] sm:$0xf0]  ;;  %v10950_v8 = vld [vmem:[%s16596_s1 + $0x17e4] sm:$0xf]  ;;  %v9528_v53 = vor.u32 %v10858_v29, %v9525_v19  ;;  %v6956_v52 = vor.u32 %v10217_v27, %v6955_v0  ;;  %v10213_v19 = vld [vmem:[%s16596_s1 + $0xd4] sm:$0xf0] }
 0x180   :  { %5631 = vmatpush.bf16.msrb.mxu2 %v9560_v24  ;;  %v9893_v24 = vld [vmem:[%s16596_s1 + $0x17f0] sm:$0xf0]  ;;  %v10982_v18 = vld [vmem:[%s16596_s1 + $0x18e4] sm:$0xf] }
 0x181   :  { %5645 = vmatpush.bf16.msrb.mxu3 %v9688_v30  ;;  %v9272_v30 = vor.u32 %v10794_v11, %v9269_v20  ;;  %v10021_v7 = vld [vmem:[%s16596_s1 + $0x18f0] sm:$0xf0]  ;;  %v10249_v11 = vld [vmem:[%s16596_s1 + $0x1f4] sm:$0xf0]  ;;  %v9656_v20 = vor.u32 %v10890_v37, %v9653_v6  ;;  %v9896_v13 = vor.u32 %v10950_v8, %v9893_v24  ;;  %v10978_v63 = vld [vmem:[%s16596_s1 + $0x18c4] sm:$0xf]  ;;  %v13727_v37 = vpop.f32.mrf.mxu0  ;;  %v13735_v24 = vpop.f32.mrf.mxu1 }
 0x182   :  { %5604 = vmatpush.bf16.msrb.mxu0 %v9288_v9  ;;  %v7083_v9 = vld [vmem:[%s16596_s1 + $0x1e8] sm:$0xf]  ;;  %v10024_v62 = vor.u32 %v10982_v18, %v10021_v7  ;;  %v10005_v29 = vld [vmem:[%s16596_s1 + $0x18d0] sm:$0xf0]  ;;  %16629 = vst [vmem:[#allocation23_spill] sm:$0xff] %v13727_v37 }
 0x183   :  { %5618 = vmatpush.bf16.msrb.mxu1 %v9416_v2  ;;  %v10946_v2 = vld [vmem:[%s16596_s1 + $0x17c4] sm:$0xf]  ;;  %v7084_v59 = vor.u32 %v10249_v11, %v7083_v9  ;;  %v7067_v6 = vld [vmem:[%s16596_s1 + $0x1c8] sm:$0xf]  ;;  %v10245_v8 = vld [vmem:[%s16596_s1 + $0x1d4] sm:$0xf0] }
 0x184   :  { %5632 = vmatpush.bf16.msrb.mxu2 %v9544_v3  ;;  %v9877_v3 = vld [vmem:[%s16596_s1 + $0x17d0] sm:$0xf0]  ;;  %v10942_v0 = vld [vmem:[%s16596_s1 + $0x17a4] sm:$0xf]  ;;  %v7051_v9 = vld [vmem:[%s16596_s1 + $0x1a8] sm:$0xf] }
 0x185   :  { %5646 = vmatpush.bf16.msrb.mxu3 %v9672_v15  ;;  %v6939_v15 = vld [vmem:[%s16596_s1 + $0xc8] sm:$0xf]  ;;  %v9880_v18 = vor.u32 %v10946_v2, %v9877_v3  ;;  %v9861_v27 = vld [vmem:[%s16596_s1 + $0x17b0] sm:$0xf0]  ;;  %v10241_v11 = vld [vmem:[%s16596_s1 + $0x1b4] sm:$0xf0]  ;;  %v13765_v2 = vpop.f32.mrf.mxu2 }
 0x186   :  { %5605 = vmatpush.bf16.msrb.mxu0 %v9272_v30  ;;  %v10008_v30 = vor.u32 %v10978_v63, %v10005_v29  ;;  %v6940_v7 = vor.u32 %v10213_v19, %v6939_v15  ;;  %v9845_v29 = vld [vmem:[%s16596_s1 + $0x1790] sm:$0xf0]  ;;  %v10970_v15 = vld [vmem:[%s16596_s1 + $0x1884] sm:$0xf]  ;;  %v7052_v19 = vor.u32 %v10241_v11, %v7051_v9 }
 0x187   :  { %5619 = vmatpush.bf16.msrb.mxu1 %v9400_v50  ;;  %v10974_v50 = vld [vmem:[%s16596_s1 + $0x18a4] sm:$0xf]  ;;  %v9829_v11 = vld [vmem:[%s16596_s1 + $0x1770] sm:$0xf0] }
 0x188   :  { %5633 = vmatpush.bf16.msrb.mxu2 %v9528_v53  ;;  %v10209_v53 = vld [vmem:[%s16596_s1 + $0xb4] sm:$0xf0]  ;;  %v10934_v9 = vld [vmem:[%s16596_s1 + $0x1764] sm:$0xf] }
 0x189   :  { %5647 = vmatpush.bf16.msrb.mxu3 %v9656_v20  ;;  %5606 = vmatmul.bf16.vlgmr.msrb.gmra.mxu0 %v12233_v60  ;;  %v9864_v20 = vor.u32 %v10942_v0, %v9861_v27  ;;  %v7035_v0 = vld [vmem:[%s16596_s1 + $0x188] sm:$0xf]  ;;  %v10237_v27 = vld [vmem:[%s16596_s1 + $0x194] sm:$0xf0] }
 0x18a   :  { %5654 = vmatpush.bf16.msra.mxu0 %v9896_v13  ;;  %v7068_v13 = vor.u32 %v10245_v8, %v7067_v6  ;;  %5620 = vmatmul.bf16.vlgmr.msrb.gmra.mxu1 %v12452_v26  ;;  %v13776_v6 = vpop.f32.mrf.mxu3  ;;  %v9973_v8 = vld [vmem:[%s16596_s1 + $0x1890] sm:$0xf0] }
 0x18b   :  { %5668 = vmatpush.bf16.msra.mxu1 %v10024_v62  ;;  %v6923_v62 = vld [vmem:[%s16596_s1 + $0xa8] sm:$0xf]  ;;  %5634 = vmatmul.bf16.vlgmr.msrb.gmra.mxu2 %v12465_v34 }
 0x18c   :  { %5682 = vmatpush.bf16.msra.mxu2 %v6956_v52  ;;  %v9989_v52 = vld [vmem:[%s16596_s1 + $0x18b0] sm:$0xf0]  ;;  %5648 = vmatmul.bf16.vlgmr.msrb.gmra.mxu3 %v12463_v33  ;;  %v6924_v63 = vor.u32 %v10209_v53, %v6923_v62  ;;  %v5397_v53 = vpop.f32.mrf.mxu1 }
 0x18d   :  { %5696 = vmatpush.bf16.msra.mxu3 %v7084_v59  ;;  %v9992_v3 = vor.u32 %v10974_v50, %v9989_v52  ;;  %v10938_v59 = vld [vmem:[%s16596_s1 + $0x1784] sm:$0xf]  ;;  %v9976_v52 = vor.u32 %v10970_v15, %v9973_v8  ;;  %v7019_v15 = vld [vmem:[%s16596_s1 + $0x168] sm:$0xf]  ;;  %v9832_v8 = vor.u32 %v10934_v9, %v9829_v11 }
 0x18e   :  { %5655 = vmatpush.bf16.msra.mxu0 %v9880_v18  ;;  %v6907_v18 = vld [vmem:[%s16596_s1 + $0x88] sm:$0xf] }
 0x18f   :  { %5669 = vmatpush.bf16.msra.mxu1 %v10008_v30  ;;  %v10205_v30 = vld [vmem:[%s16596_s1 + $0x94] sm:$0xf0]  ;;  %v7003_v11 = vld [vmem:[%s16596_s1 + $0x148] sm:$0xf] }
 0x190   :  { %5683 = vmatpush.bf16.msra.mxu2 %v6940_v7  ;;  %v5383_v7 = vpop.f32.mrf.mxu0  ;;  %v6908_v62 = vor.u32 %v10205_v30, %v6907_v18 }
 0x191   :  { %5697 = vmatpush.bf16.msra.mxu3 %v7068_v13  ;;  %v5384_v50 = vadd.f32 %v5383_v7, %v13644_v16  ;;  %v9848_v13 = vor.u32 %v10938_v59, %v9845_v29  ;;  %v7036_v16 = vor.u32 %v10237_v27, %v7035_v0  ;;  %v10201_v29 = vld [vmem:[%s16596_s1 + $0x74] sm:$0xf0]  ;;  %v10930_v7 = vld [vmem:[%s16596_s1 + $0x1744] sm:$0xf]  ;;  %v9813_v0 = vld [vmem:[%s16596_s1 + $0x1750] sm:$0xf0] }
 0x192   :  { %5656 = vmatpush.bf16.msra.mxu0 %v9864_v20  ;;  %v10966_v20 = vld [vmem:[%s16596_s1 + $0x1864] sm:$0xf] }
 0x193   :  { %5670 = vmatpush.bf16.msra.mxu1 %v9992_v3  ;;  %v5398_v59 = vadd.f32 %v5397_v53, %v5384_v50  ;;  %v9957_v3 = vld [vmem:[%s16596_s1 + $0x1870] sm:$0xf0]  ;;  %v10962_v27 = vld [vmem:[%s16596_s1 + $0x1844] sm:$0xf]  ;;  %v10197_v53 = vld [vmem:[%s16596_s1 + $0x54] sm:$0xf0] }
 0x194   :  { %5684 = vmatpush.bf16.msra.mxu2 %v6924_v63  ;;  %v6891_v63 = vld [vmem:[%s16596_s1 + $0x68] sm:$0xf]  ;;  %v9960_v18 = vor.u32 %v10966_v20, %v9957_v3  ;;  %v10229_v20 = vld [vmem:[%s16596_s1 + $0x154] sm:$0xf0]  ;;  %v9816_v3 = vor.u32 %v10930_v7, %v9813_v0 }
 0x195   :  { %5698 = vmatpush.bf16.msra.mxu3 %v7052_v19  ;;  %v10233_v19 = vld [vmem:[%s16596_s1 + $0x174] sm:$0xf0]  ;;  %v6892_v30 = vor.u32 %v10201_v29, %v6891_v63  ;;  %v7004_v7 = vor.u32 %v10229_v20, %v7003_v11  ;;  %v10954_v11 = vld [vmem:[%s16596_s1 + $0x1804] sm:$0xf]  ;;  %v9909_v20 = vld [vmem:[%s16596_s1 + $0x1810] sm:$0xf0] }
 0x196   :  { %5657 = vmatpush.bf16.msra.mxu0 %v9848_v13  ;;  %v7020_v50 = vor.u32 %v10233_v19, %v7019_v15  ;;  %v5411_v13 = vpop.f32.mrf.mxu2  ;;  %v9797_v19 = vld [vmem:[%s16596_s1 + $0x1730] sm:$0xf0]  ;;  %v10193_v0 = vld [vmem:[%s16596_s1 + $0x34] sm:$0xf0] }
 0x197   :  { %5671 = vmatpush.bf16.msra.mxu1 %v9976_v52  ;;  %v9941_v52 = vld [vmem:[%s16596_s1 + $0x1850] sm:$0xf0]  ;;  %v5412_v9 = vadd.f32 %v5411_v13, %v5398_v59  ;;  %v10926_v59 = vld [vmem:[%s16596_s1 + $0x1724] sm:$0xf] }
 0x198   :  { %5685 = vmatpush.bf16.msra.mxu2 %v6908_v62  ;;  %v6875_v62 = vld [vmem:[%s16596_s1 + $0x48] sm:$0xf]  ;;  %v9944_v29 = vor.u32 %v10962_v27, %v9941_v52  ;;  %v9800_v13 = vor.u32 %v10926_v59, %v9797_v19  ;;  %v10922_v52 = vld [vmem:[%s16596_s1 + $0x1704] sm:$0xf]  ;;  %v10221_v59 = vld [vmem:[%s16596_s1 + $0x114] sm:$0xf0] }
 0x199   :  { %5699 = vmatpush.bf16.msra.mxu3 %v7036_v16  ;;  %v5425_v16 = vpop.f32.mrf.mxu3  ;;  %v6876_v15 = vor.u32 %v10197_v53, %v6875_v62  ;;  %v6987_v27 = vld [vmem:[%s16596_s1 + $0x128] sm:$0xf]  ;;  %v9781_v62 = vld [vmem:[%s16596_s1 + $0x1710] sm:$0xf0] }
 0x19a   :  { %5658 = vmatpush.bf16.msra.mxu0 %v9832_v8  ;;  %v13842_v63 = vadd.f32 %v5425_v16, %v5412_v9  ;;  %v10958_v8 = vld [vmem:[%s16596_s1 + $0x1824] sm:$0xf]  ;;  %v6843_v16 = vld [vmem:[%s16596_s1 + $0x8] sm:$0xf] }
 0x19b   :  { %5672 = vmatpush.bf16.msra.mxu1 %v9960_v18  ;;  %v9925_v18 = vld [vmem:[%s16596_s1 + $0x1830] sm:$0xf0]  ;;  %v7211_v19 = vld [vmem:[%s16596_s1 + $0x2e8] sm:$0xf] }
 0x19c   :  { %5686 = vmatpush.bf16.msra.mxu2 %v6892_v30  ;;  %v6859_v30 = vld [vmem:[%s16596_s1 + $0x28] sm:$0xf]  ;;  %v9928_v53 = vor.u32 %v10958_v8, %v9925_v18  ;;  %v10281_v8 = vld [vmem:[%s16596_s1 + $0x2f4] sm:$0xf0]  ;;  %v9784_v18 = vor.u32 %v10922_v52, %v9781_v62 }
 0x19d   :  { %5700 = vmatpush.bf16.msra.mxu3 %v7020_v50  ;;  %v10225_v50 = vld [vmem:[%s16596_s1 + $0x134] sm:$0xf0]  ;;  %v6860_v9 = vor.u32 %v10193_v0, %v6859_v30  ;;  %v7467_v0 = vld [vmem:[%s16596_s1 + $0x4e8] sm:$0xf]  ;;  %v7212_v22 = vor.u32 %v10281_v8, %v7211_v19  ;;  %v13942_v8 = vpop.f32.mrf.mxu1 }
 0x19e   :  { %5659 = vmatpush.bf16.msra.mxu0 %v9816_v3  ;;  %v6988_v3 = vor.u32 %v10225_v50, %v6987_v27  ;;  %v10313_v30 = vld [vmem:[%s16596_s1 + $0x3f4] sm:$0xf0]  ;;  %v9912_v50 = vor.u32 %v10954_v11, %v9909_v20  ;;  %v7323_v11 = vld [vmem:[%s16596_s1 + $0x3c8] sm:$0xf] }
 0x19f   :  { %5673 = vmatpush.bf16.msra.mxu1 %v9944_v29  ;;  %v10189_v29 = vld [vmem:[%s16596_s1 + $0x14] sm:$0xf0] }
 0x1a0   :  { %5687 = vmatpush.bf16.msra.mxu2 %v6876_v15  ;;  %v6971_v15 = vld [vmem:[%s16596_s1 + $0x108] sm:$0xf]  ;;  %v10345_v27 = vld [vmem:[%s16596_s1 + $0x4f4] sm:$0xf0]  ;;  %v6844_v37 = vor.u32 %v10189_v29, %v6843_v16 }
 0x1a1   :  { %5701 = vmatpush.bf16.msra.mxu3 %v7004_v7  ;;  %v7339_v7 = vld [vmem:[%s16596_s1 + $0x3e8] sm:$0xf]  ;;  %v10377_v52 = vld [vmem:[%s16596_s1 + $0x5f4] sm:$0xf0]  ;;  %v6972_v62 = vor.u32 %v10221_v59, %v6971_v15  ;;  %v7468_v28 = vor.u32 %v10345_v27, %v7467_v0  ;;  %v13934_v15 = vpop.f32.mrf.mxu0 }
 0x1a2   :  { %5660 = vmatpush.bf16.msra.mxu0 %v9800_v13  ;;  %v7595_v13 = vld [vmem:[%s16596_s1 + $0x5e8] sm:$0xf]  ;;  %v7340_v12 = vor.u32 %v10313_v30, %v7339_v7  ;;  %v10309_v16 = vld [vmem:[%s16596_s1 + $0x3d4] sm:$0xf0] }
 0x1a3   :  { %5674 = vmatpush.bf16.msra.mxu1 %v9928_v53  ;;  %v7195_v53 = vld [vmem:[%s16596_s1 + $0x2c8] sm:$0xf]  ;;  %v7596_v20 = vor.u32 %v10377_v52, %v7595_v13  ;;  %v10341_v29 = vld [vmem:[%s16596_s1 + $0x4d4] sm:$0xf0] }
 0x1a4   :  { %5688 = vmatpush.bf16.msra.mxu2 %v6860_v9  ;;  %v10277_v9 = vld [vmem:[%s16596_s1 + $0x2d4] sm:$0xf0]  ;;  %v7579_v59 = vld [vmem:[%s16596_s1 + $0x5c8] sm:$0xf] }
 0x1a5   :  { %5702 = vmatpush.bf16.msra.mxu3 %v6988_v3  ;;  %v7451_v3 = vld [vmem:[%s16596_s1 + $0x4c8] sm:$0xf]  ;;  %v10373_v19 = vld [vmem:[%s16596_s1 + $0x5d4] sm:$0xf0]  ;;  %v7196_v7 = vor.u32 %v10277_v9, %v7195_v53 }
 0x1a6   :  { %5661 = vmatpush.bf16.msra.mxu0 %v9784_v18  ;;  %v7324_v18 = vor.u32 %v10309_v16, %v7323_v11  ;;  %v7452_v30 = vor.u32 %v10341_v29, %v7451_v3  ;;  %v10273_v0 = vld [vmem:[%s16596_s1 + $0x2b4] sm:$0xf0]  ;;  %v7307_v27 = vld [vmem:[%s16596_s1 + $0x3a8] sm:$0xf]  ;;  %v13981_v3 = vpop.f32.mrf.mxu2 }
 0x1a7   :  { %5675 = vmatpush.bf16.msra.mxu1 %v9912_v50  ;;  %v10337_v50 = vld [vmem:[%s16596_s1 + $0x4b4] sm:$0xf0]  ;;  %v7563_v13 = vld [vmem:[%s16596_s1 + $0x5a8] sm:$0xf] }
 0x1a8   :  { %5689 = vmatpush.bf16.msra.mxu2 %v6844_v37  ;;  %v7179_v37 = vld [vmem:[%s16596_s1 + $0x2a8] sm:$0xf]  ;;  %v10369_v52 = vld [vmem:[%s16596_s1 + $0x5b4] sm:$0xf0] }
 0x1a9   :  { %5703 = vmatpush.bf16.msra.mxu3 %v6972_v62  ;;  %5662 = vmatmul.bf16.vlgmr.msra.gmra.mxu0 %v12475_v48  ;;  %v7180_v62 = vor.u32 %v10273_v0, %v7179_v37  ;;  %v7163_v11 = vld [vmem:[%s16596_s1 + $0x288] sm:$0xf]  ;;  %v7564_v29 = vor.u32 %v10369_v52, %v7563_v13  ;;  %v10365_v0 = vld [vmem:[%s16596_s1 + $0x594] sm:$0xf0] }
 0x1aa   :  { %5710 = vmatpush.bf16.msrb.mxu0 %v7212_v22  ;;  %v7580_v22 = vor.u32 %v10373_v19, %v7579_v59  ;;  %5676 = vmatmul.bf16.vlgmr.msra.gmra.mxu1 %v12671_v49  ;;  %v7291_v16 = vld [vmem:[%s16596_s1 + $0x388] sm:$0xf]  ;;  %v10301_v59 = vld [vmem:[%s16596_s1 + $0x394] sm:$0xf0] }
 0x1ab   :  { %5724 = vmatpush.bf16.msrb.mxu1 %v7340_v12  ;;  %v7435_v12 = vld [vmem:[%s16596_s1 + $0x4a8] sm:$0xf]  ;;  %5690 = vmatmul.bf16.vlgmr.msra.gmra.mxu2 %v11306_v58  ;;  %v10265_v52 = vld [vmem:[%s16596_s1 + $0x274] sm:$0xf0] }
 0x1ac   :  { %5738 = vmatpush.bf16.msrb.mxu2 %v7468_v28  ;;  %v10305_v28 = vld [vmem:[%s16596_s1 + $0x3b4] sm:$0xf0]  ;;  %5704 = vmatmul.bf16.vlgmr.msra.gmra.mxu3 %v11342_v10  ;;  %v7436_v9 = vor.u32 %v10337_v50, %v7435_v12  ;;  %v7419_v19 = vld [vmem:[%s16596_s1 + $0x488] sm:$0xf]  ;;  %v7292_v12 = vor.u32 %v10301_v59, %v7291_v16 }
 0x1ad   :  { %5752 = vmatpush.bf16.msrb.mxu3 %v7596_v20  ;;  %v7308_v53 = vor.u32 %v10305_v28, %v7307_v27  ;;  %v10269_v20 = vld [vmem:[%s16596_s1 + $0x294] sm:$0xf0]  ;;  %v7547_v37 = vld [vmem:[%s16596_s1 + $0x588] sm:$0xf]  ;;  %v5453_v28 = vpop.f32.mrf.mxu1 }
 0x1ae   :  { %5711 = vmatpush.bf16.msrb.mxu0 %v7196_v7  ;;  %v10333_v7 = vld [vmem:[%s16596_s1 + $0x494] sm:$0xf0]  ;;  %v7147_v13 = vld [vmem:[%s16596_s1 + $0x268] sm:$0xf] }
 0x1af   :  { %5725 = vmatpush.bf16.msrb.mxu1 %v7324_v18  ;;  %v13992_v18 = vpop.f32.mrf.mxu3  ;;  %v7420_v50 = vor.u32 %v10333_v7, %v7419_v19  ;;  %v7531_v16 = vld [vmem:[%s16596_s1 + $0x568] sm:$0xf]  ;;  %v7148_v59 = vor.u32 %v10265_v52, %v7147_v13 }
 0x1b0   :  { %5739 = vmatpush.bf16.msrb.mxu2 %v7452_v30  ;;  %16630 = vst [vmem:[#allocation24_spill] sm:$0xff] %v13992_v18  ;;  %v5439_v30 = vpop.f32.mrf.mxu0 }
 0x1b1   :  { %5753 = vmatpush.bf16.msrb.mxu3 %v7580_v22  ;;  %v5440_v27 = vadd.f32 %v5439_v30, %v13842_v63  ;;  %v7164_v22 = vor.u32 %v10269_v20, %v7163_v11  ;;  %v7548_v63 = vor.u32 %v10365_v0, %v7547_v37  ;;  %v10329_v20 = vld [vmem:[%s16596_s1 + $0x474] sm:$0xf0]  ;;  %v7131_v30 = vld [vmem:[%s16596_s1 + $0x248] sm:$0xf] }
 0x1b2   :  { %5712 = vmatpush.bf16.msrb.mxu0 %v7180_v62  ;;  %v7275_v62 = vld [vmem:[%s16596_s1 + $0x368] sm:$0xf]  ;;  %v10261_v37 = vld [vmem:[%s16596_s1 + $0x254] sm:$0xf0] }
 0x1b3   :  { %5726 = vmatpush.bf16.msrb.mxu1 %v7308_v53  ;;  %v5454_v11 = vadd.f32 %v5453_v28, %v5440_v27  ;;  %v10297_v53 = vld [vmem:[%s16596_s1 + $0x374] sm:$0xf0]  ;;  %v7259_v0 = vld [vmem:[%s16596_s1 + $0x348] sm:$0xf] }
 0x1b4   :  { %5740 = vmatpush.bf16.msrb.mxu2 %v7436_v9  ;;  %v7403_v9 = vld [vmem:[%s16596_s1 + $0x468] sm:$0xf]  ;;  %v7276_v19 = vor.u32 %v10297_v53, %v7275_v62  ;;  %v10293_v28 = vld [vmem:[%s16596_s1 + $0x354] sm:$0xf0]  ;;  %v7132_v53 = vor.u32 %v10261_v37, %v7131_v30 }
 0x1b5   :  { %5754 = vmatpush.bf16.msrb.mxu3 %v7564_v29  ;;  %v10361_v29 = vld [vmem:[%s16596_s1 + $0x574] sm:$0xf0]  ;;  %v7404_v7 = vor.u32 %v10329_v20, %v7403_v9  ;;  %v7515_v62 = vld [vmem:[%s16596_s1 + $0x548] sm:$0xf]  ;;  %v7260_v20 = vor.u32 %v10293_v28, %v7259_v0 }
 0x1b6   :  { %5713 = vmatpush.bf16.msrb.mxu0 %v7164_v22  ;;  %v7532_v27 = vor.u32 %v10361_v29, %v7531_v16  ;;  %v5467_v22 = vpop.f32.mrf.mxu2  ;;  %v10257_v29 = vld [vmem:[%s16596_s1 + $0x234] sm:$0xf0]  ;;  %v7499_v37 = vld [vmem:[%s16596_s1 + $0x528] sm:$0xf] }
 0x1b7   :  { %5727 = vmatpush.bf16.msrb.mxu1 %v7292_v12  ;;  %v7387_v12 = vld [vmem:[%s16596_s1 + $0x448] sm:$0xf]  ;;  %v5468_v13 = vadd.f32 %v5467_v22, %v5454_v11  ;;  %v5481_v52 = vpop.f32.mrf.mxu3  ;;  %v10321_v30 = vld [vmem:[%s16596_s1 + $0x434] sm:$0xf0] }
 0x1b8   :  { %5741 = vmatpush.bf16.msrb.mxu2 %v7420_v50  ;;  %v10325_v50 = vld [vmem:[%s16596_s1 + $0x454] sm:$0xf0]  ;;  %v7115_v11 = vld [vmem:[%s16596_s1 + $0x228] sm:$0xf] }
 0x1b9   :  { %5755 = vmatpush.bf16.msrb.mxu3 %v7548_v63  ;;  %v10357_v63 = vld [vmem:[%s16596_s1 + $0x554] sm:$0xf0]  ;;  %v14049_v9 = vadd.f32 %v5481_v52, %v5468_v13  ;;  %v7388_v16 = vor.u32 %v10325_v50, %v7387_v12  ;;  %v7243_v22 = vld [vmem:[%s16596_s1 + $0x328] sm:$0xf] }
 0x1ba   :  { %5714 = vmatpush.bf16.msrb.mxu0 %v7148_v59  ;;  %v7516_v59 = vor.u32 %v10357_v63, %v7515_v62  ;;  %v10353_v0 = vld [vmem:[%s16596_s1 + $0x534] sm:$0xf0]  ;;  %v7099_v28 = vld [vmem:[%s16596_s1 + $0x208] sm:$0xf] }
 0x1bb   :  { %5728 = vmatpush.bf16.msrb.mxu1 %v7276_v19  ;;  %v10289_v19 = vld [vmem:[%s16596_s1 + $0x334] sm:$0xf0]  ;;  %v7227_v52 = vld [vmem:[%s16596_s1 + $0x308] sm:$0xf] }
 0x1bc   :  { %5742 = vmatpush.bf16.msrb.mxu2 %v7404_v7  ;;  %v7371_v7 = vld [vmem:[%s16596_s1 + $0x428] sm:$0xf]  ;;  %v10253_v12 = vld [vmem:[%s16596_s1 + $0x214] sm:$0xf0]  ;;  %v7244_v50 = vor.u32 %v10289_v19, %v7243_v22 }
 0x1bd   :  { %5756 = vmatpush.bf16.msrb.mxu3 %v7532_v27  ;;  %v7116_v27 = vor.u32 %v10257_v29, %v7115_v11  ;;  %v7372_v13 = vor.u32 %v10321_v30, %v7371_v7  ;;  %v10285_v62 = vld [vmem:[%s16596_s1 + $0x314] sm:$0xf0]  ;;  %v7355_v63 = vld [vmem:[%s16596_s1 + $0x408] sm:$0xf]  ;;  %v7100_v19 = vor.u32 %v10253_v12, %v7099_v28 }
 0x1be   :  { %5715 = vmatpush.bf16.msrb.mxu0 %v7132_v53  ;;  %v7500_v53 = vor.u32 %v10353_v0, %v7499_v37  ;;  %v10349_v11 = vld [vmem:[%s16596_s1 + $0x514] sm:$0xf0]  ;;  %v7723_v29 = vld [vmem:[%s16596_s1 + $0x6e8] sm:$0xf]  ;;  %v7228_v0 = vor.u32 %v10285_v62, %v7227_v52 }
 0x1bf   :  { %5729 = vmatpush.bf16.msrb.mxu1 %v7260_v20  ;;  %v10317_v20 = vld [vmem:[%s16596_s1 + $0x414] sm:$0xf0]  ;;  %v7979_v30 = vld [vmem:[%s16596_s1 + $0x8e8] sm:$0xf] }
 0x1c0   :  { %5743 = vmatpush.bf16.msrb.mxu2 %v7388_v16  ;;  %v7483_v16 = vld [vmem:[%s16596_s1 + $0x508] sm:$0xf]  ;;  %v10409_v22 = vld [vmem:[%s16596_s1 + $0x6f4] sm:$0xf0]  ;;  %v7356_v23 = vor.u32 %v10317_v20, %v7355_v63 }
 0x1c1   :  { %5757 = vmatpush.bf16.msrb.mxu3 %v7516_v59  ;;  %v7851_v59 = vld [vmem:[%s16596_s1 + $0x7e8] sm:$0xf]  ;;  %v10441_v7 = vld [vmem:[%s16596_s1 + $0x7f4] sm:$0xf0]  ;;  %v7484_v12 = vor.u32 %v10349_v11, %v7483_v16  ;;  %v7724_v42 = vor.u32 %v10409_v22, %v7723_v29  ;;  %v14141_v16 = vpop.f32.mrf.mxu0  ;;  %v14149_v22 = vpop.f32.mrf.mxu1 }
 0x1c2   :  { %5716 = vmatpush.bf16.msrb.mxu0 %v7116_v27  ;;  %v10473_v37 = vld [vmem:[%s16596_s1 + $0x8f4] sm:$0xf0]  ;;  %v8107_v27 = vld [vmem:[%s16596_s1 + $0x9e8] sm:$0xf]  ;;  %v7852_v18 = vor.u32 %v10441_v7, %v7851_v59  ;;  %16631 = vst [vmem:[#allocation25_spill] sm:$0xff] %v14141_v16 }
 0x1c3   :  { %5730 = vmatpush.bf16.msrb.mxu1 %v7244_v50  ;;  %v10505_v28 = vld [vmem:[%s16596_s1 + $0x9f4] sm:$0xf0]  ;;  %v7980_v25 = vor.u32 %v10473_v37, %v7979_v30  ;;  %v7707_v50 = vld [vmem:[%s16596_s1 + $0x6c8] sm:$0xf]  ;;  %16632 = vst [vmem:[#allocation26_spill] sm:$0xff] %v14149_v22 }
 0x1c4   :  { %5744 = vmatpush.bf16.msrb.mxu2 %v7372_v13  ;;  %v10405_v13 = vld [vmem:[%s16596_s1 + $0x6d4] sm:$0xf0]  ;;  %v7835_v52 = vld [vmem:[%s16596_s1 + $0x7c8] sm:$0xf]  ;;  %v8108_v62 = vor.u32 %v10505_v28, %v8107_v27 }
 0x1c5   :  { %5758 = vmatpush.bf16.msrb.mxu3 %v7500_v53  ;;  %v10437_v63 = vld [vmem:[%s16596_s1 + $0x7d4] sm:$0xf0]  ;;  %v7963_v53 = vld [vmem:[%s16596_s1 + $0x8c8] sm:$0xf]  ;;  %v7708_v59 = vor.u32 %v10405_v13, %v7707_v50 }
 0x1c6   :  { %5717 = vmatpush.bf16.msrb.mxu0 %v7100_v19  ;;  %v10469_v20 = vld [vmem:[%s16596_s1 + $0x8d4] sm:$0xf0]  ;;  %v8091_v11 = vld [vmem:[%s16596_s1 + $0x9c8] sm:$0xf]  ;;  %v7836_v19 = vor.u32 %v10437_v63, %v7835_v52 }
 0x1c7   :  { %5731 = vmatpush.bf16.msrb.mxu1 %v7228_v0  ;;  %v10501_v29 = vld [vmem:[%s16596_s1 + $0x9d4] sm:$0xf0]  ;;  %v7964_v7 = vor.u32 %v10469_v20, %v7963_v53  ;;  %v7819_v37 = vld [vmem:[%s16596_s1 + $0x7a8] sm:$0xf]  ;;  %v14188_v53 = vpop.f32.mrf.mxu2 }
 0x1c8   :  { %5745 = vmatpush.bf16.msrb.mxu2 %v7356_v23  ;;  %v7691_v23 = vld [vmem:[%s16596_s1 + $0x6a8] sm:$0xf]  ;;  %v10401_v30 = vld [vmem:[%s16596_s1 + $0x6b4] sm:$0xf0]  ;;  %16633 = vst [vmem:[#allocation27_spill] sm:$0xff] %v14188_v53 }
 0x1c9   :  { %5759 = vmatpush.bf16.msrb.mxu3 %v7484_v12  ;;  %5718 = vmatmul.bf16.vlgmr.msrb.gmra.mxu0 %v11320_v1  ;;  %v10465_v0 = vld [vmem:[%s16596_s1 + $0x8b4] sm:$0xf0]  ;;  %v8075_v27 = vld [vmem:[%s16596_s1 + $0x9a8] sm:$0xf]  ;;  %v7692_v12 = vor.u32 %v10401_v30, %v7691_v23 }
 0x1ca   :  { %5766 = vmatpush.bf16.msra.mxu0 %v7724_v42  ;;  %v8092_v42 = vor.u32 %v10501_v29, %v8091_v11  ;;  %5732 = vmatmul.bf16.vlgmr.msrb.gmra.mxu1 %v11356_v17  ;;  %v10497_v28 = vld [vmem:[%s16596_s1 + $0x9b4] sm:$0xf0]  ;;  %v7675_v52 = vld [vmem:[%s16596_s1 + $0x688] sm:$0xf] }
 0x1cb   :  { %5780 = vmatpush.bf16.msra.mxu1 %v7852_v18  ;;  %v7947_v18 = vld [vmem:[%s16596_s1 + $0x8a8] sm:$0xf]  ;;  %5746 = vmatmul.bf16.vlgmr.msrb.gmra.mxu2 %v11528_v39  ;;  %v8076_v20 = vor.u32 %v10497_v28, %v8075_v27  ;;  %v10429_v11 = vld [vmem:[%s16596_s1 + $0x794] sm:$0xf0] }
 0x1cc   :  { %5794 = vmatpush.bf16.msra.mxu2 %v7980_v25  ;;  %v10433_v25 = vld [vmem:[%s16596_s1 + $0x7b4] sm:$0xf0]  ;;  %5760 = vmatmul.bf16.vlgmr.msrb.gmra.mxu3 %v11541_v44  ;;  %v7948_v13 = vor.u32 %v10465_v0, %v7947_v18  ;;  %v7803_v63 = vld [vmem:[%s16596_s1 + $0x788] sm:$0xf] }
 0x1cd   :  { %5808 = vmatpush.bf16.msra.mxu3 %v8108_v62  ;;  %v7820_v50 = vor.u32 %v10433_v25, %v7819_v37  ;;  %v10397_v62 = vld [vmem:[%s16596_s1 + $0x694] sm:$0xf0]  ;;  %v7931_v29 = vld [vmem:[%s16596_s1 + $0x888] sm:$0xf]  ;;  %v5509_v25 = vpop.f32.mrf.mxu1  ;;  %v7804_v18 = vor.u32 %v10429_v11, %v7803_v63 }
 0x1ce   :  { %5767 = vmatpush.bf16.msra.mxu0 %v7708_v59  ;;  %v10461_v59 = vld [vmem:[%s16596_s1 + $0x894] sm:$0xf0]  ;;  %v8059_v23 = vld [vmem:[%s16596_s1 + $0x988] sm:$0xf] }
 0x1cf   :  { %5781 = vmatpush.bf16.msra.mxu1 %v7836_v19  ;;  %v14199_v19 = vpop.f32.mrf.mxu3  ;;  %v10493_v30 = vld [vmem:[%s16596_s1 + $0x994] sm:$0xf0]  ;;  %v7932_v0 = vor.u32 %v10461_v59, %v7931_v29  ;;  %v7659_v27 = vld [vmem:[%s16596_s1 + $0x668] sm:$0xf] }
 0x1d0   :  { %5795 = vmatpush.bf16.msra.mxu2 %v7964_v7  ;;  %16634 = vst [vmem:[#allocation28_spill] sm:$0xff] %v14199_v19  ;;  %v5495_v7 = vpop.f32.mrf.mxu0  ;;  %v10393_v28 = vld [vmem:[%s16596_s1 + $0x674] sm:$0xf0]  ;;  %v8043_v63 = vld [vmem:[%s16596_s1 + $0x968] sm:$0xf] }
 0x1d1   :  { %5809 = vmatpush.bf16.msra.mxu3 %v8092_v42  ;;  %v5496_v37 = vadd.f32 %v5495_v7, %v14049_v9  ;;  %v7676_v42 = vor.u32 %v10397_v62, %v7675_v52  ;;  %v8060_v9 = vor.u32 %v10493_v30, %v8059_v23  ;;  %v10457_v62 = vld [vmem:[%s16596_s1 + $0x874] sm:$0xf0]  ;;  %v7660_v11 = vor.u32 %v10393_v28, %v7659_v27  ;;  %v7643_v7 = vld [vmem:[%s16596_s1 + $0x648] sm:$0xf] }
 0x1d2   :  { %5768 = vmatpush.bf16.msra.mxu0 %v7692_v12  ;;  %v7787_v12 = vld [vmem:[%s16596_s1 + $0x768] sm:$0xf]  ;;  %v10389_v23 = vld [vmem:[%s16596_s1 + $0x654] sm:$0xf0] }
 0x1d3   :  { %5782 = vmatpush.bf16.msra.mxu1 %v7820_v50  ;;  %v5510_v52 = vadd.f32 %v5509_v25, %v5496_v37  ;;  %v10425_v50 = vld [vmem:[%s16596_s1 + $0x774] sm:$0xf0]  ;;  %v7771_v30 = vld [vmem:[%s16596_s1 + $0x748] sm:$0xf] }
 0x1d4   :  { %5796 = vmatpush.bf16.msra.mxu2 %v7948_v13  ;;  %v7915_v13 = vld [vmem:[%s16596_s1 + $0x868] sm:$0xf]  ;;  %v7788_v29 = vor.u32 %v10425_v50, %v7787_v12  ;;  %v10421_v25 = vld [vmem:[%s16596_s1 + $0x754] sm:$0xf0]  ;;  %v7644_v50 = vor.u32 %v10389_v23, %v7643_v7 }
 0x1d5   :  { %5810 = vmatpush.bf16.msra.mxu3 %v8076_v20  ;;  %v10489_v20 = vld [vmem:[%s16596_s1 + $0x974] sm:$0xf0]  ;;  %v7916_v59 = vor.u32 %v10457_v62, %v7915_v13  ;;  %v8027_v12 = vld [vmem:[%s16596_s1 + $0x948] sm:$0xf]  ;;  %v7772_v62 = vor.u32 %v10421_v25, %v7771_v30 }
 0x1d6   :  { %5769 = vmatpush.bf16.msra.mxu0 %v7676_v42  ;;  %v8044_v37 = vor.u32 %v10489_v20, %v8043_v63  ;;  %v5523_v42 = vpop.f32.mrf.mxu2  ;;  %v10385_v20 = vld [vmem:[%s16596_s1 + $0x634] sm:$0xf0]  ;;  %v8011_v23 = vld [vmem:[%s16596_s1 + $0x928] sm:$0xf] }
 0x1d7   :  { %5783 = vmatpush.bf16.msra.mxu1 %v7804_v18  ;;  %v7899_v18 = vld [vmem:[%s16596_s1 + $0x848] sm:$0xf]  ;;  %v5524_v27 = vadd.f32 %v5523_v42, %v5510_v52  ;;  %v5537_v28 = vpop.f32.mrf.mxu3  ;;  %v10449_v7 = vld [vmem:[%s16596_s1 + $0x834] sm:$0xf0] }
 0x1d8   :  { %5797 = vmatpush.bf16.msra.mxu2 %v7932_v0  ;;  %v10453_v0 = vld [vmem:[%s16596_s1 + $0x854] sm:$0xf0]  ;;  %v7627_v52 = vld [vmem:[%s16596_s1 + $0x628] sm:$0xf] }
 0x1d9   :  { %5811 = vmatpush.bf16.msra.mxu3 %v8060_v9  ;;  %v10485_v9 = vld [vmem:[%s16596_s1 + $0x954] sm:$0xf0]  ;;  %v14256_v13 = vadd.f32 %v5537_v28, %v5524_v27  ;;  %v7900_v63 = vor.u32 %v10453_v0, %v7899_v18  ;;  %v7755_v42 = vld [vmem:[%s16596_s1 + $0x728] sm:$0xf] }
 0x1da   :  { %5770 = vmatpush.bf16.msra.mxu0 %v7660_v11  ;;  %v8028_v11 = vor.u32 %v10485_v9, %v8027_v12  ;;  %v10481_v30 = vld [vmem:[%s16596_s1 + $0x934] sm:$0xf0]  ;;  %v7611_v25 = vld [vmem:[%s16596_s1 + $0x608] sm:$0xf] }
 0x1db   :  { %5784 = vmatpush.bf16.msra.mxu1 %v7788_v29  ;;  %v10417_v29 = vld [vmem:[%s16596_s1 + $0x734] sm:$0xf0]  ;;  %v7739_v28 = vld [vmem:[%s16596_s1 + $0x708] sm:$0xf] }
 0x1dc   :  { %5798 = vmatpush.bf16.msra.mxu2 %v7916_v59  ;;  %v7883_v59 = vld [vmem:[%s16596_s1 + $0x828] sm:$0xf]  ;;  %v10381_v18 = vld [vmem:[%s16596_s1 + $0x614] sm:$0xf0]  ;;  %v7756_v0 = vor.u32 %v10417_v29, %v7755_v42 }
 0x1dd   :  { %5812 = vmatpush.bf16.msra.mxu3 %v8044_v37  ;;  %v7628_v37 = vor.u32 %v10385_v20, %v7627_v52  ;;  %v7884_v27 = vor.u32 %v10449_v7, %v7883_v59  ;;  %v10413_v12 = vld [vmem:[%s16596_s1 + $0x714] sm:$0xf0]  ;;  %v7867_v9 = vld [vmem:[%s16596_s1 + $0x808] sm:$0xf]  ;;  %v7612_v29 = vor.u32 %v10381_v18, %v7611_v25 }
 0x1de   :  { %5771 = vmatpush.bf16.msra.mxu0 %v7644_v50  ;;  %v8012_v50 = vor.u32 %v10481_v30, %v8011_v23  ;;  %v10477_v52 = vld [vmem:[%s16596_s1 + $0x914] sm:$0xf0]  ;;  %v8235_v20 = vld [vmem:[%s16596_s1 + $0xae8] sm:$0xf]  ;;  %v7740_v30 = vor.u32 %v10413_v12, %v7739_v28 }
 0x1df   :  { %5785 = vmatpush.bf16.msra.mxu1 %v7772_v62  ;;  %v10445_v62 = vld [vmem:[%s16596_s1 + $0x814] sm:$0xf0]  ;;  %v8491_v7 = vld [vmem:[%s16596_s1 + $0xce8] sm:$0xf] }
 0x1e0   :  { %5799 = vmatpush.bf16.msra.mxu2 %v7900_v63  ;;  %v7995_v63 = vld [vmem:[%s16596_s1 + $0x908] sm:$0xf]  ;;  %v10537_v42 = vld [vmem:[%s16596_s1 + $0xaf4] sm:$0xf0]  ;;  %v7868_v19 = vor.u32 %v10445_v62, %v7867_v9 }
 0x1e1   :  { %5813 = vmatpush.bf16.msra.mxu3 %v8028_v11  ;;  %v8363_v11 = vld [vmem:[%s16596_s1 + $0xbe8] sm:$0xf]  ;;  %v10569_v59 = vld [vmem:[%s16596_s1 + $0xbf4] sm:$0xf0]  ;;  %v7996_v18 = vor.u32 %v10477_v52, %v7995_v63  ;;  %v8236_v53 = vor.u32 %v10537_v42, %v8235_v20  ;;  %v14348_v63 = vpop.f32.mrf.mxu0  ;;  %v14356_v42 = vpop.f32.mrf.mxu1 }
 0x1e2   :  { %5772 = vmatpush.bf16.msra.mxu0 %v7628_v37  ;;  %v10601_v23 = vld [vmem:[%s16596_s1 + $0xcf4] sm:$0xf0]  ;;  %v8619_v37 = vld [vmem:[%s16596_s1 + $0xde8] sm:$0xf]  ;;  %v8364_v22 = vor.u32 %v10569_v59, %v8363_v11  ;;  %16635 = vst [vmem:[#allocation29_spill] sm:$0xff] %v14348_v63 }
 0x1e3   :  { %5786 = vmatpush.bf16.msra.mxu1 %v7756_v0  ;;  %v10633_v25 = vld [vmem:[%s16596_s1 + $0xdf4] sm:$0xf0]  ;;  %v8492_v16 = vor.u32 %v10601_v23, %v8491_v7  ;;  %v8219_v0 = vld [vmem:[%s16596_s1 + $0xac8] sm:$0xf]  ;;  %16636 = vst [vmem:[#allocation30_spill] sm:$0xff] %v14356_v42 }
 0x1e4   :  { %5800 = vmatpush.bf16.msra.mxu2 %v7884_v27  ;;  %v10533_v27 = vld [vmem:[%s16596_s1 + $0xad4] sm:$0xf0]  ;;  %v8347_v28 = vld [vmem:[%s16596_s1 + $0xbc8] sm:$0xf]  ;;  %v8620_v12 = vor.u32 %v10633_v25, %v8619_v37 }
 0x1e5   :  { %5814 = vmatpush.bf16.msra.mxu3 %v8012_v50  ;;  %v10565_v9 = vld [vmem:[%s16596_s1 + $0xbd4] sm:$0xf0]  ;;  %v8475_v50 = vld [vmem:[%s16596_s1 + $0xcc8] sm:$0xf]  ;;  %v8220_v11 = vor.u32 %v10533_v27, %v8219_v0 }
 0x1e6   :  { %5773 = vmatpush.bf16.msra.mxu0 %v7612_v29  ;;  %v10597_v62 = vld [vmem:[%s16596_s1 + $0xcd4] sm:$0xf0]  ;;  %v8603_v52 = vld [vmem:[%s16596_s1 + $0xdc8] sm:$0xf]  ;;  %v8348_v29 = vor.u32 %v10565_v9, %v8347_v28 }
 0x1e7   :  { %5787 = vmatpush.bf16.msra.mxu1 %v7740_v30  ;;  %v10629_v20 = vld [vmem:[%s16596_s1 + $0xdd4] sm:$0xf0]  ;;  %v8476_v59 = vor.u32 %v10597_v62, %v8475_v50  ;;  %v8331_v23 = vld [vmem:[%s16596_s1 + $0xba8] sm:$0xf]  ;;  %v14395_v50 = vpop.f32.mrf.mxu2 }
 0x1e8   :  { %5801 = vmatpush.bf16.msra.mxu2 %v7868_v19  ;;  %v8203_v19 = vld [vmem:[%s16596_s1 + $0xaa8] sm:$0xf]  ;;  %v10529_v7 = vld [vmem:[%s16596_s1 + $0xab4] sm:$0xf0]  ;;  %16637 = vst [vmem:[#allocation31_spill] sm:$0xff] %v14395_v50 }
 0x1e9   :  { %5815 = vmatpush.bf16.msra.mxu3 %v7996_v18  ;;  %5774 = vmatmul.bf16.vlgmr.msra.gmra.mxu0 %v11539_v43  ;;  %v10593_v30 = vld [vmem:[%s16596_s1 + $0xcb4] sm:$0xf0]  ;;  %v8587_v37 = vld [vmem:[%s16596_s1 + $0xda8] sm:$0xf]  ;;  %v8204_v18 = vor.u32 %v10529_v7, %v8203_v19 }
 0x1ea   :  { %5822 = vmatpush.bf16.msrb.mxu0 %v8236_v53  ;;  %v8604_v53 = vor.u32 %v10629_v20, %v8603_v52  ;;  %5788 = vmatmul.bf16.vlgmr.msra.gmra.mxu1 %v11549_v47  ;;  %v10625_v25 = vld [vmem:[%s16596_s1 + $0xdb4] sm:$0xf0]  ;;  %v8187_v28 = vld [vmem:[%s16596_s1 + $0xa88] sm:$0xf] }
 0x1eb   :  { %5836 = vmatpush.bf16.msrb.mxu1 %v8364_v22  ;;  %v8459_v22 = vld [vmem:[%s16596_s1 + $0xca8] sm:$0xf]  ;;  %5802 = vmatmul.bf16.vlgmr.msra.gmra.mxu2 %v11756_v31  ;;  %v8588_v62 = vor.u32 %v10625_v25, %v8587_v37  ;;  %v10557_v52 = vld [vmem:[%s16596_s1 + $0xb94] sm:$0xf0] }
 0x1ec   :  { %5850 = vmatpush.bf16.msrb.mxu2 %v8492_v16  ;;  %v10561_v16 = vld [vmem:[%s16596_s1 + $0xbb4] sm:$0xf0]  ;;  %5816 = vmatmul.bf16.vlgmr.msra.gmra.mxu3 %v11769_v36  ;;  %v8460_v27 = vor.u32 %v10593_v30, %v8459_v22  ;;  %v8315_v9 = vld [vmem:[%s16596_s1 + $0xb88] sm:$0xf] }
 0x1ed   :  { %5864 = vmatpush.bf16.msrb.mxu3 %v8620_v12  ;;  %v8332_v0 = vor.u32 %v10561_v16, %v8331_v23  ;;  %v10525_v12 = vld [vmem:[%s16596_s1 + $0xa94] sm:$0xf0]  ;;  %v8443_v20 = vld [vmem:[%s16596_s1 + $0xc88] sm:$0xf]  ;;  %v5565_v16 = vpop.f32.mrf.mxu1  ;;  %v8316_v22 = vor.u32 %v10557_v52, %v8315_v9 }
 0x1ee   :  { %5823 = vmatpush.bf16.msrb.mxu0 %v8220_v11  ;;  %v10589_v11 = vld [vmem:[%s16596_s1 + $0xc94] sm:$0xf0]  ;;  %v8571_v19 = vld [vmem:[%s16596_s1 + $0xd88] sm:$0xf] }
 0x1ef   :  { %5837 = vmatpush.bf16.msrb.mxu1 %v8348_v29  ;;  %v14406_v29 = vpop.f32.mrf.mxu3  ;;  %v10621_v7 = vld [vmem:[%s16596_s1 + $0xd94] sm:$0xf0]  ;;  %v8444_v30 = vor.u32 %v10589_v11, %v8443_v20  ;;  %v8171_v37 = vld [vmem:[%s16596_s1 + $0xa68] sm:$0xf] }
 0x1f0   :  { %5851 = vmatpush.bf16.msrb.mxu2 %v8476_v59  ;;  %16638 = vst [vmem:[#allocation32_spill] sm:$0xff] %v14406_v29  ;;  %v5551_v59 = vpop.f32.mrf.mxu0  ;;  %v10521_v25 = vld [vmem:[%s16596_s1 + $0xa74] sm:$0xf0]  ;;  %v8555_v9 = vld [vmem:[%s16596_s1 + $0xd68] sm:$0xf] }
 0x1f1   :  { %5865 = vmatpush.bf16.msrb.mxu3 %v8604_v53  ;;  %v5552_v23 = vadd.f32 %v5551_v59, %v14256_v13  ;;  %v8188_v53 = vor.u32 %v10525_v12, %v8187_v28  ;;  %v8572_v13 = vor.u32 %v10621_v7, %v8571_v19  ;;  %v10585_v12 = vld [vmem:[%s16596_s1 + $0xc74] sm:$0xf0]  ;;  %v8172_v52 = vor.u32 %v10521_v25, %v8171_v37  ;;  %v8155_v59 = vld [vmem:[%s16596_s1 + $0xa48] sm:$0xf] }
 0x1f2   :  { %5824 = vmatpush.bf16.msrb.mxu0 %v8204_v18  ;;  %v8299_v18 = vld [vmem:[%s16596_s1 + $0xb68] sm:$0xf]  ;;  %v10517_v19 = vld [vmem:[%s16596_s1 + $0xa54] sm:$0xf0] }
 0x1f3   :  { %5838 = vmatpush.bf16.msrb.mxu1 %v8332_v0  ;;  %v5566_v28 = vadd.f32 %v5565_v16, %v5552_v23  ;;  %v10553_v0 = vld [vmem:[%s16596_s1 + $0xb74] sm:$0xf0]  ;;  %v8283_v7 = vld [vmem:[%s16596_s1 + $0xb48] sm:$0xf] }
 0x1f4   :  { %5852 = vmatpush.bf16.msrb.mxu2 %v8460_v27  ;;  %v8427_v27 = vld [vmem:[%s16596_s1 + $0xc68] sm:$0xf]  ;;  %v8300_v20 = vor.u32 %v10553_v0, %v8299_v18  ;;  %v10549_v16 = vld [vmem:[%s16596_s1 + $0xb54] sm:$0xf0]  ;;  %v8156_v0 = vor.u32 %v10517_v19, %v8155_v59 }
 0x1f5   :  { %5866 = vmatpush.bf16.msrb.mxu3 %v8588_v62  ;;  %v10617_v62 = vld [vmem:[%s16596_s1 + $0xd74] sm:$0xf0]  ;;  %v8428_v11 = vor.u32 %v10585_v12, %v8427_v27  ;;  %v8539_v18 = vld [vmem:[%s16596_s1 + $0xd48] sm:$0xf]  ;;  %v8284_v12 = vor.u32 %v10549_v16, %v8283_v7 }
 0x1f6   :  { %5825 = vmatpush.bf16.msrb.mxu0 %v8188_v53  ;;  %v8556_v23 = vor.u32 %v10617_v62, %v8555_v9  ;;  %v5579_v53 = vpop.f32.mrf.mxu2  ;;  %v10513_v62 = vld [vmem:[%s16596_s1 + $0xa34] sm:$0xf0]  ;;  %v8523_v19 = vld [vmem:[%s16596_s1 + $0xd28] sm:$0xf] }
 0x1f7   :  { %5839 = vmatpush.bf16.msrb.mxu1 %v8316_v22  ;;  %v8411_v22 = vld [vmem:[%s16596_s1 + $0xc48] sm:$0xf]  ;;  %v5580_v37 = vadd.f32 %v5579_v53, %v5566_v28  ;;  %v5593_v25 = vpop.f32.mrf.mxu3  ;;  %v10577_v59 = vld [vmem:[%s16596_s1 + $0xc34] sm:$0xf0] }
 0x1f8   :  { %5853 = vmatpush.bf16.msrb.mxu2 %v8444_v30  ;;  %v10581_v30 = vld [vmem:[%s16596_s1 + $0xc54] sm:$0xf0]  ;;  %v8139_v28 = vld [vmem:[%s16596_s1 + $0xa28] sm:$0xf] }
 0x1f9   :  { %5867 = vmatpush.bf16.msrb.mxu3 %v8572_v13  ;;  %v10613_v13 = vld [vmem:[%s16596_s1 + $0xd54] sm:$0xf0]  ;;  %v14463_v27 = vadd.f32 %v5593_v25, %v5580_v37  ;;  %v8412_v9 = vor.u32 %v10581_v30, %v8411_v22  ;;  %v8267_v53 = vld [vmem:[%s16596_s1 + $0xb28] sm:$0xf] }
 0x1fa   :  { %5826 = vmatpush.bf16.msrb.mxu0 %v8172_v52  ;;  %v8540_v52 = vor.u32 %v10613_v13, %v8539_v18  ;;  %v10609_v7 = vld [vmem:[%s16596_s1 + $0xd34] sm:$0xf0]  ;;  %v8123_v16 = vld [vmem:[%s16596_s1 + $0xa08] sm:$0xf] }
 0x1fb   :  { %5840 = vmatpush.bf16.msrb.mxu1 %v8300_v20  ;;  %v10545_v20 = vld [vmem:[%s16596_s1 + $0xb34] sm:$0xf0]  ;;  %v8251_v25 = vld [vmem:[%s16596_s1 + $0xb08] sm:$0xf] }
 0x1fc   :  { %5854 = vmatpush.bf16.msrb.mxu2 %v8428_v11  ;;  %v8395_v11 = vld [vmem:[%s16596_s1 + $0xc28] sm:$0xf]  ;;  %v10509_v22 = vld [vmem:[%s16596_s1 + $0xa14] sm:$0xf0]  ;;  %v8268_v30 = vor.u32 %v10545_v20, %v8267_v53 }
 0x1fd   :  { %5868 = vmatpush.bf16.msrb.mxu3 %v8556_v23  ;;  %v8140_v23 = vor.u32 %v10513_v62, %v8139_v28  ;;  %v8396_v37 = vor.u32 %v10577_v59, %v8395_v11  ;;  %v10541_v18 = vld [vmem:[%s16596_s1 + $0xb14] sm:$0xf0]  ;;  %v8379_v13 = vld [vmem:[%s16596_s1 + $0xc08] sm:$0xf]  ;;  %v8124_v20 = vor.u32 %v10509_v22, %v8123_v16 }
 0x1fe   :  { %5827 = vmatpush.bf16.msrb.mxu0 %v8156_v0  ;;  %v8524_v0 = vor.u32 %v10609_v7, %v8523_v19  ;;  %v10605_v28 = vld [vmem:[%s16596_s1 + $0xd14] sm:$0xf0]  ;;  %v8747_v62 = vld [vmem:[%s16596_s1 + $0xee8] sm:$0xf]  ;;  %v8252_v7 = vor.u32 %v10541_v18, %v8251_v25 }
 0x1ff   :  { %5841 = vmatpush.bf16.msrb.mxu1 %v8284_v12  ;;  %v10573_v12 = vld [vmem:[%s16596_s1 + $0xc14] sm:$0xf0]  ;;  %v9003_v59 = vld [vmem:[%s16596_s1 + $0x10e8] sm:$0xf] }
 0x200   :  { %5855 = vmatpush.bf16.msrb.mxu2 %v8412_v9  ;;  %v8507_v9 = vld [vmem:[%s16596_s1 + $0xd08] sm:$0xf]  ;;  %v10665_v53 = vld [vmem:[%s16596_s1 + $0xef4] sm:$0xf0]  ;;  %v8380_v29 = vor.u32 %v10573_v12, %v8379_v13 }
 0x201   :  { %5869 = vmatpush.bf16.msrb.mxu3 %v8540_v52  ;;  %v8875_v52 = vld [vmem:[%s16596_s1 + $0xfe8] sm:$0xf]  ;;  %v10697_v11 = vld [vmem:[%s16596_s1 + $0xff4] sm:$0xf0]  ;;  %v8508_v22 = vor.u32 %v10605_v28, %v8507_v9  ;;  %v8748_v50 = vor.u32 %v10665_v53, %v8747_v62  ;;  %v14555_v9 = vpop.f32.mrf.mxu0  ;;  %v14563_v53 = vpop.f32.mrf.mxu1 }
 0x202   :  { %5828 = vmatpush.bf16.msrb.mxu0 %v8140_v23  ;;  %v10729_v19 = vld [vmem:[%s16596_s1 + $0x10f4] sm:$0xf0]  ;;  %v9131_v23 = vld [vmem:[%s16596_s1 + $0x11e8] sm:$0xf]  ;;  %v8876_v42 = vor.u32 %v10697_v11, %v8875_v52  ;;  %16639 = vst [vmem:[#allocation33_spill] sm:$0xff] %v14555_v9 }
 0x203   :  { %5842 = vmatpush.bf16.msrb.mxu1 %v8268_v30  ;;  %v10761_v16 = vld [vmem:[%s16596_s1 + $0x11f4] sm:$0xf0]  ;;  %v9004_v63 = vor.u32 %v10729_v19, %v9003_v59  ;;  %v8731_v30 = vld [vmem:[%s16596_s1 + $0xec8] sm:$0xf]  ;;  %16640 = vst [vmem:[#allocation34_spill] sm:$0xff] %v14563_v53 }
 0x204   :  { %5856 = vmatpush.bf16.msrb.mxu2 %v8396_v37  ;;  %v10661_v37 = vld [vmem:[%s16596_s1 + $0xed4] sm:$0xf0]  ;;  %v8859_v25 = vld [vmem:[%s16596_s1 + $0xfc8] sm:$0xf]  ;;  %v9132_v18 = vor.u32 %v10761_v16, %v9131_v23 }
 0x205   :  { %5870 = vmatpush.bf16.msrb.mxu3 %v8524_v0  ;;  %v10693_v13 = vld [vmem:[%s16596_s1 + $0xfd4] sm:$0xf0]  ;;  %v8987_v0 = vld [vmem:[%s16596_s1 + $0x10c8] sm:$0xf]  ;;  %v8732_v52 = vor.u32 %v10661_v37, %v8731_v30 }
 0x206   :  { %5829 = vmatpush.bf16.msrb.mxu0 %v8124_v20  ;;  %v10725_v12 = vld [vmem:[%s16596_s1 + $0x10d4] sm:$0xf0]  ;;  %v9115_v28 = vld [vmem:[%s16596_s1 + $0x11c8] sm:$0xf]  ;;  %v8860_v20 = vor.u32 %v10693_v13, %v8859_v25 }
 0x207   :  { %5843 = vmatpush.bf16.msrb.mxu1 %v8252_v7  ;;  %v10757_v62 = vld [vmem:[%s16596_s1 + $0x11d4] sm:$0xf0]  ;;  %v8988_v11 = vor.u32 %v10725_v12, %v8987_v0  ;;  %v8843_v19 = vld [vmem:[%s16596_s1 + $0xfa8] sm:$0xf]  ;;  %v14602_v0 = vpop.f32.mrf.mxu2 }
 0x208   :  { %5857 = vmatpush.bf16.msrb.mxu2 %v8380_v29  ;;  %v8715_v29 = vld [vmem:[%s16596_s1 + $0xea8] sm:$0xf]  ;;  %v10657_v59 = vld [vmem:[%s16596_s1 + $0xeb4] sm:$0xf0]  ;;  %16641 = vst [vmem:[#allocation35_spill] sm:$0xff] %v14602_v0 }
 0x209   :  { %5871 = vmatpush.bf16.msrb.mxu3 %v8508_v22  ;;  %5830 = vmatmul.bf16.vlgmr.msrb.gmra.mxu0 %v11767_v35  ;;  %v10721_v7 = vld [vmem:[%s16596_s1 + $0x10b4] sm:$0xf0]  ;;  %v9099_v23 = vld [vmem:[%s16596_s1 + $0x11a8] sm:$0xf]  ;;  %v8716_v22 = vor.u32 %v10657_v59, %v8715_v29 }
 0x20a   :  { %5878 = vmatpush.bf16.msra.mxu0 %v8748_v50  ;;  %v9116_v50 = vor.u32 %v10757_v62, %v9115_v28  ;;  %5844 = vmatmul.bf16.vlgmr.msrb.gmra.mxu1 %v11777_v40  ;;  %v10753_v16 = vld [vmem:[%s16596_s1 + $0x11b4] sm:$0xf0]  ;;  %v8699_v25 = vld [vmem:[%s16596_s1 + $0xe88] sm:$0xf] }
 0x20b   :  { %5892 = vmatpush.bf16.msra.mxu1 %v8876_v42  ;;  %v8971_v42 = vld [vmem:[%s16596_s1 + $0x10a8] sm:$0xf]  ;;  %5858 = vmatmul.bf16.vlgmr.msrb.gmra.mxu2 %v11984_v32  ;;  %v9100_v12 = vor.u32 %v10753_v16, %v9099_v23  ;;  %v10685_v28 = vld [vmem:[%s16596_s1 + $0xf94] sm:$0xf0] }
 0x20c   :  { %5906 = vmatpush.bf16.msra.mxu2 %v9004_v63  ;;  %v10689_v63 = vld [vmem:[%s16596_s1 + $0xfb4] sm:$0xf0]  ;;  %5872 = vmatmul.bf16.vlgmr.msrb.gmra.mxu3 %v11997_v41  ;;  %v8972_v37 = vor.u32 %v10721_v7, %v8971_v42  ;;  %v8827_v13 = vld [vmem:[%s16596_s1 + $0xf88] sm:$0xf] }
 0x20d   :  { %5920 = vmatpush.bf16.msra.mxu3 %v9132_v18  ;;  %v8844_v30 = vor.u32 %v10689_v63, %v8843_v19  ;;  %v10653_v18 = vld [vmem:[%s16596_s1 + $0xe94] sm:$0xf0]  ;;  %v8955_v62 = vld [vmem:[%s16596_s1 + $0x1088] sm:$0xf]  ;;  %v5621_v63 = vpop.f32.mrf.mxu1  ;;  %v8828_v42 = vor.u32 %v10685_v28, %v8827_v13 }
 0x20e   :  { %5879 = vmatpush.bf16.msra.mxu0 %v8732_v52  ;;  %v10717_v52 = vld [vmem:[%s16596_s1 + $0x1094] sm:$0xf0]  ;;  %v9083_v29 = vld [vmem:[%s16596_s1 + $0x1188] sm:$0xf] }
 0x20f   :  { %5893 = vmatpush.bf16.msra.mxu1 %v8860_v20  ;;  %v14613_v20 = vpop.f32.mrf.mxu3  ;;  %v10749_v59 = vld [vmem:[%s16596_s1 + $0x1194] sm:$0xf0]  ;;  %v8956_v7 = vor.u32 %v10717_v52, %v8955_v62  ;;  %v8683_v23 = vld [vmem:[%s16596_s1 + $0xe68] sm:$0xf] }
 0x210   :  { %5907 = vmatpush.bf16.msra.mxu2 %v8988_v11  ;;  %16642 = vst [vmem:[#allocation36_spill] sm:$0xff] %v14613_v20  ;;  %v5607_v11 = vpop.f32.mrf.mxu0  ;;  %v10649_v16 = vld [vmem:[%s16596_s1 + $0xe74] sm:$0xf0]  ;;  %v9067_v13 = vld [vmem:[%s16596_s1 + $0x1168] sm:$0xf] }
 0x211   :  { %5921 = vmatpush.bf16.msra.mxu3 %v9116_v50  ;;  %v5608_v19 = vadd.f32 %v5607_v11, %v14463_v27  ;;  %v8700_v50 = vor.u32 %v10653_v18, %v8699_v25  ;;  %v9084_v27 = vor.u32 %v10749_v59, %v9083_v29  ;;  %v10713_v18 = vld [vmem:[%s16596_s1 + $0x1074] sm:$0xf0]  ;;  %v8684_v28 = vor.u32 %v10649_v16, %v8683_v23  ;;  %v8667_v11 = vld [vmem:[%s16596_s1 + $0xe48] sm:$0xf] }
 0x212   :  { %5880 = vmatpush.bf16.msra.mxu0 %v8716_v22  ;;  %v8811_v22 = vld [vmem:[%s16596_s1 + $0xf68] sm:$0xf]  ;;  %v10645_v29 = vld [vmem:[%s16596_s1 + $0xe54] sm:$0xf0] }
 0x213   :  { %5894 = vmatpush.bf16.msra.mxu1 %v8844_v30  ;;  %v5622_v25 = vadd.f32 %v5621_v63, %v5608_v19  ;;  %v10681_v30 = vld [vmem:[%s16596_s1 + $0xf74] sm:$0xf0]  ;;  %v8795_v59 = vld [vmem:[%s16596_s1 + $0xf48] sm:$0xf] }
 0x214   :  { %5908 = vmatpush.bf16.msra.mxu2 %v8972_v37  ;;  %v8939_v37 = vld [vmem:[%s16596_s1 + $0x1068] sm:$0xf]  ;;  %v8812_v62 = vor.u32 %v10681_v30, %v8811_v22  ;;  %v10677_v63 = vld [vmem:[%s16596_s1 + $0xf54] sm:$0xf0]  ;;  %v8668_v30 = vor.u32 %v10645_v29, %v8667_v11 }
 0x215   :  { %5922 = vmatpush.bf16.msra.mxu3 %v9100_v12  ;;  %v10745_v12 = vld [vmem:[%s16596_s1 + $0x1174] sm:$0xf0]  ;;  %v8940_v52 = vor.u32 %v10713_v18, %v8939_v37  ;;  %v9051_v22 = vld [vmem:[%s16596_s1 + $0x1148] sm:$0xf]  ;;  %v8796_v18 = vor.u32 %v10677_v63, %v8795_v59 }
 0x216   :  { %5881 = vmatpush.bf16.msra.mxu0 %v8700_v50  ;;  %v9068_v19 = vor.u32 %v10745_v12, %v9067_v13  ;;  %v5635_v50 = vpop.f32.mrf.mxu2  ;;  %v10641_v12 = vld [vmem:[%s16596_s1 + $0xe34] sm:$0xf0]  ;;  %v9035_v29 = vld [vmem:[%s16596_s1 + $0x1128] sm:$0xf] }
 0x217   :  { %5895 = vmatpush.bf16.msra.mxu1 %v8828_v42  ;;  %v8923_v42 = vld [vmem:[%s16596_s1 + $0x1048] sm:$0xf]  ;;  %v5636_v23 = vadd.f32 %v5635_v50, %v5622_v25  ;;  %v5649_v16 = vpop.f32.mrf.mxu3  ;;  %v10705_v11 = vld [vmem:[%s16596_s1 + $0x1034] sm:$0xf0] }
 0x218   :  { %5909 = vmatpush.bf16.msra.mxu2 %v8956_v7  ;;  %v10709_v7 = vld [vmem:[%s16596_s1 + $0x1054] sm:$0xf0]  ;;  %v8651_v25 = vld [vmem:[%s16596_s1 + $0xe28] sm:$0xf] }
 0x219   :  { %5923 = vmatpush.bf16.msra.mxu3 %v9084_v27  ;;  %v10741_v27 = vld [vmem:[%s16596_s1 + $0x1154] sm:$0xf0]  ;;  %v14670_v37 = vadd.f32 %v5649_v16, %v5636_v23  ;;  %v8924_v13 = vor.u32 %v10709_v7, %v8923_v42  ;;  %v8779_v50 = vld [vmem:[%s16596_s1 + $0xf28] sm:$0xf] }
 0x21a   :  { %5882 = vmatpush.bf16.msra.mxu0 %v8684_v28  ;;  %v9052_v28 = vor.u32 %v10741_v27, %v9051_v22  ;;  %v10737_v59 = vld [vmem:[%s16596_s1 + $0x1134] sm:$0xf0]  ;;  %v8635_v63 = vld [vmem:[%s16596_s1 + $0xe08] sm:$0xf] }
 0x21b   :  { %5896 = vmatpush.bf16.msra.mxu1 %v8812_v62  ;;  %v10673_v62 = vld [vmem:[%s16596_s1 + $0xf34] sm:$0xf0]  ;;  %v8763_v16 = vld [vmem:[%s16596_s1 + $0xf08] sm:$0xf] }
 0x21c   :  { %5910 = vmatpush.bf16.msra.mxu2 %v8940_v52  ;;  %v8907_v52 = vld [vmem:[%s16596_s1 + $0x1028] sm:$0xf]  ;;  %v10637_v42 = vld [vmem:[%s16596_s1 + $0xe14] sm:$0xf0]  ;;  %v8780_v7 = vor.u32 %v10673_v62, %v8779_v50 }
 0x21d   :  { %5924 = vmatpush.bf16.msra.mxu3 %v9068_v19  ;;  %v8652_v19 = vor.u32 %v10641_v12, %v8651_v25  ;;  %v8908_v23 = vor.u32 %v10705_v11, %v8907_v52  ;;  %v10669_v22 = vld [vmem:[%s16596_s1 + $0xf14] sm:$0xf0]  ;;  %v8891_v27 = vld [vmem:[%s16596_s1 + $0x1008] sm:$0xf]  ;;  %v8636_v62 = vor.u32 %v10637_v42, %v8635_v63 }
 0x21e   :  { %5883 = vmatpush.bf16.msra.mxu0 %v8668_v30  ;;  %v9036_v30 = vor.u32 %v10737_v59, %v9035_v29  ;;  %v10733_v25 = vld [vmem:[%s16596_s1 + $0x1114] sm:$0xf0]  ;;  %v9259_v12 = vld [vmem:[%s16596_s1 + $0x12e8] sm:$0xf]  ;;  %v8764_v59 = vor.u32 %v10669_v22, %v8763_v16 }
 0x21f   :  { %5897 = vmatpush.bf16.msra.mxu1 %v8796_v18  ;;  %v10701_v18 = vld [vmem:[%s16596_s1 + $0x1014] sm:$0xf0]  ;;  %v9515_v11 = vld [vmem:[%s16596_s1 + $0x14e8] sm:$0xf] }
 0x220   :  { %5911 = vmatpush.bf16.msra.mxu2 %v8924_v13  ;;  %v9019_v13 = vld [vmem:[%s16596_s1 + $0x1108] sm:$0xf]  ;;  %v10793_v50 = vld [vmem:[%s16596_s1 + $0x12f4] sm:$0xf0]  ;;  %v8892_v20 = vor.u32 %v10701_v18, %v8891_v27 }
 0x221   :  { %5925 = vmatpush.bf16.msra.mxu3 %v9052_v28  ;;  %v9387_v28 = vld [vmem:[%s16596_s1 + $0x13e8] sm:$0xf]  ;;  %v10825_v52 = vld [vmem:[%s16596_s1 + $0x13f4] sm:$0xf0]  ;;  %v9020_v42 = vor.u32 %v10733_v25, %v9019_v13  ;;  %v9260_v0 = vor.u32 %v10793_v50, %v9259_v12  ;;  %v14762_v13 = vpop.f32.mrf.mxu0  ;;  %v14770_v50 = vpop.f32.mrf.mxu1 }
 0x222   :  { %5884 = vmatpush.bf16.msra.mxu0 %v8652_v19  ;;  %v10857_v29 = vld [vmem:[%s16596_s1 + $0x14f4] sm:$0xf0]  ;;  %v9643_v19 = vld [vmem:[%s16596_s1 + $0x15e8] sm:$0xf]  ;;  %v9388_v53 = vor.u32 %v10825_v52, %v9387_v28  ;;  %16643 = vst [vmem:[#allocation37_spill] sm:$0xff] %v14770_v50 }
 0x223   :  { %5898 = vmatpush.bf16.msra.mxu1 %v8780_v7  ;;  %v10889_v63 = vld [vmem:[%s16596_s1 + $0x15f4] sm:$0xf0]  ;;  %v9516_v9 = vor.u32 %v10857_v29, %v9515_v11  ;;  %v9243_v7 = vld [vmem:[%s16596_s1 + $0x12c8] sm:$0xf] }
 0x224   :  { %5912 = vmatpush.bf16.msra.mxu2 %v8908_v23  ;;  %v10789_v23 = vld [vmem:[%s16596_s1 + $0x12d4] sm:$0xf0]  ;;  %v9371_v16 = vld [vmem:[%s16596_s1 + $0x13c8] sm:$0xf]  ;;  %v9644_v22 = vor.u32 %v10889_v63, %v9643_v19 }
 0x225   :  { %5926 = vmatpush.bf16.msra.mxu3 %v9036_v30  ;;  %v10821_v27 = vld [vmem:[%s16596_s1 + $0x13d4] sm:$0xf0]  ;;  %v9499_v30 = vld [vmem:[%s16596_s1 + $0x14c8] sm:$0xf]  ;;  %v9244_v28 = vor.u32 %v10789_v23, %v9243_v7 }
 0x226   :  { %5885 = vmatpush.bf16.msra.mxu0 %v8636_v62  ;;  %v10853_v18 = vld [vmem:[%s16596_s1 + $0x14d4] sm:$0xf0]  ;;  %v9627_v25 = vld [vmem:[%s16596_s1 + $0x15c8] sm:$0xf]  ;;  %v9372_v62 = vor.u32 %v10821_v27, %v9371_v16 }
 0x227   :  { %5899 = vmatpush.bf16.msra.mxu1 %v8764_v59  ;;  %v10885_v12 = vld [vmem:[%s16596_s1 + $0x15d4] sm:$0xf0]  ;;  %v9500_v52 = vor.u32 %v10853_v18, %v9499_v30  ;;  %v9355_v29 = vld [vmem:[%s16596_s1 + $0x13a8] sm:$0xf] }
 0x228   :  { %5913 = vmatpush.bf16.msra.mxu2 %v8892_v20  ;;  %v9227_v20 = vld [vmem:[%s16596_s1 + $0x12a8] sm:$0xf]  ;;  %v10785_v11 = vld [vmem:[%s16596_s1 + $0x12b4] sm:$0xf0] }
 0x229   :  { %5927 = vmatpush.bf16.msra.mxu3 %v9020_v42  ;;  %5886 = vmatmul.bf16.vlgmr.msra.gmra.mxu0 %v11995_v38  ;;  %v10849_v59 = vld [vmem:[%s16596_s1 + $0x14b4] sm:$0xf0]  ;;  %v9611_v19 = vld [vmem:[%s16596_s1 + $0x15a8] sm:$0xf]  ;;  %v9228_v42 = vor.u32 %v10785_v11, %v9227_v20 }
 0x22a   :  { %5934 = vmatpush.bf16.msrb.mxu0 %v9260_v0  ;;  %v9628_v0 = vor.u32 %v10885_v12, %v9627_v25  ;;  %5900 = vmatmul.bf16.vlgmr.msra.gmra.mxu1 %v12005_v46  ;;  %v10881_v63 = vld [vmem:[%s16596_s1 + $0x15b4] sm:$0xf0]  ;;  %v9211_v16 = vld [vmem:[%s16596_s1 + $0x1288] sm:$0xf] }
 0x22b   :  { %5948 = vmatpush.bf16.msrb.mxu1 %v9388_v53  ;;  %v9483_v53 = vld [vmem:[%s16596_s1 + $0x14a8] sm:$0xf]  ;;  %5914 = vmatmul.bf16.vlgmr.msra.gmra.mxu2 %v12212_v51  ;;  %v9612_v30 = vor.u32 %v10881_v63, %v9611_v19  ;;  %v10813_v18 = vld [vmem:[%s16596_s1 + $0x1394] sm:$0xf0] }
 0x22c   :  { %5962 = vmatpush.bf16.msrb.mxu2 %v9516_v9  ;;  %v10817_v9 = vld [vmem:[%s16596_s1 + $0x13b4] sm:$0xf0]  ;;  %5928 = vmatmul.bf16.vlgmr.msra.gmra.mxu3 %v12225_v56  ;;  %v9484_v23 = vor.u32 %v10849_v59, %v9483_v53  ;;  %v9339_v27 = vld [vmem:[%s16596_s1 + $0x1388] sm:$0xf] }
 0x22d   :  { %5976 = vmatpush.bf16.msrb.mxu3 %v9644_v22  ;;  %v9356_v7 = vor.u32 %v10817_v9, %v9355_v29  ;;  %v10781_v22 = vld [vmem:[%s16596_s1 + $0x1294] sm:$0xf0]  ;;  %v9467_v25 = vld [vmem:[%s16596_s1 + $0x1488] sm:$0xf]  ;;  %v5677_v29 = vpop.f32.mrf.mxu1 }
 0x22e   :  { %5935 = vmatpush.bf16.msrb.mxu0 %v9244_v28  ;;  %v10845_v12 = vld [vmem:[%s16596_s1 + $0x1494] sm:$0xf0]  ;;  %v5663_v28 = vpop.f32.mrf.mxu0  ;;  %v9212_v11 = vor.u32 %v10781_v22, %v9211_v16  ;;  %v9195_v53 = vld [vmem:[%s16596_s1 + $0x1268] sm:$0xf] }
 0x22f   :  { %5949 = vmatpush.bf16.msrb.mxu1 %v9372_v62  ;;  %v9595_v62 = vld [vmem:[%s16596_s1 + $0x1588] sm:$0xf]  ;;  %v5664_v20 = vadd.f32 %v5663_v28, %v14670_v37  ;;  %v9468_v9 = vor.u32 %v10845_v12, %v9467_v25  ;;  %v10777_v59 = vld [vmem:[%s16596_s1 + $0x1274] sm:$0xf0] }
 0x230   :  { %5963 = vmatpush.bf16.msrb.mxu2 %v9500_v52  ;;  %v10877_v52 = vld [vmem:[%s16596_s1 + $0x1594] sm:$0xf0]  ;;  %v9323_v19 = vld [vmem:[%s16596_s1 + $0x1368] sm:$0xf] }
 0x231   :  { %5977 = vmatpush.bf16.msrb.mxu3 %v9628_v0  ;;  %v9340_v0 = vor.u32 %v10813_v18, %v9339_v27  ;;  %v9596_v37 = vor.u32 %v10877_v52, %v9595_v62  ;;  %v14834_v63 = vadd.f32 %v5677_v29, %v5664_v20  ;;  %v9579_v16 = vld [vmem:[%s16596_s1 + $0x1568] sm:$0xf]  ;;  %v10873_v22 = vld [vmem:[%s16596_s1 + $0x1574] sm:$0xf0]  ;;  %v9196_v27 = vor.u32 %v10777_v59, %v9195_v53 }
 0x232   :  { %5936 = vmatpush.bf16.msrb.mxu0 %v9228_v42  ;;  %v10809_v42 = vld [vmem:[%s16596_s1 + $0x1374] sm:$0xf0]  ;;  %v9179_v25 = vld [vmem:[%s16596_s1 + $0x1248] sm:$0xf]  ;;  %v9580_v62 = vor.u32 %v10873_v22, %v9579_v16 }
 0x233   :  { %5950 = vmatpush.bf16.msrb.mxu1 %v9356_v7  ;;  %16644 = vst [vmem:[#allocation38_spill] sm:$0xff] %v14834_v63  ;;  %v9451_v7 = vld [vmem:[%s16596_s1 + $0x1468] sm:$0xf]  ;;  %v10773_v12 = vld [vmem:[%s16596_s1 + $0x1254] sm:$0xf0] }
 0x234   :  { %5964 = vmatpush.bf16.msrb.mxu2 %v9484_v23  ;;  %v10841_v23 = vld [vmem:[%s16596_s1 + $0x1474] sm:$0xf0]  ;;  %v9307_v28 = vld [vmem:[%s16596_s1 + $0x1348] sm:$0xf] }
 0x235   :  { %5978 = vmatpush.bf16.msrb.mxu3 %v9612_v30  ;;  %v9324_v30 = vor.u32 %v10809_v42, %v9323_v19  ;;  %v9452_v18 = vor.u32 %v10841_v23, %v9451_v7  ;;  %v10805_v52 = vld [vmem:[%s16596_s1 + $0x1354] sm:$0xf0]  ;;  %v9435_v20 = vld [vmem:[%s16596_s1 + $0x1448] sm:$0xf] }
 0x236   :  { %5937 = vmatpush.bf16.msrb.mxu0 %v9212_v11  ;;  %v10837_v11 = vld [vmem:[%s16596_s1 + $0x1454] sm:$0xf0]  ;;  %v9563_v29 = vld [vmem:[%s16596_s1 + $0x1548] sm:$0xf]  ;;  %v9308_v53 = vor.u32 %v10805_v52, %v9307_v28 }
 0x237   :  { %5951 = vmatpush.bf16.msrb.mxu1 %v9340_v0  ;;  %v10869_v0 = vld [vmem:[%s16596_s1 + $0x1554] sm:$0xf0]  ;;  %v9436_v59 = vor.u32 %v10837_v11, %v9435_v20  ;;  %v9163_v19 = vld [vmem:[%s16596_s1 + $0x1228] sm:$0xf] }
 0x238   :  { %5965 = vmatpush.bf16.msrb.mxu2 %v9468_v9  ;;  %v9180_v9 = vor.u32 %v10773_v12, %v9179_v25  ;;  %v9291_v42 = vld [vmem:[%s16596_s1 + $0x1328] sm:$0xf]  ;;  %v9564_v7 = vor.u32 %v10869_v0, %v9563_v29  ;;  %v10801_v23 = vld [vmem:[%s16596_s1 + $0x1334] sm:$0xf0] }
 0x239   :  { %5979 = vmatpush.bf16.msrb.mxu3 %v9596_v37  ;;  %v10769_v37 = vld [vmem:[%s16596_s1 + $0x1234] sm:$0xf0]  ;;  %v9419_v16 = vld [vmem:[%s16596_s1 + $0x1428] sm:$0xf]  ;;  %v9292_v28 = vor.u32 %v10801_v23, %v9291_v42 }
 0x23a   :  { %5938 = vmatpush.bf16.msrb.mxu0 %v9196_v27  ;;  %v10833_v22 = vld [vmem:[%s16596_s1 + $0x1434] sm:$0xf0]  ;;  %v9547_v27 = vld [vmem:[%s16596_s1 + $0x1528] sm:$0xf] }
 0x23b   :  { %5952 = vmatpush.bf16.msrb.mxu1 %v9324_v30  ;;  %v10865_v30 = vld [vmem:[%s16596_s1 + $0x1534] sm:$0xf0]  ;;  %v9147_v25 = vld [vmem:[%s16596_s1 + $0x1208] sm:$0xf] }
 0x23c   :  { %5966 = vmatpush.bf16.msrb.mxu2 %v9452_v18  ;;  %v9164_v18 = vor.u32 %v10769_v37, %v9163_v19  ;;  %v10765_v12 = vld [vmem:[%s16596_s1 + $0x1214] sm:$0xf0]  ;;  %v9275_v52 = vld [vmem:[%s16596_s1 + $0x1308] sm:$0xf]  ;;  %v9548_v29 = vor.u32 %v10865_v30, %v9547_v27  ;;  %v10215_v30 = vld [vmem:[%s16596_s1 + $0xec] sm:$0xf] }
 0x23d   :  { %5980 = vmatpush.bf16.msrb.mxu3 %v9580_v62  ;;  %v9420_v62 = vor.u32 %v10833_v22, %v9419_v16  ;;  %v10797_v20 = vld [vmem:[%s16596_s1 + $0x1314] sm:$0xf0]  ;;  %v9403_v11 = vld [vmem:[%s16596_s1 + $0x1408] sm:$0xf]  ;;  %v9148_v42 = vor.u32 %v10765_v12, %v9147_v25 }
 0x23e   :  { %5939 = vmatpush.bf16.msrb.mxu0 %v9180_v9  ;;  %v10829_v0 = vld [vmem:[%s16596_s1 + $0x1414] sm:$0xf0]  ;;  %v9531_v9 = vld [vmem:[%s16596_s1 + $0x1508] sm:$0xf]  ;;  %v9276_v22 = vor.u32 %v10797_v20, %v9275_v52 }
 0x23f   :  { %5953 = vmatpush.bf16.msrb.mxu1 %v9308_v53  ;;  %v10861_v53 = vld [vmem:[%s16596_s1 + $0x1514] sm:$0xf0]  ;;  %v9899_v37 = vld [vmem:[%s16596_s1 + $0x17e8] sm:$0xf]  ;;  %v9404_v27 = vor.u32 %v10829_v0, %v9403_v11 }
 0x240   :  { %5967 = vmatpush.bf16.msrb.mxu2 %v9436_v59  ;;  %v9771_v59 = vld [vmem:[%s16596_s1 + $0x16e8] sm:$0xf]  ;;  %v10921_v19 = vld [vmem:[%s16596_s1 + $0x16f4] sm:$0xf0]  ;;  %v9532_v25 = vor.u32 %v10861_v53, %v9531_v9  ;;  %v10211_v9 = vld [vmem:[%s16596_s1 + $0xcc] sm:$0xf] }
 0x241   :  { %5981 = vmatpush.bf16.msrb.mxu3 %v9564_v7  ;;  %v10953_v7 = vld [vmem:[%s16596_s1 + $0x17f4] sm:$0xf0]  ;;  %v10027_v23 = vld [vmem:[%s16596_s1 + $0x18e8] sm:$0xf]  ;;  %v9772_v12 = vor.u32 %v10921_v19, %v9771_v59  ;;  %v6941_v53 = vld [vmem:[%s16596_s1 + $0xd8] sm:$0xf0] }
 0x242   :  { %5940 = vmatpush.bf16.msrb.mxu0 %v9164_v18  ;;  %v10985_v16 = vld [vmem:[%s16596_s1 + $0x18f4] sm:$0xf0]  ;;  %v6957_v18 = vld [vmem:[%s16596_s1 + $0xf8] sm:$0xf0]  ;;  %v9900_v63 = vor.u32 %v10953_v7, %v9899_v37  ;;  %v9883_v52 = vld [vmem:[%s16596_s1 + $0x17c8] sm:$0xf] }
 0x243   :  { %5954 = vmatpush.bf16.msrb.mxu1 %v9292_v28  ;;  %v10028_v50 = vor.u32 %v10985_v16, %v10027_v23  ;;  %v9755_v28 = vld [vmem:[%s16596_s1 + $0x16c8] sm:$0xf]  ;;  %v6960_v20 = vor.u32 %v10215_v30, %v6957_v18  ;;  %v10949_v11 = vld [vmem:[%s16596_s1 + $0x17d4] sm:$0xf0]  ;;  %v6944_v16 = vor.u32 %v10211_v9, %v6941_v53  ;;  %v6925_v30 = vld [vmem:[%s16596_s1 + $0xb8] sm:$0xf0] }
 0x244   :  { %5968 = vmatpush.bf16.msrb.mxu2 %v9420_v62  ;;  %v10917_v62 = vld [vmem:[%s16596_s1 + $0x16d4] sm:$0xf0]  ;;  %v9884_v19 = vor.u32 %v10949_v11, %v9883_v52  ;;  %v9867_v23 = vld [vmem:[%s16596_s1 + $0x17a8] sm:$0xf]  ;;  %v10203_v9 = vld [vmem:[%s16596_s1 + $0x8c] sm:$0xf] }
 0x245   :  { %5982 = vmatpush.bf16.msrb.mxu3 %v9548_v29  ;;  %v10011_v29 = vld [vmem:[%s16596_s1 + $0x18c8] sm:$0xf]  ;;  %v10981_v0 = vld [vmem:[%s16596_s1 + $0x18d4] sm:$0xf0]  ;;  %v9756_v59 = vor.u32 %v10917_v62, %v9755_v28  ;;  %v6909_v53 = vld [vmem:[%s16596_s1 + $0x98] sm:$0xf0] }
 0x246   :  { %5941 = vmatpush.bf16.msrb.mxu0 %v9148_v42  ;;  %v10012_v37 = vor.u32 %v10981_v0, %v10011_v29  ;;  %v9739_v42 = vld [vmem:[%s16596_s1 + $0x16a8] sm:$0xf]  ;;  %v10913_v7 = vld [vmem:[%s16596_s1 + $0x16b4] sm:$0xf0] }
 0x247   :  { %5955 = vmatpush.bf16.msrb.mxu1 %v9276_v22  ;;  %v10977_v22 = vld [vmem:[%s16596_s1 + $0x18b4] sm:$0xf0]  ;;  %v9740_v18 = vor.u32 %v10913_v7, %v9739_v42  ;;  %v9723_v28 = vld [vmem:[%s16596_s1 + $0x1688] sm:$0xf] }
 0x248   :  { %5969 = vmatpush.bf16.msrb.mxu2 %v9404_v27  ;;  %v10207_v27 = vld [vmem:[%s16596_s1 + $0xac] sm:$0xf]  ;;  %v10909_v62 = vld [vmem:[%s16596_s1 + $0x1694] sm:$0xf0]  ;;  %v9851_v52 = vld [vmem:[%s16596_s1 + $0x1788] sm:$0xf] }
 0x249   :  { %5983 = vmatpush.bf16.msrb.mxu3 %v9532_v25  ;;  %5942 = vmatmul.bf16.vlgmr.msrb.gmra.mxu0 %v12223_v55  ;;  %v10941_v11 = vld [vmem:[%s16596_s1 + $0x1794] sm:$0xf0]  ;;  %v9979_v29 = vld [vmem:[%s16596_s1 + $0x1888] sm:$0xf] }
 0x24a   :  { %5990 = vmatpush.bf16.msra.mxu0 %v9772_v12  ;;  %5956 = vmatmul.bf16.vlgmr.msrb.gmra.mxu1 %v12233_v60  ;;  %v10973_v0 = vld [vmem:[%s16596_s1 + $0x1894] sm:$0xf0]  ;;  %v9707_v42 = vld [vmem:[%s16596_s1 + $0x1668] sm:$0xf] }
 0x24b   :  { %6004 = vmatpush.bf16.msra.mxu1 %v9900_v63  ;;  %v9995_v63 = vld [vmem:[%s16596_s1 + $0x18a8] sm:$0xf]  ;;  %5970 = vmatmul.bf16.vlgmr.msrb.gmra.mxu2 %v12452_v26  ;;  %v10905_v7 = vld [vmem:[%s16596_s1 + $0x1674] sm:$0xf0] }
 0x24c   :  { %6018 = vmatpush.bf16.msra.mxu2 %v10028_v50  ;;  %v10945_v50 = vld [vmem:[%s16596_s1 + $0x17b4] sm:$0xf0]  ;;  %5984 = vmatmul.bf16.vlgmr.msrb.gmra.mxu3 %v12465_v34  ;;  %v9996_v12 = vor.u32 %v10977_v22, %v9995_v63  ;;  %v9963_v63 = vld [vmem:[%s16596_s1 + $0x1868] sm:$0xf] }
 0x24d   :  { %6032 = vmatpush.bf16.msra.mxu3 %v6960_v20  ;;  %v9868_v25 = vor.u32 %v10945_v50, %v9867_v23  ;;  %v6928_v20 = vor.u32 %v10207_v27, %v6925_v30  ;;  %v9835_v23 = vld [vmem:[%s16596_s1 + $0x1768] sm:$0xf]  ;;  %v10937_v50 = vld [vmem:[%s16596_s1 + $0x1774] sm:$0xf0]  ;;  %v10199_v27 = vld [vmem:[%s16596_s1 + $0x6c] sm:$0xf] }
 0x24e   :  { %5991 = vmatpush.bf16.msra.mxu0 %v9756_v59  ;;  %v9724_v59 = vor.u32 %v10909_v62, %v9723_v28  ;;  %v10969_v22 = vld [vmem:[%s16596_s1 + $0x1874] sm:$0xf0]  ;;  %v6893_v30 = vld [vmem:[%s16596_s1 + $0x78] sm:$0xf0]  ;;  %v9691_v28 = vld [vmem:[%s16596_s1 + $0x1648] sm:$0xf] }
 0x24f   :  { %6005 = vmatpush.bf16.msra.mxu1 %v9884_v19  ;;  %v9852_v19 = vor.u32 %v10941_v11, %v9851_v52  ;;  %v10901_v62 = vld [vmem:[%s16596_s1 + $0x1654] sm:$0xf0]  ;;  %v9819_v52 = vld [vmem:[%s16596_s1 + $0x1748] sm:$0xf] }
 0x250   :  { %6019 = vmatpush.bf16.msra.mxu2 %v10012_v37  ;;  %v9980_v37 = vor.u32 %v10973_v0, %v9979_v29  ;;  %v10933_v11 = vld [vmem:[%s16596_s1 + $0x1754] sm:$0xf0]  ;;  %v9947_v29 = vld [vmem:[%s16596_s1 + $0x1848] sm:$0xf] }
 0x251   :  { %6033 = vmatpush.bf16.msra.mxu3 %v6944_v16  ;;  %v6912_v16 = vor.u32 %v10203_v9, %v6909_v53  ;;  %v10965_v0 = vld [vmem:[%s16596_s1 + $0x1854] sm:$0xf0]  ;;  %v10195_v9 = vld [vmem:[%s16596_s1 + $0x4c] sm:$0xf]  ;;  %v6877_v53 = vld [vmem:[%s16596_s1 + $0x58] sm:$0xf0] }
 0x252   :  { %5992 = vmatpush.bf16.msra.mxu0 %v9740_v18  ;;  %v9708_v18 = vor.u32 %v10905_v7, %v9707_v42  ;;  %v9675_v42 = vld [vmem:[%s16596_s1 + $0x1628] sm:$0xf]  ;;  %v10897_v7 = vld [vmem:[%s16596_s1 + $0x1634] sm:$0xf0] }
 0x253   :  { %6006 = vmatpush.bf16.msra.mxu1 %v9868_v25  ;;  %v9836_v25 = vor.u32 %v10937_v50, %v9835_v23  ;;  %v9803_v23 = vld [vmem:[%s16596_s1 + $0x1728] sm:$0xf]  ;;  %v10929_v50 = vld [vmem:[%s16596_s1 + $0x1734] sm:$0xf0] }
 0x254   :  { %6020 = vmatpush.bf16.msra.mxu2 %v9996_v12  ;;  %v9964_v12 = vor.u32 %v10969_v22, %v9963_v63  ;;  %v9931_v63 = vld [vmem:[%s16596_s1 + $0x1828] sm:$0xf]  ;;  %v10961_v22 = vld [vmem:[%s16596_s1 + $0x1834] sm:$0xf0] }
 0x255   :  { %6034 = vmatpush.bf16.msra.mxu3 %v6928_v20  ;;  %v6896_v20 = vor.u32 %v10199_v27, %v6893_v30  ;;  %v10191_v27 = vld [vmem:[%s16596_s1 + $0x2c] sm:$0xf]  ;;  %v6861_v30 = vld [vmem:[%s16596_s1 + $0x38] sm:$0xf0] }
 0x256   :  { %5993 = vmatpush.bf16.msra.mxu0 %v9724_v59  ;;  %v9692_v59 = vor.u32 %v10901_v62, %v9691_v28  ;;  %v9804_v28 = vor.u32 %v10929_v50, %v9803_v23  ;;  %v9932_v62 = vor.u32 %v10961_v22, %v9931_v63  ;;  %v10311_v23 = vld [vmem:[%s16596_s1 + $0x3ec] sm:$0xf] }
 0x257   :  { %6007 = vmatpush.bf16.msra.mxu1 %v9852_v19  ;;  %v9820_v19 = vor.u32 %v10933_v11, %v9819_v52  ;;  %v9787_v52 = vld [vmem:[%s16596_s1 + $0x1708] sm:$0xf]  ;;  %v10343_v22 = vld [vmem:[%s16596_s1 + $0x4ec] sm:$0xf] }
 0x258   :  { %6021 = vmatpush.bf16.msra.mxu2 %v9980_v37  ;;  %v9948_v37 = vor.u32 %v10965_v0, %v9947_v29  ;;  %v9915_v11 = vld [vmem:[%s16596_s1 + $0x1808] sm:$0xf]  ;;  %v6864_v29 = vor.u32 %v10191_v27, %v6861_v30  ;;  %v10957_v0 = vld [vmem:[%s16596_s1 + $0x1814] sm:$0xf0]  ;;  %v7469_v27 = vld [vmem:[%s16596_s1 + $0x4f8] sm:$0xf0] }
 0x259   :  { %6035 = vmatpush.bf16.msra.mxu3 %v6912_v16  ;;  %v6880_v16 = vor.u32 %v10195_v9, %v6877_v53  ;;  %v10187_v9 = vld [vmem:[%s16596_s1 + $0xc] sm:$0xf]  ;;  %v6845_v53 = vld [vmem:[%s16596_s1 + $0x18] sm:$0xf0]  ;;  %v9916_v63 = vor.u32 %v10957_v0, %v9915_v11 }
 0x25a   :  { %5994 = vmatpush.bf16.msra.mxu0 %v9708_v18  ;;  %v9676_v18 = vor.u32 %v10897_v7, %v9675_v42  ;;  %v7213_v7 = vld [vmem:[%s16596_s1 + $0x2f8] sm:$0xf0]  ;;  %v6848_v30 = vor.u32 %v10187_v9, %v6845_v53  ;;  %v10339_v9 = vld [vmem:[%s16596_s1 + $0x4cc] sm:$0xf] }
 0x25b   :  { %6008 = vmatpush.bf16.msra.mxu1 %v9836_v25  ;;  %v9659_v25 = vld [vmem:[%s16596_s1 + $0x1608] sm:$0xf]  ;;  %v7197_v11 = vld [vmem:[%s16596_s1 + $0x2d8] sm:$0xf0] }
 0x25c   :  { %6022 = vmatpush.bf16.msra.mxu2 %v9964_v12  ;;  %v10893_v12 = vld [vmem:[%s16596_s1 + $0x1614] sm:$0xf0]  ;;  %v7325_v0 = vld [vmem:[%s16596_s1 + $0x3d8] sm:$0xf0] }
 0x25d   :  { %6036 = vmatpush.bf16.msra.mxu3 %v6896_v20  ;;  %v10925_v20 = vld [vmem:[%s16596_s1 + $0x1714] sm:$0xf0]  ;;  %v9660_v42 = vor.u32 %v10893_v12, %v9659_v25  ;;  %v7453_v53 = vld [vmem:[%s16596_s1 + $0x4d8] sm:$0xf0] }
 0x25e   :  { %5995 = vmatpush.bf16.msra.mxu0 %v9692_v59  ;;  %v10247_v59 = vld [vmem:[%s16596_s1 + $0x1ec] sm:$0xf]  ;;  %v9788_v50 = vor.u32 %v10925_v20, %v9787_v52  ;;  %v7472_v20 = vor.u32 %v10343_v22, %v7469_v27  ;;  %v7309_v22 = vld [vmem:[%s16596_s1 + $0x3b8] sm:$0xf0] }
 0x25f   :  { %6009 = vmatpush.bf16.msra.mxu1 %v9820_v19  ;;  %v7085_v19 = vld [vmem:[%s16596_s1 + $0x1f8] sm:$0xf0]  ;;  %v10275_v52 = vld [vmem:[%s16596_s1 + $0x2cc] sm:$0xf] }
 0x260   :  { %6023 = vmatpush.bf16.msra.mxu2 %v9948_v37  ;;  %v10279_v37 = vld [vmem:[%s16596_s1 + $0x2ec] sm:$0xf] }
 0x261   :  { %6037 = vmatpush.bf16.msra.mxu3 %v6880_v16  ;;  %v7341_v16 = vld [vmem:[%s16596_s1 + $0x3f8] sm:$0xf0]  ;;  %v7216_v25 = vor.u32 %v10279_v37, %v7213_v7  ;;  %v10335_v27 = vld [vmem:[%s16596_s1 + $0x4ac] sm:$0xf] }
 0x262   :  { %5996 = vmatpush.bf16.msra.mxu0 %v9676_v18  ;;  %v7088_v18 = vor.u32 %v10247_v59, %v7085_v19  ;;  %v7344_v12 = vor.u32 %v10311_v23, %v7341_v16  ;;  %v7200_v19 = vor.u32 %v10275_v52, %v7197_v11  ;;  %v7053_v7 = vld [vmem:[%s16596_s1 + $0x1b8] sm:$0xf0]  ;;  %v10271_v23 = vld [vmem:[%s16596_s1 + $0x2ac] sm:$0xf]  ;;  %v7456_v16 = vor.u32 %v10339_v9, %v7453_v53 }
 0x263   :  { %6010 = vmatpush.bf16.msra.mxu1 %v9804_v28  ;;  %v10243_v28 = vld [vmem:[%s16596_s1 + $0x1cc] sm:$0xf]  ;;  %v7421_v9 = vld [vmem:[%s16596_s1 + $0x498] sm:$0xf0] }
 0x264   :  { %6024 = vmatpush.bf16.msra.mxu2 %v9932_v62  ;;  %v7069_v62 = vld [vmem:[%s16596_s1 + $0x1d8] sm:$0xf0]  ;;  %v10267_v52 = vld [vmem:[%s16596_s1 + $0x28c] sm:$0xf] }
 0x265   :  { %6038 = vmatpush.bf16.msra.mxu3 %v6864_v29  ;;  %v10307_v29 = vld [vmem:[%s16596_s1 + $0x3cc] sm:$0xf]  ;;  %v7072_v59 = vor.u32 %v10243_v28, %v7069_v62  ;;  %v7037_v62 = vld [vmem:[%s16596_s1 + $0x198] sm:$0xf0] }
 0x266   :  { %5997 = vmatpush.bf16.msra.mxu0 %v9660_v42  ;;  %v7328_v37 = vor.u32 %v10307_v29, %v7325_v0  ;;  %v10239_v42 = vld [vmem:[%s16596_s1 + $0x1ac] sm:$0xf]  ;;  %v7293_v29 = vld [vmem:[%s16596_s1 + $0x398] sm:$0xf0] }
 0x267   :  { %6011 = vmatpush.bf16.msra.mxu1 %v9788_v50  ;;  %v7181_v50 = vld [vmem:[%s16596_s1 + $0x2b8] sm:$0xf0]  ;;  %v10235_v28 = vld [vmem:[%s16596_s1 + $0x18c] sm:$0xf] }
 0x268   :  { %6025 = vmatpush.bf16.msra.mxu2 %v9916_v63  ;;  %v10303_v63 = vld [vmem:[%s16596_s1 + $0x3ac] sm:$0xf]  ;;  %v7040_v53 = vor.u32 %v10235_v28, %v7037_v62  ;;  %v7005_v28 = vld [vmem:[%s16596_s1 + $0x158] sm:$0xf0] }
 0x269   :  { %6039 = vmatpush.bf16.msra.mxu3 %v6848_v30  ;;  %5998 = vmatmul.bf16.vlgmr.msra.gmra.mxu0 %v12463_v33  ;;  %v7437_v30 = vld [vmem:[%s16596_s1 + $0x4b8] sm:$0xf0]  ;;  %v10299_v11 = vld [vmem:[%s16596_s1 + $0x38c] sm:$0xf] }
 0x26a   :  { %6046 = vmatpush.bf16.msrb.mxu0 %v7088_v18  ;;  %6012 = vmatmul.bf16.vlgmr.msra.gmra.mxu1 %v12475_v48  ;;  %v7056_v18 = vor.u32 %v10239_v42, %v7053_v7  ;;  %v10331_v0 = vld [vmem:[%s16596_s1 + $0x48c] sm:$0xf]  ;;  %v7021_v42 = vld [vmem:[%s16596_s1 + $0x178] sm:$0xf0] }
 0x26b   :  { %6060 = vmatpush.bf16.msrb.mxu1 %v7216_v25  ;;  %6026 = vmatmul.bf16.vlgmr.msra.gmra.mxu2 %v12671_v49  ;;  %v7184_v25 = vor.u32 %v10271_v23, %v7181_v50  ;;  %v10263_v7 = vld [vmem:[%s16596_s1 + $0x26c] sm:$0xf]  ;;  %v7424_v23 = vor.u32 %v10331_v0, %v7421_v9  ;;  %v7389_v0 = vld [vmem:[%s16596_s1 + $0x458] sm:$0xf0] }
 0x26c   :  { %6074 = vmatpush.bf16.msrb.mxu2 %v7344_v12  ;;  %6040 = vmatmul.bf16.vlgmr.msra.gmra.mxu3 %v11306_v58  ;;  %v7312_v12 = vor.u32 %v10303_v63, %v7309_v22  ;;  %v7165_v58 = vld [vmem:[%s16596_s1 + $0x298] sm:$0xf0]  ;;  %v10295_v50 = vld [vmem:[%s16596_s1 + $0x36c] sm:$0xf] }
 0x26d   :  { %6088 = vmatpush.bf16.msrb.mxu3 %v7472_v20  ;;  %v7440_v20 = vor.u32 %v10335_v27, %v7437_v30  ;;  %v7277_v63 = vld [vmem:[%s16596_s1 + $0x378] sm:$0xf0]  ;;  %v10327_v22 = vld [vmem:[%s16596_s1 + $0x46c] sm:$0xf] }
 0x26e   :  { %6047 = vmatpush.bf16.msrb.mxu0 %v7072_v59  ;;  %v7168_v59 = vor.u32 %v10267_v52, %v7165_v58  ;;  %v7405_v27 = vld [vmem:[%s16596_s1 + $0x478] sm:$0xf0]  ;;  %v10259_v62 = vld [vmem:[%s16596_s1 + $0x24c] sm:$0xf] }
 0x26f   :  { %6061 = vmatpush.bf16.msrb.mxu1 %v7200_v19  ;;  %v7296_v19 = vor.u32 %v10299_v11, %v7293_v29  ;;  %v7408_v52 = vor.u32 %v10327_v22, %v7405_v27  ;;  %v10291_v58 = vld [vmem:[%s16596_s1 + $0x34c] sm:$0xf]  ;;  %v7261_v11 = vld [vmem:[%s16596_s1 + $0x358] sm:$0xf0] }
 0x270   :  { %6075 = vmatpush.bf16.msrb.mxu2 %v7328_v37  ;;  %v10231_v37 = vld [vmem:[%s16596_s1 + $0x16c] sm:$0xf]  ;;  %v7373_v22 = vld [vmem:[%s16596_s1 + $0x438] sm:$0xf0] }
 0x271   :  { %6089 = vmatpush.bf16.msrb.mxu3 %v7456_v16  ;;  %v7149_v16 = vld [vmem:[%s16596_s1 + $0x278] sm:$0xf0]  ;;  %v7024_v30 = vor.u32 %v10231_v37, %v7021_v42  ;;  %v10323_v29 = vld [vmem:[%s16596_s1 + $0x44c] sm:$0xf] }
 0x272   :  { %6048 = vmatpush.bf16.msrb.mxu0 %v7056_v18  ;;  %v7152_v18 = vor.u32 %v10263_v7, %v7149_v16  ;;  %v6989_v37 = vld [vmem:[%s16596_s1 + $0x138] sm:$0xf0]  ;;  %v10255_v42 = vld [vmem:[%s16596_s1 + $0x22c] sm:$0xf]  ;;  %v7392_v7 = vor.u32 %v10323_v29, %v7389_v0 }
 0x273   :  { %6062 = vmatpush.bf16.msrb.mxu1 %v7184_v25  ;;  %v7280_v25 = vor.u32 %v10295_v50, %v7277_v63  ;;  %v10287_v16 = vld [vmem:[%s16596_s1 + $0x32c] sm:$0xf]  ;;  %v7245_v50 = vld [vmem:[%s16596_s1 + $0x338] sm:$0xf0] }
 0x274   :  { %6076 = vmatpush.bf16.msrb.mxu2 %v7312_v12  ;;  %v10227_v12 = vld [vmem:[%s16596_s1 + $0x14c] sm:$0xf]  ;;  %v7357_v29 = vld [vmem:[%s16596_s1 + $0x418] sm:$0xf0] }
 0x275   :  { %6090 = vmatpush.bf16.msrb.mxu3 %v7440_v20  ;;  %v7133_v20 = vld [vmem:[%s16596_s1 + $0x258] sm:$0xf0]  ;;  %v7008_v9 = vor.u32 %v10227_v12, %v7005_v28  ;;  %v10319_v63 = vld [vmem:[%s16596_s1 + $0x42c] sm:$0xf]  ;;  %v7248_v12 = vor.u32 %v10287_v16, %v7245_v50 }
 0x276   :  { %6049 = vmatpush.bf16.msrb.mxu0 %v7040_v53  ;;  %v7136_v53 = vor.u32 %v10259_v62, %v7133_v20  ;;  %v10251_v28 = vld [vmem:[%s16596_s1 + $0x20c] sm:$0xf]  ;;  %v7101_v62 = vld [vmem:[%s16596_s1 + $0x218] sm:$0xf0]  ;;  %v7376_v20 = vor.u32 %v10319_v63, %v7373_v22 }
 0x277   :  { %6063 = vmatpush.bf16.msrb.mxu1 %v7168_v59  ;;  %v7264_v59 = vor.u32 %v10291_v58, %v7261_v11  ;;  %v7229_v58 = vld [vmem:[%s16596_s1 + $0x318] sm:$0xf0]  ;;  %v10315_v11 = vld [vmem:[%s16596_s1 + $0x40c] sm:$0xf] }
 0x278   :  { %6077 = vmatpush.bf16.msrb.mxu2 %v7296_v19  ;;  %v10223_v19 = vld [vmem:[%s16596_s1 + $0x12c] sm:$0xf]  ;;  %v7981_v50 = vld [vmem:[%s16596_s1 + $0x8f8] sm:$0xf0]  ;;  %v7360_v63 = vor.u32 %v10315_v11, %v7357_v29 }
 0x279   :  { %6091 = vmatpush.bf16.msrb.mxu3 %v7424_v23  ;;  %v7117_v23 = vld [vmem:[%s16596_s1 + $0x238] sm:$0xf0]  ;;  %v6992_v27 = vor.u32 %v10223_v19, %v6989_v37  ;;  %v10375_v0 = vld [vmem:[%s16596_s1 + $0x5ec] sm:$0xf] }
 0x27a   :  { %6050 = vmatpush.bf16.msrb.mxu0 %v7024_v30  ;;  %v10219_v30 = vld [vmem:[%s16596_s1 + $0x10c] sm:$0xf]  ;;  %v7725_v19 = vld [vmem:[%s16596_s1 + $0x6f8] sm:$0xf0] }
 0x27b   :  { %6064 = vmatpush.bf16.msrb.mxu1 %v7152_v18  ;;  %v6973_v18 = vld [vmem:[%s16596_s1 + $0x118] sm:$0xf0]  ;;  %v10439_v37 = vld [vmem:[%s16596_s1 + $0x7ec] sm:$0xf] }
 0x27c   :  { %6078 = vmatpush.bf16.msrb.mxu2 %v7280_v25  ;;  %v7120_v25 = vor.u32 %v10255_v42, %v7117_v23  ;;  %v7853_v42 = vld [vmem:[%s16596_s1 + $0x7f8] sm:$0xf0]  ;;  %v10471_v16 = vld [vmem:[%s16596_s1 + $0x8ec] sm:$0xf] }
 0x27d   :  { %6092 = vmatpush.bf16.msrb.mxu3 %v7408_v52  ;;  %v10283_v52 = vld [vmem:[%s16596_s1 + $0x30c] sm:$0xf]  ;;  %v7965_v11 = vld [vmem:[%s16596_s1 + $0x8d8] sm:$0xf0] }
 0x27e   :  { %6051 = vmatpush.bf16.msrb.mxu0 %v7008_v9  ;;  %v7597_v9 = vld [vmem:[%s16596_s1 + $0x5f8] sm:$0xf0]  ;;  %v7232_v23 = vor.u32 %v10283_v52, %v7229_v58  ;;  %v10435_v52 = vld [vmem:[%s16596_s1 + $0x7cc] sm:$0xf] }
 0x27f   :  { %6065 = vmatpush.bf16.msrb.mxu1 %v7136_v53  ;;  %v10407_v53 = vld [vmem:[%s16596_s1 + $0x6ec] sm:$0xf]  ;;  %v7600_v22 = vor.u32 %v10375_v0, %v7597_v9 }
 0x280   :  { %6079 = vmatpush.bf16.msrb.mxu2 %v7264_v59  ;;  %v6976_v59 = vor.u32 %v10219_v30, %v6973_v18  ;;  %v7856_v30 = vor.u32 %v10439_v37, %v7853_v42  ;;  %v10371_v18 = vld [vmem:[%s16596_s1 + $0x5cc] sm:$0xf]  ;;  %v7693_v42 = vld [vmem:[%s16596_s1 + $0x6b8] sm:$0xf0] }
 0x281   :  { %6093 = vmatpush.bf16.msrb.mxu3 %v7392_v7  ;;  %v7104_v7 = vor.u32 %v10251_v28, %v7101_v62  ;;  %v7984_v28 = vor.u32 %v10471_v16, %v7981_v50  ;;  %v7709_v62 = vld [vmem:[%s16596_s1 + $0x6d8] sm:$0xf0]  ;;  %v10467_v58 = vld [vmem:[%s16596_s1 + $0x8cc] sm:$0xf] }
 0x282   :  { %6052 = vmatpush.bf16.msrb.mxu0 %v6992_v27  ;;  %v7728_v27 = vor.u32 %v10407_v53, %v7725_v19  ;;  %v10367_v53 = vld [vmem:[%s16596_s1 + $0x5ac] sm:$0xf]  ;;  %v7968_v37 = vor.u32 %v10467_v58, %v7965_v11  ;;  %v7949_v16 = vld [vmem:[%s16596_s1 + $0x8b8] sm:$0xf0] }
 0x283   :  { %6066 = vmatpush.bf16.msrb.mxu1 %v7120_v25  ;;  %v7581_v25 = vld [vmem:[%s16596_s1 + $0x5d8] sm:$0xf0]  ;;  %v10399_v19 = vld [vmem:[%s16596_s1 + $0x6ac] sm:$0xf] }
 0x284   :  { %6080 = vmatpush.bf16.msrb.mxu2 %v7248_v12  ;;  %v10403_v12 = vld [vmem:[%s16596_s1 + $0x6cc] sm:$0xf]  ;;  %v7584_v29 = vor.u32 %v10371_v18, %v7581_v25  ;;  %v7805_v25 = vld [vmem:[%s16596_s1 + $0x798] sm:$0xf0] }
 0x285   :  { %6094 = vmatpush.bf16.msrb.mxu3 %v7376_v20  ;;  %v7837_v20 = vld [vmem:[%s16596_s1 + $0x7d8] sm:$0xf0]  ;;  %v7712_v0 = vor.u32 %v10403_v12, %v7709_v62  ;;  %v10427_v18 = vld [vmem:[%s16596_s1 + $0x78c] sm:$0xf] }
 0x286   :  { %6053 = vmatpush.bf16.msrb.mxu0 %v6976_v59  ;;  %v7840_v9 = vor.u32 %v10435_v52, %v7837_v20  ;;  %v7565_v59 = vld [vmem:[%s16596_s1 + $0x5b8] sm:$0xf0]  ;;  %v10459_v12 = vld [vmem:[%s16596_s1 + $0x88c] sm:$0xf]  ;;  %v7808_v20 = vor.u32 %v10427_v18, %v7805_v25 }
 0x287   :  { %6067 = vmatpush.bf16.msrb.mxu1 %v7104_v7  ;;  %v10431_v7 = vld [vmem:[%s16596_s1 + $0x7ac] sm:$0xf]  ;;  %v7568_v50 = vor.u32 %v10367_v53, %v7565_v59  ;;  %v7533_v11 = vld [vmem:[%s16596_s1 + $0x578] sm:$0xf0] }
 0x288   :  { %6081 = vmatpush.bf16.msrb.mxu2 %v7232_v23  ;;  %v7821_v23 = vld [vmem:[%s16596_s1 + $0x7b8] sm:$0xf0]  ;;  %v10359_v58 = vld [vmem:[%s16596_s1 + $0x56c] sm:$0xf] }
 0x289   :  { %6095 = vmatpush.bf16.msrb.mxu3 %v7360_v63  ;;  %6054 = vmatmul.bf16.vlgmr.msrb.gmra.mxu0 %v11342_v10  ;;  %v10463_v10 = vld [vmem:[%s16596_s1 + $0x8ac] sm:$0xf]  ;;  %v7696_v63 = vor.u32 %v10399_v19, %v7693_v42  ;;  %v7789_v59 = vld [vmem:[%s16596_s1 + $0x778] sm:$0xf0]  ;;  %v7536_v42 = vor.u32 %v10359_v58, %v7533_v11 }
 0x28a   :  { %6102 = vmatpush.bf16.msra.mxu0 %v7600_v22  ;;  %6068 = vmatmul.bf16.vlgmr.msrb.gmra.mxu1 %v11320_v1  ;;  %v7824_v22 = vor.u32 %v10431_v7, %v7821_v23  ;;  %v10363_v1 = vld [vmem:[%s16596_s1 + $0x58c] sm:$0xf]  ;;  %v7757_v11 = vld [vmem:[%s16596_s1 + $0x738] sm:$0xf0] }
 0x28b   :  { %6116 = vmatpush.bf16.msra.mxu1 %v7728_v27  ;;  %6082 = vmatmul.bf16.vlgmr.msrb.gmra.mxu2 %v11356_v17  ;;  %v7549_v17 = vld [vmem:[%s16596_s1 + $0x598] sm:$0xf0]  ;;  %v10395_v27 = vld [vmem:[%s16596_s1 + $0x68c] sm:$0xf] }
 0x28c   :  { %6130 = vmatpush.bf16.msra.mxu2 %v7856_v30  ;;  %6096 = vmatmul.bf16.vlgmr.msrb.gmra.mxu3 %v11528_v39  ;;  %v7952_v39 = vor.u32 %v10463_v10, %v7949_v16  ;;  %v7677_v30 = vld [vmem:[%s16596_s1 + $0x698] sm:$0xf0]  ;;  %v7552_v62 = vor.u32 %v10363_v1, %v7549_v17  ;;  %v10423_v53 = vld [vmem:[%s16596_s1 + $0x76c] sm:$0xf] }
 0x28d   :  { %6144 = vmatpush.bf16.msra.mxu3 %v7984_v28  ;;  %v7933_v28 = vld [vmem:[%s16596_s1 + $0x898] sm:$0xf0]  ;;  %v7680_v52 = vor.u32 %v10395_v27, %v7677_v30  ;;  %v10455_v19 = vld [vmem:[%s16596_s1 + $0x86c] sm:$0xf]  ;;  %v7792_v23 = vor.u32 %v10423_v53, %v7789_v59 }
 0x28e   :  { %6103 = vmatpush.bf16.msra.mxu0 %v7584_v29  ;;  %v10391_v29 = vld [vmem:[%s16596_s1 + $0x66c] sm:$0xf]  ;;  %v7517_v16 = vld [vmem:[%s16596_s1 + $0x558] sm:$0xf0] }
 0x28f   :  { %6117 = vmatpush.bf16.msra.mxu1 %v7712_v0  ;;  %v7936_v0 = vor.u32 %v10459_v12, %v7933_v28  ;;  %v10355_v10 = vld [vmem:[%s16596_s1 + $0x54c] sm:$0xf]  ;;  %v7773_v17 = vld [vmem:[%s16596_s1 + $0x758] sm:$0xf0] }
 0x290   :  { %6131 = vmatpush.bf16.msra.mxu2 %v7840_v9  ;;  %v7661_v9 = vld [vmem:[%s16596_s1 + $0x678] sm:$0xf0]  ;;  %v10419_v1 = vld [vmem:[%s16596_s1 + $0x74c] sm:$0xf]  ;;  %v7520_v30 = vor.u32 %v10355_v10, %v7517_v16 }
 0x291   :  { %6145 = vmatpush.bf16.msra.mxu3 %v7968_v37  ;;  %v7917_v37 = vld [vmem:[%s16596_s1 + $0x878] sm:$0xf0]  ;;  %v7664_v7 = vor.u32 %v10391_v29, %v7661_v9  ;;  %v10451_v27 = vld [vmem:[%s16596_s1 + $0x84c] sm:$0xf]  ;;  %v7776_v25 = vor.u32 %v10419_v1, %v7773_v17 }
 0x292   :  { %6104 = vmatpush.bf16.msra.mxu0 %v7568_v50  ;;  %v10387_v50 = vld [vmem:[%s16596_s1 + $0x64c] sm:$0xf]  ;;  %v7501_v28 = vld [vmem:[%s16596_s1 + $0x538] sm:$0xf0] }
 0x293   :  { %6118 = vmatpush.bf16.msra.mxu1 %v7696_v63  ;;  %v7920_v63 = vor.u32 %v10455_v19, %v7917_v37  ;;  %v10351_v12 = vld [vmem:[%s16596_s1 + $0x52c] sm:$0xf]  ;;  %v7485_v59 = vld [vmem:[%s16596_s1 + $0x518] sm:$0xf0] }
 0x294   :  { %6132 = vmatpush.bf16.msra.mxu2 %v7824_v22  ;;  %v7645_v22 = vld [vmem:[%s16596_s1 + $0x658] sm:$0xf0]  ;;  %v10415_v58 = vld [vmem:[%s16596_s1 + $0x72c] sm:$0xf]  ;;  %v7504_v9 = vor.u32 %v10351_v12, %v7501_v28 }
 0x295   :  { %6146 = vmatpush.bf16.msra.mxu3 %v7952_v39  ;;  %v7901_v39 = vld [vmem:[%s16596_s1 + $0x858] sm:$0xf0]  ;;  %v7648_v18 = vor.u32 %v10387_v50, %v7645_v22  ;;  %v10447_v29 = vld [vmem:[%s16596_s1 + $0x82c] sm:$0xf]  ;;  %v7760_v37 = vor.u32 %v10415_v58, %v7757_v11 }
 0x296   :  { %6105 = vmatpush.bf16.msra.mxu0 %v7552_v62  ;;  %v10383_v62 = vld [vmem:[%s16596_s1 + $0x62c] sm:$0xf]  ;;  %v7741_v16 = vld [vmem:[%s16596_s1 + $0x718] sm:$0xf0] }
 0x297   :  { %6119 = vmatpush.bf16.msra.mxu1 %v7680_v52  ;;  %v7904_v52 = vor.u32 %v10451_v27, %v7901_v39  ;;  %v10347_v53 = vld [vmem:[%s16596_s1 + $0x50c] sm:$0xf]  ;;  %v8109_v1 = vld [vmem:[%s16596_s1 + $0x9f8] sm:$0xf0] }
 0x298   :  { %6133 = vmatpush.bf16.msra.mxu2 %v7808_v20  ;;  %v7629_v20 = vld [vmem:[%s16596_s1 + $0x638] sm:$0xf0]  ;;  %v10443_v50 = vld [vmem:[%s16596_s1 + $0x80c] sm:$0xf]  ;;  %v7488_v27 = vor.u32 %v10347_v53, %v7485_v59 }
 0x299   :  { %6147 = vmatpush.bf16.msra.mxu3 %v7936_v0  ;;  %v7885_v0 = vld [vmem:[%s16596_s1 + $0x838] sm:$0xf0]  ;;  %v7632_v19 = vor.u32 %v10383_v62, %v7629_v20  ;;  %v10503_v22 = vld [vmem:[%s16596_s1 + $0x9ec] sm:$0xf] }
 0x29a   :  { %6106 = vmatpush.bf16.msra.mxu0 %v7536_v42  ;;  %v10379_v42 = vld [vmem:[%s16596_s1 + $0x60c] sm:$0xf]  ;;  %v7888_v10 = vor.u32 %v10447_v29, %v7885_v0  ;;  %v8237_v39 = vld [vmem:[%s16596_s1 + $0xaf8] sm:$0xf0]  ;;  %v8112_v20 = vor.u32 %v10503_v22, %v8109_v1 }
 0x29b   :  { %6120 = vmatpush.bf16.msra.mxu1 %v7664_v7  ;;  %v7613_v7 = vld [vmem:[%s16596_s1 + $0x618] sm:$0xf0]  ;;  %v10535_v17 = vld [vmem:[%s16596_s1 + $0xaec] sm:$0xf] }
 0x29c   :  { %6134 = vmatpush.bf16.msra.mxu2 %v7792_v23  ;;  %v10411_v23 = vld [vmem:[%s16596_s1 + $0x70c] sm:$0xf]  ;;  %v8493_v62 = vld [vmem:[%s16596_s1 + $0xcf8] sm:$0xf0]  ;;  %v8240_v58 = vor.u32 %v10535_v17, %v8237_v39 }
 0x29d   :  { %6148 = vmatpush.bf16.msra.mxu3 %v7920_v63  ;;  %v7869_v63 = vld [vmem:[%s16596_s1 + $0x818] sm:$0xf0]  ;;  %v7744_v12 = vor.u32 %v10411_v23, %v7741_v16  ;;  %v10599_v28 = vld [vmem:[%s16596_s1 + $0xcec] sm:$0xf] }
 0x29e   :  { %6107 = vmatpush.bf16.msra.mxu0 %v7520_v30  ;;  %v10567_v30 = vld [vmem:[%s16596_s1 + $0xbec] sm:$0xf]  ;;  %v8093_v0 = vld [vmem:[%s16596_s1 + $0x9d8] sm:$0xf0]  ;;  %v8496_v53 = vor.u32 %v10599_v28, %v8493_v62 }
 0x29f   :  { %6121 = vmatpush.bf16.msra.mxu1 %v7648_v18  ;;  %v8365_v18 = vld [vmem:[%s16596_s1 + $0xbf8] sm:$0xf0]  ;;  %v10499_v29 = vld [vmem:[%s16596_s1 + $0x9cc] sm:$0xf] }
 0x2a0   :  { %6135 = vmatpush.bf16.msra.mxu2 %v7776_v25  ;;  %v7616_v25 = vor.u32 %v10379_v42, %v7613_v7  ;;  %v8368_v11 = vor.u32 %v10567_v30, %v8365_v18  ;;  %v8221_v59 = vld [vmem:[%s16596_s1 + $0xad8] sm:$0xf0]  ;;  %v10595_v42 = vld [vmem:[%s16596_s1 + $0xccc] sm:$0xf]  ;;  %v8096_v23 = vor.u32 %v10499_v29, %v8093_v0  ;;  %v15611_v29 = vpop.f32.mrf.mxu2 }
 0x2a1   :  { %6149 = vmatpush.bf16.msra.mxu3 %v7904_v52  ;;  %v7872_v52 = vor.u32 %v10443_v50, %v7869_v63  ;;  %v8477_v7 = vld [vmem:[%s16596_s1 + $0xcd8] sm:$0xf0]  ;;  %v10495_v50 = vld [vmem:[%s16596_s1 + $0x9ac] sm:$0xf]  ;;  %16645 = vst [vmem:[#allocation39_spill] sm:$0xff] %v15611_v29 }
 0x2a2   :  { %6108 = vmatpush.bf16.msra.mxu0 %v7504_v9  ;;  %v10531_v9 = vld [vmem:[%s16596_s1 + $0xacc] sm:$0xf]  ;;  %v8077_v63 = vld [vmem:[%s16596_s1 + $0x9b8] sm:$0xf0]  ;;  %v8480_v1 = vor.u32 %v10595_v42, %v8477_v7 }
 0x2a3   :  { %6122 = vmatpush.bf16.msra.mxu1 %v7632_v19  ;;  %v10563_v19 = vld [vmem:[%s16596_s1 + $0xbcc] sm:$0xf]  ;;  %v8205_v17 = vld [vmem:[%s16596_s1 + $0xab8] sm:$0xf0]  ;;  %v8080_v18 = vor.u32 %v10495_v50, %v8077_v63 }
 0x2a4   :  { %6136 = vmatpush.bf16.msra.mxu2 %v7760_v37  ;;  %v8349_v37 = vld [vmem:[%s16596_s1 + $0xbd8] sm:$0xf0]  ;;  %v10527_v22 = vld [vmem:[%s16596_s1 + $0xaac] sm:$0xf] }
 0x2a5   :  { %6150 = vmatpush.bf16.msra.mxu3 %v7888_v10  ;;  %v8224_v10 = vor.u32 %v10531_v9, %v8221_v59  ;;  %v8352_v16 = vor.u32 %v10563_v19, %v8349_v37  ;;  %v8333_v39 = vld [vmem:[%s16596_s1 + $0xbb8] sm:$0xf0]  ;;  %v10523_v28 = vld [vmem:[%s16596_s1 + $0xa8c] sm:$0xf] }
 0x2a6   :  { %6109 = vmatpush.bf16.msra.mxu0 %v7488_v27  ;;  %v10559_v27 = vld [vmem:[%s16596_s1 + $0xbac] sm:$0xf]  ;;  %v8461_v30 = vld [vmem:[%s16596_s1 + $0xcb8] sm:$0xf0] }
 0x2a7   :  { %6123 = vmatpush.bf16.msra.mxu1 %v7616_v25  ;;  %v8208_v25 = vor.u32 %v10527_v22, %v8205_v17  ;;  %v8189_v62 = vld [vmem:[%s16596_s1 + $0xa98] sm:$0xf0]  ;;  %v10487_v59 = vld [vmem:[%s16596_s1 + $0x96c] sm:$0xf] }
 0x2a8   :  { %6137 = vmatpush.bf16.msra.mxu2 %v7744_v12  ;;  %v8336_v12 = vor.u32 %v10559_v27, %v8333_v39  ;;  %v8192_v9 = vor.u32 %v10523_v28, %v8189_v62  ;;  %v8045_v19 = vld [vmem:[%s16596_s1 + $0x978] sm:$0xf0]  ;;  %v10519_v37 = vld [vmem:[%s16596_s1 + $0xa6c] sm:$0xf] }
 0x2a9   :  { %6151 = vmatpush.bf16.msra.mxu3 %v7872_v52  ;;  %6110 = vmatmul.bf16.vlgmr.msra.gmra.mxu0 %v11541_v44  ;;  %v10591_v44 = vld [vmem:[%s16596_s1 + $0xcac] sm:$0xf]  ;;  %v8173_v7 = vld [vmem:[%s16596_s1 + $0xa78] sm:$0xf0]  ;;  %v8048_v63 = vor.u32 %v10487_v59, %v8045_v19 }
 0x2aa   :  { %6158 = vmatpush.bf16.msrb.mxu0 %v8112_v20  ;;  %6124 = vmatmul.bf16.vlgmr.msra.gmra.mxu1 %v11539_v43  ;;  %v10491_v43 = vld [vmem:[%s16596_s1 + $0x98c] sm:$0xf]  ;;  %v8317_v20 = vld [vmem:[%s16596_s1 + $0xb98] sm:$0xf0]  ;;  %v8176_v22 = vor.u32 %v10519_v37, %v8173_v7 }
 0x2ab   :  { %6172 = vmatpush.bf16.msrb.mxu1 %v8240_v58  ;;  %6138 = vmatmul.bf16.vlgmr.msra.gmra.mxu2 %v11549_v47  ;;  %v8061_v47 = vld [vmem:[%s16596_s1 + $0x998] sm:$0xf0]  ;;  %v10555_v52 = vld [vmem:[%s16596_s1 + $0xb8c] sm:$0xf] }
 0x2ac   :  { %6186 = vmatpush.bf16.msrb.mxu2 %v8368_v11  ;;  %6152 = vmatmul.bf16.vlgmr.msra.gmra.mxu3 %v11756_v31  ;;  %v8464_v31 = vor.u32 %v10591_v44, %v8461_v30  ;;  %v10587_v58 = vld [vmem:[%s16596_s1 + $0xc8c] sm:$0xf]  ;;  %v8445_v11 = vld [vmem:[%s16596_s1 + $0xc98] sm:$0xf0]  ;;  %v8064_v0 = vor.u32 %v10491_v43, %v8061_v47  ;;  %v15661_v47 = vpop.f32.mrf.mxu2 }
 0x2ad   :  { %6200 = vmatpush.bf16.msrb.mxu3 %v8496_v53  ;;  %v8320_v53 = vor.u32 %v10555_v52, %v8317_v20  ;;  %v8448_v42 = vor.u32 %v10587_v58, %v8445_v11  ;;  %v8429_v50 = vld [vmem:[%s16596_s1 + $0xc78] sm:$0xf0]  ;;  %v10483_v17 = vld [vmem:[%s16596_s1 + $0x94c] sm:$0xf] }
 0x2ae   :  { %6159 = vmatpush.bf16.msrb.mxu0 %v8096_v23  ;;  %v10551_v23 = vld [vmem:[%s16596_s1 + $0xb6c] sm:$0xf]  ;;  %v8029_v27 = vld [vmem:[%s16596_s1 + $0x958] sm:$0xf0] }
 0x2af   :  { %6173 = vmatpush.bf16.msrb.mxu1 %v8224_v10  ;;  %v8301_v10 = vld [vmem:[%s16596_s1 + $0xb78] sm:$0xf0]  ;;  %v10515_v39 = vld [vmem:[%s16596_s1 + $0xa4c] sm:$0xf]  ;;  %v8032_v28 = vor.u32 %v10483_v17, %v8029_v27 }
 0x2b0   :  { %6187 = vmatpush.bf16.msrb.mxu2 %v8352_v16  ;;  %v10583_v16 = vld [vmem:[%s16596_s1 + $0xc6c] sm:$0xf]  ;;  %v8157_v30 = vld [vmem:[%s16596_s1 + $0xa58] sm:$0xf0] }
 0x2b1   :  { %6201 = vmatpush.bf16.msrb.mxu3 %v8480_v1  ;;  %v8304_v1 = vor.u32 %v10551_v23, %v8301_v10  ;;  %v8432_v44 = vor.u32 %v10583_v16, %v8429_v50  ;;  %v8413_v43 = vld [vmem:[%s16596_s1 + $0xc58] sm:$0xf0]  ;;  %v8160_v62 = vor.u32 %v10515_v39, %v8157_v30  ;;  %v10479_v20 = vld [vmem:[%s16596_s1 + $0x92c] sm:$0xf] }
 0x2b2   :  { %6160 = vmatpush.bf16.msrb.mxu0 %v8080_v18  ;;  %v10547_v18 = vld [vmem:[%s16596_s1 + $0xb4c] sm:$0xf]  ;;  %v8013_v58 = vld [vmem:[%s16596_s1 + $0x938] sm:$0xf0] }
 0x2b3   :  { %6174 = vmatpush.bf16.msrb.mxu1 %v8208_v25  ;;  %v8285_v25 = vld [vmem:[%s16596_s1 + $0xb58] sm:$0xf0]  ;;  %v10511_v11 = vld [vmem:[%s16596_s1 + $0xa2c] sm:$0xf] }
 0x2b4   :  { %6188 = vmatpush.bf16.msrb.mxu2 %v8336_v12  ;;  %v10579_v12 = vld [vmem:[%s16596_s1 + $0xc4c] sm:$0xf]  ;;  %v8288_v52 = vor.u32 %v10547_v18, %v8285_v25  ;;  %v8269_v59 = vld [vmem:[%s16596_s1 + $0xb38] sm:$0xf0] }
 0x2b5   :  { %6202 = vmatpush.bf16.msrb.mxu3 %v8464_v31  ;;  %v15663_v31 = vpop.f32.mrf.mxu3  ;;  %v10575_v19 = vld [vmem:[%s16596_s1 + $0xc2c] sm:$0xf]  ;;  %v8397_v37 = vld [vmem:[%s16596_s1 + $0xc38] sm:$0xf0] }
 0x2b6   :  { %6161 = vmatpush.bf16.msrb.mxu0 %v8064_v0  ;;  %16646 = vst [vmem:[#allocation40_spill] sm:$0xff] %v15663_v31  ;;  %v8416_v0 = vor.u32 %v10579_v12, %v8413_v43  ;;  %v10475_v7 = vld [vmem:[%s16596_s1 + $0x90c] sm:$0xf]  ;;  %v7997_v23 = vld [vmem:[%s16596_s1 + $0x918] sm:$0xf0]  ;;  %v8400_v17 = vor.u32 %v10575_v19, %v8397_v37 }
 0x2b7   :  { %6175 = vmatpush.bf16.msrb.mxu1 %v8192_v9  ;;  %v8141_v9 = vld [vmem:[%s16596_s1 + $0xa38] sm:$0xf0]  ;;  %v10507_v50 = vld [vmem:[%s16596_s1 + $0xa0c] sm:$0xf]  ;;  %v8000_v12 = vor.u32 %v10475_v7, %v7997_v23 }
 0x2b8   :  { %6189 = vmatpush.bf16.msrb.mxu2 %v8320_v53  ;;  %v10543_v53 = vld [vmem:[%s16596_s1 + $0xb2c] sm:$0xf]  ;;  %v8144_v10 = vor.u32 %v10511_v11, %v8141_v9  ;;  %v8253_v27 = vld [vmem:[%s16596_s1 + $0xb18] sm:$0xf0]  ;;  %v15741_v9 = vpop.f32.mrf.mxu1 }
 0x2b9   :  { %6203 = vmatpush.bf16.msrb.mxu3 %v8448_v42  ;;  %v8016_v42 = vor.u32 %v10479_v20, %v8013_v58  ;;  %v8272_v16 = vor.u32 %v10543_v53, %v8269_v59  ;;  %v10571_v39 = vld [vmem:[%s16596_s1 + $0xc0c] sm:$0xf]  ;;  %v8621_v18 = vld [vmem:[%s16596_s1 + $0xdf8] sm:$0xf0]  ;;  %16648 = vst [vmem:[#allocation42_spill] sm:$0xff] %v15741_v9  ;;  %v15743_v53 = vpop.f32.mrf.mxu2 }
 0x2ba   :  { %6162 = vmatpush.bf16.msrb.mxu0 %v8048_v63  ;;  %v8125_v63 = vld [vmem:[%s16596_s1 + $0xa18] sm:$0xf0]  ;;  %v10631_v30 = vld [vmem:[%s16596_s1 + $0xdec] sm:$0xf] }
 0x2bb   :  { %6176 = vmatpush.bf16.msrb.mxu1 %v8176_v22  ;;  %v10539_v22 = vld [vmem:[%s16596_s1 + $0xb0c] sm:$0xf]  ;;  %v8749_v43 = vld [vmem:[%s16596_s1 + $0xef8] sm:$0xf0]  ;;  %v8128_v20 = vor.u32 %v10507_v50, %v8125_v63  ;;  %v8624_v19 = vor.u32 %v10631_v30, %v8621_v18 }
 0x2bc   :  { %6190 = vmatpush.bf16.msrb.mxu2 %v8304_v1  ;;  %v15704_v1 = vpop.f32.mrf.mxu0  ;;  %v10663_v25 = vld [vmem:[%s16596_s1 + $0xeec] sm:$0xf]  ;;  %v8256_v58 = vor.u32 %v10539_v22, %v8253_v27  ;;  %v8605_v23 = vld [vmem:[%s16596_s1 + $0xdd8] sm:$0xf0] }
 0x2bd   :  { %6204 = vmatpush.bf16.msrb.mxu3 %v8432_v44  ;;  %16647 = vst [vmem:[#allocation41_spill] sm:$0xff] %v15704_v1  ;;  %v8381_v44 = vld [vmem:[%s16596_s1 + $0xc18] sm:$0xf0]  ;;  %v10727_v11 = vld [vmem:[%s16596_s1 + $0x10ec] sm:$0xf]  ;;  %v8752_v37 = vor.u32 %v10663_v25, %v8749_v43 }
 0x2be   :  { %6163 = vmatpush.bf16.msrb.mxu0 %v8032_v28  ;;  %v10695_v28 = vld [vmem:[%s16596_s1 + $0xfec] sm:$0xf]  ;;  %v8384_v59 = vor.u32 %v10571_v39, %v8381_v44  ;;  %v8733_v50 = vld [vmem:[%s16596_s1 + $0xed8] sm:$0xf0] }
 0x2bf   :  { %6177 = vmatpush.bf16.msrb.mxu1 %v8160_v62  ;;  %v8877_v62 = vld [vmem:[%s16596_s1 + $0xff8] sm:$0xf0]  ;;  %v10627_v7 = vld [vmem:[%s16596_s1 + $0xdcc] sm:$0xf] }
 0x2c0   :  { %6191 = vmatpush.bf16.msrb.mxu2 %v8288_v52  ;;  %v15733_v52 = vpop.f32.mrf.mxu3  ;;  %v10691_v63 = vld [vmem:[%s16596_s1 + $0xfcc] sm:$0xf]  ;;  %v8861_v22 = vld [vmem:[%s16596_s1 + $0xfd8] sm:$0xf0]  ;;  %v8608_v44 = vor.u32 %v10627_v7, %v8605_v23 }
 0x2c1   :  { %6205 = vmatpush.bf16.msrb.mxu3 %v8416_v0  ;;  %v9005_v0 = vld [vmem:[%s16596_s1 + $0x10f8] sm:$0xf0]  ;;  %v8864_v18 = vor.u32 %v10691_v63, %v8861_v22  ;;  %v10623_v25 = vld [vmem:[%s16596_s1 + $0xdac] sm:$0xf] }
 0x2c2   :  { %6164 = vmatpush.bf16.msrb.mxu0 %v8016_v42  ;;  %v8880_v42 = vor.u32 %v10695_v28, %v8877_v62  ;;  %v8989_v27 = vld [vmem:[%s16596_s1 + $0x10d8] sm:$0xf0]  ;;  %v10655_v43 = vld [vmem:[%s16596_s1 + $0xeac] sm:$0xf] }
 0x2c3   :  { %6178 = vmatpush.bf16.msrb.mxu1 %v8144_v10  ;;  %v10659_v10 = vld [vmem:[%s16596_s1 + $0xecc] sm:$0xf]  ;;  %v8717_v62 = vld [vmem:[%s16596_s1 + $0xeb8] sm:$0xf0] }
 0x2c4   :  { %6192 = vmatpush.bf16.msrb.mxu2 %v8272_v16  ;;  %v9008_v16 = vor.u32 %v10727_v11, %v9005_v0  ;;  %v15769_v39 = vpop.f32.mrf.mxu0  ;;  %v8736_v30 = vor.u32 %v10659_v10, %v8733_v50  ;;  %v8973_v11 = vld [vmem:[%s16596_s1 + $0x10b8] sm:$0xf0]  ;;  %v15798_v0 = vpop.f32.mrf.mxu1  ;;  %v10715_v63 = vld [vmem:[%s16596_s1 + $0x108c] sm:$0xf] }
 0x2c5   :  { %6206 = vmatpush.bf16.msrb.mxu3 %v8400_v17  ;;  %v10723_v17 = vld [vmem:[%s16596_s1 + $0x10cc] sm:$0xf]  ;;  %v8701_v10 = vld [vmem:[%s16596_s1 + $0xe98] sm:$0xf0] }
 0x2c6   :  { %6165 = vmatpush.bf16.msrb.mxu0 %v8000_v12  ;;  %v8589_v12 = vld [vmem:[%s16596_s1 + $0xdb8] sm:$0xf0]  ;;  %v8992_v28 = vor.u32 %v10723_v17, %v8989_v27 }
 0x2c7   :  { %6179 = vmatpush.bf16.msrb.mxu1 %v8128_v20  ;;  %v10687_v20 = vld [vmem:[%s16596_s1 + $0xfac] sm:$0xf]  ;;  %v8829_v50 = vld [vmem:[%s16596_s1 + $0xf98] sm:$0xf0] }
 0x2c8   :  { %6193 = vmatpush.bf16.msrb.mxu2 %v8256_v58  ;;  %v8845_v58 = vld [vmem:[%s16596_s1 + $0xfb8] sm:$0xf0]  ;;  %v15810_v7 = vpop.f32.mrf.mxu3 }
 0x2c9   :  { %6207 = vmatpush.bf16.msrb.mxu3 %v8384_v59  ;;  %6166 = vmatmul.bf16.vlgmr.msrb.gmra.mxu0 %v11769_v36  ;;  %v10719_v36 = vld [vmem:[%s16596_s1 + $0x10ac] sm:$0xf]  ;;  %v8592_v59 = vor.u32 %v10623_v25, %v8589_v12  ;;  %v8957_v22 = vld [vmem:[%s16596_s1 + $0x1098] sm:$0xf0] }
 0x2ca   :  { %6214 = vmatpush.bf16.msra.mxu0 %v8624_v19  ;;  %6180 = vmatmul.bf16.vlgmr.msrb.gmra.mxu1 %v11767_v35  ;;  %v8720_v19 = vor.u32 %v10655_v43, %v8717_v62  ;;  %v10619_v35 = vld [vmem:[%s16596_s1 + $0xd8c] sm:$0xf]  ;;  %v8976_v23 = vor.u32 %v10719_v36, %v8973_v11  ;;  %v8960_v43 = vor.u32 %v10715_v63, %v8957_v22  ;;  %v8941_v36 = vld [vmem:[%s16596_s1 + $0x1078] sm:$0xf0] }
 0x2cb   :  { %6228 = vmatpush.bf16.msra.mxu1 %v8752_v37  ;;  %6194 = vmatmul.bf16.vlgmr.msrb.gmra.mxu2 %v11777_v40  ;;  %v8848_v40 = vor.u32 %v10687_v20, %v8845_v58  ;;  %v8573_v37 = vld [vmem:[%s16596_s1 + $0xd98] sm:$0xf0]  ;;  %v10647_v25 = vld [vmem:[%s16596_s1 + $0xe6c] sm:$0xf] }
 0x2cc   :  { %6242 = vmatpush.bf16.msra.mxu2 %v8880_v42  ;;  %6208 = vmatmul.bf16.vlgmr.msrb.gmra.mxu3 %v11984_v32  ;;  %v10651_v42 = vld [vmem:[%s16596_s1 + $0xe8c] sm:$0xf]  ;;  %v15812_v32 = vpop.f32.mrf.mxu2  ;;  %v8576_v17 = vor.u32 %v10619_v35, %v8573_v37  ;;  %v15838_v12 = vpop.f32.mrf.mxu0  ;;  %v8813_v20 = vld [vmem:[%s16596_s1 + $0xf78] sm:$0xf0] }
 0x2cd   :  { %6256 = vmatpush.bf16.msra.mxu3 %v9008_v16  ;;  %v10683_v16 = vld [vmem:[%s16596_s1 + $0xf8c] sm:$0xf]  ;;  %v8704_v27 = vor.u32 %v10651_v42, %v8701_v10  ;;  %v8541_v35 = vld [vmem:[%s16596_s1 + $0xd58] sm:$0xf0]  ;;  %v15864_v42 = vpop.f32.mrf.mxu1 }
 0x2ce   :  { %6215 = vmatpush.bf16.msra.mxu0 %v8608_v44  ;;  %v8832_v44 = vor.u32 %v10683_v16, %v8829_v50  ;;  %v10679_v62 = vld [vmem:[%s16596_s1 + $0xf6c] sm:$0xf]  ;;  %v8669_v10 = vld [vmem:[%s16596_s1 + $0xe58] sm:$0xf0] }
 0x2cf   :  { %6229 = vmatpush.bf16.msra.mxu1 %v8736_v30  ;;  %v10615_v30 = vld [vmem:[%s16596_s1 + $0xd6c] sm:$0xf]  ;;  %v8797_v50 = vld [vmem:[%s16596_s1 + $0xf58] sm:$0xf0] }
 0x2d0   :  { %6243 = vmatpush.bf16.msra.mxu2 %v8864_v18  ;;  %v8557_v18 = vld [vmem:[%s16596_s1 + $0xd78] sm:$0xf0]  ;;  %v10711_v58 = vld [vmem:[%s16596_s1 + $0x106c] sm:$0xf] }
 0x2d1   :  { %6257 = vmatpush.bf16.msra.mxu3 %v8992_v28  ;;  %v8685_v28 = vld [vmem:[%s16596_s1 + $0xe78] sm:$0xf0]  ;;  %v8560_v11 = vor.u32 %v10615_v30, %v8557_v18  ;;  %v10643_v37 = vld [vmem:[%s16596_s1 + $0xe4c] sm:$0xf] }
 0x2d2   :  { %6216 = vmatpush.bf16.msra.mxu0 %v8592_v59  ;;  %v8688_v59 = vor.u32 %v10647_v25, %v8685_v28  ;;  %v10675_v16 = vld [vmem:[%s16596_s1 + $0xf4c] sm:$0xf]  ;;  %v8925_v22 = vld [vmem:[%s16596_s1 + $0x1058] sm:$0xf0]  ;;  %v8672_v30 = vor.u32 %v10643_v37, %v8669_v10 }
 0x2d3   :  { %6230 = vmatpush.bf16.msra.mxu1 %v8720_v19  ;;  %v8816_v19 = vor.u32 %v10679_v62, %v8813_v20  ;;  %v10707_v63 = vld [vmem:[%s16596_s1 + $0x104c] sm:$0xf]  ;;  %v8800_v18 = vor.u32 %v10675_v16, %v8797_v50  ;;  %v8509_v37 = vld [vmem:[%s16596_s1 + $0xd18] sm:$0xf0] }
 0x2d4   :  { %6244 = vmatpush.bf16.msra.mxu2 %v8848_v40  ;;  %v10611_v40 = vld [vmem:[%s16596_s1 + $0xd4c] sm:$0xf]  ;;  %v15894_v62 = vpop.f32.mrf.mxu0  ;;  %v8928_v20 = vor.u32 %v10707_v63, %v8925_v22  ;;  %v8637_v50 = vld [vmem:[%s16596_s1 + $0xe18] sm:$0xf0] }
 0x2d5   :  { %6258 = vmatpush.bf16.msra.mxu3 %v8976_v23  ;;  %v8944_v23 = vor.u32 %v10711_v58, %v8941_v36  ;;  %v10607_v25 = vld [vmem:[%s16596_s1 + $0xd2c] sm:$0xf]  ;;  %v8653_v58 = vld [vmem:[%s16596_s1 + $0xe38] sm:$0xf0]  ;;  %v15926_v22 = vpop.f32.mrf.mxu1 }
 0x2d6   :  { %6217 = vmatpush.bf16.msra.mxu0 %v8576_v17  ;;  %v15881_v17 = vpop.f32.mrf.mxu3  ;;  %v10639_v28 = vld [vmem:[%s16596_s1 + $0xe2c] sm:$0xf] }
 0x2d7   :  { %6231 = vmatpush.bf16.msra.mxu1 %v8704_v27  ;;  %v15883_v27 = vpop.f32.mrf.mxu2  ;;  %v10671_v36 = vld [vmem:[%s16596_s1 + $0xf2c] sm:$0xf] }
 0x2d8   :  { %6245 = vmatpush.bf16.msra.mxu2 %v8832_v44  ;;  %v8544_v44 = vor.u32 %v10611_v40, %v8541_v35  ;;  %v10603_v35 = vld [vmem:[%s16596_s1 + $0xd0c] sm:$0xf] }
 0x2d9   :  { %6259 = vmatpush.bf16.msra.mxu3 %v8960_v43  ;;  %v8525_v43 = vld [vmem:[%s16596_s1 + $0xd38] sm:$0xf0]  ;;  %v10635_v16 = vld [vmem:[%s16596_s1 + $0xe0c] sm:$0xf] }
 0x2da   :  { %6218 = vmatpush.bf16.msra.mxu0 %v8560_v11  ;;  %v8781_v11 = vld [vmem:[%s16596_s1 + $0xf38] sm:$0xf0]  ;;  %v8528_v40 = vor.u32 %v10607_v25, %v8525_v43  ;;  %v10667_v63 = vld [vmem:[%s16596_s1 + $0xf0c] sm:$0xf]  ;;  %v8640_v9 = vor.u32 %v10635_v16, %v8637_v50 }
 0x2db   :  { %6232 = vmatpush.bf16.msra.mxu1 %v8688_v59  ;;  %v10703_v59 = vld [vmem:[%s16596_s1 + $0x102c] sm:$0xf]  ;;  %v8784_v10 = vor.u32 %v10671_v36, %v8781_v11  ;;  %v8893_v25 = vld [vmem:[%s16596_s1 + $0x1018] sm:$0xf0]  ;;  %v8512_v36 = vor.u32 %v10603_v35, %v8509_v37 }
 0x2dc   :  { %6246 = vmatpush.bf16.msra.mxu2 %v8816_v19  ;;  %v8909_v19 = vld [vmem:[%s16596_s1 + $0x1038] sm:$0xf0]  ;;  %v10759_v43 = vld [vmem:[%s16596_s1 + $0x11ec] sm:$0xf]  ;;  %v15974_v50 = vpop.f32.mrf.mxu0 }
 0x2dd   :  { %6260 = vmatpush.bf16.msra.mxu3 %v8944_v23  ;;  %v8656_v23 = vor.u32 %v10639_v28, %v8653_v58  ;;  %v9133_v28 = vld [vmem:[%s16596_s1 + $0x11f8] sm:$0xf0]  ;;  %v10787_v16 = vld [vmem:[%s16596_s1 + $0x12cc] sm:$0xf] }
 0x2de   :  { %6219 = vmatpush.bf16.msra.mxu0 %v8544_v44  ;;  %v8912_v44 = vor.u32 %v10703_v59, %v8909_v19  ;;  %v9261_v11 = vld [vmem:[%s16596_s1 + $0x12f8] sm:$0xf0]  ;;  %v10823_v59 = vld [vmem:[%s16596_s1 + $0x13ec] sm:$0xf]  ;;  %v15963_v37 = vpop.f32.mrf.mxu3  ;;  %v9136_v29 = vor.u32 %v10759_v43, %v9133_v28  ;;  %v16649_v28 = vperm.slane %v12247_v4, 0 }
 0x2df   :  { %6233 = vmatpush.bf16.msra.mxu1 %v8672_v30  ;;  %v8765_v30 = vld [vmem:[%s16596_s1 + $0xf18] sm:$0xf0]  ;;  %v15946_v58 = vpop.f32.mrf.mxu2  ;;  %v10751_v4 = vld [vmem:[%s16596_s1 + $0x11ac] sm:$0xf] }
 0x2e0   :  { %6247 = vmatpush.bf16.msra.mxu2 %v8800_v18  ;;  %v10699_v18 = vld [vmem:[%s16596_s1 + $0x100c] sm:$0xf]  ;;  %v9389_v19 = vld [vmem:[%s16596_s1 + $0x13f8] sm:$0xf0]  ;;  %v8768_v1 = vor.u32 %v10667_v63, %v8765_v30 }
 0x2e1   :  { %6261 = vmatpush.bf16.msra.mxu3 %v8928_v20  ;;  %v10791_v20 = vld [vmem:[%s16596_s1 + $0x12ec] sm:$0xf]  ;;  %v9517_v35 = vld [vmem:[%s16596_s1 + $0x14f8] sm:$0xf0]  ;;  %v8896_v31 = vor.u32 %v10699_v18, %v8893_v25  ;;  %v9392_v48 = vor.u32 %v10823_v59, %v9389_v19 }
 0x2e2   :  { %6220 = vmatpush.bf16.msra.mxu0 %v8528_v40  ;;  %v10855_v40 = vld [vmem:[%s16596_s1 + $0x14ec] sm:$0xf]  ;;  %v9264_v49 = vor.u32 %v10791_v20, %v9261_v11  ;;  %v9373_v18 = vld [vmem:[%s16596_s1 + $0x13d8] sm:$0xf0]  ;;  %v4994_v20 = vadd.f32 %v12441_v21, %v16649_v28 }
 0x2e3   :  { %6234 = vmatpush.bf16.msra.mxu1 %v8656_v23  ;;  %v10755_v23 = vld [vmem:[%s16596_s1 + $0x11cc] sm:$0xf]  ;;  %v9520_v63 = vor.u32 %v10855_v40, %v9517_v35  ;;  %v9501_v43 = vld [vmem:[%s16596_s1 + $0x14d8] sm:$0xf0] }
 0x2e4   :  { %6248 = vmatpush.bf16.msra.mxu2 %v8784_v10  ;;  %v9117_v10 = vld [vmem:[%s16596_s1 + $0x11d8] sm:$0xf0]  ;;  %v10819_v30 = vld [vmem:[%s16596_s1 + $0x13cc] sm:$0xf] }
 0x2e5   :  { %6262 = vmatpush.bf16.msra.mxu3 %v8912_v44  ;;  %v9245_v44 = vld [vmem:[%s16596_s1 + $0x12d8] sm:$0xf0]  ;;  %v10851_v25 = vld [vmem:[%s16596_s1 + $0x14cc] sm:$0xf]  ;;  %v9376_v59 = vor.u32 %v10819_v30, %v9373_v18 }
 0x2e6   :  { %6221 = vmatpush.bf16.msra.mxu0 %v8512_v36  ;;  %v15997_v36 = vld [vmem:[%s16598_s2] sm:$0xf]  ;;  %v9248_v11 = vor.u32 %v10787_v16, %v9245_v44  ;;  %v9101_v21 = vld [vmem:[%s16596_s1 + $0x11b8] sm:$0xf0]  ;;  %v10783_v19 = vld [vmem:[%s16596_s1 + $0x12ac] sm:$0xf]  ;;  %v16034_v16 = vpop.f32.mrf.mxu3 }
 0x2e7   :  { %6235 = vmatpush.bf16.msra.mxu1 %v8640_v9  ;;  %v850_v9 = vperm.slane %v15997_v36, 2  ;;  %v9229_v40 = vld [vmem:[%s16596_s1 + $0x12b8] sm:$0xf0]  ;;  %v10815_v35 = vld [vmem:[%s16596_s1 + $0x13ac] sm:$0xf] }
 0x2e8   :  { %6249 = vmatpush.bf16.msra.mxu2 %v8768_v1  ;;  %v9120_v1 = vor.u32 %v10755_v23, %v9117_v10  ;;  %v5008_v23 = vadd.f32 %v12473_v45, %v4994_v20  ;;  %v9232_v44 = vor.u32 %v10783_v19, %v9229_v40  ;;  %v10747_v45 = vld [vmem:[%s16596_s1 + $0x118c] sm:$0xf]  ;;  %v9341_v20 = vld [vmem:[%s16596_s1 + $0x1398] sm:$0xf0] }
 0x2e9   :  { %6263 = vmatpush.bf16.msra.mxu3 %v8896_v31  ;;  %v16650_v31 = vperm.slane %v13577_v57, 1  ;;  %6222 = vmatmul.bf16.vlgmr.msra.gmra.mxu0 %v11997_v41  ;;  %v9357_v57 = vld [vmem:[%s16596_s1 + $0x13b8] sm:$0xf0]  ;;  %v10847_v41 = vld [vmem:[%s16596_s1 + $0x14ac] sm:$0xf]  ;;  %v5692_v10 = vadd.f32 %v15661_v47, %v850_v9 }
 0x2ea   :  { %6270 = vmatpush.bf16.msrb.mxu0 %v9136_v29  ;;  %6236 = vmatmul.bf16.vlgmr.msra.gmra.mxu1 %v11995_v38  ;;  %v9104_v38 = vor.u32 %v10751_v4, %v9101_v21  ;;  %v9360_v30 = vor.u32 %v10815_v35, %v9357_v57  ;;  %v9085_v47 = vld [vmem:[%s16596_s1 + $0x1198] sm:$0xf0]  ;;  %v10811_v28 = vld [vmem:[%s16596_s1 + $0x138c] sm:$0xf] }
 0x2eb   :  { %6284 = vmatpush.bf16.msrb.mxu1 %v9264_v49  ;;  %v5344_v29 = vadd.f32 %v13735_v24, %v16650_v31  ;;  %v16012_v49 = vpop.f32.mrf.mxu1  ;;  %6250 = vmatmul.bf16.vlgmr.msra.gmra.mxu2 %v12005_v46  ;;  %v9485_v24 = vld [vmem:[%s16596_s1 + $0x14b8] sm:$0xf0]  ;;  %v5694_v46 = vadd.f32 %v15743_v53, %v850_v9  ;;  %v9344_v19 = vor.u32 %v10811_v28, %v9341_v20  ;;  %v10743_v31 = vld [vmem:[%s16596_s1 + $0x116c] sm:$0xf] }
 0x2ec   :  { %6298 = vmatpush.bf16.msrb.mxu2 %v9392_v48  ;;  %v9504_v48 = vor.u32 %v10851_v25, %v9501_v43  ;;  %6264 = vmatmul.bf16.vlgmr.msra.gmra.mxu3 %v12212_v51  ;;  %v10779_v51 = vld [vmem:[%s16596_s1 + $0x128c] sm:$0xf]  ;;  %v16050_v25 = vpop.f32.mrf.mxu0  ;;  %v9488_v53 = vor.u32 %v10847_v41, %v9485_v24  ;;  %v9213_v43 = vld [vmem:[%s16596_s1 + $0x1298] sm:$0xf0] }
 0x2ed   :  { %6312 = vmatpush.bf16.msrb.mxu3 %v9520_v63  ;;  %v16036_v63 = vpop.f32.mrf.mxu2  ;;  %v5358_v18 = vadd.f32 %v13765_v2, %v5344_v29  ;;  %v10843_v2 = vld [vmem:[%s16596_s1 + $0x148c] sm:$0xf]  ;;  %v9469_v9 = vld [vmem:[%s16596_s1 + $0x1498] sm:$0xf0]  ;;  %v5708_v4 = vadd.f32 %v15810_v7, %v5694_v46  ;;  %v9216_v21 = vor.u32 %v10779_v51, %v9213_v43 }
 0x2ee   :  { %6271 = vmatpush.bf16.msrb.mxu0 %v9120_v1  ;;  %v5022_v1 = vadd.f32 %v12505_v5, %v5008_v23  ;;  %v9069_v29 = vld [vmem:[%s16596_s1 + $0x1178] sm:$0xf0]  ;;  %v10775_v5 = vld [vmem:[%s16596_s1 + $0x126c] sm:$0xf]  ;;  %v9472_v7 = vor.u32 %v10843_v2, %v9469_v9  ;;  %v16112_v51 = vpop.f32.mrf.mxu3 }
 0x2ef   :  { %6285 = vmatpush.bf16.msrb.mxu1 %v9248_v11  ;;  %v5706_v11 = vadd.f32 %v15733_v52, %v5692_v10  ;;  %v5372_v52 = vadd.f32 %v13776_v6, %v5358_v18  ;;  %v9197_v40 = vld [vmem:[%s16596_s1 + $0x1278] sm:$0xf0]  ;;  %v10807_v35 = vld [vmem:[%s16596_s1 + $0x136c] sm:$0xf]  ;;  %v5722_v46 = vadd.f32 %v15838_v12, %v5708_v4 }
 0x2f0   :  { %6299 = vmatpush.bf16.msrb.mxu2 %v9376_v59  ;;  %v9088_v59 = vor.u32 %v10747_v45, %v9085_v47  ;;  %v9325_v57 = vld [vmem:[%s16596_s1 + $0x1378] sm:$0xf0]  ;;  %v10839_v6 = vld [vmem:[%s16596_s1 + $0x146c] sm:$0xf]  ;;  %v5036_v24 = vadd.f32 %v12516_v14, %v5022_v1 }
 0x2f1   :  { %6313 = vmatpush.bf16.msrb.mxu3 %v9504_v48  ;;  %v9453_v41 = vld [vmem:[%s16596_s1 + $0x1478] sm:$0xf0]  ;;  %v5720_v23 = vadd.f32 %v15769_v39, %v5706_v11  ;;  %v10739_v45 = vld [vmem:[%s16596_s1 + $0x114c] sm:$0xf]  ;;  %v5386_v47 = vadd.f32 %v13934_v15, %v5372_v52  ;;  %v5736_v11 = vadd.f32 %v15864_v42, %v5722_v46 }
 0x2f2   :  { %6272 = vmatpush.bf16.msrb.mxu0 %v9104_v38  ;;  %v9072_v38 = vor.u32 %v10743_v31, %v9069_v29  ;;  %v9053_v14 = vld [vmem:[%s16596_s1 + $0x1158] sm:$0xf0]  ;;  %v10771_v39 = vld [vmem:[%s16596_s1 + $0x124c] sm:$0xf]  ;;  %v9456_v12 = vor.u32 %v10839_v6, %v9453_v41  ;;  %v5050_v20 = vadd.f32 %v12682_v54, %v5036_v24 }
 0x2f3   :  { %6286 = vmatpush.bf16.msrb.mxu1 %v9232_v44  ;;  %v16080_v48 = vpop.f32.mrf.mxu1  ;;  %v9200_v44 = vor.u32 %v10775_v5, %v9197_v40  ;;  %v9181_v18 = vld [vmem:[%s16596_s1 + $0x1258] sm:$0xf0]  ;;  %v10835_v15 = vld [vmem:[%s16596_s1 + $0x144c] sm:$0xf]  ;;  %v5734_v2 = vadd.f32 %v15798_v0, %v5720_v23  ;;  %v9056_v1 = vor.u32 %v10739_v45, %v9053_v14  ;;  %v5750_v52 = vadd.f32 %v15883_v27, %v5736_v11 }
 0x2f4   :  { %6300 = vmatpush.bf16.msrb.mxu2 %v9360_v30  ;;  %v9328_v30 = vor.u32 %v10807_v35, %v9325_v57  ;;  %v9309_v43 = vld [vmem:[%s16596_s1 + $0x1358] sm:$0xf0]  ;;  %v16131_v9 = vpop.f32.mrf.mxu0  ;;  %v10767_v0 = vld [vmem:[%s16596_s1 + $0x122c] sm:$0xf]  ;;  %v5064_v24 = vadd.f32 %v12690_v61, %v5050_v20 }
 0x2f5   :  { %6314 = vmatpush.bf16.msrb.mxu3 %v9488_v53  ;;  %v16099_v10 = vpop.f32.mrf.mxu2  ;;  %v10803_v53 = vld [vmem:[%s16596_s1 + $0x134c] sm:$0xf]  ;;  %v9437_v28 = vld [vmem:[%s16596_s1 + $0x1458] sm:$0xf0]  ;;  %v5748_v35 = vadd.f32 %v15812_v32, %v5734_v2 }
 0x2f6   :  { %6273 = vmatpush.bf16.msrb.mxu0 %v9088_v59  ;;  %v9184_v59 = vor.u32 %v10771_v39, %v9181_v18  ;;  %v9312_v4 = vor.u32 %v10803_v53, %v9309_v43  ;;  %v9037_v54 = vld [vmem:[%s16596_s1 + $0x1138] sm:$0xf0]  ;;  %v9440_v42 = vor.u32 %v10835_v15, %v9437_v28  ;;  %v10799_v29 = vld [vmem:[%s16596_s1 + $0x132c] sm:$0xf]  ;;  %v5764_v18 = vadd.f32 %v15963_v37, %v5750_v52  ;;  %v16652_v28 = vld [vmem:[#allocation24_spill] sm:$0xff] }
 0x2f7   :  { %6287 = vmatpush.bf16.msrb.mxu1 %v9216_v21  ;;  %v10735_v21 = vld [vmem:[%s16596_s1 + $0x112c] sm:$0xf]  ;;  %v9165_v31 = vld [vmem:[%s16596_s1 + $0x1238] sm:$0xf0]  ;;  %v5762_v2 = vadd.f32 %v15881_v17, %v5748_v35 }
 0x2f8   :  { %6301 = vmatpush.bf16.msrb.mxu2 %v9344_v19  ;;  %v5400_v19 = vadd.f32 %v13942_v8, %v5386_v47  ;;  %v9293_v5 = vld [vmem:[%s16596_s1 + $0x1338] sm:$0xf0]  ;;  %v10831_v8 = vld [vmem:[%s16596_s1 + $0x142c] sm:$0xf]  ;;  %v9040_v6 = vor.u32 %v10735_v21, %v9037_v54  ;;  %v9168_v23 = vor.u32 %v10767_v0, %v9165_v31  ;;  %v16651_v47 = vld [vmem:[#allocation4_spill] sm:$0xff]  ;;  %v5778_v21 = vadd.f32 %v15974_v50, %v5764_v18 }
 0x2f9   :  { %6315 = vmatpush.bf16.msrb.mxu3 %v9472_v7  ;;  %v9421_v7 = vld [vmem:[%s16596_s1 + $0x1438] sm:$0xf0]  ;;  %v10731_v27 = vld [vmem:[%s16596_s1 + $0x110c] sm:$0xf] }
 0x2fa   :  { %6274 = vmatpush.bf16.msrb.mxu0 %v9072_v38  ;;  %v5414_v40 = vadd.f32 %v13981_v3, %v5400_v19  ;;  %v9021_v41 = vld [vmem:[%s16596_s1 + $0x1118] sm:$0xf0]  ;;  %v9296_v3 = vor.u32 %v10799_v29, %v9293_v5  ;;  %v10763_v32 = vld [vmem:[%s16596_s1 + $0x120c] sm:$0xf]  ;;  %v9424_v61 = vor.u32 %v10831_v8, %v9421_v7  ;;  %v5776_v29 = vadd.f32 %v15894_v62, %v5762_v2 }
 0x2fb   :  { %6288 = vmatpush.bf16.msrb.mxu1 %v9200_v44  ;;  %v16162_v57 = vpop.f32.mrf.mxu1  ;;  %v9149_v38 = vld [vmem:[%s16596_s1 + $0x1218] sm:$0xf0]  ;;  %v10795_v46 = vld [vmem:[%s16596_s1 + $0x130c] sm:$0xf]  ;;  %v16180_v44 = vpop.f32.mrf.mxu3  ;;  %v9024_v37 = vor.u32 %v10731_v27, %v9021_v41 }
 0x2fc   :  { %6302 = vmatpush.bf16.msrb.mxu2 %v9328_v30  ;;  %v9277_v45 = vld [vmem:[%s16596_s1 + $0x1318] sm:$0xf0]  ;;  %v10827_v14 = vld [vmem:[%s16596_s1 + $0x140c] sm:$0xf]  ;;  %v5428_v20 = vadd.f32 %v16652_v28, %v5414_v40  ;;  %v9152_v17 = vor.u32 %v10763_v32, %v9149_v38  ;;  %v16655_v32 = vld [vmem:[#allocation6_spill] sm:$0xff] }
 0x2fd   :  { %6316 = vmatpush.bf16.msrb.mxu3 %v9456_v12  ;;  %v16182_v30 = vpop.f32.mrf.mxu2  ;;  %v9405_v39 = vld [vmem:[%s16596_s1 + $0x1418] sm:$0xf0]  ;;  %v5078_v12 = vadd.f32 %v16651_v47, %v5064_v24  ;;  %v10887_v53 = vld [vmem:[%s16596_s1 + $0x15ec] sm:$0xf]  ;;  %v9280_v54 = vor.u32 %v10795_v46, %v9277_v45  ;;  %v5792_v46 = vadd.f32 %v16012_v49, %v5778_v21  ;;  %v5790_v47 = vadd.f32 %v15926_v22, %v5776_v29 }
 0x2fe   :  { %6275 = vmatpush.bf16.msrb.mxu0 %v9056_v1  ;;  %v9645_v43 = vld [vmem:[%s16596_s1 + $0x15f8] sm:$0xf0]  ;;  %v10919_v15 = vld [vmem:[%s16596_s1 + $0x16ec] sm:$0xf]  ;;  %v16206_v1 = vpop.f32.mrf.mxu0  ;;  %v9408_v5 = vor.u32 %v10827_v14, %v9405_v39  ;;  %v16656_v14 = vld [vmem:[#allocation26_spill] sm:$0xff] }
 0x2ff   :  { %6289 = vmatpush.bf16.msrb.mxu1 %v9184_v59  ;;  %v9773_v11 = vld [vmem:[%s16596_s1 + $0x16f8] sm:$0xf0]  ;;  %v10951_v59 = vld [vmem:[%s16596_s1 + $0x17ec] sm:$0xf]  ;;  %v9648_v52 = vor.u32 %v10887_v53, %v9645_v43  ;;  %v5806_v49 = vadd.f32 %v16036_v63, %v5792_v46  ;;  %v5804_v63 = vadd.f32 %v15946_v58, %v5790_v47 }
 0x300   :  { %6303 = vmatpush.bf16.msrb.mxu2 %v9312_v4  ;;  %v9901_v4 = vld [vmem:[%s16596_s1 + $0x17f8] sm:$0xf0]  ;;  %v10983_v0 = vld [vmem:[%s16596_s1 + $0x18ec] sm:$0xf]  ;;  %v9776_v7 = vor.u32 %v10919_v15, %v9773_v11 }
 0x301   :  { %6317 = vmatpush.bf16.msrb.mxu3 %v9440_v42  ;;  %v10029_v19 = vld [vmem:[%s16596_s1 + $0x18f8] sm:$0xf0]  ;;  %v9904_v40 = vor.u32 %v10951_v59, %v9901_v4  ;;  %v10883_v35 = vld [vmem:[%s16596_s1 + $0x15cc] sm:$0xf] }
 0x302   :  { %6276 = vmatpush.bf16.msrb.mxu0 %v9040_v6  ;;  %v16653_v42 = vld [vmem:[#allocation25_spill] sm:$0xff]  ;;  %v10915_v27 = vld [vmem:[%s16596_s1 + $0x16cc] sm:$0xf]  ;;  %v10032_v41 = vor.u32 %v10983_v0, %v10029_v19 }
 0x303   :  { %6290 = vmatpush.bf16.msrb.mxu1 %v9168_v23  ;;  %v5442_v31 = vadd.f32 %v16653_v42, %v5428_v20  ;;  %v16654_v50 = vld [vmem:[#allocation5_spill] sm:$0xff]  ;;  %v16236_v62 = vpop.f32.mrf.mxu1  ;;  %v10947_v23 = vld [vmem:[%s16596_s1 + $0x17cc] sm:$0xf] }
 0x304   :  { %6304 = vmatpush.bf16.msrb.mxu2 %v9296_v3  ;;  %v5092_v8 = vadd.f32 %v16654_v50, %v5078_v12  ;;  %v9629_v6 = vld [vmem:[%s16596_s1 + $0x15d8] sm:$0xf0]  ;;  %v10879_v15 = vld [vmem:[%s16596_s1 + $0x15ac] sm:$0xf]  ;;  %v16660_v50 = vld [vmem:[#allocation28_spill] sm:$0xff] }
 0x305   :  { %6318 = vmatpush.bf16.msrb.mxu3 %v9424_v61  ;;  %v9757_v24 = vld [vmem:[%s16596_s1 + $0x16d8] sm:$0xf0]  ;;  %v10979_v61 = vld [vmem:[%s16596_s1 + $0x18cc] sm:$0xf]  ;;  %v5456_v39 = vadd.f32 %v16656_v14, %v5442_v31  ;;  %v16257_v12 = vpop.f32.mrf.mxu2  ;;  %v9632_v18 = vor.u32 %v10883_v35, %v9629_v6 }
 0x306   :  { %6277 = vmatpush.bf16.msrb.mxu0 %v9024_v37  ;;  %v9885_v3 = vld [vmem:[%s16596_s1 + $0x17d8] sm:$0xf0]  ;;  %v5106_v38 = vadd.f32 %v16655_v32, %v5092_v8  ;;  %v9760_v53 = vor.u32 %v10915_v27, %v9757_v24  ;;  %v10911_v22 = vld [vmem:[%s16596_s1 + $0x16ac] sm:$0xf]  ;;  %v16271_v37 = vpop.f32.mrf.mxu3  ;;  %v16292_v0 = vpop.f32.mrf.mxu0  ;;  %v5818_v8 = vadd.f32 %v16034_v16, %v5804_v63 }
 0x307   :  { %6291 = vmatpush.bf16.msrb.mxu1 %v9152_v17  ;;  %v10013_v45 = vld [vmem:[%s16596_s1 + $0x18d8] sm:$0xf0]  ;;  %v9888_v43 = vor.u32 %v10947_v23, %v9885_v3  ;;  %v16657_v20 = vld [vmem:[#allocation27_spill] sm:$0xff] }
 0x308   :  { %6305 = vmatpush.bf16.msrb.mxu2 %v9280_v54  ;;  %v9613_v28 = vld [vmem:[%s16596_s1 + $0x15b8] sm:$0xf0]  ;;  %v5470_v2 = vadd.f32 %v16657_v20, %v5456_v39  ;;  %v10016_v11 = vor.u32 %v10979_v61, %v10013_v45  ;;  %v10943_v4 = vld [vmem:[%s16596_s1 + $0x17ac] sm:$0xf]  ;;  %v5832_v3 = vadd.f32 %v16050_v25, %v5818_v8 }
 0x309   :  { %6319 = vmatpush.bf16.msrb.mxu3 %v9408_v5  ;;  %6278 = vmatmul.bf16.vlgmr.msrb.gmra.mxu0 %v12225_v56  ;;  %v9741_v59 = vld [vmem:[%s16596_s1 + $0x16b8] sm:$0xf0]  ;;  %v10975_v56 = vld [vmem:[%s16596_s1 + $0x18ac] sm:$0xf]  ;;  %v9616_v19 = vor.u32 %v10879_v15, %v9613_v28  ;;  %v16659_v5 = vld [vmem:[#allocation8_spill] sm:$0xff] }
 0x30a   :  { %6326 = vmatpush.bf16.msra.mxu0 %v9648_v52  ;;  %v9869_v21 = vld [vmem:[%s16596_s1 + $0x17b8] sm:$0xf0]  ;;  %6292 = vmatmul.bf16.vlgmr.msrb.gmra.mxu1 %v12223_v55  ;;  %v16658_v17 = vld [vmem:[#allocation7_spill] sm:$0xff]  ;;  %v9744_v55 = vor.u32 %v10911_v22, %v9741_v59 }
 0x30b   :  { %6340 = vmatpush.bf16.msra.mxu1 %v9776_v7  ;;  %6306 = vmatmul.bf16.vlgmr.msrb.gmra.mxu2 %v12233_v60  ;;  %v9997_v58 = vld [vmem:[%s16596_s1 + $0x18b8] sm:$0xf0]  ;;  %v5120_v54 = vadd.f32 %v16658_v17, %v5106_v38  ;;  %v5820_v60 = vadd.f32 %v16112_v51, %v5806_v49  ;;  %v9872_v42 = vor.u32 %v10943_v4, %v9869_v21  ;;  %v10875_v31 = vld [vmem:[%s16596_s1 + $0x158c] sm:$0xf]  ;;  %v16326_v32 = vpop.f32.mrf.mxu1 }
 0x30c   :  { %6354 = vmatpush.bf16.msra.mxu2 %v9904_v40  ;;  %6320 = vmatmul.bf16.vlgmr.msrb.gmra.mxu3 %v12452_v26  ;;  %v9597_v29 = vld [vmem:[%s16596_s1 + $0x1598] sm:$0xf0]  ;;  %v10907_v26 = vld [vmem:[%s16596_s1 + $0x168c] sm:$0xf]  ;;  %v5484_v51 = vadd.f32 %v16660_v50, %v5470_v2  ;;  %v10000_v7 = vor.u32 %v10975_v56, %v9997_v58  ;;  %v16663_v2 = vld [vmem:[#allocation10_spill] sm:$0xff]  ;;  %v5846_v4 = vadd.f32 %v16080_v48, %v5832_v3 }
 0x30d   :  { %6368 = vmatpush.bf16.msra.mxu3 %v10032_v41  ;;  %v5134_v52 = vadd.f32 %v16659_v5, %v5120_v54  ;;  %v9725_v40 = vld [vmem:[%s16596_s1 + $0x1698] sm:$0xf0]  ;;  %v10939_v35 = vld [vmem:[%s16596_s1 + $0x178c] sm:$0xf]  ;;  %v5834_v27 = vadd.f32 %v16131_v9, %v5820_v60  ;;  %v9600_v38 = vor.u32 %v10875_v31, %v9597_v29 }
 0x30e   :  { %6327 = vmatpush.bf16.msra.mxu0 %v9632_v18  ;;  %v9853_v6 = vld [vmem:[%s16596_s1 + $0x1798] sm:$0xf0]  ;;  %v10971_v16 = vld [vmem:[%s16596_s1 + $0x188c] sm:$0xf]  ;;  %v9728_v46 = vor.u32 %v10907_v26, %v9725_v40  ;;  %v16338_v47 = vpop.f32.mrf.mxu3  ;;  %v16340_v18 = vpop.f32.mrf.mxu2 }
 0x30f   :  { %6341 = vmatpush.bf16.msra.mxu1 %v9760_v53  ;;  %v9981_v41 = vld [vmem:[%s16596_s1 + $0x1898] sm:$0xf0]  ;;  %v9856_v9 = vor.u32 %v10939_v35, %v9853_v6  ;;  %v10871_v61 = vld [vmem:[%s16596_s1 + $0x156c] sm:$0xf]  ;;  %v5848_v28 = vadd.f32 %v16162_v57, %v5834_v27  ;;  %v16361_v21 = vpop.f32.mrf.mxu0 }
 0x310   :  { %6355 = vmatpush.bf16.msra.mxu2 %v9888_v43  ;;  %v16661_v24 = vld [vmem:[#allocation29_spill] sm:$0xff]  ;;  %v10903_v25 = vld [vmem:[%s16596_s1 + $0x166c] sm:$0xf]  ;;  %v9984_v49 = vor.u32 %v10971_v16, %v9981_v41  ;;  %v16667_v41 = vld [vmem:[#allocation12_spill] sm:$0xff] }
 0x311   :  { %6369 = vmatpush.bf16.msra.mxu3 %v10016_v11  ;;  %v5498_v23 = vadd.f32 %v16661_v24, %v5484_v51  ;;  %v9581_v45 = vld [vmem:[%s16596_s1 + $0x1578] sm:$0xf0]  ;;  %v10935_v43 = vld [vmem:[%s16596_s1 + $0x176c] sm:$0xf]  ;;  %v16664_v11 = vld [vmem:[#allocation30_spill] sm:$0xff]  ;;  %v5862_v57 = vadd.f32 %v16182_v30, %v5848_v28  ;;  %v5860_v30 = vadd.f32 %v16099_v10, %v5846_v4 }
 0x312   :  { %6328 = vmatpush.bf16.msra.mxu0 %v9616_v19  ;;  %v16662_v14 = vld [vmem:[#allocation9_spill] sm:$0xff]  ;;  %v10967_v22 = vld [vmem:[%s16596_s1 + $0x186c] sm:$0xf]  ;;  %v9584_v56 = vor.u32 %v10871_v61, %v9581_v45 }
 0x313   :  { %6342 = vmatpush.bf16.msra.mxu1 %v9744_v55  ;;  %v5148_v39 = vadd.f32 %v16662_v14, %v5134_v52  ;;  %v9709_v53 = vld [vmem:[%s16596_s1 + $0x1678] sm:$0xf0]  ;;  %v5512_v59 = vadd.f32 %v16664_v11, %v5498_v23  ;;  %v10867_v54 = vld [vmem:[%s16596_s1 + $0x154c] sm:$0xf]  ;;  %v16391_v51 = vpop.f32.mrf.mxu1  ;;  %v16668_v23 = vld [vmem:[#allocation32_spill] sm:$0xff]  ;;  %v5874_v3 = vadd.f32 %v16180_v44, %v5860_v30 }
 0x314   :  { %6356 = vmatpush.bf16.msra.mxu2 %v9872_v42  ;;  %v9837_v15 = vld [vmem:[%s16596_s1 + $0x1778] sm:$0xf0]  ;;  %v9712_v58 = vor.u32 %v10903_v25, %v9709_v53  ;;  %v10899_v48 = vld [vmem:[%s16596_s1 + $0x164c] sm:$0xf] }
 0x315   :  { %6370 = vmatpush.bf16.msra.mxu3 %v10000_v7  ;;  %v9965_v20 = vld [vmem:[%s16596_s1 + $0x1878] sm:$0xf0]  ;;  %v5162_v63 = vadd.f32 %v16663_v2, %v5148_v39  ;;  %v9840_v17 = vor.u32 %v10935_v43, %v9837_v15  ;;  %v16665_v60 = vld [vmem:[#allocation31_spill] sm:$0xff]  ;;  %v5876_v7 = vadd.f32 %v16271_v37, %v5862_v57  ;;  %v5888_v53 = vadd.f32 %v16206_v1, %v5874_v3 }
 0x316   :  { %6329 = vmatpush.bf16.msra.mxu0 %v9600_v38  ;;  %v9565_v19 = vld [vmem:[%s16596_s1 + $0x1558] sm:$0xf0]  ;;  %v5526_v55 = vadd.f32 %v16665_v60, %v5512_v59  ;;  %v9968_v42 = vor.u32 %v10967_v22, %v9965_v20  ;;  %v10931_v29 = vld [vmem:[%s16596_s1 + $0x174c] sm:$0xf]  ;;  %v16406_v38 = vpop.f32.mrf.mxu2  ;;  %v5931_v43 = vpop.f32.mrf.mxu3  ;;  %v16672_v60 = vld [vmem:[#allocation34_spill] sm:$0xff] }
 0x317   :  { %6343 = vmatpush.bf16.msra.mxu1 %v9728_v46  ;;  %v9693_v31 = vld [vmem:[%s16596_s1 + $0x1658] sm:$0xf0]  ;;  %v10963_v5 = vld [vmem:[%s16596_s1 + $0x184c] sm:$0xf]  ;;  %v9568_v8 = vor.u32 %v10867_v54, %v9565_v19  ;;  %v5890_v25 = vadd.f32 %v16292_v0, %v5876_v7  ;;  %v5945_v11 = vpop.f32.mrf.mxu0  ;;  %v16671_v19 = vld [vmem:[#allocation14_spill] sm:$0xff]  ;;  %v5902_v30 = vadd.f32 %v16236_v62, %v5888_v53 }
 0x318   :  { %6357 = vmatpush.bf16.msra.mxu2 %v9856_v9  ;;  %v9821_v26 = vld [vmem:[%s16596_s1 + $0x1758] sm:$0xf0]  ;;  %v16666_v52 = vld [vmem:[#allocation11_spill] sm:$0xff]  ;;  %v9696_v40 = vor.u32 %v10899_v48, %v9693_v31  ;;  %v5540_v37 = vadd.f32 %v16668_v23, %v5526_v55  ;;  %v16676_v23 = vld [vmem:[#allocation36_spill] sm:$0xff] }
 0x319   :  { %6371 = vmatpush.bf16.msra.mxu3 %v9984_v49  ;;  %v9949_v10 = vld [vmem:[%s16596_s1 + $0x1858] sm:$0xf0]  ;;  %v5176_v50 = vadd.f32 %v16666_v52, %v5162_v63  ;;  %v9824_v35 = vor.u32 %v10931_v29, %v9821_v26  ;;  %v10863_v6 = vld [vmem:[%s16596_s1 + $0x152c] sm:$0xf] }
 0x31a   :  { %6330 = vmatpush.bf16.msra.mxu0 %v9584_v56  ;;  %v9549_v27 = vld [vmem:[%s16596_s1 + $0x1538] sm:$0xf0]  ;;  %v10895_v16 = vld [vmem:[%s16596_s1 + $0x162c] sm:$0xf]  ;;  %v9952_v46 = vor.u32 %v10963_v5, %v9949_v10 }
 0x31b   :  { %6344 = vmatpush.bf16.msra.mxu1 %v9712_v58  ;;  %v5190_v24 = vadd.f32 %v16667_v41, %v5176_v50  ;;  %v9677_v9 = vld [vmem:[%s16596_s1 + $0x1638] sm:$0xf0]  ;;  %v10927_v61 = vld [vmem:[%s16596_s1 + $0x172c] sm:$0xf]  ;;  %v9552_v15 = vor.u32 %v10863_v6, %v9549_v27  ;;  %v5904_v58 = vadd.f32 %v16326_v32, %v5890_v25  ;;  %v5959_v26 = vpop.f32.mrf.mxu1 }
 0x31c   :  { %6358 = vmatpush.bf16.msra.mxu2 %v9840_v17  ;;  %v9805_v45 = vld [vmem:[%s16596_s1 + $0x1738] sm:$0xf0]  ;;  %v10959_v44 = vld [vmem:[%s16596_s1 + $0x182c] sm:$0xf]  ;;  %v9680_v28 = vor.u32 %v10895_v16, %v9677_v9  ;;  %v16675_v16 = vld [vmem:[#allocation16_spill] sm:$0xff] }
 0x31d   :  { %6372 = vmatpush.bf16.msra.mxu3 %v9968_v42  ;;  %v9933_v14 = vld [vmem:[%s16596_s1 + $0x1838] sm:$0xf0]  ;;  %v9808_v22 = vor.u32 %v10927_v61, %v9805_v45  ;;  %v10859_v0 = vld [vmem:[%s16596_s1 + $0x150c] sm:$0xf]  ;;  %v5918_v31 = vadd.f32 %v16340_v18, %v5904_v58  ;;  %v11000_v9 = vld [vmem:[%s16599_s3 + $0x70] sm:$0xff] }
 0x31e   :  { %v16669_v39 = vld [vmem:[#allocation33_spill] sm:$0xff]  ;;  %6331 = vmatpush.bf16.msra.mxu0 %v9568_v8  ;;  %v10891_v2 = vld [vmem:[%s16596_s1 + $0x160c] sm:$0xf]  ;;  %v9936_v59 = vor.u32 %v10959_v44, %v9933_v14  ;;  %v5916_v8 = vadd.f32 %v16257_v12, %v5902_v30  ;;  %v5973_v6 = vpop.f32.mrf.mxu2  ;;  %v10992_v12 = vld [vmem:[%s16599_s3 + $0x30] sm:$0xff] }
 0x31f   :  { %v5554_v49 = vadd.f32 %v16669_v39, %v5540_v37  ;;  %6345 = vmatpush.bf16.msra.mxu1 %v9696_v40  ;;  %v9533_v20 = vld [vmem:[%s16596_s1 + $0x1518] sm:$0xf0]  ;;  %v10923_v56 = vld [vmem:[%s16596_s1 + $0x170c] sm:$0xf]  ;;  %v5932_v27 = vadd.f32 %v5931_v43, %v5918_v31  ;;  %v11008_v61 = vld [vmem:[%s16599_s3 + $0xb0] sm:$0xff] }
 0x320   :  { %6359 = vmatpush.bf16.msra.mxu2 %v9824_v35  ;;  %v16670_v1 = vld [vmem:[#allocation13_spill] sm:$0xff]  ;;  %v10955_v17 = vld [vmem:[%s16596_s1 + $0x180c] sm:$0xf]  ;;  %v9536_v42 = vor.u32 %v10859_v0, %v9533_v20  ;;  %v5985_v35 = vpop.f32.mrf.mxu3  ;;  %v5930_v3 = vadd.f32 %v16338_v47, %v5916_v8  ;;  %v16677_v47 = vld [vmem:[#allocation2_spill] sm:$0xff] }
 0x321   :  { %v5204_v63 = vadd.f32 %v16670_v1, %v5190_v24  ;;  %6373 = vmatpush.bf16.msra.mxu3 %v9952_v46  ;;  %v9661_v4 = vld [vmem:[%s16596_s1 + $0x1618] sm:$0xf0]  ;;  %v5568_v55 = vadd.f32 %v16672_v60, %v5554_v49  ;;  %v16673_v52 = vld [vmem:[#allocation35_spill] sm:$0xff]  ;;  %v5999_v24 = vpop.f32.mrf.mxu0  ;;  %v5946_v46 = vadd.f32 %v5945_v11, %v5932_v27  ;;  %v10990_v1 = vld [vmem:[%s16599_s3 + $0x20] sm:$0xff] }
 0x322   :  { %v9789_v57 = vld [vmem:[%s16596_s1 + $0x1718] sm:$0xf0]  ;;  %6332 = vmatpush.bf16.msra.mxu0 %v9552_v15  ;;  %v9664_v32 = vor.u32 %v10891_v2, %v9661_v4  ;;  %v16674_v7 = vld [vmem:[#allocation15_spill] sm:$0xff]  ;;  %v5944_v25 = vadd.f32 %v16361_v21, %v5930_v3  ;;  %v10998_v4 = vld [vmem:[%s16599_s3 + $0x60] sm:$0xff] }
 0x323   :  { %v9917_v54 = vld [vmem:[%s16596_s1 + $0x1818] sm:$0xf0]  ;;  %v5218_v48 = vadd.f32 %v16671_v19, %v5204_v63  ;;  %6346 = vmatpush.bf16.msra.mxu1 %v9680_v28  ;;  %v9792_v29 = vor.u32 %v10923_v56, %v9789_v57  ;;  %v5582_v50 = vadd.f32 %v16673_v52, %v5568_v55  ;;  %v16678_v44 = vld [vmem:[#allocation3_spill] sm:$0xff]  ;;  %v6013_v49 = vpop.f32.mrf.mxu1  ;;  %v5960_v43 = vadd.f32 %v5959_v26, %v5946_v46  ;;  %v10988_v8 = vld [vmem:[%s16599_s3 + $0x10] sm:$0xff] }
 0x324   :  { %6360 = vmatpush.bf16.msra.mxu2 %v9808_v22  ;;  %v9920_v5 = vor.u32 %v10955_v17, %v9917_v54  ;;  %v10993_v10 = vld [vmem:[%s16599_s3 + $0x38] sm:$0xff]  ;;  %v10991_v53 = vld [vmem:[%s16599_s3 + $0x28] sm:$0xff]  ;;  %v5958_v0 = vadd.f32 %v16391_v51, %v5944_v25  ;;  %v11006_v51 = vld [vmem:[%s16599_s3 + $0xa0] sm:$0xff] }
 0x325   :  { %6374 = vmatpush.bf16.msra.mxu3 %v9936_v59  ;;  %v11001_v62 = vld [vmem:[%s16599_s3 + $0x78] sm:$0xff]  ;;  %v5232_v40 = vadd.f32 %v16674_v7, %v5218_v48  ;;  %v5596_v37 = vadd.f32 %v16676_v23, %v5582_v50  ;;  %v5974_v20 = vadd.f32 %v5973_v6, %v5960_v43  ;;  %v16682_v63 = vld [vmem:[#allocation39_spill] sm:$0xff]  ;;  %v16684_v54 = vld [vmem:[#allocation20_spill] sm:$0xff] }
 0x326   :  { %v11009_v18 = vld [vmem:[%s16599_s3 + $0xb8] sm:$0xff]  ;;  %6333 = vmatpush.bf16.msra.mxu0 %v9536_v42  ;;  %v6027_v15 = vpop.f32.mrf.mxu2  ;;  %v5972_v59 = vadd.f32 %v16406_v38, %v5958_v0  ;;  %v16683_v56 = vld [vmem:[#allocation19_spill] sm:$0xff]  ;;  %v16685_v48 = vld [vmem:[#allocation40_spill] sm:$0xff] }
 0x327   :  { %6347 = vmatpush.bf16.msra.mxu1 %v9664_v32  ;;  %v5246_v41 = vadd.f32 %v16675_v16, %v5232_v40  ;;  %v5610_v45 = vadd.f32 %v14762_v13, %v5596_v37  ;;  %v16679_v14 = vld [vmem:[#allocation17_spill] sm:$0xff]  ;;  %v16680_v13 = vld [vmem:[#allocation18_spill] sm:$0xff]  ;;  %v11004_v7 = vld [vmem:[%s16599_s3 + $0x90] sm:$0xff] }
 0x328   :  { %6361 = vmatpush.bf16.msra.mxu2 %v9792_v29  ;;  %v16681_v28 = vld [vmem:[#allocation37_spill] sm:$0xff]  ;;  %v5987_v2 = vpop.f32.mrf.mxu3  ;;  %v5986_v55 = vadd.f32 %v5985_v35, %v5972_v59  ;;  %v16688_v40 = vld [vmem:[#allocation23_spill] sm:$0xff]  ;;  %v16689_v6 = vld [vmem:[#allocation42_spill] sm:$0xff] }
 0x329   :  { %6375 = vmatpush.bf16.msra.mxu3 %v9920_v5  ;;  %6334 = vmatmul.bf16.vlgmr.msra.gmra.mxu0 %v12465_v34  ;;  %v5260_v39 = vadd.f32 %v16679_v14, %v5246_v41  ;;  %v11007_v34 = vld [vmem:[%s16599_s3 + $0xa8] sm:$0xff]  ;;  %v5624_v22 = vadd.f32 %v16681_v28, %v5610_v45  ;;  %v6001_v58 = vpop.f32.mrf.mxu0  ;;  %v5988_v17 = vadd.f32 %v5987_v2, %v5974_v20  ;;  %v10989_v38 = vld [vmem:[%s16599_s3 + $0x18] sm:$0xff]  ;;  %v16690_v3 = vld [vmem:[#allocation22_spill] sm:$0xff] }
 0x32a   :  { %6670 = vmatpush.bf16.msrb.mxu0 %v10993_v10  ;;  %6348 = vmatmul.bf16.vlgmr.msra.gmra.mxu1 %v12463_v33  ;;  %v10999_v33 = vld [vmem:[%s16599_s3 + $0x68] sm:$0xff]  ;;  %v10997_v42 = vld [vmem:[%s16599_s3 + $0x58] sm:$0xff]  ;;  %v6000_v5 = vadd.f32 %v5999_v24, %v5986_v55  ;;  %v6390_v46 = vmul.f32 0.01, %v16690_v3  ;;  %vm6382_vm1 = vcmp.gt.f32.partialorder %v16690_v3, 0.0  ;;  %v16691_v25 = vld [vmem:[#allocation38_spill] sm:$0xff] }
 0x32b   :  { %6684 = vmatpush.bf16.msrb.mxu1 %v11001_v62  ;;  %6362 = vmatmul.bf16.vlgmr.msra.gmra.mxu2 %v16677_v47  ;;  %v5274_v21 = vadd.f32 %v16680_v13, %v5260_v39  ;;  %v5638_v11 = vadd.f32 %v16682_v63, %v5624_v22  ;;  %v6002_v30 = vadd.f32 %v6001_v58, %v5988_v17  ;;  %v11005_v31 = vld [vmem:[%s16599_s3 + $0x98] sm:$0xff]  ;;  %v6015_v32 = vpop.f32.mrf.mxu1  ;;  %v10987_v24 = vld [vmem:[%s16599_s3 + $0x8] sm:$0xff]  ;;  %v6391_v47 = vmul.f32 0.01, %v16691_v25  ;;  %v10986_v14 = vld [vmem:[%s16599_s3] sm:$0xff] }
 0x32c   :  { %6698 = vmatpush.bf16.msrb.mxu2 %v11009_v18  ;;  %6376 = vmatmul.bf16.vlgmr.msra.gmra.mxu3 %v16678_v44  ;;  %v16686_v29 = vld [vmem:[#allocation41_spill] sm:$0xff]  ;;  %v10996_v18 = vld [vmem:[%s16599_s3 + $0x50] sm:$0xff]  ;;  %v6014_v16 = vadd.f32 %v6013_v49, %v6000_v5  ;;  %v10995_v23 = vld [vmem:[%s16599_s3 + $0x48] sm:$0xff]  ;;  %vm6383_vm4 = vcmp.gt.f32.partialorder %v16691_v25, 0.0  ;;  %v6398_v13 = vsel %vm6382_vm1, %v16690_v3, %v6390_v46  ;;  %v851_v17 = vperm.slane %v15997_v36, 3 }
 0x32d   :  { %v5288_v57 = vadd.f32 %v16683_v56, %v5274_v21  ;;  %v5652_v60 = vadd.f32 %v16685_v48, %v5638_v11  ;;  %v16687_v10 = vld [vmem:[#allocation21_spill] sm:$0xff]  ;;  %v6016_v62 = vadd.f32 %v6015_v32, %v6002_v30  ;;  %v11003_v37 = vld [vmem:[%s16599_s3 + $0x88] sm:$0xff]  ;;  %v10994_v49 = vld [vmem:[%s16599_s3 + $0x40] sm:$0xff] }
 0x32e   :  { %6671 = vmatpush.bf16.msrb.mxu0 %v10992_v12  ;;  %v6029_v50 = vpop.f32.mrf.mxu2  ;;  %v6028_v12 = vadd.f32 %v6027_v15, %v6014_v16  ;;  %v6399_v15 = vsel %vm6383_vm4, %v16691_v25, %v6391_v47  ;;  %v11015_v25 = vld [vmem:[%s16599_s3 + $0xe8] sm:$0xff] }
 0x32f   :  { %6685 = vmatpush.bf16.msrb.mxu1 %v11000_v9  ;;  %v5302_v19 = vadd.f32 %v16684_v54, %v5288_v57  ;;  %v5666_v26 = vadd.f32 %v16686_v29, %v5652_v60  ;;  %v6030_v41 = vadd.f32 %v6029_v50, %v6016_v62 }
 0x330   :  { %6699 = vmatpush.bf16.msrb.mxu2 %v11008_v61  ;;  %v6041_v44 = vpop.f32.mrf.mxu3  ;;  %v6392_v39 = vmul.f32 0.01, %v6028_v12  ;;  %vm6384_vm5 = vcmp.gt.f32.partialorder %v6028_v12, 0.0 }
 0x331   :  { %v5316_v52 = vadd.f32 %v16687_v10, %v5302_v19  ;;  %v5680_v27 = vadd.f32 %v16689_v6, %v5666_v26  ;;  %v6396_v45 = vmul.f32 0.01, %v6030_v41  ;;  %vm6388_vm3 = vcmp.gt.f32.partialorder %v6030_v41, 0.0  ;;  %v6055_v2 = vpop.f32.mrf.mxu0 }
 0x332   :  { %6672 = vmatpush.bf16.msrb.mxu0 %v10991_v53  ;;  %v11002_v53 = vld [vmem:[%s16599_s3 + $0x80] sm:$0xff]  ;;  %v6400_v28 = vsel %vm6384_vm5, %v6028_v12, %v6392_v39 }
 0x333   :  { %6686 = vmatpush.bf16.msrb.mxu1 %v10999_v33  ;;  %v5330_v35 = vadd.f32 %v16688_v40, %v5316_v52  ;;  %v6395_v61 = vmul.f32 0.01, %v5680_v27  ;;  %vm6387_vm2 = vcmp.gt.f32.partialorder %v5680_v27, 0.0  ;;  %v11017_v40 = vld [vmem:[%s16599_s3 + $0xf8] sm:$0xff] }
 0x334   :  { %6700 = vmatpush.bf16.msrb.mxu2 %v11007_v34  ;;  %v6404_v34 = vsel %vm6388_vm3, %v6030_v41, %v6396_v45  ;;  %6712 = vmatpush.bf16.msrb.mxu3 %v11017_v40 }
 0x335   :  { %v6394_v9 = vmul.f32 0.01, %v5330_v35  ;;  %vm6386_vm0 = vcmp.gt.f32.partialorder %v5330_v35, 0.0  ;;  %v6403_v33 = vsel %vm6387_vm2, %v5680_v27, %v6395_v61  ;;  %v6408_v0 = vpack.c.bf16 %v6404_v34, %v6400_v28  ;;  %v11013_v34 = vld [vmem:[%s16599_s3 + $0xd8] sm:$0xff] }
 0x336   :  { %6673 = vmatpush.bf16.msrb.mxu0 %v10990_v1  ;;  %v6407_v22 = vpack.c.bf16 %v6403_v33, %v6399_v15  ;;  %v6069_v1 = vpop.f32.mrf.mxu1  ;;  %v6083_v63 = vpop.f32.mrf.mxu2 }
 0x337   :  { %6687 = vmatpush.bf16.msrb.mxu1 %v10998_v4  ;;  %v6402_v43 = vsel %vm6386_vm0, %v5330_v35, %v6394_v9  ;;  %v11016_v35 = vld [vmem:[%s16599_s3 + $0xf0] sm:$0xff] }
 0x338   :  { %6701 = vmatpush.bf16.msrb.mxu2 %v11006_v51  ;;  %v6406_v21 = vpack.c.bf16 %v6402_v43, %v6398_v13  ;;  %v6043_v20 = vpop.f32.mrf.mxu3  ;;  %6713 = vmatpush.bf16.msrb.mxu3 %v11016_v35 }
 0x339   :  { %v6057_v59 = vpop.f32.mrf.mxu0 }
 0x33a   :  { %6674 = vmatpush.bf16.msrb.mxu0 %v10989_v38  ;;  %v6042_v38 = vadd.f32 %v6041_v44, %v851_v17 }
 0x33b   :  { %6688 = vmatpush.bf16.msrb.mxu1 %v10997_v42 }
 0x33c   :  { %6702 = vmatpush.bf16.msrb.mxu2 %v11005_v31  ;;  %v6056_v55 = vadd.f32 %v6055_v2, %v6042_v38  ;;  %v6044_v31 = vadd.f32 %v6043_v20, %v851_v17  ;;  %6714 = vmatpush.bf16.msrb.mxu3 %v11015_v25 }
 0x33e   :  { %6675 = vmatpush.bf16.msrb.mxu0 %v10988_v8  ;;  %v6071_v4 = vpop.f32.mrf.mxu1  ;;  %v6085_v51 = vpop.f32.mrf.mxu2  ;;  %v6070_v32 = vadd.f32 %v6069_v1, %v6056_v55  ;;  %v6058_v10 = vadd.f32 %v6057_v59, %v6044_v31  ;;  %v11011_v59 = vld [vmem:[%s16599_s3 + $0xc8] sm:$0xff] }
 0x33f   :  { %6689 = vmatpush.bf16.msrb.mxu1 %v10996_v18 }
 0x340   :  { %6703 = vmatpush.bf16.msrb.mxu2 %v11004_v7  ;;  %v6097_v11 = vpop.f32.mrf.mxu3  ;;  %v6084_v5 = vadd.f32 %v6083_v63, %v6070_v32  ;;  %v6072_v62 = vadd.f32 %v6071_v4, %v6058_v10 }
 0x341   :  { %v6111_v57 = vpop.f32.mrf.mxu0 }
 0x342   :  { %6676 = vmatpush.bf16.msrb.mxu0 %v10987_v24  ;;  %v6098_v8 = vadd.f32 %v6097_v11, %v6084_v5  ;;  %v6086_v18 = vadd.f32 %v6085_v51, %v6072_v62 }
 0x343   :  { %6690 = vmatpush.bf16.msrb.mxu1 %v10995_v23 }
 0x344   :  { %6704 = vmatpush.bf16.msrb.mxu2 %v11003_v37  ;;  %v6112_v36 = vadd.f32 %v6111_v57, %v6098_v8  ;;  %v11010_v57 = vld [vmem:[%s16599_s3 + $0xc0] sm:$0xff] }
 0x346   :  { %6677 = vmatpush.bf16.msrb.mxu0 %v10986_v14  ;;  %v6125_v58 = vpop.f32.mrf.mxu1  ;;  %v6139_v54 = vpop.f32.mrf.mxu2  ;;  %v11014_v14 = vld [vmem:[%s16599_s3 + $0xe0] sm:$0xff] }
 0x347   :  { %6691 = vmatpush.bf16.msrb.mxu1 %v10994_v49  ;;  %v6126_v16 = vadd.f32 %v6125_v58, %v6112_v36  ;;  %6715 = vmatpush.bf16.msrb.mxu3 %v11014_v14 }
 0x348   :  { %6705 = vmatpush.bf16.msrb.mxu2 %v11002_v53  ;;  %v6099_v56 = vpop.f32.mrf.mxu3 }
 0x349   :  { %6678 = vmatmul.bf16.vlgmr.msrb.gmra.mxu0 %v6406_v21  ;;  %v6113_v48 = vpop.f32.mrf.mxu0  ;;  %v6100_v27 = vadd.f32 %v6099_v56, %v6086_v18  ;;  %v6140_v41 = vadd.f32 %v6139_v54, %v6126_v16 }
 0x34a   :  { %6692 = vmatmul.bf16.vlgmr.msrb.gmra.mxu1 %v6407_v22 }
 0x34b   :  { %6706 = vmatmul.bf16.vlgmr.msrb.gmra.mxu2 %v6408_v0  ;;  %v6114_v24 = vadd.f32 %v6113_v48, %v6100_v27  ;;  %6716 = vmatpush.bf16.msrb.mxu3 %v11013_v34  ;;  %v11012_v0 = vld [vmem:[%s16599_s3 + $0xd0] sm:$0xff] }
 0x34e   :  { %v6127_v60 = vpop.f32.mrf.mxu1  ;;  %v6141_v30 = vpop.f32.mrf.mxu2 }
 0x34f   :  { %v6128_v46 = vadd.f32 %v6127_v60, %v6114_v24  ;;  %6717 = vmatpush.bf16.msrb.mxu3 %v11012_v0 }
 0x350   :  { %v6153_v19 = vpop.f32.mrf.mxu3 }
 0x351   :  { %v6167_v29 = vpop.f32.mrf.mxu0  ;;  %v6154_v3 = vadd.f32 %v6153_v19, %v6140_v41  ;;  %v6142_v61 = vadd.f32 %v6141_v30, %v6128_v46 }
 0x353   :  { %v6168_v45 = vadd.f32 %v6167_v29, %v6154_v3  ;;  %6718 = vmatpush.bf16.msrb.mxu3 %v11011_v59 }
 0x356   :  { %v6181_v26 = vpop.f32.mrf.mxu1  ;;  %v6195_v52 = vpop.f32.mrf.mxu2 }
 0x357   :  { %v6182_v49 = vadd.f32 %v6181_v26, %v6168_v45  ;;  %6719 = vmatpush.bf16.msrb.mxu3 %v11010_v57 }
 0x358   :  { %v6155_v42 = vpop.f32.mrf.mxu3 }
 0x359   :  { %v6169_v7 = vpop.f32.mrf.mxu0  ;;  %v6156_v39 = vadd.f32 %v6155_v42, %v6142_v61  ;;  %v6196_v53 = vadd.f32 %v6195_v52, %v6182_v49 }
 0x35b   :  { %v6170_v43 = vadd.f32 %v6169_v7, %v6156_v39 }
 0x35e   :  { %v6183_v6 = vpop.f32.mrf.mxu1  ;;  %v6197_v12 = vpop.f32.mrf.mxu2 }
 0x35f   :  { %v6184_v15 = vadd.f32 %v6183_v6, %v6170_v43 }
 0x360   :  { %v6209_v50 = vpop.f32.mrf.mxu3 }
 0x361   :  { %v6210_v21 = vadd.f32 %v6209_v50, %v6196_v53  ;;  %v6198_v28 = vadd.f32 %v6197_v12, %v6184_v15 }
 0x366   :  { %v6223_v37 = vpop.f32.mrf.mxu0 }
 0x367   :  { %v6237_v9 = vpop.f32.mrf.mxu1  ;;  %v6224_v22 = vadd.f32 %v6223_v37, %v6210_v21 }
 0x368   :  { %v6211_v23 = vpop.f32.mrf.mxu3 }
 0x369   :  { %v6212_v63 = vadd.f32 %v6211_v23, %v6198_v28  ;;  %v6238_v11 = vadd.f32 %v6237_v9, %v6224_v22 }
 0x36e   :  { %v6251_v47 = vpop.f32.mrf.mxu2  ;;  %v6225_v33 = vpop.f32.mrf.mxu0 }
 0x36f   :  { %v6239_v13 = vpop.f32.mrf.mxu1  ;;  %v6252_v51 = vadd.f32 %v6251_v47, %v6238_v11  ;;  %v6226_v56 = vadd.f32 %v6225_v33, %v6212_v63 }
 0x370   :  { %v6265_v44 = vpop.f32.mrf.mxu3 }
 0x371   :  { %v6266_v54 = vadd.f32 %v6265_v44, %v6252_v51  ;;  %v6240_v19 = vadd.f32 %v6239_v13, %v6226_v56  ;;  %v11018_v44 = vld [vmem:[%s16600_s4] ss:$0 sm:$0xff] }
 0x376   :  { %v6253_v20 = vpop.f32.mrf.mxu2 }
 0x377   :  { %v6254_v38 = vadd.f32 %v6253_v20, %v6240_v19 }
 0x378   :  { %v6267_v2 = vpop.f32.mrf.mxu3 }
 0x379   :  { %v6268_v30 = vadd.f32 %v6267_v2, %v6254_v38 }
 0x386   :  { %v6279_v1 = vpop.f32.mrf.mxu0 }
 0x387   :  { %v6293_v4 = vpop.f32.mrf.mxu1  ;;  %v6280_v48 = vadd.f32 %v6279_v1, %v6266_v54 }
 0x389   :  { %v6294_v42 = vadd.f32 %v6293_v4, %v6280_v48 }
 0x38e   :  { %v6307_v58 = vpop.f32.mrf.mxu2  ;;  %v6281_v60 = vpop.f32.mrf.mxu0 }
 0x38f   :  { %v6321_v17 = vpop.f32.mrf.mxu3  ;;  %v6295_v55 = vpop.f32.mrf.mxu1  ;;  %v6308_v31 = vadd.f32 %v6307_v58, %v6294_v42  ;;  %v6282_v32 = vadd.f32 %v6281_v60, %v6268_v30 }
 0x391   :  { %v6322_v10 = vadd.f32 %v6321_v17, %v6308_v31  ;;  %v6296_v52 = vadd.f32 %v6295_v55, %v6282_v32 }
 0x396   :  { %v6309_v29 = vpop.f32.mrf.mxu2 }
 0x397   :  { %v6323_v26 = vpop.f32.mrf.mxu3  ;;  %v6310_v8 = vadd.f32 %v6309_v29, %v6296_v52 }
 0x399   :  { %v6324_v7 = vadd.f32 %v6323_v26, %v6310_v8 }
 0x3a6   :  { %v6335_v5 = vpop.f32.mrf.mxu0 }
 0x3a7   :  { %v6349_v50 = vpop.f32.mrf.mxu1  ;;  %v6336_v62 = vadd.f32 %v6335_v5, %v6322_v10 }
 0x3a9   :  { %v6350_v40 = vadd.f32 %v6349_v50, %v6336_v62 }
 0x3ae   :  { %v6363_v18 = vpop.f32.mrf.mxu2  ;;  %v6337_v35 = vpop.f32.mrf.mxu0 }
 0x3af   :  { %v6377_v36 = vpop.f32.mrf.mxu3  ;;  %v6364_v6 = vadd.f32 %v6363_v18, %v6350_v40  ;;  %v6338_v27 = vadd.f32 %v6337_v35, %v6324_v7  ;;  %v6351_v16 = vpop.f32.mrf.mxu1 }
 0x3b1   :  { %v6378_v41 = vadd.f32 %v6377_v36, %v6364_v6  ;;  %v6352_v24 = vadd.f32 %v6351_v16, %v6338_v27 }
 0x3b3   :  { %v6393_v3 = vmul.f32 0.01, %v6378_v41  ;;  %vm6385_vm6 = vcmp.gt.f32.partialorder %v6378_v41, 0.0 }
 0x3b5   :  { %v6401_v61 = vsel %vm6385_vm6, %v6378_v41, %v6393_v3 }
 0x3b6   :  { %v6365_v12 = vpop.f32.mrf.mxu2 }
 0x3b7   :  { %v6366_v23 = vadd.f32 %v6365_v12, %v6352_v24  ;;  %v6379_v37 = vpop.f32.mrf.mxu3 }
 0x3b9   :  { %v6380_v46 = vadd.f32 %v6379_v37, %v6366_v23 }
 0x3bb   :  { %vm6389_vm7 = vcmp.gt.f32.partialorder %v6380_v46, 0.0  ;;  %v6397_v9 = vmul.f32 0.01, %v6380_v46 }
 0x3bd   :  { %v6405_v45 = vsel %vm6389_vm7, %v6380_v46, %v6397_v9 }
 0x3be   :  { %v6409_v25 = vpack.c.bf16 %v6405_v45, %v6401_v61 }
 0x3c0   :  { %6720 = vmatmul.bf16.vlgmr.msrb.gmra.mxu3 %v6409_v25 }
 0x3c6   :  { %v6679_v47 = vpop.f32.mrf.mxu0 }
 0x3c7   :  { %v6680_v14 = vadd.f32 %v11018_v44, %v6679_v47  ;;  %v6693_v39 = vpop.f32.mrf.mxu1 }
 0x3c9   :  { %v6694_v53 = vadd.f32 %v6693_v39, %v6680_v14 }
 0x3ce   :  { %v6707_v49 = vpop.f32.mrf.mxu2  ;;  %v6681_v43 = vpop.f32.mrf.mxu0 }
 0x3cf   :  { %v6708_v33 = vadd.f32 %v6707_v49, %v6694_v53  ;;  %v6682_v13 = vadd.f32 %v11018_v44, %v6681_v43  ;;  %v6695_v15 = vpop.f32.mrf.mxu1 }
 0x3d1   :  { %v6696_v22 = vadd.f32 %v6695_v15, %v6682_v13 }
 0x3d6   :  { %v6709_v28 = vpop.f32.mrf.mxu2 }
 0x3d7   :  { %v6710_v0 = vadd.f32 %v6709_v28, %v6696_v22 }
 0x443   :  { %v6721_v34 = vpop.f32.mrf.mxu3 }
 0x444   :  { %v6722_v21 = vadd.f32 %v6721_v34, %v6708_v33 }
 0x446   :  { %6727 = vst.msk [vmem:[%s16601_s5] sm:$0xff] %vm6726_vm8, %v6722_v21 }
 0x44b   :  { %v6723_v20 = vpop.f32.mrf.mxu3 }
 0x44c   :  { %v6724_v2 = vadd.f32 %v6723_v20, %v6710_v0 }
 0x44e   :  { %6728 = vst.msk [vmem:[%s16601_s5 + $0x8] sm:$0xff] %vm6726_vm8, %v6724_v2 }

</bundles_post_ra>
